<compile_context>
chip_gen: v7x
topology: tpu7x:2x2x1
jax: 0.10.0
libtpu: 0.0.40
codegen_flags: <defaults>
</compile_context>

<pallas_src>
import jax
import jax.numpy as jnp
from jax import lax
from jax.experimental import pallas as pl
from jax.experimental.pallas import tpu as pltpu

_N_SWEEPS = 7            # cyclic Jacobi sweeps (8x8 converges in ~5)
_LANE = 128              # batch tile width (lane axis)
_TINY = 1e-30
_EPS2 = 1e-14            # relative skip: gamma^2 <= eps^2 * alpha * beta


def _round_robin_rounds(n):
    """Tournament schedule: (n-1) rounds of n//2 disjoint column pairs."""
    m = n if n % 2 == 0 else n + 1        # add a bye for odd n
    idx = list(range(m))
    rounds = []
    for _ in range(m - 1):
        rnd = []
        for k in range(m // 2):
            p, q = idx[k], idx[m - 1 - k]
            if p < n and q < n:
                rnd.append((min(p, q), max(p, q)))
        if rnd:
            rounds.append(rnd)
        idx = [idx[0]] + [idx[-1]] + idx[1:-1]
    return rounds


def _make_svd_kernel(n_dim: int, bt: int, n_sweeps: int):
    """Kernel computing the SVD of `bt` (n_dim x n_dim) matrices at once.

    Layout inside the kernel: every working array is (n_dim, bt) -- one matrix
    column across the whole batch tile, batch on the lane axis.  Input / U / V
    refs are (col, row, batch), so column p is the leading-dim slice [p].
    """
    rounds = _round_robin_rounds(n_dim)

    def kernel(a_ref, u_ref, sig_ref, v_ref):
        a = a_ref[...]                                   # (N, N, Bt): (col,row,b)

        # Per-column (N, Bt) slabs: leading-dim slices, no sublane shuffles.
        w_init = tuple(a[p] for p in range(n_dim))
        row_idx = lax.broadcasted_iota(jnp.int32, (n_dim, bt), 0)
        v_init = tuple(
            jnp.where(row_idx == p, 1.0, 0.0).astype(jnp.float32)
            for p in range(n_dim))
        # Initial squared column norms (tracked incrementally afterwards).
        nrm_init = tuple(
            jnp.sum(w_init[p] * w_init[p], axis=0, keepdims=True)
            for p in range(n_dim))

        def sweep(_, carry):
            wc = list(carry[0])
            vc = list(carry[1])
            nrm = list(carry[2])
            for rnd in rounds:                           # static unroll
                for (p, q) in rnd:                       # disjoint pairs: ILP
                    wp, wq = wc[p], wc[q]
                    al, be = nrm[p], nrm[q]
                    g = jnp.sum(wp * wq, axis=0, keepdims=True)   # only reduce
                    d = be - al
                    small = (g * g) <= (_EPS2 * (al * be))        # relative
                    sgn = jnp.where(d >= 0.0, 1.0, -1.0)
                    denom = jnp.abs(d) + jnp.sqrt(d * d + 4.0 * (g * g))
                    safe_denom = jnp.where(small, 1.0, denom)
                    t = jnp.where(small, 0.0, (2.0 * sgn * g) / safe_denom)
                    c = lax.rsqrt(1.0 + t * t)                    # EUP
                    s = c * t

                    # Incremental (Hestenes) column-norm update.
                    cc = c * c
                    ss = s * s
                    cs2 = 2.0 * (c * s)
                    nrm[p] = cc * al - cs2 * g + ss * be
                    nrm[q] = ss * al + cs2 * g + cc * be

                    # Hoist the (1,Bt)->(N,Bt) broadcasts once per pair.
                    cb = jnp.broadcast_to(c, (n_dim, bt))
                    sb = jnp.broadcast_to(s, (n_dim, bt))
                    wc[p] = cb * wp - sb * wq
                    wc[q] = sb * wp + cb * wq
                    vp, vq = vc[p], vc[q]
                    vc[p] = cb * vp - sb * vq
                    vc[q] = sb * vp + cb * vq
            return (tuple(wc), tuple(vc), tuple(nrm))

        w_cols, v_cols, nrm = lax.fori_loop(
            0, n_sweeps, sweep, (w_init, v_init, nrm_init))
        w_cols = list(w_cols)
        v_cols = list(v_cols)
        nrm = list(nrm)

        # Singular values and U columns from the tracked norms (no extra reduce).
        sig = []
        u_cols = []
        for p in range(n_dim):
            inv = lax.rsqrt(jnp.maximum(nrm[p], _TINY))           # EUP
            sig.append(nrm[p] * inv)                              # = sqrt(nrm)
            u_cols.append(w_cols[p] * jnp.broadcast_to(inv, (n_dim, bt)))
        # TODO(synk): rank-deficient inputs leave near-zero U columns here
        # (no orthogonal-complement completion as in torch.svd(some=False)).

        # In-kernel descending sort: odd-even transposition network over the
        # N singular values, permuting the matching U / V columns per lane.
        for rnd in range(n_dim):
            for i in range(rnd % 2, n_dim - 1, 2):
                swap = sig[i] < sig[i + 1]                        # (1, Bt) bool
                swap_b = jnp.broadcast_to(swap, (n_dim, bt))      # hoisted
                si, sj = sig[i], sig[i + 1]
                sig[i] = jnp.where(swap, sj, si)
                sig[i + 1] = jnp.where(swap, si, sj)
                ui, uj = u_cols[i], u_cols[i + 1]
                u_cols[i] = jnp.where(swap_b, uj, ui)
                u_cols[i + 1] = jnp.where(swap_b, ui, uj)
                vi, vj = v_cols[i], v_cols[i + 1]
                v_cols[i] = jnp.where(swap_b, vj, vi)
                v_cols[i + 1] = jnp.where(swap_b, vi, vj)

        # Leading-dim, lane-dense full-tile stores (no sublane re-layout).
        for p in range(n_dim):
            u_ref[p] = u_cols[p]
            v_ref[p] = v_cols[p]
        sig_ref[...] = jnp.concatenate(sig, axis=0)               # (N, Bt)

    return kernel


def svd_layer_forward(x):
    """Pallas implementation of SVDLayer.forward for square batched matrices."""
    x = jnp.asarray(x, dtype=jnp.float32)
    if x.ndim != 3 or x.shape[1] != x.shape[2]:
        raise NotImplementedError(
            "Pallas SVDLayer kernel currently supports square (n, N, N) inputs")
    n, N, _ = x.shape

    bt = _LANE
    n_pad = ((n + bt - 1) // bt) * bt
    n_sweeps = max(_N_SWEEPS, N - 1)

    # Layout (col, row, batch): kernel column slices / stores hit the leading
    # dim, batch lives on the lane axis, padded to the tile width.
    xt = jnp.transpose(x, (2, 1, 0))                              # (N, N, n)
    if n_pad != n:
        xt = jnp.pad(xt, ((0, 0), (0, 0), (0, n_pad - n)))

    kernel = _make_svd_kernel(N, bt, n_sweeps)
    mat_shape = jax.ShapeDtypeStruct((N, N, n_pad), jnp.float32)
    sig_shape = jax.ShapeDtypeStruct((N, n_pad), jnp.float32)
    mat_spec = pl.BlockSpec((N, N, bt), lambda i: (0, 0, i))
    sig_spec = pl.BlockSpec((N, bt), lambda i: (0, i))

    U_t, Sig_t, V_t = pl.pallas_call(
        kernel,
        out_shape=(mat_shape, sig_shape, mat_shape),              # U, sigma, V
        grid=(n_pad // bt,),
        in_specs=[mat_spec],
        out_specs=(mat_spec, sig_spec, mat_spec),
        compiler_params=pltpu.CompilerParams(
            dimension_semantics=("parallel",)),
    )(xt)

    # U_t[p, r, b] = U[b, r, p]  (column-major slabs) -> (n, N, N).
    U = jnp.transpose(U_t[:, :, :n], (2, 1, 0))
    V = jnp.transpose(V_t[:, :, :n], (2, 1, 0))
    sv = jnp.transpose(Sig_t[:, :n], (1, 0))                      # (n, N)
    # Diagonal S assembled in XLA (trivial) instead of a third dense output.
    S = sv[:, :, None] * jnp.eye(N, dtype=jnp.float32)[None, :, :]
    return U, S, V


if __name__ == "__main__":
    key = jax.random.PRNGKey(0)
    batch, dim = 2, 8
    x = jax.random.normal(key, (batch, dim, dim), dtype=jnp.float32)

    U, S, V = svd_layer_forward(x)
    jax.block_until_ready((U, S, V))

    # Correctness checks: reconstruction, orthogonality, sorted singular values.
    recon = jnp.einsum("bij,bjk,blk->bil", U, S, V)               # U @ S @ V^T
    recon_err = float(jnp.max(jnp.abs(recon - x)))
    eye = jnp.eye(dim, dtype=jnp.float32)
    u_err = float(jnp.max(jnp.abs(jnp.einsum("bji,bjk->bik", U, U) - eye)))
    v_err = float(jnp.max(jnp.abs(jnp.einsum("bji,bjk->bik", V, V) - eye)))
    sv = jnp.diagonal(S, axis1=1, axis2=2)
    desc = bool(jnp.all(sv[:, :-1] >= sv[:, 1:] - 1e-5))

    assert recon_err < 1e-3, f"reconstruction error too large: {recon_err}"
    assert u_err < 1e-3, f"U not orthogonal: {u_err}"
    assert v_err < 1e-3, f"V not orthogonal: {v_err}"
    assert desc, "singular values not sorted descending"

    print("KERNEL_OK")
</pallas_src>

<mosaic_0001>
module attributes {stable_mosaic.version = 11 : i64} {
  func.func @kernel(%arg0: i32, %arg1: memref<8x8x128xf32, #tpu.memory_space<vmem>>, %arg2: memref<8x8x128xf32, #tpu.memory_space<vmem>>, %arg3: memref<8x128xf32, #tpu.memory_space<vmem>>, %arg4: memref<8x8x128xf32, #tpu.memory_space<vmem>>) attributes {dimension_semantics = [#tpu.dimension_semantics<parallel>], iteration_bounds = array<i64: 1>, scalar_prefetch = 0 : i64, scratch_operands = 0 : i64, tpu.core_type = #tpu.core_type<tc>, window_params = [{transform_indices = @transform_0, window_bounds = array<i64: 8, 8, 128>}, {transform_indices = @transform_1, window_bounds = array<i64: 8, 8, 128>}, {transform_indices = @transform_2, window_bounds = array<i64: 8, 128>}, {transform_indices = @transform_3, window_bounds = array<i64: 8, 8, 128>}]} {
    %c0 = arith.constant 0 : index
    %c0_0 = arith.constant 0 : index
    %c0_1 = arith.constant 0 : index
    %0 = vector.load %arg1[%c0, %c0_0, %c0_1] : memref<8x8x128xf32, #tpu.memory_space<vmem>>, vector<8x8x128xf32>
    %1 = vector.extract_strided_slice %0 {offsets = [0, 0, 0], sizes = [1, 8, 128], strides = [1, 1, 1]} : vector<8x8x128xf32> to vector<1x8x128xf32>
    %2 = vector.shape_cast %1 : vector<1x8x128xf32> to vector<8x128xf32>
    %3 = vector.extract_strided_slice %0 {offsets = [1, 0, 0], sizes = [1, 8, 128], strides = [1, 1, 1]} : vector<8x8x128xf32> to vector<1x8x128xf32>
    %4 = vector.shape_cast %3 : vector<1x8x128xf32> to vector<8x128xf32>
    %5 = vector.extract_strided_slice %0 {offsets = [2, 0, 0], sizes = [1, 8, 128], strides = [1, 1, 1]} : vector<8x8x128xf32> to vector<1x8x128xf32>
    %6 = vector.shape_cast %5 : vector<1x8x128xf32> to vector<8x128xf32>
    %7 = vector.extract_strided_slice %0 {offsets = [3, 0, 0], sizes = [1, 8, 128], strides = [1, 1, 1]} : vector<8x8x128xf32> to vector<1x8x128xf32>
    %8 = vector.shape_cast %7 : vector<1x8x128xf32> to vector<8x128xf32>
    %9 = vector.extract_strided_slice %0 {offsets = [4, 0, 0], sizes = [1, 8, 128], strides = [1, 1, 1]} : vector<8x8x128xf32> to vector<1x8x128xf32>
    %10 = vector.shape_cast %9 : vector<1x8x128xf32> to vector<8x128xf32>
    %11 = vector.extract_strided_slice %0 {offsets = [5, 0, 0], sizes = [1, 8, 128], strides = [1, 1, 1]} : vector<8x8x128xf32> to vector<1x8x128xf32>
    %12 = vector.shape_cast %11 : vector<1x8x128xf32> to vector<8x128xf32>
    %13 = vector.extract_strided_slice %0 {offsets = [6, 0, 0], sizes = [1, 8, 128], strides = [1, 1, 1]} : vector<8x8x128xf32> to vector<1x8x128xf32>
    %14 = vector.shape_cast %13 : vector<1x8x128xf32> to vector<8x128xf32>
    %15 = vector.extract_strided_slice %0 {offsets = [7, 0, 0], sizes = [1, 8, 128], strides = [1, 1, 1]} : vector<8x8x128xf32> to vector<1x8x128xf32>
    %16 = vector.shape_cast %15 : vector<1x8x128xf32> to vector<8x128xf32>
    %17 = tpu.iota {dimensions = array<i32: 0>} : vector<8x128xi32>
    %c0_i32 = arith.constant 0 : i32
    %18 = vector.broadcast %c0_i32 : i32 to vector<8x128xi32>
    %19 = arith.cmpi eq, %17, %18 : vector<8x128xi32>
    %cst = arith.constant 1.000000e+00 : f32
    %cst_2 = arith.constant 0.000000e+00 : f32
    %20 = vector.broadcast %cst : f32 to vector<8x128xf32>
    %21 = vector.broadcast %cst_2 : f32 to vector<8x128xf32>
    %22 = arith.select %19, %20, %21 : vector<8x128xi1>, vector<8x128xf32>
    %c1_i32 = arith.constant 1 : i32
    %23 = vector.broadcast %c1_i32 : i32 to vector<8x128xi32>
    %24 = arith.cmpi eq, %17, %23 : vector<8x128xi32>
    %cst_3 = arith.constant 1.000000e+00 : f32
    %cst_4 = arith.constant 0.000000e+00 : f32
    %25 = vector.broadcast %cst_3 : f32 to vector<8x128xf32>
    %26 = vector.broadcast %cst_4 : f32 to vector<8x128xf32>
    %27 = arith.select %24, %25, %26 : vector<8x128xi1>, vector<8x128xf32>
    %c2_i32 = arith.constant 2 : i32
    %28 = vector.broadcast %c2_i32 : i32 to vector<8x128xi32>
    %29 = arith.cmpi eq, %17, %28 : vector<8x128xi32>
    %cst_5 = arith.constant 1.000000e+00 : f32
    %cst_6 = arith.constant 0.000000e+00 : f32
    %30 = vector.broadcast %cst_5 : f32 to vector<8x128xf32>
    %31 = vector.broadcast %cst_6 : f32 to vector<8x128xf32>
    %32 = arith.select %29, %30, %31 : vector<8x128xi1>, vector<8x128xf32>
    %c3_i32 = arith.constant 3 : i32
    %33 = vector.broadcast %c3_i32 : i32 to vector<8x128xi32>
    %34 = arith.cmpi eq, %17, %33 : vector<8x128xi32>
    %cst_7 = arith.constant 1.000000e+00 : f32
    %cst_8 = arith.constant 0.000000e+00 : f32
    %35 = vector.broadcast %cst_7 : f32 to vector<8x128xf32>
    %36 = vector.broadcast %cst_8 : f32 to vector<8x128xf32>
    %37 = arith.select %34, %35, %36 : vector<8x128xi1>, vector<8x128xf32>
    %c4_i32 = arith.constant 4 : i32
    %38 = vector.broadcast %c4_i32 : i32 to vector<8x128xi32>
    %39 = arith.cmpi eq, %17, %38 : vector<8x128xi32>
    %cst_9 = arith.constant 1.000000e+00 : f32
    %cst_10 = arith.constant 0.000000e+00 : f32
    %40 = vector.broadcast %cst_9 : f32 to vector<8x128xf32>
    %41 = vector.broadcast %cst_10 : f32 to vector<8x128xf32>
    %42 = arith.select %39, %40, %41 : vector<8x128xi1>, vector<8x128xf32>
    %c5_i32 = arith.constant 5 : i32
    %43 = vector.broadcast %c5_i32 : i32 to vector<8x128xi32>
    %44 = arith.cmpi eq, %17, %43 : vector<8x128xi32>
    %cst_11 = arith.constant 1.000000e+00 : f32
    %cst_12 = arith.constant 0.000000e+00 : f32
    %45 = vector.broadcast %cst_11 : f32 to vector<8x128xf32>
    %46 = vector.broadcast %cst_12 : f32 to vector<8x128xf32>
    %47 = arith.select %44, %45, %46 : vector<8x128xi1>, vector<8x128xf32>
    %c6_i32 = arith.constant 6 : i32
    %48 = vector.broadcast %c6_i32 : i32 to vector<8x128xi32>
    %49 = arith.cmpi eq, %17, %48 : vector<8x128xi32>
    %cst_13 = arith.constant 1.000000e+00 : f32
    %cst_14 = arith.constant 0.000000e+00 : f32
    %50 = vector.broadcast %cst_13 : f32 to vector<8x128xf32>
    %51 = vector.broadcast %cst_14 : f32 to vector<8x128xf32>
    %52 = arith.select %49, %50, %51 : vector<8x128xi1>, vector<8x128xf32>
    %c7_i32 = arith.constant 7 : i32
    %53 = vector.broadcast %c7_i32 : i32 to vector<8x128xi32>
    %54 = arith.cmpi eq, %17, %53 : vector<8x128xi32>
    %cst_15 = arith.constant 1.000000e+00 : f32
    %cst_16 = arith.constant 0.000000e+00 : f32
    %55 = vector.broadcast %cst_15 : f32 to vector<8x128xf32>
    %56 = vector.broadcast %cst_16 : f32 to vector<8x128xf32>
    %57 = arith.select %54, %55, %56 : vector<8x128xi1>, vector<8x128xf32>
    %58 = arith.mulf %2, %2 : vector<8x128xf32>
    %cst_17 = arith.constant dense<0.000000e+00> : vector<128xf32>
    %59 = vector.multi_reduction <add>, %58, %cst_17 [0] : vector<8x128xf32> to vector<128xf32>
    %60 = vector.shape_cast %59 : vector<128xf32> to vector<1x128xf32>
    %61 = arith.mulf %4, %4 : vector<8x128xf32>
    %cst_18 = arith.constant dense<0.000000e+00> : vector<128xf32>
    %62 = vector.multi_reduction <add>, %61, %cst_18 [0] : vector<8x128xf32> to vector<128xf32>
    %63 = vector.shape_cast %62 : vector<128xf32> to vector<1x128xf32>
    %64 = arith.mulf %6, %6 : vector<8x128xf32>
    %cst_19 = arith.constant dense<0.000000e+00> : vector<128xf32>
    %65 = vector.multi_reduction <add>, %64, %cst_19 [0] : vector<8x128xf32> to vector<128xf32>
    %66 = vector.shape_cast %65 : vector<128xf32> to vector<1x128xf32>
    %67 = arith.mulf %8, %8 : vector<8x128xf32>
    %cst_20 = arith.constant dense<0.000000e+00> : vector<128xf32>
    %68 = vector.multi_reduction <add>, %67, %cst_20 [0] : vector<8x128xf32> to vector<128xf32>
    %69 = vector.shape_cast %68 : vector<128xf32> to vector<1x128xf32>
    %70 = arith.mulf %10, %10 : vector<8x128xf32>
    %cst_21 = arith.constant dense<0.000000e+00> : vector<128xf32>
    %71 = vector.multi_reduction <add>, %70, %cst_21 [0] : vector<8x128xf32> to vector<128xf32>
    %72 = vector.shape_cast %71 : vector<128xf32> to vector<1x128xf32>
    %73 = arith.mulf %12, %12 : vector<8x128xf32>
    %cst_22 = arith.constant dense<0.000000e+00> : vector<128xf32>
    %74 = vector.multi_reduction <add>, %73, %cst_22 [0] : vector<8x128xf32> to vector<128xf32>
    %75 = vector.shape_cast %74 : vector<128xf32> to vector<1x128xf32>
    %76 = arith.mulf %14, %14 : vector<8x128xf32>
    %cst_23 = arith.constant dense<0.000000e+00> : vector<128xf32>
    %77 = vector.multi_reduction <add>, %76, %cst_23 [0] : vector<8x128xf32> to vector<128xf32>
    %78 = vector.shape_cast %77 : vector<128xf32> to vector<1x128xf32>
    %79 = arith.mulf %16, %16 : vector<8x128xf32>
    %cst_24 = arith.constant dense<0.000000e+00> : vector<128xf32>
    %80 = vector.multi_reduction <add>, %79, %cst_24 [0] : vector<8x128xf32> to vector<128xf32>
    %81 = vector.shape_cast %80 : vector<128xf32> to vector<1x128xf32>
    %c0_i32_25 = arith.constant 0 : i32
    %c7_i32_26 = arith.constant 7 : i32
    %82 = arith.addi %c0_i32_25, %c7_i32_26 : i32
    %c1_i32_27 = arith.constant 1 : i32
    %83:24 = scf.for %arg5 = %c0_i32_25 to %82 step %c1_i32_27 iter_args(%arg6 = %2, %arg7 = %4, %arg8 = %6, %arg9 = %8, %arg10 = %10, %arg11 = %12, %arg12 = %14, %arg13 = %16, %arg14 = %22, %arg15 = %27, %arg16 = %32, %arg17 = %37, %arg18 = %42, %arg19 = %47, %arg20 = %52, %arg21 = %57, %arg22 = %60, %arg23 = %63, %arg24 = %66, %arg25 = %69, %arg26 = %72, %arg27 = %75, %arg28 = %78, %arg29 = %81) -> (vector<8x128xf32>, vector<8x128xf32>, vector<8x128xf32>, vector<8x128xf32>, vector<8x128xf32>, vector<8x128xf32>, vector<8x128xf32>, vector<8x128xf32>, vector<8x128xf32>, vector<8x128xf32>, vector<8x128xf32>, vector<8x128xf32>, vector<8x128xf32>, vector<8x128xf32>, vector<8x128xf32>, vector<8x128xf32>, vector<1x128xf32>, vector<1x128xf32>, vector<1x128xf32>, vector<1x128xf32>, vector<1x128xf32>, vector<1x128xf32>, vector<1x128xf32>, vector<1x128xf32>)  : i32 {
      %442 = arith.mulf %arg6, %arg13 : vector<8x128xf32>
      %cst_79 = arith.constant dense<0.000000e+00> : vector<128xf32>
      %443 = vector.multi_reduction <add>, %442, %cst_79 [0] : vector<8x128xf32> to vector<128xf32>
      %444 = vector.shape_cast %443 : vector<128xf32> to vector<1x128xf32>
      %445 = arith.subf %arg29, %arg22 : vector<1x128xf32>
      %446 = arith.mulf %444, %444 : vector<1x128xf32>
      %447 = arith.mulf %arg22, %arg29 : vector<1x128xf32>
      %cst_80 = arith.constant 9.99999982E-15 : f32
      %448 = vector.broadcast %cst_80 : f32 to vector<1x128xf32>
      %449 = arith.mulf %448, %447 : vector<1x128xf32>
      %450 = arith.cmpf ole, %446, %449 : vector<1x128xf32>
      %cst_81 = arith.constant 0.000000e+00 : f32
      %451 = vector.broadcast %cst_81 : f32 to vector<1x128xf32>
      %452 = arith.cmpf oge, %445, %451 : vector<1x128xf32>
      %cst_82 = arith.constant 1.000000e+00 : f32
      %cst_83 = arith.constant -1.000000e+00 : f32
      %453 = vector.broadcast %cst_82 : f32 to vector<1x128xf32>
      %454 = vector.broadcast %cst_83 : f32 to vector<1x128xf32>
      %455 = arith.select %452, %453, %454 : vector<1x128xi1>, vector<1x128xf32>
      %456 = math.absf %445 : vector<1x128xf32>
      %457 = arith.mulf %445, %445 : vector<1x128xf32>
      %458 = arith.mulf %444, %444 : vector<1x128xf32>
      %cst_84 = arith.constant 4.000000e+00 : f32
      %459 = vector.broadcast %cst_84 : f32 to vector<1x128xf32>
      %460 = arith.mulf %459, %458 : vector<1x128xf32>
      %461 = arith.addf %457, %460 : vector<1x128xf32>
      %462 = math.sqrt %461 : vector<1x128xf32>
      %463 = arith.addf %456, %462 : vector<1x128xf32>
      %cst_85 = arith.constant 1.000000e+00 : f32
      %464 = vector.broadcast %cst_85 : f32 to vector<1x128xf32>
      %465 = arith.select %450, %464, %463 : vector<1x128xi1>, vector<1x128xf32>
      %cst_86 = arith.constant 2.000000e+00 : f32
      %466 = vector.broadcast %cst_86 : f32 to vector<1x128xf32>
      %467 = arith.mulf %466, %455 : vector<1x128xf32>
      %468 = arith.mulf %467, %444 : vector<1x128xf32>
      %469 = arith.divf %468, %465 : vector<1x128xf32>
      %cst_87 = arith.constant 0.000000e+00 : f32
      %470 = vector.broadcast %cst_87 : f32 to vector<1x128xf32>
      %471 = arith.select %450, %470, %469 : vector<1x128xi1>, vector<1x128xf32>
      %472 = arith.mulf %471, %471 : vector<1x128xf32>
      %cst_88 = arith.constant 1.000000e+00 : f32
      %473 = vector.broadcast %cst_88 : f32 to vector<1x128xf32>
      %474 = arith.addf %473, %472 : vector<1x128xf32>
      %475 = math.rsqrt %474 : vector<1x128xf32>
      %476 = arith.mulf %475, %471 : vector<1x128xf32>
      %477 = arith.mulf %475, %475 : vector<1x128xf32>
      %478 = arith.mulf %476, %476 : vector<1x128xf32>
      %479 = arith.mulf %475, %476 : vector<1x128xf32>
      %cst_89 = arith.constant 2.000000e+00 : f32
      %480 = vector.broadcast %cst_89 : f32 to vector<1x128xf32>
      %481 = arith.mulf %480, %479 : vector<1x128xf32>
      %482 = arith.mulf %477, %arg22 : vector<1x128xf32>
      %483 = arith.mulf %481, %444 : vector<1x128xf32>
      %484 = arith.subf %482, %483 : vector<1x128xf32>
      %485 = arith.mulf %478, %arg29 : vector<1x128xf32>
      %486 = arith.addf %484, %485 : vector<1x128xf32>
      %487 = arith.mulf %478, %arg22 : vector<1x128xf32>
      %488 = arith.mulf %481, %444 : vector<1x128xf32>
      %489 = arith.addf %487, %488 : vector<1x128xf32>
      %490 = arith.mulf %477, %arg29 : vector<1x128xf32>
      %491 = arith.addf %489, %490 : vector<1x128xf32>
      %492 = vector.shape_cast %475 : vector<1x128xf32> to vector<1x128xf32>
      %493 = vector.broadcast %492 : vector<1x128xf32> to vector<8x128xf32>
      %494 = vector.shape_cast %476 : vector<1x128xf32> to vector<1x128xf32>
      %495 = vector.broadcast %494 : vector<1x128xf32> to vector<8x128xf32>
      %496 = arith.mulf %493, %arg6 : vector<8x128xf32>
      %497 = arith.mulf %495, %arg13 : vector<8x128xf32>
      %498 = arith.subf %496, %497 : vector<8x128xf32>
      %499 = arith.mulf %495, %arg6 : vector<8x128xf32>
      %500 = arith.mulf %493, %arg13 : vector<8x128xf32>
      %501 = arith.addf %499, %500 : vector<8x128xf32>
      %502 = arith.mulf %493, %arg14 : vector<8x128xf32>
      %503 = arith.mulf %495, %arg21 : vector<8x128xf32>
      %504 = arith.subf %502, %503 : vector<8x128xf32>
      %505 = arith.mulf %495, %arg14 : vector<8x128xf32>
      %506 = arith.mulf %493, %arg21 : vector<8x128xf32>
      %507 = arith.addf %505, %506 : vector<8x128xf32>
      %508 = arith.mulf %arg7, %arg12 : vector<8x128xf32>
      %cst_90 = arith.constant dense<0.000000e+00> : vector<128xf32>
      %509 = vector.multi_reduction <add>, %508, %cst_90 [0] : vector<8x128xf32> to vector<128xf32>
      %510 = vector.shape_cast %509 : vector<128xf32> to vector<1x128xf32>
      %511 = arith.subf %arg28, %arg23 : vector<1x128xf32>
      %512 = arith.mulf %510, %510 : vector<1x128xf32>
      %513 = arith.mulf %arg23, %arg28 : vector<1x128xf32>
      %cst_91 = arith.constant 9.99999982E-15 : f32
      %514 = vector.broadcast %cst_91 : f32 to vector<1x128xf32>
      %515 = arith.mulf %514, %513 : vector<1x128xf32>
      %516 = arith.cmpf ole, %512, %515 : vector<1x128xf32>
      %cst_92 = arith.constant 0.000000e+00 : f32
      %517 = vector.broadcast %cst_92 : f32 to vector<1x128xf32>
      %518 = arith.cmpf oge, %511, %517 : vector<1x128xf32>
      %cst_93 = arith.constant 1.000000e+00 : f32
      %cst_94 = arith.constant -1.000000e+00 : f32
      %519 = vector.broadcast %cst_93 : f32 to vector<1x128xf32>
      %520 = vector.broadcast %cst_94 : f32 to vector<1x128xf32>
      %521 = arith.select %518, %519, %520 : vector<1x128xi1>, vector<1x128xf32>
      %522 = math.absf %511 : vector<1x128xf32>
      %523 = arith.mulf %511, %511 : vector<1x128xf32>
      %524 = arith.mulf %510, %510 : vector<1x128xf32>
      %cst_95 = arith.constant 4.000000e+00 : f32
      %525 = vector.broadcast %cst_95 : f32 to vector<1x128xf32>
      %526 = arith.mulf %525, %524 : vector<1x128xf32>
      %527 = arith.addf %523, %526 : vector<1x128xf32>
      %528 = math.sqrt %527 : vector<1x128xf32>
      %529 = arith.addf %522, %528 : vector<1x128xf32>
      %cst_96 = arith.constant 1.000000e+00 : f32
      %530 = vector.broadcast %cst_96 : f32 to vector<1x128xf32>
      %531 = arith.select %516, %530, %529 : vector<1x128xi1>, vector<1x128xf32>
      %cst_97 = arith.constant 2.000000e+00 : f32
      %532 = vector.broadcast %cst_97 : f32 to vector<1x128xf32>
      %533 = arith.mulf %532, %521 : vector<1x128xf32>
      %534 = arith.mulf %533, %510 : vector<1x128xf32>
      %535 = arith.divf %534, %531 : vector<1x128xf32>
      %cst_98 = arith.constant 0.000000e+00 : f32
      %536 = vector.broadcast %cst_98 : f32 to vector<1x128xf32>
      %537 = arith.select %516, %536, %535 : vector<1x128xi1>, vector<1x128xf32>
      %538 = arith.mulf %537, %537 : vector<1x128xf32>
      %cst_99 = arith.constant 1.000000e+00 : f32
      %539 = vector.broadcast %cst_99 : f32 to vector<1x128xf32>
      %540 = arith.addf %539, %538 : vector<1x128xf32>
      %541 = math.rsqrt %540 : vector<1x128xf32>
      %542 = arith.mulf %541, %537 : vector<1x128xf32>
      %543 = arith.mulf %541, %541 : vector<1x128xf32>
      %544 = arith.mulf %542, %542 : vector<1x128xf32>
      %545 = arith.mulf %541, %542 : vector<1x128xf32>
      %cst_100 = arith.constant 2.000000e+00 : f32
      %546 = vector.broadcast %cst_100 : f32 to vector<1x128xf32>
      %547 = arith.mulf %546, %545 : vector<1x128xf32>
      %548 = arith.mulf %543, %arg23 : vector<1x128xf32>
      %549 = arith.mulf %547, %510 : vector<1x128xf32>
      %550 = arith.subf %548, %549 : vector<1x128xf32>
      %551 = arith.mulf %544, %arg28 : vector<1x128xf32>
      %552 = arith.addf %550, %551 : vector<1x128xf32>
      %553 = arith.mulf %544, %arg23 : vector<1x128xf32>
      %554 = arith.mulf %547, %510 : vector<1x128xf32>
      %555 = arith.addf %553, %554 : vector<1x128xf32>
      %556 = arith.mulf %543, %arg28 : vector<1x128xf32>
      %557 = arith.addf %555, %556 : vector<1x128xf32>
      %558 = vector.shape_cast %541 : vector<1x128xf32> to vector<1x128xf32>
      %559 = vector.broadcast %558 : vector<1x128xf32> to vector<8x128xf32>
      %560 = vector.shape_cast %542 : vector<1x128xf32> to vector<1x128xf32>
      %561 = vector.broadcast %560 : vector<1x128xf32> to vector<8x128xf32>
      %562 = arith.mulf %559, %arg7 : vector<8x128xf32>
      %563 = arith.mulf %561, %arg12 : vector<8x128xf32>
      %564 = arith.subf %562, %563 : vector<8x128xf32>
      %565 = arith.mulf %561, %arg7 : vector<8x128xf32>
      %566 = arith.mulf %559, %arg12 : vector<8x128xf32>
      %567 = arith.addf %565, %566 : vector<8x128xf32>
      %568 = arith.mulf %559, %arg15 : vector<8x128xf32>
      %569 = arith.mulf %561, %arg20 : vector<8x128xf32>
      %570 = arith.subf %568, %569 : vector<8x128xf32>
      %571 = arith.mulf %561, %arg15 : vector<8x128xf32>
      %572 = arith.mulf %559, %arg20 : vector<8x128xf32>
      %573 = arith.addf %571, %572 : vector<8x128xf32>
      %574 = arith.mulf %arg8, %arg11 : vector<8x128xf32>
      %cst_101 = arith.constant dense<0.000000e+00> : vector<128xf32>
      %575 = vector.multi_reduction <add>, %574, %cst_101 [0] : vector<8x128xf32> to vector<128xf32>
      %576 = vector.shape_cast %575 : vector<128xf32> to vector<1x128xf32>
      %577 = arith.subf %arg27, %arg24 : vector<1x128xf32>
      %578 = arith.mulf %576, %576 : vector<1x128xf32>
      %579 = arith.mulf %arg24, %arg27 : vector<1x128xf32>
      %cst_102 = arith.constant 9.99999982E-15 : f32
      %580 = vector.broadcast %cst_102 : f32 to vector<1x128xf32>
      %581 = arith.mulf %580, %579 : vector<1x128xf32>
      %582 = arith.cmpf ole, %578, %581 : vector<1x128xf32>
      %cst_103 = arith.constant 0.000000e+00 : f32
      %583 = vector.broadcast %cst_103 : f32 to vector<1x128xf32>
      %584 = arith.cmpf oge, %577, %583 : vector<1x128xf32>
      %cst_104 = arith.constant 1.000000e+00 : f32
      %cst_105 = arith.constant -1.000000e+00 : f32
      %585 = vector.broadcast %cst_104 : f32 to vector<1x128xf32>
      %586 = vector.broadcast %cst_105 : f32 to vector<1x128xf32>
      %587 = arith.select %584, %585, %586 : vector<1x128xi1>, vector<1x128xf32>
      %588 = math.absf %577 : vector<1x128xf32>
      %589 = arith.mulf %577, %577 : vector<1x128xf32>
      %590 = arith.mulf %576, %576 : vector<1x128xf32>
      %cst_106 = arith.constant 4.000000e+00 : f32
      %591 = vector.broadcast %cst_106 : f32 to vector<1x128xf32>
      %592 = arith.mulf %591, %590 : vector<1x128xf32>
      %593 = arith.addf %589, %592 : vector<1x128xf32>
      %594 = math.sqrt %593 : vector<1x128xf32>
      %595 = arith.addf %588, %594 : vector<1x128xf32>
      %cst_107 = arith.constant 1.000000e+00 : f32
      %596 = vector.broadcast %cst_107 : f32 to vector<1x128xf32>
      %597 = arith.select %582, %596, %595 : vector<1x128xi1>, vector<1x128xf32>
      %cst_108 = arith.constant 2.000000e+00 : f32
      %598 = vector.broadcast %cst_108 : f32 to vector<1x128xf32>
      %599 = arith.mulf %598, %587 : vector<1x128xf32>
      %600 = arith.mulf %599, %576 : vector<1x128xf32>
      %601 = arith.divf %600, %597 : vector<1x128xf32>
      %cst_109 = arith.constant 0.000000e+00 : f32
      %602 = vector.broadcast %cst_109 : f32 to vector<1x128xf32>
      %603 = arith.select %582, %602, %601 : vector<1x128xi1>, vector<1x128xf32>
      %604 = arith.mulf %603, %603 : vector<1x128xf32>
      %cst_110 = arith.constant 1.000000e+00 : f32
      %605 = vector.broadcast %cst_110 : f32 to vector<1x128xf32>
      %606 = arith.addf %605, %604 : vector<1x128xf32>
      %607 = math.rsqrt %606 : vector<1x128xf32>
      %608 = arith.mulf %607, %603 : vector<1x128xf32>
      %609 = arith.mulf %607, %607 : vector<1x128xf32>
      %610 = arith.mulf %608, %608 : vector<1x128xf32>
      %611 = arith.mulf %607, %608 : vector<1x128xf32>
      %cst_111 = arith.constant 2.000000e+00 : f32
      %612 = vector.broadcast %cst_111 : f32 to vector<1x128xf32>
      %613 = arith.mulf %612, %611 : vector<1x128xf32>
      %614 = arith.mulf %609, %arg24 : vector<1x128xf32>
      %615 = arith.mulf %613, %576 : vector<1x128xf32>
      %616 = arith.subf %614, %615 : vector<1x128xf32>
      %617 = arith.mulf %610, %arg27 : vector<1x128xf32>
      %618 = arith.addf %616, %617 : vector<1x128xf32>
      %619 = arith.mulf %610, %arg24 : vector<1x128xf32>
      %620 = arith.mulf %613, %576 : vector<1x128xf32>
      %621 = arith.addf %619, %620 : vector<1x128xf32>
      %622 = arith.mulf %609, %arg27 : vector<1x128xf32>
      %623 = arith.addf %621, %622 : vector<1x128xf32>
      %624 = vector.shape_cast %607 : vector<1x128xf32> to vector<1x128xf32>
      %625 = vector.broadcast %624 : vector<1x128xf32> to vector<8x128xf32>
      %626 = vector.shape_cast %608 : vector<1x128xf32> to vector<1x128xf32>
      %627 = vector.broadcast %626 : vector<1x128xf32> to vector<8x128xf32>
      %628 = arith.mulf %625, %arg8 : vector<8x128xf32>
      %629 = arith.mulf %627, %arg11 : vector<8x128xf32>
      %630 = arith.subf %628, %629 : vector<8x128xf32>
      %631 = arith.mulf %627, %arg8 : vector<8x128xf32>
      %632 = arith.mulf %625, %arg11 : vector<8x128xf32>
      %633 = arith.addf %631, %632 : vector<8x128xf32>
      %634 = arith.mulf %625, %arg16 : vector<8x128xf32>
      %635 = arith.mulf %627, %arg19 : vector<8x128xf32>
      %636 = arith.subf %634, %635 : vector<8x128xf32>
      %637 = arith.mulf %627, %arg16 : vector<8x128xf32>
      %638 = arith.mulf %625, %arg19 : vector<8x128xf32>
      %639 = arith.addf %637, %638 : vector<8x128xf32>
      %640 = arith.mulf %arg9, %arg10 : vector<8x128xf32>
      %cst_112 = arith.constant dense<0.000000e+00> : vector<128xf32>
      %641 = vector.multi_reduction <add>, %640, %cst_112 [0] : vector<8x128xf32> to vector<128xf32>
      %642 = vector.shape_cast %641 : vector<128xf32> to vector<1x128xf32>
      %643 = arith.subf %arg26, %arg25 : vector<1x128xf32>
      %644 = arith.mulf %642, %642 : vector<1x128xf32>
      %645 = arith.mulf %arg25, %arg26 : vector<1x128xf32>
      %cst_113 = arith.constant 9.99999982E-15 : f32
      %646 = vector.broadcast %cst_113 : f32 to vector<1x128xf32>
      %647 = arith.mulf %646, %645 : vector<1x128xf32>
      %648 = arith.cmpf ole, %644, %647 : vector<1x128xf32>
      %cst_114 = arith.constant 0.000000e+00 : f32
      %649 = vector.broadcast %cst_114 : f32 to vector<1x128xf32>
      %650 = arith.cmpf oge, %643, %649 : vector<1x128xf32>
      %cst_115 = arith.constant 1.000000e+00 : f32
      %cst_116 = arith.constant -1.000000e+00 : f32
      %651 = vector.broadcast %cst_115 : f32 to vector<1x128xf32>
      %652 = vector.broadcast %cst_116 : f32 to vector<1x128xf32>
      %653 = arith.select %650, %651, %652 : vector<1x128xi1>, vector<1x128xf32>
      %654 = math.absf %643 : vector<1x128xf32>
      %655 = arith.mulf %643, %643 : vector<1x128xf32>
      %656 = arith.mulf %642, %642 : vector<1x128xf32>
      %cst_117 = arith.constant 4.000000e+00 : f32
      %657 = vector.broadcast %cst_117 : f32 to vector<1x128xf32>
      %658 = arith.mulf %657, %656 : vector<1x128xf32>
      %659 = arith.addf %655, %658 : vector<1x128xf32>
      %660 = math.sqrt %659 : vector<1x128xf32>
      %661 = arith.addf %654, %660 : vector<1x128xf32>
      %cst_118 = arith.constant 1.000000e+00 : f32
      %662 = vector.broadcast %cst_118 : f32 to vector<1x128xf32>
      %663 = arith.select %648, %662, %661 : vector<1x128xi1>, vector<1x128xf32>
      %cst_119 = arith.constant 2.000000e+00 : f32
      %664 = vector.broadcast %cst_119 : f32 to vector<1x128xf32>
      %665 = arith.mulf %664, %653 : vector<1x128xf32>
      %666 = arith.mulf %665, %642 : vector<1x128xf32>
      %667 = arith.divf %666, %663 : vector<1x128xf32>
      %cst_120 = arith.constant 0.000000e+00 : f32
      %668 = vector.broadcast %cst_120 : f32 to vector<1x128xf32>
      %669 = arith.select %648, %668, %667 : vector<1x128xi1>, vector<1x128xf32>
      %670 = arith.mulf %669, %669 : vector<1x128xf32>
      %cst_121 = arith.constant 1.000000e+00 : f32
      %671 = vector.broadcast %cst_121 : f32 to vector<1x128xf32>
      %672 = arith.addf %671, %670 : vector<1x128xf32>
      %673 = math.rsqrt %672 : vector<1x128xf32>
      %674 = arith.mulf %673, %669 : vector<1x128xf32>
      %675 = arith.mulf %673, %673 : vector<1x128xf32>
      %676 = arith.mulf %674, %674 : vector<1x128xf32>
      %677 = arith.mulf %673, %674 : vector<1x128xf32>
      %cst_122 = arith.constant 2.000000e+00 : f32
      %678 = vector.broadcast %cst_122 : f32 to vector<1x128xf32>
      %679 = arith.mulf %678, %677 : vector<1x128xf32>
      %680 = arith.mulf %675, %arg25 : vector<1x128xf32>
      %681 = arith.mulf %679, %642 : vector<1x128xf32>
      %682 = arith.subf %680, %681 : vector<1x128xf32>
      %683 = arith.mulf %676, %arg26 : vector<1x128xf32>
      %684 = arith.addf %682, %683 : vector<1x128xf32>
      %685 = arith.mulf %676, %arg25 : vector<1x128xf32>
      %686 = arith.mulf %679, %642 : vector<1x128xf32>
      %687 = arith.addf %685, %686 : vector<1x128xf32>
      %688 = arith.mulf %675, %arg26 : vector<1x128xf32>
      %689 = arith.addf %687, %688 : vector<1x128xf32>
      %690 = vector.shape_cast %673 : vector<1x128xf32> to vector<1x128xf32>
      %691 = vector.broadcast %690 : vector<1x128xf32> to vector<8x128xf32>
      %692 = vector.shape_cast %674 : vector<1x128xf32> to vector<1x128xf32>
      %693 = vector.broadcast %692 : vector<1x128xf32> to vector<8x128xf32>
      %694 = arith.mulf %691, %arg9 : vector<8x128xf32>
      %695 = arith.mulf %693, %arg10 : vector<8x128xf32>
      %696 = arith.subf %694, %695 : vector<8x128xf32>
      %697 = arith.mulf %693, %arg9 : vector<8x128xf32>
      %698 = arith.mulf %691, %arg10 : vector<8x128xf32>
      %699 = arith.addf %697, %698 : vector<8x128xf32>
      %700 = arith.mulf %691, %arg17 : vector<8x128xf32>
      %701 = arith.mulf %693, %arg18 : vector<8x128xf32>
      %702 = arith.subf %700, %701 : vector<8x128xf32>
      %703 = arith.mulf %693, %arg17 : vector<8x128xf32>
      %704 = arith.mulf %691, %arg18 : vector<8x128xf32>
      %705 = arith.addf %703, %704 : vector<8x128xf32>
      %706 = arith.mulf %498, %567 : vector<8x128xf32>
      %cst_123 = arith.constant dense<0.000000e+00> : vector<128xf32>
      %707 = vector.multi_reduction <add>, %706, %cst_123 [0] : vector<8x128xf32> to vector<128xf32>
      %708 = vector.shape_cast %707 : vector<128xf32> to vector<1x128xf32>
      %709 = arith.subf %557, %486 : vector<1x128xf32>
      %710 = arith.mulf %708, %708 : vector<1x128xf32>
      %711 = arith.mulf %486, %557 : vector<1x128xf32>
      %cst_124 = arith.constant 9.99999982E-15 : f32
      %712 = vector.broadcast %cst_124 : f32 to vector<1x128xf32>
      %713 = arith.mulf %712, %711 : vector<1x128xf32>
      %714 = arith.cmpf ole, %710, %713 : vector<1x128xf32>
      %cst_125 = arith.constant 0.000000e+00 : f32
      %715 = vector.broadcast %cst_125 : f32 to vector<1x128xf32>
      %716 = arith.cmpf oge, %709, %715 : vector<1x128xf32>
      %cst_126 = arith.constant 1.000000e+00 : f32
      %cst_127 = arith.constant -1.000000e+00 : f32
      %717 = vector.broadcast %cst_126 : f32 to vector<1x128xf32>
      %718 = vector.broadcast %cst_127 : f32 to vector<1x128xf32>
      %719 = arith.select %716, %717, %718 : vector<1x128xi1>, vector<1x128xf32>
      %720 = math.absf %709 : vector<1x128xf32>
      %721 = arith.mulf %709, %709 : vector<1x128xf32>
      %722 = arith.mulf %708, %708 : vector<1x128xf32>
      %cst_128 = arith.constant 4.000000e+00 : f32
      %723 = vector.broadcast %cst_128 : f32 to vector<1x128xf32>
      %724 = arith.mulf %723, %722 : vector<1x128xf32>
      %725 = arith.addf %721, %724 : vector<1x128xf32>
      %726 = math.sqrt %725 : vector<1x128xf32>
      %727 = arith.addf %720, %726 : vector<1x128xf32>
      %cst_129 = arith.constant 1.000000e+00 : f32
      %728 = vector.broadcast %cst_129 : f32 to vector<1x128xf32>
      %729 = arith.select %714, %728, %727 : vector<1x128xi1>, vector<1x128xf32>
      %cst_130 = arith.constant 2.000000e+00 : f32
      %730 = vector.broadcast %cst_130 : f32 to vector<1x128xf32>
      %731 = arith.mulf %730, %719 : vector<1x128xf32>
      %732 = arith.mulf %731, %708 : vector<1x128xf32>
      %733 = arith.divf %732, %729 : vector<1x128xf32>
      %cst_131 = arith.constant 0.000000e+00 : f32
      %734 = vector.broadcast %cst_131 : f32 to vector<1x128xf32>
      %735 = arith.select %714, %734, %733 : vector<1x128xi1>, vector<1x128xf32>
      %736 = arith.mulf %735, %735 : vector<1x128xf32>
      %cst_132 = arith.constant 1.000000e+00 : f32
      %737 = vector.broadcast %cst_132 : f32 to vector<1x128xf32>
      %738 = arith.addf %737, %736 : vector<1x128xf32>
      %739 = math.rsqrt %738 : vector<1x128xf32>
      %740 = arith.mulf %739, %735 : vector<1x128xf32>
      %741 = arith.mulf %739, %739 : vector<1x128xf32>
      %742 = arith.mulf %740, %740 : vector<1x128xf32>
      %743 = arith.mulf %739, %740 : vector<1x128xf32>
      %cst_133 = arith.constant 2.000000e+00 : f32
      %744 = vector.broadcast %cst_133 : f32 to vector<1x128xf32>
      %745 = arith.mulf %744, %743 : vector<1x128xf32>
      %746 = arith.mulf %741, %486 : vector<1x128xf32>
      %747 = arith.mulf %745, %708 : vector<1x128xf32>
      %748 = arith.subf %746, %747 : vector<1x128xf32>
      %749 = arith.mulf %742, %557 : vector<1x128xf32>
      %750 = arith.addf %748, %749 : vector<1x128xf32>
      %751 = arith.mulf %742, %486 : vector<1x128xf32>
      %752 = arith.mulf %745, %708 : vector<1x128xf32>
      %753 = arith.addf %751, %752 : vector<1x128xf32>
      %754 = arith.mulf %741, %557 : vector<1x128xf32>
      %755 = arith.addf %753, %754 : vector<1x128xf32>
      %756 = vector.shape_cast %739 : vector<1x128xf32> to vector<1x128xf32>
      %757 = vector.broadcast %756 : vector<1x128xf32> to vector<8x128xf32>
      %758 = vector.shape_cast %740 : vector<1x128xf32> to vector<1x128xf32>
      %759 = vector.broadcast %758 : vector<1x128xf32> to vector<8x128xf32>
      %760 = arith.mulf %757, %498 : vector<8x128xf32>
      %761 = arith.mulf %759, %567 : vector<8x128xf32>
      %762 = arith.subf %760, %761 : vector<8x128xf32>
      %763 = arith.mulf %759, %498 : vector<8x128xf32>
      %764 = arith.mulf %757, %567 : vector<8x128xf32>
      %765 = arith.addf %763, %764 : vector<8x128xf32>
      %766 = arith.mulf %757, %504 : vector<8x128xf32>
      %767 = arith.mulf %759, %573 : vector<8x128xf32>
      %768 = arith.subf %766, %767 : vector<8x128xf32>
      %769 = arith.mulf %759, %504 : vector<8x128xf32>
      %770 = arith.mulf %757, %573 : vector<8x128xf32>
      %771 = arith.addf %769, %770 : vector<8x128xf32>
      %772 = arith.mulf %633, %501 : vector<8x128xf32>
      %cst_134 = arith.constant dense<0.000000e+00> : vector<128xf32>
      %773 = vector.multi_reduction <add>, %772, %cst_134 [0] : vector<8x128xf32> to vector<128xf32>
      %774 = vector.shape_cast %773 : vector<128xf32> to vector<1x128xf32>
      %775 = arith.subf %491, %623 : vector<1x128xf32>
      %776 = arith.mulf %774, %774 : vector<1x128xf32>
      %777 = arith.mulf %623, %491 : vector<1x128xf32>
      %cst_135 = arith.constant 9.99999982E-15 : f32
      %778 = vector.broadcast %cst_135 : f32 to vector<1x128xf32>
      %779 = arith.mulf %778, %777 : vector<1x128xf32>
      %780 = arith.cmpf ole, %776, %779 : vector<1x128xf32>
      %cst_136 = arith.constant 0.000000e+00 : f32
      %781 = vector.broadcast %cst_136 : f32 to vector<1x128xf32>
      %782 = arith.cmpf oge, %775, %781 : vector<1x128xf32>
      %cst_137 = arith.constant 1.000000e+00 : f32
      %cst_138 = arith.constant -1.000000e+00 : f32
      %783 = vector.broadcast %cst_137 : f32 to vector<1x128xf32>
      %784 = vector.broadcast %cst_138 : f32 to vector<1x128xf32>
      %785 = arith.select %782, %783, %784 : vector<1x128xi1>, vector<1x128xf32>
      %786 = math.absf %775 : vector<1x128xf32>
      %787 = arith.mulf %775, %775 : vector<1x128xf32>
      %788 = arith.mulf %774, %774 : vector<1x128xf32>
      %cst_139 = arith.constant 4.000000e+00 : f32
      %789 = vector.broadcast %cst_139 : f32 to vector<1x128xf32>
      %790 = arith.mulf %789, %788 : vector<1x128xf32>
      %791 = arith.addf %787, %790 : vector<1x128xf32>
      %792 = math.sqrt %791 : vector<1x128xf32>
      %793 = arith.addf %786, %792 : vector<1x128xf32>
      %cst_140 = arith.constant 1.000000e+00 : f32
      %794 = vector.broadcast %cst_140 : f32 to vector<1x128xf32>
      %795 = arith.select %780, %794, %793 : vector<1x128xi1>, vector<1x128xf32>
      %cst_141 = arith.constant 2.000000e+00 : f32
      %796 = vector.broadcast %cst_141 : f32 to vector<1x128xf32>
      %797 = arith.mulf %796, %785 : vector<1x128xf32>
      %798 = arith.mulf %797, %774 : vector<1x128xf32>
      %799 = arith.divf %798, %795 : vector<1x128xf32>
      %cst_142 = arith.constant 0.000000e+00 : f32
      %800 = vector.broadcast %cst_142 : f32 to vector<1x128xf32>
      %801 = arith.select %780, %800, %799 : vector<1x128xi1>, vector<1x128xf32>
      %802 = arith.mulf %801, %801 : vector<1x128xf32>
      %cst_143 = arith.constant 1.000000e+00 : f32
      %803 = vector.broadcast %cst_143 : f32 to vector<1x128xf32>
      %804 = arith.addf %803, %802 : vector<1x128xf32>
      %805 = math.rsqrt %804 : vector<1x128xf32>
      %806 = arith.mulf %805, %801 : vector<1x128xf32>
      %807 = arith.mulf %805, %805 : vector<1x128xf32>
      %808 = arith.mulf %806, %806 : vector<1x128xf32>
      %809 = arith.mulf %805, %806 : vector<1x128xf32>
      %cst_144 = arith.constant 2.000000e+00 : f32
      %810 = vector.broadcast %cst_144 : f32 to vector<1x128xf32>
      %811 = arith.mulf %810, %809 : vector<1x128xf32>
      %812 = arith.mulf %807, %623 : vector<1x128xf32>
      %813 = arith.mulf %811, %774 : vector<1x128xf32>
      %814 = arith.subf %812, %813 : vector<1x128xf32>
      %815 = arith.mulf %808, %491 : vector<1x128xf32>
      %816 = arith.addf %814, %815 : vector<1x128xf32>
      %817 = arith.mulf %808, %623 : vector<1x128xf32>
      %818 = arith.mulf %811, %774 : vector<1x128xf32>
      %819 = arith.addf %817, %818 : vector<1x128xf32>
      %820 = arith.mulf %807, %491 : vector<1x128xf32>
      %821 = arith.addf %819, %820 : vector<1x128xf32>
      %822 = vector.shape_cast %805 : vector<1x128xf32> to vector<1x128xf32>
      %823 = vector.broadcast %822 : vector<1x128xf32> to vector<8x128xf32>
      %824 = vector.shape_cast %806 : vector<1x128xf32> to vector<1x128xf32>
      %825 = vector.broadcast %824 : vector<1x128xf32> to vector<8x128xf32>
      %826 = arith.mulf %823, %633 : vector<8x128xf32>
      %827 = arith.mulf %825, %501 : vector<8x128xf32>
      %828 = arith.subf %826, %827 : vector<8x128xf32>
      %829 = arith.mulf %825, %633 : vector<8x128xf32>
      %830 = arith.mulf %823, %501 : vector<8x128xf32>
      %831 = arith.addf %829, %830 : vector<8x128xf32>
      %832 = arith.mulf %823, %639 : vector<8x128xf32>
      %833 = arith.mulf %825, %507 : vector<8x128xf32>
      %834 = arith.subf %832, %833 : vector<8x128xf32>
      %835 = arith.mulf %825, %639 : vector<8x128xf32>
      %836 = arith.mulf %823, %507 : vector<8x128xf32>
      %837 = arith.addf %835, %836 : vector<8x128xf32>
      %838 = arith.mulf %564, %699 : vector<8x128xf32>
      %cst_145 = arith.constant dense<0.000000e+00> : vector<128xf32>
      %839 = vector.multi_reduction <add>, %838, %cst_145 [0] : vector<8x128xf32> to vector<128xf32>
      %840 = vector.shape_cast %839 : vector<128xf32> to vector<1x128xf32>
      %841 = arith.subf %689, %552 : vector<1x128xf32>
      %842 = arith.mulf %840, %840 : vector<1x128xf32>
      %843 = arith.mulf %552, %689 : vector<1x128xf32>
      %cst_146 = arith.constant 9.99999982E-15 : f32
      %844 = vector.broadcast %cst_146 : f32 to vector<1x128xf32>
      %845 = arith.mulf %844, %843 : vector<1x128xf32>
      %846 = arith.cmpf ole, %842, %845 : vector<1x128xf32>
      %cst_147 = arith.constant 0.000000e+00 : f32
      %847 = vector.broadcast %cst_147 : f32 to vector<1x128xf32>
      %848 = arith.cmpf oge, %841, %847 : vector<1x128xf32>
      %cst_148 = arith.constant 1.000000e+00 : f32
      %cst_149 = arith.constant -1.000000e+00 : f32
      %849 = vector.broadcast %cst_148 : f32 to vector<1x128xf32>
      %850 = vector.broadcast %cst_149 : f32 to vector<1x128xf32>
      %851 = arith.select %848, %849, %850 : vector<1x128xi1>, vector<1x128xf32>
      %852 = math.absf %841 : vector<1x128xf32>
      %853 = arith.mulf %841, %841 : vector<1x128xf32>
      %854 = arith.mulf %840, %840 : vector<1x128xf32>
      %cst_150 = arith.constant 4.000000e+00 : f32
      %855 = vector.broadcast %cst_150 : f32 to vector<1x128xf32>
      %856 = arith.mulf %855, %854 : vector<1x128xf32>
      %857 = arith.addf %853, %856 : vector<1x128xf32>
      %858 = math.sqrt %857 : vector<1x128xf32>
      %859 = arith.addf %852, %858 : vector<1x128xf32>
      %cst_151 = arith.constant 1.000000e+00 : f32
      %860 = vector.broadcast %cst_151 : f32 to vector<1x128xf32>
      %861 = arith.select %846, %860, %859 : vector<1x128xi1>, vector<1x128xf32>
      %cst_152 = arith.constant 2.000000e+00 : f32
      %862 = vector.broadcast %cst_152 : f32 to vector<1x128xf32>
      %863 = arith.mulf %862, %851 : vector<1x128xf32>
      %864 = arith.mulf %863, %840 : vector<1x128xf32>
      %865 = arith.divf %864, %861 : vector<1x128xf32>
      %cst_153 = arith.constant 0.000000e+00 : f32
      %866 = vector.broadcast %cst_153 : f32 to vector<1x128xf32>
      %867 = arith.select %846, %866, %865 : vector<1x128xi1>, vector<1x128xf32>
      %868 = arith.mulf %867, %867 : vector<1x128xf32>
      %cst_154 = arith.constant 1.000000e+00 : f32
      %869 = vector.broadcast %cst_154 : f32 to vector<1x128xf32>
      %870 = arith.addf %869, %868 : vector<1x128xf32>
      %871 = math.rsqrt %870 : vector<1x128xf32>
      %872 = arith.mulf %871, %867 : vector<1x128xf32>
      %873 = arith.mulf %871, %871 : vector<1x128xf32>
      %874 = arith.mulf %872, %872 : vector<1x128xf32>
      %875 = arith.mulf %871, %872 : vector<1x128xf32>
      %cst_155 = arith.constant 2.000000e+00 : f32
      %876 = vector.broadcast %cst_155 : f32 to vector<1x128xf32>
      %877 = arith.mulf %876, %875 : vector<1x128xf32>
      %878 = arith.mulf %873, %552 : vector<1x128xf32>
      %879 = arith.mulf %877, %840 : vector<1x128xf32>
      %880 = arith.subf %878, %879 : vector<1x128xf32>
      %881 = arith.mulf %874, %689 : vector<1x128xf32>
      %882 = arith.addf %880, %881 : vector<1x128xf32>
      %883 = arith.mulf %874, %552 : vector<1x128xf32>
      %884 = arith.mulf %877, %840 : vector<1x128xf32>
      %885 = arith.addf %883, %884 : vector<1x128xf32>
      %886 = arith.mulf %873, %689 : vector<1x128xf32>
      %887 = arith.addf %885, %886 : vector<1x128xf32>
      %888 = vector.shape_cast %871 : vector<1x128xf32> to vector<1x128xf32>
      %889 = vector.broadcast %888 : vector<1x128xf32> to vector<8x128xf32>
      %890 = vector.shape_cast %872 : vector<1x128xf32> to vector<1x128xf32>
      %891 = vector.broadcast %890 : vector<1x128xf32> to vector<8x128xf32>
      %892 = arith.mulf %889, %564 : vector<8x128xf32>
      %893 = arith.mulf %891, %699 : vector<8x128xf32>
      %894 = arith.subf %892, %893 : vector<8x128xf32>
      %895 = arith.mulf %891, %564 : vector<8x128xf32>
      %896 = arith.mulf %889, %699 : vector<8x128xf32>
      %897 = arith.addf %895, %896 : vector<8x128xf32>
      %898 = arith.mulf %889, %570 : vector<8x128xf32>
      %899 = arith.mulf %891, %705 : vector<8x128xf32>
      %900 = arith.subf %898, %899 : vector<8x128xf32>
      %901 = arith.mulf %891, %570 : vector<8x128xf32>
      %902 = arith.mulf %889, %705 : vector<8x128xf32>
      %903 = arith.addf %901, %902 : vector<8x128xf32>
      %904 = arith.mulf %630, %696 : vector<8x128xf32>
      %cst_156 = arith.constant dense<0.000000e+00> : vector<128xf32>
      %905 = vector.multi_reduction <add>, %904, %cst_156 [0] : vector<8x128xf32> to vector<128xf32>
      %906 = vector.shape_cast %905 : vector<128xf32> to vector<1x128xf32>
      %907 = arith.subf %684, %618 : vector<1x128xf32>
      %908 = arith.mulf %906, %906 : vector<1x128xf32>
      %909 = arith.mulf %618, %684 : vector<1x128xf32>
      %cst_157 = arith.constant 9.99999982E-15 : f32
      %910 = vector.broadcast %cst_157 : f32 to vector<1x128xf32>
      %911 = arith.mulf %910, %909 : vector<1x128xf32>
      %912 = arith.cmpf ole, %908, %911 : vector<1x128xf32>
      %cst_158 = arith.constant 0.000000e+00 : f32
      %913 = vector.broadcast %cst_158 : f32 to vector<1x128xf32>
      %914 = arith.cmpf oge, %907, %913 : vector<1x128xf32>
      %cst_159 = arith.constant 1.000000e+00 : f32
      %cst_160 = arith.constant -1.000000e+00 : f32
      %915 = vector.broadcast %cst_159 : f32 to vector<1x128xf32>
      %916 = vector.broadcast %cst_160 : f32 to vector<1x128xf32>
      %917 = arith.select %914, %915, %916 : vector<1x128xi1>, vector<1x128xf32>
      %918 = math.absf %907 : vector<1x128xf32>
      %919 = arith.mulf %907, %907 : vector<1x128xf32>
      %920 = arith.mulf %906, %906 : vector<1x128xf32>
      %cst_161 = arith.constant 4.000000e+00 : f32
      %921 = vector.broadcast %cst_161 : f32 to vector<1x128xf32>
      %922 = arith.mulf %921, %920 : vector<1x128xf32>
      %923 = arith.addf %919, %922 : vector<1x128xf32>
      %924 = math.sqrt %923 : vector<1x128xf32>
      %925 = arith.addf %918, %924 : vector<1x128xf32>
      %cst_162 = arith.constant 1.000000e+00 : f32
      %926 = vector.broadcast %cst_162 : f32 to vector<1x128xf32>
      %927 = arith.select %912, %926, %925 : vector<1x128xi1>, vector<1x128xf32>
      %cst_163 = arith.constant 2.000000e+00 : f32
      %928 = vector.broadcast %cst_163 : f32 to vector<1x128xf32>
      %929 = arith.mulf %928, %917 : vector<1x128xf32>
      %930 = arith.mulf %929, %906 : vector<1x128xf32>
      %931 = arith.divf %930, %927 : vector<1x128xf32>
      %cst_164 = arith.constant 0.000000e+00 : f32
      %932 = vector.broadcast %cst_164 : f32 to vector<1x128xf32>
      %933 = arith.select %912, %932, %931 : vector<1x128xi1>, vector<1x128xf32>
      %934 = arith.mulf %933, %933 : vector<1x128xf32>
      %cst_165 = arith.constant 1.000000e+00 : f32
      %935 = vector.broadcast %cst_165 : f32 to vector<1x128xf32>
      %936 = arith.addf %935, %934 : vector<1x128xf32>
      %937 = math.rsqrt %936 : vector<1x128xf32>
      %938 = arith.mulf %937, %933 : vector<1x128xf32>
      %939 = arith.mulf %937, %937 : vector<1x128xf32>
      %940 = arith.mulf %938, %938 : vector<1x128xf32>
      %941 = arith.mulf %937, %938 : vector<1x128xf32>
      %cst_166 = arith.constant 2.000000e+00 : f32
      %942 = vector.broadcast %cst_166 : f32 to vector<1x128xf32>
      %943 = arith.mulf %942, %941 : vector<1x128xf32>
      %944 = arith.mulf %939, %618 : vector<1x128xf32>
      %945 = arith.mulf %943, %906 : vector<1x128xf32>
      %946 = arith.subf %944, %945 : vector<1x128xf32>
      %947 = arith.mulf %940, %684 : vector<1x128xf32>
      %948 = arith.addf %946, %947 : vector<1x128xf32>
      %949 = arith.mulf %940, %618 : vector<1x128xf32>
      %950 = arith.mulf %943, %906 : vector<1x128xf32>
      %951 = arith.addf %949, %950 : vector<1x128xf32>
      %952 = arith.mulf %939, %684 : vector<1x128xf32>
      %953 = arith.addf %951, %952 : vector<1x128xf32>
      %954 = vector.shape_cast %937 : vector<1x128xf32> to vector<1x128xf32>
      %955 = vector.broadcast %954 : vector<1x128xf32> to vector<8x128xf32>
      %956 = vector.shape_cast %938 : vector<1x128xf32> to vector<1x128xf32>
      %957 = vector.broadcast %956 : vector<1x128xf32> to vector<8x128xf32>
      %958 = arith.mulf %955, %630 : vector<8x128xf32>
      %959 = arith.mulf %957, %696 : vector<8x128xf32>
      %960 = arith.subf %958, %959 : vector<8x128xf32>
      %961 = arith.mulf %957, %630 : vector<8x128xf32>
      %962 = arith.mulf %955, %696 : vector<8x128xf32>
      %963 = arith.addf %961, %962 : vector<8x128xf32>
      %964 = arith.mulf %955, %636 : vector<8x128xf32>
      %965 = arith.mulf %957, %702 : vector<8x128xf32>
      %966 = arith.subf %964, %965 : vector<8x128xf32>
      %967 = arith.mulf %957, %636 : vector<8x128xf32>
      %968 = arith.mulf %955, %702 : vector<8x128xf32>
      %969 = arith.addf %967, %968 : vector<8x128xf32>
      %970 = arith.mulf %762, %828 : vector<8x128xf32>
      %cst_167 = arith.constant dense<0.000000e+00> : vector<128xf32>
      %971 = vector.multi_reduction <add>, %970, %cst_167 [0] : vector<8x128xf32> to vector<128xf32>
      %972 = vector.shape_cast %971 : vector<128xf32> to vector<1x128xf32>
      %973 = arith.subf %816, %750 : vector<1x128xf32>
      %974 = arith.mulf %972, %972 : vector<1x128xf32>
      %975 = arith.mulf %750, %816 : vector<1x128xf32>
      %cst_168 = arith.constant 9.99999982E-15 : f32
      %976 = vector.broadcast %cst_168 : f32 to vector<1x128xf32>
      %977 = arith.mulf %976, %975 : vector<1x128xf32>
      %978 = arith.cmpf ole, %974, %977 : vector<1x128xf32>
      %cst_169 = arith.constant 0.000000e+00 : f32
      %979 = vector.broadcast %cst_169 : f32 to vector<1x128xf32>
      %980 = arith.cmpf oge, %973, %979 : vector<1x128xf32>
      %cst_170 = arith.constant 1.000000e+00 : f32
      %cst_171 = arith.constant -1.000000e+00 : f32
      %981 = vector.broadcast %cst_170 : f32 to vector<1x128xf32>
      %982 = vector.broadcast %cst_171 : f32 to vector<1x128xf32>
      %983 = arith.select %980, %981, %982 : vector<1x128xi1>, vector<1x128xf32>
      %984 = math.absf %973 : vector<1x128xf32>
      %985 = arith.mulf %973, %973 : vector<1x128xf32>
      %986 = arith.mulf %972, %972 : vector<1x128xf32>
      %cst_172 = arith.constant 4.000000e+00 : f32
      %987 = vector.broadcast %cst_172 : f32 to vector<1x128xf32>
      %988 = arith.mulf %987, %986 : vector<1x128xf32>
      %989 = arith.addf %985, %988 : vector<1x128xf32>
      %990 = math.sqrt %989 : vector<1x128xf32>
      %991 = arith.addf %984, %990 : vector<1x128xf32>
      %cst_173 = arith.constant 1.000000e+00 : f32
      %992 = vector.broadcast %cst_173 : f32 to vector<1x128xf32>
      %993 = arith.select %978, %992, %991 : vector<1x128xi1>, vector<1x128xf32>
      %cst_174 = arith.constant 2.000000e+00 : f32
      %994 = vector.broadcast %cst_174 : f32 to vector<1x128xf32>
      %995 = arith.mulf %994, %983 : vector<1x128xf32>
      %996 = arith.mulf %995, %972 : vector<1x128xf32>
      %997 = arith.divf %996, %993 : vector<1x128xf32>
      %cst_175 = arith.constant 0.000000e+00 : f32
      %998 = vector.broadcast %cst_175 : f32 to vector<1x128xf32>
      %999 = arith.select %978, %998, %997 : vector<1x128xi1>, vector<1x128xf32>
      %1000 = arith.mulf %999, %999 : vector<1x128xf32>
      %cst_176 = arith.constant 1.000000e+00 : f32
      %1001 = vector.broadcast %cst_176 : f32 to vector<1x128xf32>
      %1002 = arith.addf %1001, %1000 : vector<1x128xf32>
      %1003 = math.rsqrt %1002 : vector<1x128xf32>
      %1004 = arith.mulf %1003, %999 : vector<1x128xf32>
      %1005 = arith.mulf %1003, %1003 : vector<1x128xf32>
      %1006 = arith.mulf %1004, %1004 : vector<1x128xf32>
      %1007 = arith.mulf %1003, %1004 : vector<1x128xf32>
      %cst_177 = arith.constant 2.000000e+00 : f32
      %1008 = vector.broadcast %cst_177 : f32 to vector<1x128xf32>
      %1009 = arith.mulf %1008, %1007 : vector<1x128xf32>
      %1010 = arith.mulf %1005, %750 : vector<1x128xf32>
      %1011 = arith.mulf %1009, %972 : vector<1x128xf32>
      %1012 = arith.subf %1010, %1011 : vector<1x128xf32>
      %1013 = arith.mulf %1006, %816 : vector<1x128xf32>
      %1014 = arith.addf %1012, %1013 : vector<1x128xf32>
      %1015 = arith.mulf %1006, %750 : vector<1x128xf32>
      %1016 = arith.mulf %1009, %972 : vector<1x128xf32>
      %1017 = arith.addf %1015, %1016 : vector<1x128xf32>
      %1018 = arith.mulf %1005, %816 : vector<1x128xf32>
      %1019 = arith.addf %1017, %1018 : vector<1x128xf32>
      %1020 = vector.shape_cast %1003 : vector<1x128xf32> to vector<1x128xf32>
      %1021 = vector.broadcast %1020 : vector<1x128xf32> to vector<8x128xf32>
      %1022 = vector.shape_cast %1004 : vector<1x128xf32> to vector<1x128xf32>
      %1023 = vector.broadcast %1022 : vector<1x128xf32> to vector<8x128xf32>
      %1024 = arith.mulf %1021, %762 : vector<8x128xf32>
      %1025 = arith.mulf %1023, %828 : vector<8x128xf32>
      %1026 = arith.subf %1024, %1025 : vector<8x128xf32>
      %1027 = arith.mulf %1023, %762 : vector<8x128xf32>
      %1028 = arith.mulf %1021, %828 : vector<8x128xf32>
      %1029 = arith.addf %1027, %1028 : vector<8x128xf32>
      %1030 = arith.mulf %1021, %768 : vector<8x128xf32>
      %1031 = arith.mulf %1023, %834 : vector<8x128xf32>
      %1032 = arith.subf %1030, %1031 : vector<8x128xf32>
      %1033 = arith.mulf %1023, %768 : vector<8x128xf32>
      %1034 = arith.mulf %1021, %834 : vector<8x128xf32>
      %1035 = arith.addf %1033, %1034 : vector<8x128xf32>
      %1036 = arith.mulf %897, %765 : vector<8x128xf32>
      %cst_178 = arith.constant dense<0.000000e+00> : vector<128xf32>
      %1037 = vector.multi_reduction <add>, %1036, %cst_178 [0] : vector<8x128xf32> to vector<128xf32>
      %1038 = vector.shape_cast %1037 : vector<128xf32> to vector<1x128xf32>
      %1039 = arith.subf %755, %887 : vector<1x128xf32>
      %1040 = arith.mulf %1038, %1038 : vector<1x128xf32>
      %1041 = arith.mulf %887, %755 : vector<1x128xf32>
      %cst_179 = arith.constant 9.99999982E-15 : f32
      %1042 = vector.broadcast %cst_179 : f32 to vector<1x128xf32>
      %1043 = arith.mulf %1042, %1041 : vector<1x128xf32>
      %1044 = arith.cmpf ole, %1040, %1043 : vector<1x128xf32>
      %cst_180 = arith.constant 0.000000e+00 : f32
      %1045 = vector.broadcast %cst_180 : f32 to vector<1x128xf32>
      %1046 = arith.cmpf oge, %1039, %1045 : vector<1x128xf32>
      %cst_181 = arith.constant 1.000000e+00 : f32
      %cst_182 = arith.constant -1.000000e+00 : f32
      %1047 = vector.broadcast %cst_181 : f32 to vector<1x128xf32>
      %1048 = vector.broadcast %cst_182 : f32 to vector<1x128xf32>
      %1049 = arith.select %1046, %1047, %1048 : vector<1x128xi1>, vector<1x128xf32>
      %1050 = math.absf %1039 : vector<1x128xf32>
      %1051 = arith.mulf %1039, %1039 : vector<1x128xf32>
      %1052 = arith.mulf %1038, %1038 : vector<1x128xf32>
      %cst_183 = arith.constant 4.000000e+00 : f32
      %1053 = vector.broadcast %cst_183 : f32 to vector<1x128xf32>
      %1054 = arith.mulf %1053, %1052 : vector<1x128xf32>
      %1055 = arith.addf %1051, %1054 : vector<1x128xf32>
      %1056 = math.sqrt %1055 : vector<1x128xf32>
      %1057 = arith.addf %1050, %1056 : vector<1x128xf32>
      %cst_184 = arith.constant 1.000000e+00 : f32
      %1058 = vector.broadcast %cst_184 : f32 to vector<1x128xf32>
      %1059 = arith.select %1044, %1058, %1057 : vector<1x128xi1>, vector<1x128xf32>
      %cst_185 = arith.constant 2.000000e+00 : f32
      %1060 = vector.broadcast %cst_185 : f32 to vector<1x128xf32>
      %1061 = arith.mulf %1060, %1049 : vector<1x128xf32>
      %1062 = arith.mulf %1061, %1038 : vector<1x128xf32>
      %1063 = arith.divf %1062, %1059 : vector<1x128xf32>
      %cst_186 = arith.constant 0.000000e+00 : f32
      %1064 = vector.broadcast %cst_186 : f32 to vector<1x128xf32>
      %1065 = arith.select %1044, %1064, %1063 : vector<1x128xi1>, vector<1x128xf32>
      %1066 = arith.mulf %1065, %1065 : vector<1x128xf32>
      %cst_187 = arith.constant 1.000000e+00 : f32
      %1067 = vector.broadcast %cst_187 : f32 to vector<1x128xf32>
      %1068 = arith.addf %1067, %1066 : vector<1x128xf32>
      %1069 = math.rsqrt %1068 : vector<1x128xf32>
      %1070 = arith.mulf %1069, %1065 : vector<1x128xf32>
      %1071 = arith.mulf %1069, %1069 : vector<1x128xf32>
      %1072 = arith.mulf %1070, %1070 : vector<1x128xf32>
      %1073 = arith.mulf %1069, %1070 : vector<1x128xf32>
      %cst_188 = arith.constant 2.000000e+00 : f32
      %1074 = vector.broadcast %cst_188 : f32 to vector<1x128xf32>
      %1075 = arith.mulf %1074, %1073 : vector<1x128xf32>
      %1076 = arith.mulf %1071, %887 : vector<1x128xf32>
      %1077 = arith.mulf %1075, %1038 : vector<1x128xf32>
      %1078 = arith.subf %1076, %1077 : vector<1x128xf32>
      %1079 = arith.mulf %1072, %755 : vector<1x128xf32>
      %1080 = arith.addf %1078, %1079 : vector<1x128xf32>
      %1081 = arith.mulf %1072, %887 : vector<1x128xf32>
      %1082 = arith.mulf %1075, %1038 : vector<1x128xf32>
      %1083 = arith.addf %1081, %1082 : vector<1x128xf32>
      %1084 = arith.mulf %1071, %755 : vector<1x128xf32>
      %1085 = arith.addf %1083, %1084 : vector<1x128xf32>
      %1086 = vector.shape_cast %1069 : vector<1x128xf32> to vector<1x128xf32>
      %1087 = vector.broadcast %1086 : vector<1x128xf32> to vector<8x128xf32>
      %1088 = vector.shape_cast %1070 : vector<1x128xf32> to vector<1x128xf32>
      %1089 = vector.broadcast %1088 : vector<1x128xf32> to vector<8x128xf32>
      %1090 = arith.mulf %1087, %897 : vector<8x128xf32>
      %1091 = arith.mulf %1089, %765 : vector<8x128xf32>
      %1092 = arith.subf %1090, %1091 : vector<8x128xf32>
      %1093 = arith.mulf %1089, %897 : vector<8x128xf32>
      %1094 = arith.mulf %1087, %765 : vector<8x128xf32>
      %1095 = arith.addf %1093, %1094 : vector<8x128xf32>
      %1096 = arith.mulf %1087, %903 : vector<8x128xf32>
      %1097 = arith.mulf %1089, %771 : vector<8x128xf32>
      %1098 = arith.subf %1096, %1097 : vector<8x128xf32>
      %1099 = arith.mulf %1089, %903 : vector<8x128xf32>
      %1100 = arith.mulf %1087, %771 : vector<8x128xf32>
      %1101 = arith.addf %1099, %1100 : vector<8x128xf32>
      %1102 = arith.mulf %963, %831 : vector<8x128xf32>
      %cst_189 = arith.constant dense<0.000000e+00> : vector<128xf32>
      %1103 = vector.multi_reduction <add>, %1102, %cst_189 [0] : vector<8x128xf32> to vector<128xf32>
      %1104 = vector.shape_cast %1103 : vector<128xf32> to vector<1x128xf32>
      %1105 = arith.subf %821, %953 : vector<1x128xf32>
      %1106 = arith.mulf %1104, %1104 : vector<1x128xf32>
      %1107 = arith.mulf %953, %821 : vector<1x128xf32>
      %cst_190 = arith.constant 9.99999982E-15 : f32
      %1108 = vector.broadcast %cst_190 : f32 to vector<1x128xf32>
      %1109 = arith.mulf %1108, %1107 : vector<1x128xf32>
      %1110 = arith.cmpf ole, %1106, %1109 : vector<1x128xf32>
      %cst_191 = arith.constant 0.000000e+00 : f32
      %1111 = vector.broadcast %cst_191 : f32 to vector<1x128xf32>
      %1112 = arith.cmpf oge, %1105, %1111 : vector<1x128xf32>
      %cst_192 = arith.constant 1.000000e+00 : f32
      %cst_193 = arith.constant -1.000000e+00 : f32
      %1113 = vector.broadcast %cst_192 : f32 to vector<1x128xf32>
      %1114 = vector.broadcast %cst_193 : f32 to vector<1x128xf32>
      %1115 = arith.select %1112, %1113, %1114 : vector<1x128xi1>, vector<1x128xf32>
      %1116 = math.absf %1105 : vector<1x128xf32>
      %1117 = arith.mulf %1105, %1105 : vector<1x128xf32>
      %1118 = arith.mulf %1104, %1104 : vector<1x128xf32>
      %cst_194 = arith.constant 4.000000e+00 : f32
      %1119 = vector.broadcast %cst_194 : f32 to vector<1x128xf32>
      %1120 = arith.mulf %1119, %1118 : vector<1x128xf32>
      %1121 = arith.addf %1117, %1120 : vector<1x128xf32>
      %1122 = math.sqrt %1121 : vector<1x128xf32>
      %1123 = arith.addf %1116, %1122 : vector<1x128xf32>
      %cst_195 = arith.constant 1.000000e+00 : f32
      %1124 = vector.broadcast %cst_195 : f32 to vector<1x128xf32>
      %1125 = arith.select %1110, %1124, %1123 : vector<1x128xi1>, vector<1x128xf32>
      %cst_196 = arith.constant 2.000000e+00 : f32
      %1126 = vector.broadcast %cst_196 : f32 to vector<1x128xf32>
      %1127 = arith.mulf %1126, %1115 : vector<1x128xf32>
      %1128 = arith.mulf %1127, %1104 : vector<1x128xf32>
      %1129 = arith.divf %1128, %1125 : vector<1x128xf32>
      %cst_197 = arith.constant 0.000000e+00 : f32
      %1130 = vector.broadcast %cst_197 : f32 to vector<1x128xf32>
      %1131 = arith.select %1110, %1130, %1129 : vector<1x128xi1>, vector<1x128xf32>
      %1132 = arith.mulf %1131, %1131 : vector<1x128xf32>
      %cst_198 = arith.constant 1.000000e+00 : f32
      %1133 = vector.broadcast %cst_198 : f32 to vector<1x128xf32>
      %1134 = arith.addf %1133, %1132 : vector<1x128xf32>
      %1135 = math.rsqrt %1134 : vector<1x128xf32>
      %1136 = arith.mulf %1135, %1131 : vector<1x128xf32>
      %1137 = arith.mulf %1135, %1135 : vector<1x128xf32>
      %1138 = arith.mulf %1136, %1136 : vector<1x128xf32>
      %1139 = arith.mulf %1135, %1136 : vector<1x128xf32>
      %cst_199 = arith.constant 2.000000e+00 : f32
      %1140 = vector.broadcast %cst_199 : f32 to vector<1x128xf32>
      %1141 = arith.mulf %1140, %1139 : vector<1x128xf32>
      %1142 = arith.mulf %1137, %953 : vector<1x128xf32>
      %1143 = arith.mulf %1141, %1104 : vector<1x128xf32>
      %1144 = arith.subf %1142, %1143 : vector<1x128xf32>
      %1145 = arith.mulf %1138, %821 : vector<1x128xf32>
      %1146 = arith.addf %1144, %1145 : vector<1x128xf32>
      %1147 = arith.mulf %1138, %953 : vector<1x128xf32>
      %1148 = arith.mulf %1141, %1104 : vector<1x128xf32>
      %1149 = arith.addf %1147, %1148 : vector<1x128xf32>
      %1150 = arith.mulf %1137, %821 : vector<1x128xf32>
      %1151 = arith.addf %1149, %1150 : vector<1x128xf32>
      %1152 = vector.shape_cast %1135 : vector<1x128xf32> to vector<1x128xf32>
      %1153 = vector.broadcast %1152 : vector<1x128xf32> to vector<8x128xf32>
      %1154 = vector.shape_cast %1136 : vector<1x128xf32> to vector<1x128xf32>
      %1155 = vector.broadcast %1154 : vector<1x128xf32> to vector<8x128xf32>
      %1156 = arith.mulf %1153, %963 : vector<8x128xf32>
      %1157 = arith.mulf %1155, %831 : vector<8x128xf32>
      %1158 = arith.subf %1156, %1157 : vector<8x128xf32>
      %1159 = arith.mulf %1155, %963 : vector<8x128xf32>
      %1160 = arith.mulf %1153, %831 : vector<8x128xf32>
      %1161 = arith.addf %1159, %1160 : vector<8x128xf32>
      %1162 = arith.mulf %1153, %969 : vector<8x128xf32>
      %1163 = arith.mulf %1155, %837 : vector<8x128xf32>
      %1164 = arith.subf %1162, %1163 : vector<8x128xf32>
      %1165 = arith.mulf %1155, %969 : vector<8x128xf32>
      %1166 = arith.mulf %1153, %837 : vector<8x128xf32>
      %1167 = arith.addf %1165, %1166 : vector<8x128xf32>
      %1168 = arith.mulf %894, %960 : vector<8x128xf32>
      %cst_200 = arith.constant dense<0.000000e+00> : vector<128xf32>
      %1169 = vector.multi_reduction <add>, %1168, %cst_200 [0] : vector<8x128xf32> to vector<128xf32>
      %1170 = vector.shape_cast %1169 : vector<128xf32> to vector<1x128xf32>
      %1171 = arith.subf %948, %882 : vector<1x128xf32>
      %1172 = arith.mulf %1170, %1170 : vector<1x128xf32>
      %1173 = arith.mulf %882, %948 : vector<1x128xf32>
      %cst_201 = arith.constant 9.99999982E-15 : f32
      %1174 = vector.broadcast %cst_201 : f32 to vector<1x128xf32>
      %1175 = arith.mulf %1174, %1173 : vector<1x128xf32>
      %1176 = arith.cmpf ole, %1172, %1175 : vector<1x128xf32>
      %cst_202 = arith.constant 0.000000e+00 : f32
      %1177 = vector.broadcast %cst_202 : f32 to vector<1x128xf32>
      %1178 = arith.cmpf oge, %1171, %1177 : vector<1x128xf32>
      %cst_203 = arith.constant 1.000000e+00 : f32
      %cst_204 = arith.constant -1.000000e+00 : f32
      %1179 = vector.broadcast %cst_203 : f32 to vector<1x128xf32>
      %1180 = vector.broadcast %cst_204 : f32 to vector<1x128xf32>
      %1181 = arith.select %1178, %1179, %1180 : vector<1x128xi1>, vector<1x128xf32>
      %1182 = math.absf %1171 : vector<1x128xf32>
      %1183 = arith.mulf %1171, %1171 : vector<1x128xf32>
      %1184 = arith.mulf %1170, %1170 : vector<1x128xf32>
      %cst_205 = arith.constant 4.000000e+00 : f32
      %1185 = vector.broadcast %cst_205 : f32 to vector<1x128xf32>
      %1186 = arith.mulf %1185, %1184 : vector<1x128xf32>
      %1187 = arith.addf %1183, %1186 : vector<1x128xf32>
      %1188 = math.sqrt %1187 : vector<1x128xf32>
      %1189 = arith.addf %1182, %1188 : vector<1x128xf32>
      %cst_206 = arith.constant 1.000000e+00 : f32
      %1190 = vector.broadcast %cst_206 : f32 to vector<1x128xf32>
      %1191 = arith.select %1176, %1190, %1189 : vector<1x128xi1>, vector<1x128xf32>
      %cst_207 = arith.constant 2.000000e+00 : f32
      %1192 = vector.broadcast %cst_207 : f32 to vector<1x128xf32>
      %1193 = arith.mulf %1192, %1181 : vector<1x128xf32>
      %1194 = arith.mulf %1193, %1170 : vector<1x128xf32>
      %1195 = arith.divf %1194, %1191 : vector<1x128xf32>
      %cst_208 = arith.constant 0.000000e+00 : f32
      %1196 = vector.broadcast %cst_208 : f32 to vector<1x128xf32>
      %1197 = arith.select %1176, %1196, %1195 : vector<1x128xi1>, vector<1x128xf32>
      %1198 = arith.mulf %1197, %1197 : vector<1x128xf32>
      %cst_209 = arith.constant 1.000000e+00 : f32
      %1199 = vector.broadcast %cst_209 : f32 to vector<1x128xf32>
      %1200 = arith.addf %1199, %1198 : vector<1x128xf32>
      %1201 = math.rsqrt %1200 : vector<1x128xf32>
      %1202 = arith.mulf %1201, %1197 : vector<1x128xf32>
      %1203 = arith.mulf %1201, %1201 : vector<1x128xf32>
      %1204 = arith.mulf %1202, %1202 : vector<1x128xf32>
      %1205 = arith.mulf %1201, %1202 : vector<1x128xf32>
      %cst_210 = arith.constant 2.000000e+00 : f32
      %1206 = vector.broadcast %cst_210 : f32 to vector<1x128xf32>
      %1207 = arith.mulf %1206, %1205 : vector<1x128xf32>
      %1208 = arith.mulf %1203, %882 : vector<1x128xf32>
      %1209 = arith.mulf %1207, %1170 : vector<1x128xf32>
      %1210 = arith.subf %1208, %1209 : vector<1x128xf32>
      %1211 = arith.mulf %1204, %948 : vector<1x128xf32>
      %1212 = arith.addf %1210, %1211 : vector<1x128xf32>
      %1213 = arith.mulf %1204, %882 : vector<1x128xf32>
      %1214 = arith.mulf %1207, %1170 : vector<1x128xf32>
      %1215 = arith.addf %1213, %1214 : vector<1x128xf32>
      %1216 = arith.mulf %1203, %948 : vector<1x128xf32>
      %1217 = arith.addf %1215, %1216 : vector<1x128xf32>
      %1218 = vector.shape_cast %1201 : vector<1x128xf32> to vector<1x128xf32>
      %1219 = vector.broadcast %1218 : vector<1x128xf32> to vector<8x128xf32>
      %1220 = vector.shape_cast %1202 : vector<1x128xf32> to vector<1x128xf32>
      %1221 = vector.broadcast %1220 : vector<1x128xf32> to vector<8x128xf32>
      %1222 = arith.mulf %1219, %894 : vector<8x128xf32>
      %1223 = arith.mulf %1221, %960 : vector<8x128xf32>
      %1224 = arith.subf %1222, %1223 : vector<8x128xf32>
      %1225 = arith.mulf %1221, %894 : vector<8x128xf32>
      %1226 = arith.mulf %1219, %960 : vector<8x128xf32>
      %1227 = arith.addf %1225, %1226 : vector<8x128xf32>
      %1228 = arith.mulf %1219, %900 : vector<8x128xf32>
      %1229 = arith.mulf %1221, %966 : vector<8x128xf32>
      %1230 = arith.subf %1228, %1229 : vector<8x128xf32>
      %1231 = arith.mulf %1221, %900 : vector<8x128xf32>
      %1232 = arith.mulf %1219, %966 : vector<8x128xf32>
      %1233 = arith.addf %1231, %1232 : vector<8x128xf32>
      %1234 = arith.mulf %1026, %1092 : vector<8x128xf32>
      %cst_211 = arith.constant dense<0.000000e+00> : vector<128xf32>
      %1235 = vector.multi_reduction <add>, %1234, %cst_211 [0] : vector<8x128xf32> to vector<128xf32>
      %1236 = vector.shape_cast %1235 : vector<128xf32> to vector<1x128xf32>
      %1237 = arith.subf %1080, %1014 : vector<1x128xf32>
      %1238 = arith.mulf %1236, %1236 : vector<1x128xf32>
      %1239 = arith.mulf %1014, %1080 : vector<1x128xf32>
      %cst_212 = arith.constant 9.99999982E-15 : f32
      %1240 = vector.broadcast %cst_212 : f32 to vector<1x128xf32>
      %1241 = arith.mulf %1240, %1239 : vector<1x128xf32>
      %1242 = arith.cmpf ole, %1238, %1241 : vector<1x128xf32>
      %cst_213 = arith.constant 0.000000e+00 : f32
      %1243 = vector.broadcast %cst_213 : f32 to vector<1x128xf32>
      %1244 = arith.cmpf oge, %1237, %1243 : vector<1x128xf32>
      %cst_214 = arith.constant 1.000000e+00 : f32
      %cst_215 = arith.constant -1.000000e+00 : f32
      %1245 = vector.broadcast %cst_214 : f32 to vector<1x128xf32>
      %1246 = vector.broadcast %cst_215 : f32 to vector<1x128xf32>
      %1247 = arith.select %1244, %1245, %1246 : vector<1x128xi1>, vector<1x128xf32>
      %1248 = math.absf %1237 : vector<1x128xf32>
      %1249 = arith.mulf %1237, %1237 : vector<1x128xf32>
      %1250 = arith.mulf %1236, %1236 : vector<1x128xf32>
      %cst_216 = arith.constant 4.000000e+00 : f32
      %1251 = vector.broadcast %cst_216 : f32 to vector<1x128xf32>
      %1252 = arith.mulf %1251, %1250 : vector<1x128xf32>
      %1253 = arith.addf %1249, %1252 : vector<1x128xf32>
      %1254 = math.sqrt %1253 : vector<1x128xf32>
      %1255 = arith.addf %1248, %1254 : vector<1x128xf32>
      %cst_217 = arith.constant 1.000000e+00 : f32
      %1256 = vector.broadcast %cst_217 : f32 to vector<1x128xf32>
      %1257 = arith.select %1242, %1256, %1255 : vector<1x128xi1>, vector<1x128xf32>
      %cst_218 = arith.constant 2.000000e+00 : f32
      %1258 = vector.broadcast %cst_218 : f32 to vector<1x128xf32>
      %1259 = arith.mulf %1258, %1247 : vector<1x128xf32>
      %1260 = arith.mulf %1259, %1236 : vector<1x128xf32>
      %1261 = arith.divf %1260, %1257 : vector<1x128xf32>
      %cst_219 = arith.constant 0.000000e+00 : f32
      %1262 = vector.broadcast %cst_219 : f32 to vector<1x128xf32>
      %1263 = arith.select %1242, %1262, %1261 : vector<1x128xi1>, vector<1x128xf32>
      %1264 = arith.mulf %1263, %1263 : vector<1x128xf32>
      %cst_220 = arith.constant 1.000000e+00 : f32
      %1265 = vector.broadcast %cst_220 : f32 to vector<1x128xf32>
      %1266 = arith.addf %1265, %1264 : vector<1x128xf32>
      %1267 = math.rsqrt %1266 : vector<1x128xf32>
      %1268 = arith.mulf %1267, %1263 : vector<1x128xf32>
      %1269 = arith.mulf %1267, %1267 : vector<1x128xf32>
      %1270 = arith.mulf %1268, %1268 : vector<1x128xf32>
      %1271 = arith.mulf %1267, %1268 : vector<1x128xf32>
      %cst_221 = arith.constant 2.000000e+00 : f32
      %1272 = vector.broadcast %cst_221 : f32 to vector<1x128xf32>
      %1273 = arith.mulf %1272, %1271 : vector<1x128xf32>
      %1274 = arith.mulf %1269, %1014 : vector<1x128xf32>
      %1275 = arith.mulf %1273, %1236 : vector<1x128xf32>
      %1276 = arith.subf %1274, %1275 : vector<1x128xf32>
      %1277 = arith.mulf %1270, %1080 : vector<1x128xf32>
      %1278 = arith.addf %1276, %1277 : vector<1x128xf32>
      %1279 = arith.mulf %1270, %1014 : vector<1x128xf32>
      %1280 = arith.mulf %1273, %1236 : vector<1x128xf32>
      %1281 = arith.addf %1279, %1280 : vector<1x128xf32>
      %1282 = arith.mulf %1269, %1080 : vector<1x128xf32>
      %1283 = arith.addf %1281, %1282 : vector<1x128xf32>
      %1284 = vector.shape_cast %1267 : vector<1x128xf32> to vector<1x128xf32>
      %1285 = vector.broadcast %1284 : vector<1x128xf32> to vector<8x128xf32>
      %1286 = vector.shape_cast %1268 : vector<1x128xf32> to vector<1x128xf32>
      %1287 = vector.broadcast %1286 : vector<1x128xf32> to vector<8x128xf32>
      %1288 = arith.mulf %1285, %1026 : vector<8x128xf32>
      %1289 = arith.mulf %1287, %1092 : vector<8x128xf32>
      %1290 = arith.subf %1288, %1289 : vector<8x128xf32>
      %1291 = arith.mulf %1287, %1026 : vector<8x128xf32>
      %1292 = arith.mulf %1285, %1092 : vector<8x128xf32>
      %1293 = arith.addf %1291, %1292 : vector<8x128xf32>
      %1294 = arith.mulf %1285, %1032 : vector<8x128xf32>
      %1295 = arith.mulf %1287, %1098 : vector<8x128xf32>
      %1296 = arith.subf %1294, %1295 : vector<8x128xf32>
      %1297 = arith.mulf %1287, %1032 : vector<8x128xf32>
      %1298 = arith.mulf %1285, %1098 : vector<8x128xf32>
      %1299 = arith.addf %1297, %1298 : vector<8x128xf32>
      %1300 = arith.mulf %1158, %1029 : vector<8x128xf32>
      %cst_222 = arith.constant dense<0.000000e+00> : vector<128xf32>
      %1301 = vector.multi_reduction <add>, %1300, %cst_222 [0] : vector<8x128xf32> to vector<128xf32>
      %1302 = vector.shape_cast %1301 : vector<128xf32> to vector<1x128xf32>
      %1303 = arith.subf %1019, %1146 : vector<1x128xf32>
      %1304 = arith.mulf %1302, %1302 : vector<1x128xf32>
      %1305 = arith.mulf %1146, %1019 : vector<1x128xf32>
      %cst_223 = arith.constant 9.99999982E-15 : f32
      %1306 = vector.broadcast %cst_223 : f32 to vector<1x128xf32>
      %1307 = arith.mulf %1306, %1305 : vector<1x128xf32>
      %1308 = arith.cmpf ole, %1304, %1307 : vector<1x128xf32>
      %cst_224 = arith.constant 0.000000e+00 : f32
      %1309 = vector.broadcast %cst_224 : f32 to vector<1x128xf32>
      %1310 = arith.cmpf oge, %1303, %1309 : vector<1x128xf32>
      %cst_225 = arith.constant 1.000000e+00 : f32
      %cst_226 = arith.constant -1.000000e+00 : f32
      %1311 = vector.broadcast %cst_225 : f32 to vector<1x128xf32>
      %1312 = vector.broadcast %cst_226 : f32 to vector<1x128xf32>
      %1313 = arith.select %1310, %1311, %1312 : vector<1x128xi1>, vector<1x128xf32>
      %1314 = math.absf %1303 : vector<1x128xf32>
      %1315 = arith.mulf %1303, %1303 : vector<1x128xf32>
      %1316 = arith.mulf %1302, %1302 : vector<1x128xf32>
      %cst_227 = arith.constant 4.000000e+00 : f32
      %1317 = vector.broadcast %cst_227 : f32 to vector<1x128xf32>
      %1318 = arith.mulf %1317, %1316 : vector<1x128xf32>
      %1319 = arith.addf %1315, %1318 : vector<1x128xf32>
      %1320 = math.sqrt %1319 : vector<1x128xf32>
      %1321 = arith.addf %1314, %1320 : vector<1x128xf32>
      %cst_228 = arith.constant 1.000000e+00 : f32
      %1322 = vector.broadcast %cst_228 : f32 to vector<1x128xf32>
      %1323 = arith.select %1308, %1322, %1321 : vector<1x128xi1>, vector<1x128xf32>
      %cst_229 = arith.constant 2.000000e+00 : f32
      %1324 = vector.broadcast %cst_229 : f32 to vector<1x128xf32>
      %1325 = arith.mulf %1324, %1313 : vector<1x128xf32>
      %1326 = arith.mulf %1325, %1302 : vector<1x128xf32>
      %1327 = arith.divf %1326, %1323 : vector<1x128xf32>
      %cst_230 = arith.constant 0.000000e+00 : f32
      %1328 = vector.broadcast %cst_230 : f32 to vector<1x128xf32>
      %1329 = arith.select %1308, %1328, %1327 : vector<1x128xi1>, vector<1x128xf32>
      %1330 = arith.mulf %1329, %1329 : vector<1x128xf32>
      %cst_231 = arith.constant 1.000000e+00 : f32
      %1331 = vector.broadcast %cst_231 : f32 to vector<1x128xf32>
      %1332 = arith.addf %1331, %1330 : vector<1x128xf32>
      %1333 = math.rsqrt %1332 : vector<1x128xf32>
      %1334 = arith.mulf %1333, %1329 : vector<1x128xf32>
      %1335 = arith.mulf %1333, %1333 : vector<1x128xf32>
      %1336 = arith.mulf %1334, %1334 : vector<1x128xf32>
      %1337 = arith.mulf %1333, %1334 : vector<1x128xf32>
      %cst_232 = arith.constant 2.000000e+00 : f32
      %1338 = vector.broadcast %cst_232 : f32 to vector<1x128xf32>
      %1339 = arith.mulf %1338, %1337 : vector<1x128xf32>
      %1340 = arith.mulf %1335, %1146 : vector<1x128xf32>
      %1341 = arith.mulf %1339, %1302 : vector<1x128xf32>
      %1342 = arith.subf %1340, %1341 : vector<1x128xf32>
      %1343 = arith.mulf %1336, %1019 : vector<1x128xf32>
      %1344 = arith.addf %1342, %1343 : vector<1x128xf32>
      %1345 = arith.mulf %1336, %1146 : vector<1x128xf32>
      %1346 = arith.mulf %1339, %1302 : vector<1x128xf32>
      %1347 = arith.addf %1345, %1346 : vector<1x128xf32>
      %1348 = arith.mulf %1335, %1019 : vector<1x128xf32>
      %1349 = arith.addf %1347, %1348 : vector<1x128xf32>
      %1350 = vector.shape_cast %1333 : vector<1x128xf32> to vector<1x128xf32>
      %1351 = vector.broadcast %1350 : vector<1x128xf32> to vector<8x128xf32>
      %1352 = vector.shape_cast %1334 : vector<1x128xf32> to vector<1x128xf32>
      %1353 = vector.broadcast %1352 : vector<1x128xf32> to vector<8x128xf32>
      %1354 = arith.mulf %1351, %1158 : vector<8x128xf32>
      %1355 = arith.mulf %1353, %1029 : vector<8x128xf32>
      %1356 = arith.subf %1354, %1355 : vector<8x128xf32>
      %1357 = arith.mulf %1353, %1158 : vector<8x128xf32>
      %1358 = arith.mulf %1351, %1029 : vector<8x128xf32>
      %1359 = arith.addf %1357, %1358 : vector<8x128xf32>
      %1360 = arith.mulf %1351, %1164 : vector<8x128xf32>
      %1361 = arith.mulf %1353, %1035 : vector<8x128xf32>
      %1362 = arith.subf %1360, %1361 : vector<8x128xf32>
      %1363 = arith.mulf %1353, %1164 : vector<8x128xf32>
      %1364 = arith.mulf %1351, %1035 : vector<8x128xf32>
      %1365 = arith.addf %1363, %1364 : vector<8x128xf32>
      %1366 = arith.mulf %1227, %1095 : vector<8x128xf32>
      %cst_233 = arith.constant dense<0.000000e+00> : vector<128xf32>
      %1367 = vector.multi_reduction <add>, %1366, %cst_233 [0] : vector<8x128xf32> to vector<128xf32>
      %1368 = vector.shape_cast %1367 : vector<128xf32> to vector<1x128xf32>
      %1369 = arith.subf %1085, %1217 : vector<1x128xf32>
      %1370 = arith.mulf %1368, %1368 : vector<1x128xf32>
      %1371 = arith.mulf %1217, %1085 : vector<1x128xf32>
      %cst_234 = arith.constant 9.99999982E-15 : f32
      %1372 = vector.broadcast %cst_234 : f32 to vector<1x128xf32>
      %1373 = arith.mulf %1372, %1371 : vector<1x128xf32>
      %1374 = arith.cmpf ole, %1370, %1373 : vector<1x128xf32>
      %cst_235 = arith.constant 0.000000e+00 : f32
      %1375 = vector.broadcast %cst_235 : f32 to vector<1x128xf32>
      %1376 = arith.cmpf oge, %1369, %1375 : vector<1x128xf32>
      %cst_236 = arith.constant 1.000000e+00 : f32
      %cst_237 = arith.constant -1.000000e+00 : f32
      %1377 = vector.broadcast %cst_236 : f32 to vector<1x128xf32>
      %1378 = vector.broadcast %cst_237 : f32 to vector<1x128xf32>
      %1379 = arith.select %1376, %1377, %1378 : vector<1x128xi1>, vector<1x128xf32>
      %1380 = math.absf %1369 : vector<1x128xf32>
      %1381 = arith.mulf %1369, %1369 : vector<1x128xf32>
      %1382 = arith.mulf %1368, %1368 : vector<1x128xf32>
      %cst_238 = arith.constant 4.000000e+00 : f32
      %1383 = vector.broadcast %cst_238 : f32 to vector<1x128xf32>
      %1384 = arith.mulf %1383, %1382 : vector<1x128xf32>
      %1385 = arith.addf %1381, %1384 : vector<1x128xf32>
      %1386 = math.sqrt %1385 : vector<1x128xf32>
      %1387 = arith.addf %1380, %1386 : vector<1x128xf32>
      %cst_239 = arith.constant 1.000000e+00 : f32
      %1388 = vector.broadcast %cst_239 : f32 to vector<1x128xf32>
      %1389 = arith.select %1374, %1388, %1387 : vector<1x128xi1>, vector<1x128xf32>
      %cst_240 = arith.constant 2.000000e+00 : f32
      %1390 = vector.broadcast %cst_240 : f32 to vector<1x128xf32>
      %1391 = arith.mulf %1390, %1379 : vector<1x128xf32>
      %1392 = arith.mulf %1391, %1368 : vector<1x128xf32>
      %1393 = arith.divf %1392, %1389 : vector<1x128xf32>
      %cst_241 = arith.constant 0.000000e+00 : f32
      %1394 = vector.broadcast %cst_241 : f32 to vector<1x128xf32>
      %1395 = arith.select %1374, %1394, %1393 : vector<1x128xi1>, vector<1x128xf32>
      %1396 = arith.mulf %1395, %1395 : vector<1x128xf32>
      %cst_242 = arith.constant 1.000000e+00 : f32
      %1397 = vector.broadcast %cst_242 : f32 to vector<1x128xf32>
      %1398 = arith.addf %1397, %1396 : vector<1x128xf32>
      %1399 = math.rsqrt %1398 : vector<1x128xf32>
      %1400 = arith.mulf %1399, %1395 : vector<1x128xf32>
      %1401 = arith.mulf %1399, %1399 : vector<1x128xf32>
      %1402 = arith.mulf %1400, %1400 : vector<1x128xf32>
      %1403 = arith.mulf %1399, %1400 : vector<1x128xf32>
      %cst_243 = arith.constant 2.000000e+00 : f32
      %1404 = vector.broadcast %cst_243 : f32 to vector<1x128xf32>
      %1405 = arith.mulf %1404, %1403 : vector<1x128xf32>
      %1406 = arith.mulf %1401, %1217 : vector<1x128xf32>
      %1407 = arith.mulf %1405, %1368 : vector<1x128xf32>
      %1408 = arith.subf %1406, %1407 : vector<1x128xf32>
      %1409 = arith.mulf %1402, %1085 : vector<1x128xf32>
      %1410 = arith.addf %1408, %1409 : vector<1x128xf32>
      %1411 = arith.mulf %1402, %1217 : vector<1x128xf32>
      %1412 = arith.mulf %1405, %1368 : vector<1x128xf32>
      %1413 = arith.addf %1411, %1412 : vector<1x128xf32>
      %1414 = arith.mulf %1401, %1085 : vector<1x128xf32>
      %1415 = arith.addf %1413, %1414 : vector<1x128xf32>
      %1416 = vector.shape_cast %1399 : vector<1x128xf32> to vector<1x128xf32>
      %1417 = vector.broadcast %1416 : vector<1x128xf32> to vector<8x128xf32>
      %1418 = vector.shape_cast %1400 : vector<1x128xf32> to vector<1x128xf32>
      %1419 = vector.broadcast %1418 : vector<1x128xf32> to vector<8x128xf32>
      %1420 = arith.mulf %1417, %1227 : vector<8x128xf32>
      %1421 = arith.mulf %1419, %1095 : vector<8x128xf32>
      %1422 = arith.subf %1420, %1421 : vector<8x128xf32>
      %1423 = arith.mulf %1419, %1227 : vector<8x128xf32>
      %1424 = arith.mulf %1417, %1095 : vector<8x128xf32>
      %1425 = arith.addf %1423, %1424 : vector<8x128xf32>
      %1426 = arith.mulf %1417, %1233 : vector<8x128xf32>
      %1427 = arith.mulf %1419, %1101 : vector<8x128xf32>
      %1428 = arith.subf %1426, %1427 : vector<8x128xf32>
      %1429 = arith.mulf %1419, %1233 : vector<8x128xf32>
      %1430 = arith.mulf %1417, %1101 : vector<8x128xf32>
      %1431 = arith.addf %1429, %1430 : vector<8x128xf32>
      %1432 = arith.mulf %1224, %1161 : vector<8x128xf32>
      %cst_244 = arith.constant dense<0.000000e+00> : vector<128xf32>
      %1433 = vector.multi_reduction <add>, %1432, %cst_244 [0] : vector<8x128xf32> to vector<128xf32>
      %1434 = vector.shape_cast %1433 : vector<128xf32> to vector<1x128xf32>
      %1435 = arith.subf %1151, %1212 : vector<1x128xf32>
      %1436 = arith.mulf %1434, %1434 : vector<1x128xf32>
      %1437 = arith.mulf %1212, %1151 : vector<1x128xf32>
      %cst_245 = arith.constant 9.99999982E-15 : f32
      %1438 = vector.broadcast %cst_245 : f32 to vector<1x128xf32>
      %1439 = arith.mulf %1438, %1437 : vector<1x128xf32>
      %1440 = arith.cmpf ole, %1436, %1439 : vector<1x128xf32>
      %cst_246 = arith.constant 0.000000e+00 : f32
      %1441 = vector.broadcast %cst_246 : f32 to vector<1x128xf32>
      %1442 = arith.cmpf oge, %1435, %1441 : vector<1x128xf32>
      %cst_247 = arith.constant 1.000000e+00 : f32
      %cst_248 = arith.constant -1.000000e+00 : f32
      %1443 = vector.broadcast %cst_247 : f32 to vector<1x128xf32>
      %1444 = vector.broadcast %cst_248 : f32 to vector<1x128xf32>
      %1445 = arith.select %1442, %1443, %1444 : vector<1x128xi1>, vector<1x128xf32>
      %1446 = math.absf %1435 : vector<1x128xf32>
      %1447 = arith.mulf %1435, %1435 : vector<1x128xf32>
      %1448 = arith.mulf %1434, %1434 : vector<1x128xf32>
      %cst_249 = arith.constant 4.000000e+00 : f32
      %1449 = vector.broadcast %cst_249 : f32 to vector<1x128xf32>
      %1450 = arith.mulf %1449, %1448 : vector<1x128xf32>
      %1451 = arith.addf %1447, %1450 : vector<1x128xf32>
      %1452 = math.sqrt %1451 : vector<1x128xf32>
      %1453 = arith.addf %1446, %1452 : vector<1x128xf32>
      %cst_250 = arith.constant 1.000000e+00 : f32
      %1454 = vector.broadcast %cst_250 : f32 to vector<1x128xf32>
      %1455 = arith.select %1440, %1454, %1453 : vector<1x128xi1>, vector<1x128xf32>
      %cst_251 = arith.constant 2.000000e+00 : f32
      %1456 = vector.broadcast %cst_251 : f32 to vector<1x128xf32>
      %1457 = arith.mulf %1456, %1445 : vector<1x128xf32>
      %1458 = arith.mulf %1457, %1434 : vector<1x128xf32>
      %1459 = arith.divf %1458, %1455 : vector<1x128xf32>
      %cst_252 = arith.constant 0.000000e+00 : f32
      %1460 = vector.broadcast %cst_252 : f32 to vector<1x128xf32>
      %1461 = arith.select %1440, %1460, %1459 : vector<1x128xi1>, vector<1x128xf32>
      %1462 = arith.mulf %1461, %1461 : vector<1x128xf32>
      %cst_253 = arith.constant 1.000000e+00 : f32
      %1463 = vector.broadcast %cst_253 : f32 to vector<1x128xf32>
      %1464 = arith.addf %1463, %1462 : vector<1x128xf32>
      %1465 = math.rsqrt %1464 : vector<1x128xf32>
      %1466 = arith.mulf %1465, %1461 : vector<1x128xf32>
      %1467 = arith.mulf %1465, %1465 : vector<1x128xf32>
      %1468 = arith.mulf %1466, %1466 : vector<1x128xf32>
      %1469 = arith.mulf %1465, %1466 : vector<1x128xf32>
      %cst_254 = arith.constant 2.000000e+00 : f32
      %1470 = vector.broadcast %cst_254 : f32 to vector<1x128xf32>
      %1471 = arith.mulf %1470, %1469 : vector<1x128xf32>
      %1472 = arith.mulf %1467, %1212 : vector<1x128xf32>
      %1473 = arith.mulf %1471, %1434 : vector<1x128xf32>
      %1474 = arith.subf %1472, %1473 : vector<1x128xf32>
      %1475 = arith.mulf %1468, %1151 : vector<1x128xf32>
      %1476 = arith.addf %1474, %1475 : vector<1x128xf32>
      %1477 = arith.mulf %1468, %1212 : vector<1x128xf32>
      %1478 = arith.mulf %1471, %1434 : vector<1x128xf32>
      %1479 = arith.addf %1477, %1478 : vector<1x128xf32>
      %1480 = arith.mulf %1467, %1151 : vector<1x128xf32>
      %1481 = arith.addf %1479, %1480 : vector<1x128xf32>
      %1482 = vector.shape_cast %1465 : vector<1x128xf32> to vector<1x128xf32>
      %1483 = vector.broadcast %1482 : vector<1x128xf32> to vector<8x128xf32>
      %1484 = vector.shape_cast %1466 : vector<1x128xf32> to vector<1x128xf32>
      %1485 = vector.broadcast %1484 : vector<1x128xf32> to vector<8x128xf32>
      %1486 = arith.mulf %1483, %1224 : vector<8x128xf32>
      %1487 = arith.mulf %1485, %1161 : vector<8x128xf32>
      %1488 = arith.subf %1486, %1487 : vector<8x128xf32>
      %1489 = arith.mulf %1485, %1224 : vector<8x128xf32>
      %1490 = arith.mulf %1483, %1161 : vector<8x128xf32>
      %1491 = arith.addf %1489, %1490 : vector<8x128xf32>
      %1492 = arith.mulf %1483, %1230 : vector<8x128xf32>
      %1493 = arith.mulf %1485, %1167 : vector<8x128xf32>
      %1494 = arith.subf %1492, %1493 : vector<8x128xf32>
      %1495 = arith.mulf %1485, %1230 : vector<8x128xf32>
      %1496 = arith.mulf %1483, %1167 : vector<8x128xf32>
      %1497 = arith.addf %1495, %1496 : vector<8x128xf32>
      %1498 = arith.mulf %1290, %1356 : vector<8x128xf32>
      %cst_255 = arith.constant dense<0.000000e+00> : vector<128xf32>
      %1499 = vector.multi_reduction <add>, %1498, %cst_255 [0] : vector<8x128xf32> to vector<128xf32>
      %1500 = vector.shape_cast %1499 : vector<128xf32> to vector<1x128xf32>
      %1501 = arith.subf %1344, %1278 : vector<1x128xf32>
      %1502 = arith.mulf %1500, %1500 : vector<1x128xf32>
      %1503 = arith.mulf %1278, %1344 : vector<1x128xf32>
      %cst_256 = arith.constant 9.99999982E-15 : f32
      %1504 = vector.broadcast %cst_256 : f32 to vector<1x128xf32>
      %1505 = arith.mulf %1504, %1503 : vector<1x128xf32>
      %1506 = arith.cmpf ole, %1502, %1505 : vector<1x128xf32>
      %cst_257 = arith.constant 0.000000e+00 : f32
      %1507 = vector.broadcast %cst_257 : f32 to vector<1x128xf32>
      %1508 = arith.cmpf oge, %1501, %1507 : vector<1x128xf32>
      %cst_258 = arith.constant 1.000000e+00 : f32
      %cst_259 = arith.constant -1.000000e+00 : f32
      %1509 = vector.broadcast %cst_258 : f32 to vector<1x128xf32>
      %1510 = vector.broadcast %cst_259 : f32 to vector<1x128xf32>
      %1511 = arith.select %1508, %1509, %1510 : vector<1x128xi1>, vector<1x128xf32>
      %1512 = math.absf %1501 : vector<1x128xf32>
      %1513 = arith.mulf %1501, %1501 : vector<1x128xf32>
      %1514 = arith.mulf %1500, %1500 : vector<1x128xf32>
      %cst_260 = arith.constant 4.000000e+00 : f32
      %1515 = vector.broadcast %cst_260 : f32 to vector<1x128xf32>
      %1516 = arith.mulf %1515, %1514 : vector<1x128xf32>
      %1517 = arith.addf %1513, %1516 : vector<1x128xf32>
      %1518 = math.sqrt %1517 : vector<1x128xf32>
      %1519 = arith.addf %1512, %1518 : vector<1x128xf32>
      %cst_261 = arith.constant 1.000000e+00 : f32
      %1520 = vector.broadcast %cst_261 : f32 to vector<1x128xf32>
      %1521 = arith.select %1506, %1520, %1519 : vector<1x128xi1>, vector<1x128xf32>
      %cst_262 = arith.constant 2.000000e+00 : f32
      %1522 = vector.broadcast %cst_262 : f32 to vector<1x128xf32>
      %1523 = arith.mulf %1522, %1511 : vector<1x128xf32>
      %1524 = arith.mulf %1523, %1500 : vector<1x128xf32>
      %1525 = arith.divf %1524, %1521 : vector<1x128xf32>
      %cst_263 = arith.constant 0.000000e+00 : f32
      %1526 = vector.broadcast %cst_263 : f32 to vector<1x128xf32>
      %1527 = arith.select %1506, %1526, %1525 : vector<1x128xi1>, vector<1x128xf32>
      %1528 = arith.mulf %1527, %1527 : vector<1x128xf32>
      %cst_264 = arith.constant 1.000000e+00 : f32
      %1529 = vector.broadcast %cst_264 : f32 to vector<1x128xf32>
      %1530 = arith.addf %1529, %1528 : vector<1x128xf32>
      %1531 = math.rsqrt %1530 : vector<1x128xf32>
      %1532 = arith.mulf %1531, %1527 : vector<1x128xf32>
      %1533 = arith.mulf %1531, %1531 : vector<1x128xf32>
      %1534 = arith.mulf %1532, %1532 : vector<1x128xf32>
      %1535 = arith.mulf %1531, %1532 : vector<1x128xf32>
      %cst_265 = arith.constant 2.000000e+00 : f32
      %1536 = vector.broadcast %cst_265 : f32 to vector<1x128xf32>
      %1537 = arith.mulf %1536, %1535 : vector<1x128xf32>
      %1538 = arith.mulf %1533, %1278 : vector<1x128xf32>
      %1539 = arith.mulf %1537, %1500 : vector<1x128xf32>
      %1540 = arith.subf %1538, %1539 : vector<1x128xf32>
      %1541 = arith.mulf %1534, %1344 : vector<1x128xf32>
      %1542 = arith.addf %1540, %1541 : vector<1x128xf32>
      %1543 = arith.mulf %1534, %1278 : vector<1x128xf32>
      %1544 = arith.mulf %1537, %1500 : vector<1x128xf32>
      %1545 = arith.addf %1543, %1544 : vector<1x128xf32>
      %1546 = arith.mulf %1533, %1344 : vector<1x128xf32>
      %1547 = arith.addf %1545, %1546 : vector<1x128xf32>
      %1548 = vector.shape_cast %1531 : vector<1x128xf32> to vector<1x128xf32>
      %1549 = vector.broadcast %1548 : vector<1x128xf32> to vector<8x128xf32>
      %1550 = vector.shape_cast %1532 : vector<1x128xf32> to vector<1x128xf32>
      %1551 = vector.broadcast %1550 : vector<1x128xf32> to vector<8x128xf32>
      %1552 = arith.mulf %1549, %1290 : vector<8x128xf32>
      %1553 = arith.mulf %1551, %1356 : vector<8x128xf32>
      %1554 = arith.subf %1552, %1553 : vector<8x128xf32>
      %1555 = arith.mulf %1551, %1290 : vector<8x128xf32>
      %1556 = arith.mulf %1549, %1356 : vector<8x128xf32>
      %1557 = arith.addf %1555, %1556 : vector<8x128xf32>
      %1558 = arith.mulf %1549, %1296 : vector<8x128xf32>
      %1559 = arith.mulf %1551, %1362 : vector<8x128xf32>
      %1560 = arith.subf %1558, %1559 : vector<8x128xf32>
      %1561 = arith.mulf %1551, %1296 : vector<8x128xf32>
      %1562 = arith.mulf %1549, %1362 : vector<8x128xf32>
      %1563 = arith.addf %1561, %1562 : vector<8x128xf32>
      %1564 = arith.mulf %1422, %1293 : vector<8x128xf32>
      %cst_266 = arith.constant dense<0.000000e+00> : vector<128xf32>
      %1565 = vector.multi_reduction <add>, %1564, %cst_266 [0] : vector<8x128xf32> to vector<128xf32>
      %1566 = vector.shape_cast %1565 : vector<128xf32> to vector<1x128xf32>
      %1567 = arith.subf %1283, %1410 : vector<1x128xf32>
      %1568 = arith.mulf %1566, %1566 : vector<1x128xf32>
      %1569 = arith.mulf %1410, %1283 : vector<1x128xf32>
      %cst_267 = arith.constant 9.99999982E-15 : f32
      %1570 = vector.broadcast %cst_267 : f32 to vector<1x128xf32>
      %1571 = arith.mulf %1570, %1569 : vector<1x128xf32>
      %1572 = arith.cmpf ole, %1568, %1571 : vector<1x128xf32>
      %cst_268 = arith.constant 0.000000e+00 : f32
      %1573 = vector.broadcast %cst_268 : f32 to vector<1x128xf32>
      %1574 = arith.cmpf oge, %1567, %1573 : vector<1x128xf32>
      %cst_269 = arith.constant 1.000000e+00 : f32
      %cst_270 = arith.constant -1.000000e+00 : f32
      %1575 = vector.broadcast %cst_269 : f32 to vector<1x128xf32>
      %1576 = vector.broadcast %cst_270 : f32 to vector<1x128xf32>
      %1577 = arith.select %1574, %1575, %1576 : vector<1x128xi1>, vector<1x128xf32>
      %1578 = math.absf %1567 : vector<1x128xf32>
      %1579 = arith.mulf %1567, %1567 : vector<1x128xf32>
      %1580 = arith.mulf %1566, %1566 : vector<1x128xf32>
      %cst_271 = arith.constant 4.000000e+00 : f32
      %1581 = vector.broadcast %cst_271 : f32 to vector<1x128xf32>
      %1582 = arith.mulf %1581, %1580 : vector<1x128xf32>
      %1583 = arith.addf %1579, %1582 : vector<1x128xf32>
      %1584 = math.sqrt %1583 : vector<1x128xf32>
      %1585 = arith.addf %1578, %1584 : vector<1x128xf32>
      %cst_272 = arith.constant 1.000000e+00 : f32
      %1586 = vector.broadcast %cst_272 : f32 to vector<1x128xf32>
      %1587 = arith.select %1572, %1586, %1585 : vector<1x128xi1>, vector<1x128xf32>
      %cst_273 = arith.constant 2.000000e+00 : f32
      %1588 = vector.broadcast %cst_273 : f32 to vector<1x128xf32>
      %1589 = arith.mulf %1588, %1577 : vector<1x128xf32>
      %1590 = arith.mulf %1589, %1566 : vector<1x128xf32>
      %1591 = arith.divf %1590, %1587 : vector<1x128xf32>
      %cst_274 = arith.constant 0.000000e+00 : f32
      %1592 = vector.broadcast %cst_274 : f32 to vector<1x128xf32>
      %1593 = arith.select %1572, %1592, %1591 : vector<1x128xi1>, vector<1x128xf32>
      %1594 = arith.mulf %1593, %1593 : vector<1x128xf32>
      %cst_275 = arith.constant 1.000000e+00 : f32
      %1595 = vector.broadcast %cst_275 : f32 to vector<1x128xf32>
      %1596 = arith.addf %1595, %1594 : vector<1x128xf32>
      %1597 = math.rsqrt %1596 : vector<1x128xf32>
      %1598 = arith.mulf %1597, %1593 : vector<1x128xf32>
      %1599 = arith.mulf %1597, %1597 : vector<1x128xf32>
      %1600 = arith.mulf %1598, %1598 : vector<1x128xf32>
      %1601 = arith.mulf %1597, %1598 : vector<1x128xf32>
      %cst_276 = arith.constant 2.000000e+00 : f32
      %1602 = vector.broadcast %cst_276 : f32 to vector<1x128xf32>
      %1603 = arith.mulf %1602, %1601 : vector<1x128xf32>
      %1604 = arith.mulf %1599, %1410 : vector<1x128xf32>
      %1605 = arith.mulf %1603, %1566 : vector<1x128xf32>
      %1606 = arith.subf %1604, %1605 : vector<1x128xf32>
      %1607 = arith.mulf %1600, %1283 : vector<1x128xf32>
      %1608 = arith.addf %1606, %1607 : vector<1x128xf32>
      %1609 = arith.mulf %1600, %1410 : vector<1x128xf32>
      %1610 = arith.mulf %1603, %1566 : vector<1x128xf32>
      %1611 = arith.addf %1609, %1610 : vector<1x128xf32>
      %1612 = arith.mulf %1599, %1283 : vector<1x128xf32>
      %1613 = arith.addf %1611, %1612 : vector<1x128xf32>
      %1614 = vector.shape_cast %1597 : vector<1x128xf32> to vector<1x128xf32>
      %1615 = vector.broadcast %1614 : vector<1x128xf32> to vector<8x128xf32>
      %1616 = vector.shape_cast %1598 : vector<1x128xf32> to vector<1x128xf32>
      %1617 = vector.broadcast %1616 : vector<1x128xf32> to vector<8x128xf32>
      %1618 = arith.mulf %1615, %1422 : vector<8x128xf32>
      %1619 = arith.mulf %1617, %1293 : vector<8x128xf32>
      %1620 = arith.subf %1618, %1619 : vector<8x128xf32>
      %1621 = arith.mulf %1617, %1422 : vector<8x128xf32>
      %1622 = arith.mulf %1615, %1293 : vector<8x128xf32>
      %1623 = arith.addf %1621, %1622 : vector<8x128xf32>
      %1624 = arith.mulf %1615, %1428 : vector<8x128xf32>
      %1625 = arith.mulf %1617, %1299 : vector<8x128xf32>
      %1626 = arith.subf %1624, %1625 : vector<8x128xf32>
      %1627 = arith.mulf %1617, %1428 : vector<8x128xf32>
      %1628 = arith.mulf %1615, %1299 : vector<8x128xf32>
      %1629 = arith.addf %1627, %1628 : vector<8x128xf32>
      %1630 = arith.mulf %1488, %1359 : vector<8x128xf32>
      %cst_277 = arith.constant dense<0.000000e+00> : vector<128xf32>
      %1631 = vector.multi_reduction <add>, %1630, %cst_277 [0] : vector<8x128xf32> to vector<128xf32>
      %1632 = vector.shape_cast %1631 : vector<128xf32> to vector<1x128xf32>
      %1633 = arith.subf %1349, %1476 : vector<1x128xf32>
      %1634 = arith.mulf %1632, %1632 : vector<1x128xf32>
      %1635 = arith.mulf %1476, %1349 : vector<1x128xf32>
      %cst_278 = arith.constant 9.99999982E-15 : f32
      %1636 = vector.broadcast %cst_278 : f32 to vector<1x128xf32>
      %1637 = arith.mulf %1636, %1635 : vector<1x128xf32>
      %1638 = arith.cmpf ole, %1634, %1637 : vector<1x128xf32>
      %cst_279 = arith.constant 0.000000e+00 : f32
      %1639 = vector.broadcast %cst_279 : f32 to vector<1x128xf32>
      %1640 = arith.cmpf oge, %1633, %1639 : vector<1x128xf32>
      %cst_280 = arith.constant 1.000000e+00 : f32
      %cst_281 = arith.constant -1.000000e+00 : f32
      %1641 = vector.broadcast %cst_280 : f32 to vector<1x128xf32>
      %1642 = vector.broadcast %cst_281 : f32 to vector<1x128xf32>
      %1643 = arith.select %1640, %1641, %1642 : vector<1x128xi1>, vector<1x128xf32>
      %1644 = math.absf %1633 : vector<1x128xf32>
      %1645 = arith.mulf %1633, %1633 : vector<1x128xf32>
      %1646 = arith.mulf %1632, %1632 : vector<1x128xf32>
      %cst_282 = arith.constant 4.000000e+00 : f32
      %1647 = vector.broadcast %cst_282 : f32 to vector<1x128xf32>
      %1648 = arith.mulf %1647, %1646 : vector<1x128xf32>
      %1649 = arith.addf %1645, %1648 : vector<1x128xf32>
      %1650 = math.sqrt %1649 : vector<1x128xf32>
      %1651 = arith.addf %1644, %1650 : vector<1x128xf32>
      %cst_283 = arith.constant 1.000000e+00 : f32
      %1652 = vector.broadcast %cst_283 : f32 to vector<1x128xf32>
      %1653 = arith.select %1638, %1652, %1651 : vector<1x128xi1>, vector<1x128xf32>
      %cst_284 = arith.constant 2.000000e+00 : f32
      %1654 = vector.broadcast %cst_284 : f32 to vector<1x128xf32>
      %1655 = arith.mulf %1654, %1643 : vector<1x128xf32>
      %1656 = arith.mulf %1655, %1632 : vector<1x128xf32>
      %1657 = arith.divf %1656, %1653 : vector<1x128xf32>
      %cst_285 = arith.constant 0.000000e+00 : f32
      %1658 = vector.broadcast %cst_285 : f32 to vector<1x128xf32>
      %1659 = arith.select %1638, %1658, %1657 : vector<1x128xi1>, vector<1x128xf32>
      %1660 = arith.mulf %1659, %1659 : vector<1x128xf32>
      %cst_286 = arith.constant 1.000000e+00 : f32
      %1661 = vector.broadcast %cst_286 : f32 to vector<1x128xf32>
      %1662 = arith.addf %1661, %1660 : vector<1x128xf32>
      %1663 = math.rsqrt %1662 : vector<1x128xf32>
      %1664 = arith.mulf %1663, %1659 : vector<1x128xf32>
      %1665 = arith.mulf %1663, %1663 : vector<1x128xf32>
      %1666 = arith.mulf %1664, %1664 : vector<1x128xf32>
      %1667 = arith.mulf %1663, %1664 : vector<1x128xf32>
      %cst_287 = arith.constant 2.000000e+00 : f32
      %1668 = vector.broadcast %cst_287 : f32 to vector<1x128xf32>
      %1669 = arith.mulf %1668, %1667 : vector<1x128xf32>
      %1670 = arith.mulf %1665, %1476 : vector<1x128xf32>
      %1671 = arith.mulf %1669, %1632 : vector<1x128xf32>
      %1672 = arith.subf %1670, %1671 : vector<1x128xf32>
      %1673 = arith.mulf %1666, %1349 : vector<1x128xf32>
      %1674 = arith.addf %1672, %1673 : vector<1x128xf32>
      %1675 = arith.mulf %1666, %1476 : vector<1x128xf32>
      %1676 = arith.mulf %1669, %1632 : vector<1x128xf32>
      %1677 = arith.addf %1675, %1676 : vector<1x128xf32>
      %1678 = arith.mulf %1665, %1349 : vector<1x128xf32>
      %1679 = arith.addf %1677, %1678 : vector<1x128xf32>
      %1680 = vector.shape_cast %1663 : vector<1x128xf32> to vector<1x128xf32>
      %1681 = vector.broadcast %1680 : vector<1x128xf32> to vector<8x128xf32>
      %1682 = vector.shape_cast %1664 : vector<1x128xf32> to vector<1x128xf32>
      %1683 = vector.broadcast %1682 : vector<1x128xf32> to vector<8x128xf32>
      %1684 = arith.mulf %1681, %1488 : vector<8x128xf32>
      %1685 = arith.mulf %1683, %1359 : vector<8x128xf32>
      %1686 = arith.subf %1684, %1685 : vector<8x128xf32>
      %1687 = arith.mulf %1683, %1488 : vector<8x128xf32>
      %1688 = arith.mulf %1681, %1359 : vector<8x128xf32>
      %1689 = arith.addf %1687, %1688 : vector<8x128xf32>
      %1690 = arith.mulf %1681, %1494 : vector<8x128xf32>
      %1691 = arith.mulf %1683, %1365 : vector<8x128xf32>
      %1692 = arith.subf %1690, %1691 : vector<8x128xf32>
      %1693 = arith.mulf %1683, %1494 : vector<8x128xf32>
      %1694 = arith.mulf %1681, %1365 : vector<8x128xf32>
      %1695 = arith.addf %1693, %1694 : vector<8x128xf32>
      %1696 = arith.mulf %1425, %1491 : vector<8x128xf32>
      %cst_288 = arith.constant dense<0.000000e+00> : vector<128xf32>
      %1697 = vector.multi_reduction <add>, %1696, %cst_288 [0] : vector<8x128xf32> to vector<128xf32>
      %1698 = vector.shape_cast %1697 : vector<128xf32> to vector<1x128xf32>
      %1699 = arith.subf %1481, %1415 : vector<1x128xf32>
      %1700 = arith.mulf %1698, %1698 : vector<1x128xf32>
      %1701 = arith.mulf %1415, %1481 : vector<1x128xf32>
      %cst_289 = arith.constant 9.99999982E-15 : f32
      %1702 = vector.broadcast %cst_289 : f32 to vector<1x128xf32>
      %1703 = arith.mulf %1702, %1701 : vector<1x128xf32>
      %1704 = arith.cmpf ole, %1700, %1703 : vector<1x128xf32>
      %cst_290 = arith.constant 0.000000e+00 : f32
      %1705 = vector.broadcast %cst_290 : f32 to vector<1x128xf32>
      %1706 = arith.cmpf oge, %1699, %1705 : vector<1x128xf32>
      %cst_291 = arith.constant 1.000000e+00 : f32
      %cst_292 = arith.constant -1.000000e+00 : f32
      %1707 = vector.broadcast %cst_291 : f32 to vector<1x128xf32>
      %1708 = vector.broadcast %cst_292 : f32 to vector<1x128xf32>
      %1709 = arith.select %1706, %1707, %1708 : vector<1x128xi1>, vector<1x128xf32>
      %1710 = math.absf %1699 : vector<1x128xf32>
      %1711 = arith.mulf %1699, %1699 : vector<1x128xf32>
      %1712 = arith.mulf %1698, %1698 : vector<1x128xf32>
      %cst_293 = arith.constant 4.000000e+00 : f32
      %1713 = vector.broadcast %cst_293 : f32 to vector<1x128xf32>
      %1714 = arith.mulf %1713, %1712 : vector<1x128xf32>
      %1715 = arith.addf %1711, %1714 : vector<1x128xf32>
      %1716 = math.sqrt %1715 : vector<1x128xf32>
      %1717 = arith.addf %1710, %1716 : vector<1x128xf32>
      %cst_294 = arith.constant 1.000000e+00 : f32
      %1718 = vector.broadcast %cst_294 : f32 to vector<1x128xf32>
      %1719 = arith.select %1704, %1718, %1717 : vector<1x128xi1>, vector<1x128xf32>
      %cst_295 = arith.constant 2.000000e+00 : f32
      %1720 = vector.broadcast %cst_295 : f32 to vector<1x128xf32>
      %1721 = arith.mulf %1720, %1709 : vector<1x128xf32>
      %1722 = arith.mulf %1721, %1698 : vector<1x128xf32>
      %1723 = arith.divf %1722, %1719 : vector<1x128xf32>
      %cst_296 = arith.constant 0.000000e+00 : f32
      %1724 = vector.broadcast %cst_296 : f32 to vector<1x128xf32>
      %1725 = arith.select %1704, %1724, %1723 : vector<1x128xi1>, vector<1x128xf32>
      %1726 = arith.mulf %1725, %1725 : vector<1x128xf32>
      %cst_297 = arith.constant 1.000000e+00 : f32
      %1727 = vector.broadcast %cst_297 : f32 to vector<1x128xf32>
      %1728 = arith.addf %1727, %1726 : vector<1x128xf32>
      %1729 = math.rsqrt %1728 : vector<1x128xf32>
      %1730 = arith.mulf %1729, %1725 : vector<1x128xf32>
      %1731 = arith.mulf %1729, %1729 : vector<1x128xf32>
      %1732 = arith.mulf %1730, %1730 : vector<1x128xf32>
      %1733 = arith.mulf %1729, %1730 : vector<1x128xf32>
      %cst_298 = arith.constant 2.000000e+00 : f32
      %1734 = vector.broadcast %cst_298 : f32 to vector<1x128xf32>
      %1735 = arith.mulf %1734, %1733 : vector<1x128xf32>
      %1736 = arith.mulf %1731, %1415 : vector<1x128xf32>
      %1737 = arith.mulf %1735, %1698 : vector<1x128xf32>
      %1738 = arith.subf %1736, %1737 : vector<1x128xf32>
      %1739 = arith.mulf %1732, %1481 : vector<1x128xf32>
      %1740 = arith.addf %1738, %1739 : vector<1x128xf32>
      %1741 = arith.mulf %1732, %1415 : vector<1x128xf32>
      %1742 = arith.mulf %1735, %1698 : vector<1x128xf32>
      %1743 = arith.addf %1741, %1742 : vector<1x128xf32>
      %1744 = arith.mulf %1731, %1481 : vector<1x128xf32>
      %1745 = arith.addf %1743, %1744 : vector<1x128xf32>
      %1746 = vector.shape_cast %1729 : vector<1x128xf32> to vector<1x128xf32>
      %1747 = vector.broadcast %1746 : vector<1x128xf32> to vector<8x128xf32>
      %1748 = vector.shape_cast %1730 : vector<1x128xf32> to vector<1x128xf32>
      %1749 = vector.broadcast %1748 : vector<1x128xf32> to vector<8x128xf32>
      %1750 = arith.mulf %1747, %1425 : vector<8x128xf32>
      %1751 = arith.mulf %1749, %1491 : vector<8x128xf32>
      %1752 = arith.subf %1750, %1751 : vector<8x128xf32>
      %1753 = arith.mulf %1749, %1425 : vector<8x128xf32>
      %1754 = arith.mulf %1747, %1491 : vector<8x128xf32>
      %1755 = arith.addf %1753, %1754 : vector<8x128xf32>
      %1756 = arith.mulf %1747, %1431 : vector<8x128xf32>
      %1757 = arith.mulf %1749, %1497 : vector<8x128xf32>
      %1758 = arith.subf %1756, %1757 : vector<8x128xf32>
      %1759 = arith.mulf %1749, %1431 : vector<8x128xf32>
      %1760 = arith.mulf %1747, %1497 : vector<8x128xf32>
      %1761 = arith.addf %1759, %1760 : vector<8x128xf32>
      %1762 = arith.mulf %1554, %1620 : vector<8x128xf32>
      %cst_299 = arith.constant dense<0.000000e+00> : vector<128xf32>
      %1763 = vector.multi_reduction <add>, %1762, %cst_299 [0] : vector<8x128xf32> to vector<128xf32>
      %1764 = vector.shape_cast %1763 : vector<128xf32> to vector<1x128xf32>
      %1765 = arith.subf %1608, %1542 : vector<1x128xf32>
      %1766 = arith.mulf %1764, %1764 : vector<1x128xf32>
      %1767 = arith.mulf %1542, %1608 : vector<1x128xf32>
      %cst_300 = arith.constant 9.99999982E-15 : f32
      %1768 = vector.broadcast %cst_300 : f32 to vector<1x128xf32>
      %1769 = arith.mulf %1768, %1767 : vector<1x128xf32>
      %1770 = arith.cmpf ole, %1766, %1769 : vector<1x128xf32>
      %cst_301 = arith.constant 0.000000e+00 : f32
      %1771 = vector.broadcast %cst_301 : f32 to vector<1x128xf32>
      %1772 = arith.cmpf oge, %1765, %1771 : vector<1x128xf32>
      %cst_302 = arith.constant 1.000000e+00 : f32
      %cst_303 = arith.constant -1.000000e+00 : f32
      %1773 = vector.broadcast %cst_302 : f32 to vector<1x128xf32>
      %1774 = vector.broadcast %cst_303 : f32 to vector<1x128xf32>
      %1775 = arith.select %1772, %1773, %1774 : vector<1x128xi1>, vector<1x128xf32>
      %1776 = math.absf %1765 : vector<1x128xf32>
      %1777 = arith.mulf %1765, %1765 : vector<1x128xf32>
      %1778 = arith.mulf %1764, %1764 : vector<1x128xf32>
      %cst_304 = arith.constant 4.000000e+00 : f32
      %1779 = vector.broadcast %cst_304 : f32 to vector<1x128xf32>
      %1780 = arith.mulf %1779, %1778 : vector<1x128xf32>
      %1781 = arith.addf %1777, %1780 : vector<1x128xf32>
      %1782 = math.sqrt %1781 : vector<1x128xf32>
      %1783 = arith.addf %1776, %1782 : vector<1x128xf32>
      %cst_305 = arith.constant 1.000000e+00 : f32
      %1784 = vector.broadcast %cst_305 : f32 to vector<1x128xf32>
      %1785 = arith.select %1770, %1784, %1783 : vector<1x128xi1>, vector<1x128xf32>
      %cst_306 = arith.constant 2.000000e+00 : f32
      %1786 = vector.broadcast %cst_306 : f32 to vector<1x128xf32>
      %1787 = arith.mulf %1786, %1775 : vector<1x128xf32>
      %1788 = arith.mulf %1787, %1764 : vector<1x128xf32>
      %1789 = arith.divf %1788, %1785 : vector<1x128xf32>
      %cst_307 = arith.constant 0.000000e+00 : f32
      %1790 = vector.broadcast %cst_307 : f32 to vector<1x128xf32>
      %1791 = arith.select %1770, %1790, %1789 : vector<1x128xi1>, vector<1x128xf32>
      %1792 = arith.mulf %1791, %1791 : vector<1x128xf32>
      %cst_308 = arith.constant 1.000000e+00 : f32
      %1793 = vector.broadcast %cst_308 : f32 to vector<1x128xf32>
      %1794 = arith.addf %1793, %1792 : vector<1x128xf32>
      %1795 = math.rsqrt %1794 : vector<1x128xf32>
      %1796 = arith.mulf %1795, %1791 : vector<1x128xf32>
      %1797 = arith.mulf %1795, %1795 : vector<1x128xf32>
      %1798 = arith.mulf %1796, %1796 : vector<1x128xf32>
      %1799 = arith.mulf %1795, %1796 : vector<1x128xf32>
      %cst_309 = arith.constant 2.000000e+00 : f32
      %1800 = vector.broadcast %cst_309 : f32 to vector<1x128xf32>
      %1801 = arith.mulf %1800, %1799 : vector<1x128xf32>
      %1802 = arith.mulf %1797, %1542 : vector<1x128xf32>
      %1803 = arith.mulf %1801, %1764 : vector<1x128xf32>
      %1804 = arith.subf %1802, %1803 : vector<1x128xf32>
      %1805 = arith.mulf %1798, %1608 : vector<1x128xf32>
      %1806 = arith.addf %1804, %1805 : vector<1x128xf32>
      %1807 = arith.mulf %1798, %1542 : vector<1x128xf32>
      %1808 = arith.mulf %1801, %1764 : vector<1x128xf32>
      %1809 = arith.addf %1807, %1808 : vector<1x128xf32>
      %1810 = arith.mulf %1797, %1608 : vector<1x128xf32>
      %1811 = arith.addf %1809, %1810 : vector<1x128xf32>
      %1812 = vector.shape_cast %1795 : vector<1x128xf32> to vector<1x128xf32>
      %1813 = vector.broadcast %1812 : vector<1x128xf32> to vector<8x128xf32>
      %1814 = vector.shape_cast %1796 : vector<1x128xf32> to vector<1x128xf32>
      %1815 = vector.broadcast %1814 : vector<1x128xf32> to vector<8x128xf32>
      %1816 = arith.mulf %1813, %1554 : vector<8x128xf32>
      %1817 = arith.mulf %1815, %1620 : vector<8x128xf32>
      %1818 = arith.subf %1816, %1817 : vector<8x128xf32>
      %1819 = arith.mulf %1815, %1554 : vector<8x128xf32>
      %1820 = arith.mulf %1813, %1620 : vector<8x128xf32>
      %1821 = arith.addf %1819, %1820 : vector<8x128xf32>
      %1822 = arith.mulf %1813, %1560 : vector<8x128xf32>
      %1823 = arith.mulf %1815, %1626 : vector<8x128xf32>
      %1824 = arith.subf %1822, %1823 : vector<8x128xf32>
      %1825 = arith.mulf %1815, %1560 : vector<8x128xf32>
      %1826 = arith.mulf %1813, %1626 : vector<8x128xf32>
      %1827 = arith.addf %1825, %1826 : vector<8x128xf32>
      %1828 = arith.mulf %1686, %1557 : vector<8x128xf32>
      %cst_310 = arith.constant dense<0.000000e+00> : vector<128xf32>
      %1829 = vector.multi_reduction <add>, %1828, %cst_310 [0] : vector<8x128xf32> to vector<128xf32>
      %1830 = vector.shape_cast %1829 : vector<128xf32> to vector<1x128xf32>
      %1831 = arith.subf %1547, %1674 : vector<1x128xf32>
      %1832 = arith.mulf %1830, %1830 : vector<1x128xf32>
      %1833 = arith.mulf %1674, %1547 : vector<1x128xf32>
      %cst_311 = arith.constant 9.99999982E-15 : f32
      %1834 = vector.broadcast %cst_311 : f32 to vector<1x128xf32>
      %1835 = arith.mulf %1834, %1833 : vector<1x128xf32>
      %1836 = arith.cmpf ole, %1832, %1835 : vector<1x128xf32>
      %cst_312 = arith.constant 0.000000e+00 : f32
      %1837 = vector.broadcast %cst_312 : f32 to vector<1x128xf32>
      %1838 = arith.cmpf oge, %1831, %1837 : vector<1x128xf32>
      %cst_313 = arith.constant 1.000000e+00 : f32
      %cst_314 = arith.constant -1.000000e+00 : f32
      %1839 = vector.broadcast %cst_313 : f32 to vector<1x128xf32>
      %1840 = vector.broadcast %cst_314 : f32 to vector<1x128xf32>
      %1841 = arith.select %1838, %1839, %1840 : vector<1x128xi1>, vector<1x128xf32>
      %1842 = math.absf %1831 : vector<1x128xf32>
      %1843 = arith.mulf %1831, %1831 : vector<1x128xf32>
      %1844 = arith.mulf %1830, %1830 : vector<1x128xf32>
      %cst_315 = arith.constant 4.000000e+00 : f32
      %1845 = vector.broadcast %cst_315 : f32 to vector<1x128xf32>
      %1846 = arith.mulf %1845, %1844 : vector<1x128xf32>
      %1847 = arith.addf %1843, %1846 : vector<1x128xf32>
      %1848 = math.sqrt %1847 : vector<1x128xf32>
      %1849 = arith.addf %1842, %1848 : vector<1x128xf32>
      %cst_316 = arith.constant 1.000000e+00 : f32
      %1850 = vector.broadcast %cst_316 : f32 to vector<1x128xf32>
      %1851 = arith.select %1836, %1850, %1849 : vector<1x128xi1>, vector<1x128xf32>
      %cst_317 = arith.constant 2.000000e+00 : f32
      %1852 = vector.broadcast %cst_317 : f32 to vector<1x128xf32>
      %1853 = arith.mulf %1852, %1841 : vector<1x128xf32>
      %1854 = arith.mulf %1853, %1830 : vector<1x128xf32>
      %1855 = arith.divf %1854, %1851 : vector<1x128xf32>
      %cst_318 = arith.constant 0.000000e+00 : f32
      %1856 = vector.broadcast %cst_318 : f32 to vector<1x128xf32>
      %1857 = arith.select %1836, %1856, %1855 : vector<1x128xi1>, vector<1x128xf32>
      %1858 = arith.mulf %1857, %1857 : vector<1x128xf32>
      %cst_319 = arith.constant 1.000000e+00 : f32
      %1859 = vector.broadcast %cst_319 : f32 to vector<1x128xf32>
      %1860 = arith.addf %1859, %1858 : vector<1x128xf32>
      %1861 = math.rsqrt %1860 : vector<1x128xf32>
      %1862 = arith.mulf %1861, %1857 : vector<1x128xf32>
      %1863 = arith.mulf %1861, %1861 : vector<1x128xf32>
      %1864 = arith.mulf %1862, %1862 : vector<1x128xf32>
      %1865 = arith.mulf %1861, %1862 : vector<1x128xf32>
      %cst_320 = arith.constant 2.000000e+00 : f32
      %1866 = vector.broadcast %cst_320 : f32 to vector<1x128xf32>
      %1867 = arith.mulf %1866, %1865 : vector<1x128xf32>
      %1868 = arith.mulf %1863, %1674 : vector<1x128xf32>
      %1869 = arith.mulf %1867, %1830 : vector<1x128xf32>
      %1870 = arith.subf %1868, %1869 : vector<1x128xf32>
      %1871 = arith.mulf %1864, %1547 : vector<1x128xf32>
      %1872 = arith.addf %1870, %1871 : vector<1x128xf32>
      %1873 = arith.mulf %1864, %1674 : vector<1x128xf32>
      %1874 = arith.mulf %1867, %1830 : vector<1x128xf32>
      %1875 = arith.addf %1873, %1874 : vector<1x128xf32>
      %1876 = arith.mulf %1863, %1547 : vector<1x128xf32>
      %1877 = arith.addf %1875, %1876 : vector<1x128xf32>
      %1878 = vector.shape_cast %1861 : vector<1x128xf32> to vector<1x128xf32>
      %1879 = vector.broadcast %1878 : vector<1x128xf32> to vector<8x128xf32>
      %1880 = vector.shape_cast %1862 : vector<1x128xf32> to vector<1x128xf32>
      %1881 = vector.broadcast %1880 : vector<1x128xf32> to vector<8x128xf32>
      %1882 = arith.mulf %1879, %1686 : vector<8x128xf32>
      %1883 = arith.mulf %1881, %1557 : vector<8x128xf32>
      %1884 = arith.subf %1882, %1883 : vector<8x128xf32>
      %1885 = arith.mulf %1881, %1686 : vector<8x128xf32>
      %1886 = arith.mulf %1879, %1557 : vector<8x128xf32>
      %1887 = arith.addf %1885, %1886 : vector<8x128xf32>
      %1888 = arith.mulf %1879, %1692 : vector<8x128xf32>
      %1889 = arith.mulf %1881, %1563 : vector<8x128xf32>
      %1890 = arith.subf %1888, %1889 : vector<8x128xf32>
      %1891 = arith.mulf %1881, %1692 : vector<8x128xf32>
      %1892 = arith.mulf %1879, %1563 : vector<8x128xf32>
      %1893 = arith.addf %1891, %1892 : vector<8x128xf32>
      %1894 = arith.mulf %1623, %1755 : vector<8x128xf32>
      %cst_321 = arith.constant dense<0.000000e+00> : vector<128xf32>
      %1895 = vector.multi_reduction <add>, %1894, %cst_321 [0] : vector<8x128xf32> to vector<128xf32>
      %1896 = vector.shape_cast %1895 : vector<128xf32> to vector<1x128xf32>
      %1897 = arith.subf %1745, %1613 : vector<1x128xf32>
      %1898 = arith.mulf %1896, %1896 : vector<1x128xf32>
      %1899 = arith.mulf %1613, %1745 : vector<1x128xf32>
      %cst_322 = arith.constant 9.99999982E-15 : f32
      %1900 = vector.broadcast %cst_322 : f32 to vector<1x128xf32>
      %1901 = arith.mulf %1900, %1899 : vector<1x128xf32>
      %1902 = arith.cmpf ole, %1898, %1901 : vector<1x128xf32>
      %cst_323 = arith.constant 0.000000e+00 : f32
      %1903 = vector.broadcast %cst_323 : f32 to vector<1x128xf32>
      %1904 = arith.cmpf oge, %1897, %1903 : vector<1x128xf32>
      %cst_324 = arith.constant 1.000000e+00 : f32
      %cst_325 = arith.constant -1.000000e+00 : f32
      %1905 = vector.broadcast %cst_324 : f32 to vector<1x128xf32>
      %1906 = vector.broadcast %cst_325 : f32 to vector<1x128xf32>
      %1907 = arith.select %1904, %1905, %1906 : vector<1x128xi1>, vector<1x128xf32>
      %1908 = math.absf %1897 : vector<1x128xf32>
      %1909 = arith.mulf %1897, %1897 : vector<1x128xf32>
      %1910 = arith.mulf %1896, %1896 : vector<1x128xf32>
      %cst_326 = arith.constant 4.000000e+00 : f32
      %1911 = vector.broadcast %cst_326 : f32 to vector<1x128xf32>
      %1912 = arith.mulf %1911, %1910 : vector<1x128xf32>
      %1913 = arith.addf %1909, %1912 : vector<1x128xf32>
      %1914 = math.sqrt %1913 : vector<1x128xf32>
      %1915 = arith.addf %1908, %1914 : vector<1x128xf32>
      %cst_327 = arith.constant 1.000000e+00 : f32
      %1916 = vector.broadcast %cst_327 : f32 to vector<1x128xf32>
      %1917 = arith.select %1902, %1916, %1915 : vector<1x128xi1>, vector<1x128xf32>
      %cst_328 = arith.constant 2.000000e+00 : f32
      %1918 = vector.broadcast %cst_328 : f32 to vector<1x128xf32>
      %1919 = arith.mulf %1918, %1907 : vector<1x128xf32>
      %1920 = arith.mulf %1919, %1896 : vector<1x128xf32>
      %1921 = arith.divf %1920, %1917 : vector<1x128xf32>
      %cst_329 = arith.constant 0.000000e+00 : f32
      %1922 = vector.broadcast %cst_329 : f32 to vector<1x128xf32>
      %1923 = arith.select %1902, %1922, %1921 : vector<1x128xi1>, vector<1x128xf32>
      %1924 = arith.mulf %1923, %1923 : vector<1x128xf32>
      %cst_330 = arith.constant 1.000000e+00 : f32
      %1925 = vector.broadcast %cst_330 : f32 to vector<1x128xf32>
      %1926 = arith.addf %1925, %1924 : vector<1x128xf32>
      %1927 = math.rsqrt %1926 : vector<1x128xf32>
      %1928 = arith.mulf %1927, %1923 : vector<1x128xf32>
      %1929 = arith.mulf %1927, %1927 : vector<1x128xf32>
      %1930 = arith.mulf %1928, %1928 : vector<1x128xf32>
      %1931 = arith.mulf %1927, %1928 : vector<1x128xf32>
      %cst_331 = arith.constant 2.000000e+00 : f32
      %1932 = vector.broadcast %cst_331 : f32 to vector<1x128xf32>
      %1933 = arith.mulf %1932, %1931 : vector<1x128xf32>
      %1934 = arith.mulf %1929, %1613 : vector<1x128xf32>
      %1935 = arith.mulf %1933, %1896 : vector<1x128xf32>
      %1936 = arith.subf %1934, %1935 : vector<1x128xf32>
      %1937 = arith.mulf %1930, %1745 : vector<1x128xf32>
      %1938 = arith.addf %1936, %1937 : vector<1x128xf32>
      %1939 = arith.mulf %1930, %1613 : vector<1x128xf32>
      %1940 = arith.mulf %1933, %1896 : vector<1x128xf32>
      %1941 = arith.addf %1939, %1940 : vector<1x128xf32>
      %1942 = arith.mulf %1929, %1745 : vector<1x128xf32>
      %1943 = arith.addf %1941, %1942 : vector<1x128xf32>
      %1944 = vector.shape_cast %1927 : vector<1x128xf32> to vector<1x128xf32>
      %1945 = vector.broadcast %1944 : vector<1x128xf32> to vector<8x128xf32>
      %1946 = vector.shape_cast %1928 : vector<1x128xf32> to vector<1x128xf32>
      %1947 = vector.broadcast %1946 : vector<1x128xf32> to vector<8x128xf32>
      %1948 = arith.mulf %1945, %1623 : vector<8x128xf32>
      %1949 = arith.mulf %1947, %1755 : vector<8x128xf32>
      %1950 = arith.subf %1948, %1949 : vector<8x128xf32>
      %1951 = arith.mulf %1947, %1623 : vector<8x128xf32>
      %1952 = arith.mulf %1945, %1755 : vector<8x128xf32>
      %1953 = arith.addf %1951, %1952 : vector<8x128xf32>
      %1954 = arith.mulf %1945, %1629 : vector<8x128xf32>
      %1955 = arith.mulf %1947, %1761 : vector<8x128xf32>
      %1956 = arith.subf %1954, %1955 : vector<8x128xf32>
      %1957 = arith.mulf %1947, %1629 : vector<8x128xf32>
      %1958 = arith.mulf %1945, %1761 : vector<8x128xf32>
      %1959 = arith.addf %1957, %1958 : vector<8x128xf32>
      %1960 = arith.mulf %1689, %1752 : vector<8x128xf32>
      %cst_332 = arith.constant dense<0.000000e+00> : vector<128xf32>
      %1961 = vector.multi_reduction <add>, %1960, %cst_332 [0] : vector<8x128xf32> to vector<128xf32>
      %1962 = vector.shape_cast %1961 : vector<128xf32> to vector<1x128xf32>
      %1963 = arith.subf %1740, %1679 : vector<1x128xf32>
      %1964 = arith.mulf %1962, %1962 : vector<1x128xf32>
      %1965 = arith.mulf %1679, %1740 : vector<1x128xf32>
      %cst_333 = arith.constant 9.99999982E-15 : f32
      %1966 = vector.broadcast %cst_333 : f32 to vector<1x128xf32>
      %1967 = arith.mulf %1966, %1965 : vector<1x128xf32>
      %1968 = arith.cmpf ole, %1964, %1967 : vector<1x128xf32>
      %cst_334 = arith.constant 0.000000e+00 : f32
      %1969 = vector.broadcast %cst_334 : f32 to vector<1x128xf32>
      %1970 = arith.cmpf oge, %1963, %1969 : vector<1x128xf32>
      %cst_335 = arith.constant 1.000000e+00 : f32
      %cst_336 = arith.constant -1.000000e+00 : f32
      %1971 = vector.broadcast %cst_335 : f32 to vector<1x128xf32>
      %1972 = vector.broadcast %cst_336 : f32 to vector<1x128xf32>
      %1973 = arith.select %1970, %1971, %1972 : vector<1x128xi1>, vector<1x128xf32>
      %1974 = math.absf %1963 : vector<1x128xf32>
      %1975 = arith.mulf %1963, %1963 : vector<1x128xf32>
      %1976 = arith.mulf %1962, %1962 : vector<1x128xf32>
      %cst_337 = arith.constant 4.000000e+00 : f32
      %1977 = vector.broadcast %cst_337 : f32 to vector<1x128xf32>
      %1978 = arith.mulf %1977, %1976 : vector<1x128xf32>
      %1979 = arith.addf %1975, %1978 : vector<1x128xf32>
      %1980 = math.sqrt %1979 : vector<1x128xf32>
      %1981 = arith.addf %1974, %1980 : vector<1x128xf32>
      %cst_338 = arith.constant 1.000000e+00 : f32
      %1982 = vector.broadcast %cst_338 : f32 to vector<1x128xf32>
      %1983 = arith.select %1968, %1982, %1981 : vector<1x128xi1>, vector<1x128xf32>
      %cst_339 = arith.constant 2.000000e+00 : f32
      %1984 = vector.broadcast %cst_339 : f32 to vector<1x128xf32>
      %1985 = arith.mulf %1984, %1973 : vector<1x128xf32>
      %1986 = arith.mulf %1985, %1962 : vector<1x128xf32>
      %1987 = arith.divf %1986, %1983 : vector<1x128xf32>
      %cst_340 = arith.constant 0.000000e+00 : f32
      %1988 = vector.broadcast %cst_340 : f32 to vector<1x128xf32>
      %1989 = arith.select %1968, %1988, %1987 : vector<1x128xi1>, vector<1x128xf32>
      %1990 = arith.mulf %1989, %1989 : vector<1x128xf32>
      %cst_341 = arith.constant 1.000000e+00 : f32
      %1991 = vector.broadcast %cst_341 : f32 to vector<1x128xf32>
      %1992 = arith.addf %1991, %1990 : vector<1x128xf32>
      %1993 = math.rsqrt %1992 : vector<1x128xf32>
      %1994 = arith.mulf %1993, %1989 : vector<1x128xf32>
      %1995 = arith.mulf %1993, %1993 : vector<1x128xf32>
      %1996 = arith.mulf %1994, %1994 : vector<1x128xf32>
      %1997 = arith.mulf %1993, %1994 : vector<1x128xf32>
      %cst_342 = arith.constant 2.000000e+00 : f32
      %1998 = vector.broadcast %cst_342 : f32 to vector<1x128xf32>
      %1999 = arith.mulf %1998, %1997 : vector<1x128xf32>
      %2000 = arith.mulf %1995, %1679 : vector<1x128xf32>
      %2001 = arith.mulf %1999, %1962 : vector<1x128xf32>
      %2002 = arith.subf %2000, %2001 : vector<1x128xf32>
      %2003 = arith.mulf %1996, %1740 : vector<1x128xf32>
      %2004 = arith.addf %2002, %2003 : vector<1x128xf32>
      %2005 = arith.mulf %1996, %1679 : vector<1x128xf32>
      %2006 = arith.mulf %1999, %1962 : vector<1x128xf32>
      %2007 = arith.addf %2005, %2006 : vector<1x128xf32>
      %2008 = arith.mulf %1995, %1740 : vector<1x128xf32>
      %2009 = arith.addf %2007, %2008 : vector<1x128xf32>
      %2010 = vector.shape_cast %1993 : vector<1x128xf32> to vector<1x128xf32>
      %2011 = vector.broadcast %2010 : vector<1x128xf32> to vector<8x128xf32>
      %2012 = vector.shape_cast %1994 : vector<1x128xf32> to vector<1x128xf32>
      %2013 = vector.broadcast %2012 : vector<1x128xf32> to vector<8x128xf32>
      %2014 = arith.mulf %2011, %1689 : vector<8x128xf32>
      %2015 = arith.mulf %2013, %1752 : vector<8x128xf32>
      %2016 = arith.subf %2014, %2015 : vector<8x128xf32>
      %2017 = arith.mulf %2013, %1689 : vector<8x128xf32>
      %2018 = arith.mulf %2011, %1752 : vector<8x128xf32>
      %2019 = arith.addf %2017, %2018 : vector<8x128xf32>
      %2020 = arith.mulf %2011, %1695 : vector<8x128xf32>
      %2021 = arith.mulf %2013, %1758 : vector<8x128xf32>
      %2022 = arith.subf %2020, %2021 : vector<8x128xf32>
      %2023 = arith.mulf %2013, %1695 : vector<8x128xf32>
      %2024 = arith.mulf %2011, %1758 : vector<8x128xf32>
      %2025 = arith.addf %2023, %2024 : vector<8x128xf32>
      %2026 = arith.mulf %1818, %1884 : vector<8x128xf32>
      %cst_343 = arith.constant dense<0.000000e+00> : vector<128xf32>
      %2027 = vector.multi_reduction <add>, %2026, %cst_343 [0] : vector<8x128xf32> to vector<128xf32>
      %2028 = vector.shape_cast %2027 : vector<128xf32> to vector<1x128xf32>
      %2029 = arith.subf %1872, %1806 : vector<1x128xf32>
      %2030 = arith.mulf %2028, %2028 : vector<1x128xf32>
      %2031 = arith.mulf %1806, %1872 : vector<1x128xf32>
      %cst_344 = arith.constant 9.99999982E-15 : f32
      %2032 = vector.broadcast %cst_344 : f32 to vector<1x128xf32>
      %2033 = arith.mulf %2032, %2031 : vector<1x128xf32>
      %2034 = arith.cmpf ole, %2030, %2033 : vector<1x128xf32>
      %cst_345 = arith.constant 0.000000e+00 : f32
      %2035 = vector.broadcast %cst_345 : f32 to vector<1x128xf32>
      %2036 = arith.cmpf oge, %2029, %2035 : vector<1x128xf32>
      %cst_346 = arith.constant 1.000000e+00 : f32
      %cst_347 = arith.constant -1.000000e+00 : f32
      %2037 = vector.broadcast %cst_346 : f32 to vector<1x128xf32>
      %2038 = vector.broadcast %cst_347 : f32 to vector<1x128xf32>
      %2039 = arith.select %2036, %2037, %2038 : vector<1x128xi1>, vector<1x128xf32>
      %2040 = math.absf %2029 : vector<1x128xf32>
      %2041 = arith.mulf %2029, %2029 : vector<1x128xf32>
      %2042 = arith.mulf %2028, %2028 : vector<1x128xf32>
      %cst_348 = arith.constant 4.000000e+00 : f32
      %2043 = vector.broadcast %cst_348 : f32 to vector<1x128xf32>
      %2044 = arith.mulf %2043, %2042 : vector<1x128xf32>
      %2045 = arith.addf %2041, %2044 : vector<1x128xf32>
      %2046 = math.sqrt %2045 : vector<1x128xf32>
      %2047 = arith.addf %2040, %2046 : vector<1x128xf32>
      %cst_349 = arith.constant 1.000000e+00 : f32
      %2048 = vector.broadcast %cst_349 : f32 to vector<1x128xf32>
      %2049 = arith.select %2034, %2048, %2047 : vector<1x128xi1>, vector<1x128xf32>
      %cst_350 = arith.constant 2.000000e+00 : f32
      %2050 = vector.broadcast %cst_350 : f32 to vector<1x128xf32>
      %2051 = arith.mulf %2050, %2039 : vector<1x128xf32>
      %2052 = arith.mulf %2051, %2028 : vector<1x128xf32>
      %2053 = arith.divf %2052, %2049 : vector<1x128xf32>
      %cst_351 = arith.constant 0.000000e+00 : f32
      %2054 = vector.broadcast %cst_351 : f32 to vector<1x128xf32>
      %2055 = arith.select %2034, %2054, %2053 : vector<1x128xi1>, vector<1x128xf32>
      %2056 = arith.mulf %2055, %2055 : vector<1x128xf32>
      %cst_352 = arith.constant 1.000000e+00 : f32
      %2057 = vector.broadcast %cst_352 : f32 to vector<1x128xf32>
      %2058 = arith.addf %2057, %2056 : vector<1x128xf32>
      %2059 = math.rsqrt %2058 : vector<1x128xf32>
      %2060 = arith.mulf %2059, %2055 : vector<1x128xf32>
      %2061 = arith.mulf %2059, %2059 : vector<1x128xf32>
      %2062 = arith.mulf %2060, %2060 : vector<1x128xf32>
      %2063 = arith.mulf %2059, %2060 : vector<1x128xf32>
      %cst_353 = arith.constant 2.000000e+00 : f32
      %2064 = vector.broadcast %cst_353 : f32 to vector<1x128xf32>
      %2065 = arith.mulf %2064, %2063 : vector<1x128xf32>
      %2066 = arith.mulf %2061, %1806 : vector<1x128xf32>
      %2067 = arith.mulf %2065, %2028 : vector<1x128xf32>
      %2068 = arith.subf %2066, %2067 : vector<1x128xf32>
      %2069 = arith.mulf %2062, %1872 : vector<1x128xf32>
      %2070 = arith.addf %2068, %2069 : vector<1x128xf32>
      %2071 = arith.mulf %2062, %1806 : vector<1x128xf32>
      %2072 = arith.mulf %2065, %2028 : vector<1x128xf32>
      %2073 = arith.addf %2071, %2072 : vector<1x128xf32>
      %2074 = arith.mulf %2061, %1872 : vector<1x128xf32>
      %2075 = arith.addf %2073, %2074 : vector<1x128xf32>
      %2076 = vector.shape_cast %2059 : vector<1x128xf32> to vector<1x128xf32>
      %2077 = vector.broadcast %2076 : vector<1x128xf32> to vector<8x128xf32>
      %2078 = vector.shape_cast %2060 : vector<1x128xf32> to vector<1x128xf32>
      %2079 = vector.broadcast %2078 : vector<1x128xf32> to vector<8x128xf32>
      %2080 = arith.mulf %2077, %1818 : vector<8x128xf32>
      %2081 = arith.mulf %2079, %1884 : vector<8x128xf32>
      %2082 = arith.subf %2080, %2081 : vector<8x128xf32>
      %2083 = arith.mulf %2079, %1818 : vector<8x128xf32>
      %2084 = arith.mulf %2077, %1884 : vector<8x128xf32>
      %2085 = arith.addf %2083, %2084 : vector<8x128xf32>
      %2086 = arith.mulf %2077, %1824 : vector<8x128xf32>
      %2087 = arith.mulf %2079, %1890 : vector<8x128xf32>
      %2088 = arith.subf %2086, %2087 : vector<8x128xf32>
      %2089 = arith.mulf %2079, %1824 : vector<8x128xf32>
      %2090 = arith.mulf %2077, %1890 : vector<8x128xf32>
      %2091 = arith.addf %2089, %2090 : vector<8x128xf32>
      %2092 = arith.mulf %1821, %1953 : vector<8x128xf32>
      %cst_354 = arith.constant dense<0.000000e+00> : vector<128xf32>
      %2093 = vector.multi_reduction <add>, %2092, %cst_354 [0] : vector<8x128xf32> to vector<128xf32>
      %2094 = vector.shape_cast %2093 : vector<128xf32> to vector<1x128xf32>
      %2095 = arith.subf %1943, %1811 : vector<1x128xf32>
      %2096 = arith.mulf %2094, %2094 : vector<1x128xf32>
      %2097 = arith.mulf %1811, %1943 : vector<1x128xf32>
      %cst_355 = arith.constant 9.99999982E-15 : f32
      %2098 = vector.broadcast %cst_355 : f32 to vector<1x128xf32>
      %2099 = arith.mulf %2098, %2097 : vector<1x128xf32>
      %2100 = arith.cmpf ole, %2096, %2099 : vector<1x128xf32>
      %cst_356 = arith.constant 0.000000e+00 : f32
      %2101 = vector.broadcast %cst_356 : f32 to vector<1x128xf32>
      %2102 = arith.cmpf oge, %2095, %2101 : vector<1x128xf32>
      %cst_357 = arith.constant 1.000000e+00 : f32
      %cst_358 = arith.constant -1.000000e+00 : f32
      %2103 = vector.broadcast %cst_357 : f32 to vector<1x128xf32>
      %2104 = vector.broadcast %cst_358 : f32 to vector<1x128xf32>
      %2105 = arith.select %2102, %2103, %2104 : vector<1x128xi1>, vector<1x128xf32>
      %2106 = math.absf %2095 : vector<1x128xf32>
      %2107 = arith.mulf %2095, %2095 : vector<1x128xf32>
      %2108 = arith.mulf %2094, %2094 : vector<1x128xf32>
      %cst_359 = arith.constant 4.000000e+00 : f32
      %2109 = vector.broadcast %cst_359 : f32 to vector<1x128xf32>
      %2110 = arith.mulf %2109, %2108 : vector<1x128xf32>
      %2111 = arith.addf %2107, %2110 : vector<1x128xf32>
      %2112 = math.sqrt %2111 : vector<1x128xf32>
      %2113 = arith.addf %2106, %2112 : vector<1x128xf32>
      %cst_360 = arith.constant 1.000000e+00 : f32
      %2114 = vector.broadcast %cst_360 : f32 to vector<1x128xf32>
      %2115 = arith.select %2100, %2114, %2113 : vector<1x128xi1>, vector<1x128xf32>
      %cst_361 = arith.constant 2.000000e+00 : f32
      %2116 = vector.broadcast %cst_361 : f32 to vector<1x128xf32>
      %2117 = arith.mulf %2116, %2105 : vector<1x128xf32>
      %2118 = arith.mulf %2117, %2094 : vector<1x128xf32>
      %2119 = arith.divf %2118, %2115 : vector<1x128xf32>
      %cst_362 = arith.constant 0.000000e+00 : f32
      %2120 = vector.broadcast %cst_362 : f32 to vector<1x128xf32>
      %2121 = arith.select %2100, %2120, %2119 : vector<1x128xi1>, vector<1x128xf32>
      %2122 = arith.mulf %2121, %2121 : vector<1x128xf32>
      %cst_363 = arith.constant 1.000000e+00 : f32
      %2123 = vector.broadcast %cst_363 : f32 to vector<1x128xf32>
      %2124 = arith.addf %2123, %2122 : vector<1x128xf32>
      %2125 = math.rsqrt %2124 : vector<1x128xf32>
      %2126 = arith.mulf %2125, %2121 : vector<1x128xf32>
      %2127 = arith.mulf %2125, %2125 : vector<1x128xf32>
      %2128 = arith.mulf %2126, %2126 : vector<1x128xf32>
      %2129 = arith.mulf %2125, %2126 : vector<1x128xf32>
      %cst_364 = arith.constant 2.000000e+00 : f32
      %2130 = vector.broadcast %cst_364 : f32 to vector<1x128xf32>
      %2131 = arith.mulf %2130, %2129 : vector<1x128xf32>
      %2132 = arith.mulf %2127, %1811 : vector<1x128xf32>
      %2133 = arith.mulf %2131, %2094 : vector<1x128xf32>
      %2134 = arith.subf %2132, %2133 : vector<1x128xf32>
      %2135 = arith.mulf %2128, %1943 : vector<1x128xf32>
      %2136 = arith.addf %2134, %2135 : vector<1x128xf32>
      %2137 = arith.mulf %2128, %1811 : vector<1x128xf32>
      %2138 = arith.mulf %2131, %2094 : vector<1x128xf32>
      %2139 = arith.addf %2137, %2138 : vector<1x128xf32>
      %2140 = arith.mulf %2127, %1943 : vector<1x128xf32>
      %2141 = arith.addf %2139, %2140 : vector<1x128xf32>
      %2142 = vector.shape_cast %2125 : vector<1x128xf32> to vector<1x128xf32>
      %2143 = vector.broadcast %2142 : vector<1x128xf32> to vector<8x128xf32>
      %2144 = vector.shape_cast %2126 : vector<1x128xf32> to vector<1x128xf32>
      %2145 = vector.broadcast %2144 : vector<1x128xf32> to vector<8x128xf32>
      %2146 = arith.mulf %2143, %1821 : vector<8x128xf32>
      %2147 = arith.mulf %2145, %1953 : vector<8x128xf32>
      %2148 = arith.subf %2146, %2147 : vector<8x128xf32>
      %2149 = arith.mulf %2145, %1821 : vector<8x128xf32>
      %2150 = arith.mulf %2143, %1953 : vector<8x128xf32>
      %2151 = arith.addf %2149, %2150 : vector<8x128xf32>
      %2152 = arith.mulf %2143, %1827 : vector<8x128xf32>
      %2153 = arith.mulf %2145, %1959 : vector<8x128xf32>
      %2154 = arith.subf %2152, %2153 : vector<8x128xf32>
      %2155 = arith.mulf %2145, %1827 : vector<8x128xf32>
      %2156 = arith.mulf %2143, %1959 : vector<8x128xf32>
      %2157 = arith.addf %2155, %2156 : vector<8x128xf32>
      %2158 = arith.mulf %1887, %2019 : vector<8x128xf32>
      %cst_365 = arith.constant dense<0.000000e+00> : vector<128xf32>
      %2159 = vector.multi_reduction <add>, %2158, %cst_365 [0] : vector<8x128xf32> to vector<128xf32>
      %2160 = vector.shape_cast %2159 : vector<128xf32> to vector<1x128xf32>
      %2161 = arith.subf %2009, %1877 : vector<1x128xf32>
      %2162 = arith.mulf %2160, %2160 : vector<1x128xf32>
      %2163 = arith.mulf %1877, %2009 : vector<1x128xf32>
      %cst_366 = arith.constant 9.99999982E-15 : f32
      %2164 = vector.broadcast %cst_366 : f32 to vector<1x128xf32>
      %2165 = arith.mulf %2164, %2163 : vector<1x128xf32>
      %2166 = arith.cmpf ole, %2162, %2165 : vector<1x128xf32>
      %cst_367 = arith.constant 0.000000e+00 : f32
      %2167 = vector.broadcast %cst_367 : f32 to vector<1x128xf32>
      %2168 = arith.cmpf oge, %2161, %2167 : vector<1x128xf32>
      %cst_368 = arith.constant 1.000000e+00 : f32
      %cst_369 = arith.constant -1.000000e+00 : f32
      %2169 = vector.broadcast %cst_368 : f32 to vector<1x128xf32>
      %2170 = vector.broadcast %cst_369 : f32 to vector<1x128xf32>
      %2171 = arith.select %2168, %2169, %2170 : vector<1x128xi1>, vector<1x128xf32>
      %2172 = math.absf %2161 : vector<1x128xf32>
      %2173 = arith.mulf %2161, %2161 : vector<1x128xf32>
      %2174 = arith.mulf %2160, %2160 : vector<1x128xf32>
      %cst_370 = arith.constant 4.000000e+00 : f32
      %2175 = vector.broadcast %cst_370 : f32 to vector<1x128xf32>
      %2176 = arith.mulf %2175, %2174 : vector<1x128xf32>
      %2177 = arith.addf %2173, %2176 : vector<1x128xf32>
      %2178 = math.sqrt %2177 : vector<1x128xf32>
      %2179 = arith.addf %2172, %2178 : vector<1x128xf32>
      %cst_371 = arith.constant 1.000000e+00 : f32
      %2180 = vector.broadcast %cst_371 : f32 to vector<1x128xf32>
      %2181 = arith.select %2166, %2180, %2179 : vector<1x128xi1>, vector<1x128xf32>
      %cst_372 = arith.constant 2.000000e+00 : f32
      %2182 = vector.broadcast %cst_372 : f32 to vector<1x128xf32>
      %2183 = arith.mulf %2182, %2171 : vector<1x128xf32>
      %2184 = arith.mulf %2183, %2160 : vector<1x128xf32>
      %2185 = arith.divf %2184, %2181 : vector<1x128xf32>
      %cst_373 = arith.constant 0.000000e+00 : f32
      %2186 = vector.broadcast %cst_373 : f32 to vector<1x128xf32>
      %2187 = arith.select %2166, %2186, %2185 : vector<1x128xi1>, vector<1x128xf32>
      %2188 = arith.mulf %2187, %2187 : vector<1x128xf32>
      %cst_374 = arith.constant 1.000000e+00 : f32
      %2189 = vector.broadcast %cst_374 : f32 to vector<1x128xf32>
      %2190 = arith.addf %2189, %2188 : vector<1x128xf32>
      %2191 = math.rsqrt %2190 : vector<1x128xf32>
      %2192 = arith.mulf %2191, %2187 : vector<1x128xf32>
      %2193 = arith.mulf %2191, %2191 : vector<1x128xf32>
      %2194 = arith.mulf %2192, %2192 : vector<1x128xf32>
      %2195 = arith.mulf %2191, %2192 : vector<1x128xf32>
      %cst_375 = arith.constant 2.000000e+00 : f32
      %2196 = vector.broadcast %cst_375 : f32 to vector<1x128xf32>
      %2197 = arith.mulf %2196, %2195 : vector<1x128xf32>
      %2198 = arith.mulf %2193, %1877 : vector<1x128xf32>
      %2199 = arith.mulf %2197, %2160 : vector<1x128xf32>
      %2200 = arith.subf %2198, %2199 : vector<1x128xf32>
      %2201 = arith.mulf %2194, %2009 : vector<1x128xf32>
      %2202 = arith.addf %2200, %2201 : vector<1x128xf32>
      %2203 = arith.mulf %2194, %1877 : vector<1x128xf32>
      %2204 = arith.mulf %2197, %2160 : vector<1x128xf32>
      %2205 = arith.addf %2203, %2204 : vector<1x128xf32>
      %2206 = arith.mulf %2193, %2009 : vector<1x128xf32>
      %2207 = arith.addf %2205, %2206 : vector<1x128xf32>
      %2208 = vector.shape_cast %2191 : vector<1x128xf32> to vector<1x128xf32>
      %2209 = vector.broadcast %2208 : vector<1x128xf32> to vector<8x128xf32>
      %2210 = vector.shape_cast %2192 : vector<1x128xf32> to vector<1x128xf32>
      %2211 = vector.broadcast %2210 : vector<1x128xf32> to vector<8x128xf32>
      %2212 = arith.mulf %2209, %1887 : vector<8x128xf32>
      %2213 = arith.mulf %2211, %2019 : vector<8x128xf32>
      %2214 = arith.subf %2212, %2213 : vector<8x128xf32>
      %2215 = arith.mulf %2211, %1887 : vector<8x128xf32>
      %2216 = arith.mulf %2209, %2019 : vector<8x128xf32>
      %2217 = arith.addf %2215, %2216 : vector<8x128xf32>
      %2218 = arith.mulf %2209, %1893 : vector<8x128xf32>
      %2219 = arith.mulf %2211, %2025 : vector<8x128xf32>
      %2220 = arith.subf %2218, %2219 : vector<8x128xf32>
      %2221 = arith.mulf %2211, %1893 : vector<8x128xf32>
      %2222 = arith.mulf %2209, %2025 : vector<8x128xf32>
      %2223 = arith.addf %2221, %2222 : vector<8x128xf32>
      %2224 = arith.mulf %1950, %2016 : vector<8x128xf32>
      %cst_376 = arith.constant dense<0.000000e+00> : vector<128xf32>
      %2225 = vector.multi_reduction <add>, %2224, %cst_376 [0] : vector<8x128xf32> to vector<128xf32>
      %2226 = vector.shape_cast %2225 : vector<128xf32> to vector<1x128xf32>
      %2227 = arith.subf %2004, %1938 : vector<1x128xf32>
      %2228 = arith.mulf %2226, %2226 : vector<1x128xf32>
      %2229 = arith.mulf %1938, %2004 : vector<1x128xf32>
      %cst_377 = arith.constant 9.99999982E-15 : f32
      %2230 = vector.broadcast %cst_377 : f32 to vector<1x128xf32>
      %2231 = arith.mulf %2230, %2229 : vector<1x128xf32>
      %2232 = arith.cmpf ole, %2228, %2231 : vector<1x128xf32>
      %cst_378 = arith.constant 0.000000e+00 : f32
      %2233 = vector.broadcast %cst_378 : f32 to vector<1x128xf32>
      %2234 = arith.cmpf oge, %2227, %2233 : vector<1x128xf32>
      %cst_379 = arith.constant 1.000000e+00 : f32
      %cst_380 = arith.constant -1.000000e+00 : f32
      %2235 = vector.broadcast %cst_379 : f32 to vector<1x128xf32>
      %2236 = vector.broadcast %cst_380 : f32 to vector<1x128xf32>
      %2237 = arith.select %2234, %2235, %2236 : vector<1x128xi1>, vector<1x128xf32>
      %2238 = math.absf %2227 : vector<1x128xf32>
      %2239 = arith.mulf %2227, %2227 : vector<1x128xf32>
      %2240 = arith.mulf %2226, %2226 : vector<1x128xf32>
      %cst_381 = arith.constant 4.000000e+00 : f32
      %2241 = vector.broadcast %cst_381 : f32 to vector<1x128xf32>
      %2242 = arith.mulf %2241, %2240 : vector<1x128xf32>
      %2243 = arith.addf %2239, %2242 : vector<1x128xf32>
      %2244 = math.sqrt %2243 : vector<1x128xf32>
      %2245 = arith.addf %2238, %2244 : vector<1x128xf32>
      %cst_382 = arith.constant 1.000000e+00 : f32
      %2246 = vector.broadcast %cst_382 : f32 to vector<1x128xf32>
      %2247 = arith.select %2232, %2246, %2245 : vector<1x128xi1>, vector<1x128xf32>
      %cst_383 = arith.constant 2.000000e+00 : f32
      %2248 = vector.broadcast %cst_383 : f32 to vector<1x128xf32>
      %2249 = arith.mulf %2248, %2237 : vector<1x128xf32>
      %2250 = arith.mulf %2249, %2226 : vector<1x128xf32>
      %2251 = arith.divf %2250, %2247 : vector<1x128xf32>
      %cst_384 = arith.constant 0.000000e+00 : f32
      %2252 = vector.broadcast %cst_384 : f32 to vector<1x128xf32>
      %2253 = arith.select %2232, %2252, %2251 : vector<1x128xi1>, vector<1x128xf32>
      %2254 = arith.mulf %2253, %2253 : vector<1x128xf32>
      %cst_385 = arith.constant 1.000000e+00 : f32
      %2255 = vector.broadcast %cst_385 : f32 to vector<1x128xf32>
      %2256 = arith.addf %2255, %2254 : vector<1x128xf32>
      %2257 = math.rsqrt %2256 : vector<1x128xf32>
      %2258 = arith.mulf %2257, %2253 : vector<1x128xf32>
      %2259 = arith.mulf %2257, %2257 : vector<1x128xf32>
      %2260 = arith.mulf %2258, %2258 : vector<1x128xf32>
      %2261 = arith.mulf %2257, %2258 : vector<1x128xf32>
      %cst_386 = arith.constant 2.000000e+00 : f32
      %2262 = vector.broadcast %cst_386 : f32 to vector<1x128xf32>
      %2263 = arith.mulf %2262, %2261 : vector<1x128xf32>
      %2264 = arith.mulf %2259, %1938 : vector<1x128xf32>
      %2265 = arith.mulf %2263, %2226 : vector<1x128xf32>
      %2266 = arith.subf %2264, %2265 : vector<1x128xf32>
      %2267 = arith.mulf %2260, %2004 : vector<1x128xf32>
      %2268 = arith.addf %2266, %2267 : vector<1x128xf32>
      %2269 = arith.mulf %2260, %1938 : vector<1x128xf32>
      %2270 = arith.mulf %2263, %2226 : vector<1x128xf32>
      %2271 = arith.addf %2269, %2270 : vector<1x128xf32>
      %2272 = arith.mulf %2259, %2004 : vector<1x128xf32>
      %2273 = arith.addf %2271, %2272 : vector<1x128xf32>
      %2274 = vector.shape_cast %2257 : vector<1x128xf32> to vector<1x128xf32>
      %2275 = vector.broadcast %2274 : vector<1x128xf32> to vector<8x128xf32>
      %2276 = vector.shape_cast %2258 : vector<1x128xf32> to vector<1x128xf32>
      %2277 = vector.broadcast %2276 : vector<1x128xf32> to vector<8x128xf32>
      %2278 = arith.mulf %2275, %1950 : vector<8x128xf32>
      %2279 = arith.mulf %2277, %2016 : vector<8x128xf32>
      %2280 = arith.subf %2278, %2279 : vector<8x128xf32>
      %2281 = arith.mulf %2277, %1950 : vector<8x128xf32>
      %2282 = arith.mulf %2275, %2016 : vector<8x128xf32>
      %2283 = arith.addf %2281, %2282 : vector<8x128xf32>
      %2284 = arith.mulf %2275, %1956 : vector<8x128xf32>
      %2285 = arith.mulf %2277, %2022 : vector<8x128xf32>
      %2286 = arith.subf %2284, %2285 : vector<8x128xf32>
      %2287 = arith.mulf %2277, %1956 : vector<8x128xf32>
      %2288 = arith.mulf %2275, %2022 : vector<8x128xf32>
      %2289 = arith.addf %2287, %2288 : vector<8x128xf32>
      scf.yield %2082, %2085, %2148, %2214, %2280, %2283, %2217, %2151, %2088, %2091, %2154, %2220, %2286, %2289, %2223, %2157, %2070, %2075, %2136, %2202, %2268, %2273, %2207, %2141 : vector<8x128xf32>, vector<8x128xf32>, vector<8x128xf32>, vector<8x128xf32>, vector<8x128xf32>, vector<8x128xf32>, vector<8x128xf32>, vector<8x128xf32>, vector<8x128xf32>, vector<8x128xf32>, vector<8x128xf32>, vector<8x128xf32>, vector<8x128xf32>, vector<8x128xf32>, vector<8x128xf32>, vector<8x128xf32>, vector<1x128xf32>, vector<1x128xf32>, vector<1x128xf32>, vector<1x128xf32>, vector<1x128xf32>, vector<1x128xf32>, vector<1x128xf32>, vector<1x128xf32>
    }
    %cst_28 = arith.constant 1.000000e-30 : f32
    %84 = vector.broadcast %cst_28 : f32 to vector<1x128xf32>
    %85 = arith.maximumf %83#16, %84 : vector<1x128xf32>
    %86 = math.rsqrt %85 : vector<1x128xf32>
    %87 = arith.mulf %83#16, %86 : vector<1x128xf32>
    %88 = vector.shape_cast %86 : vector<1x128xf32> to vector<1x128xf32>
    %89 = vector.broadcast %88 : vector<1x128xf32> to vector<8x128xf32>
    %90 = arith.mulf %83#0, %89 : vector<8x128xf32>
    %cst_29 = arith.constant 1.000000e-30 : f32
    %91 = vector.broadcast %cst_29 : f32 to vector<1x128xf32>
    %92 = arith.maximumf %83#17, %91 : vector<1x128xf32>
    %93 = math.rsqrt %92 : vector<1x128xf32>
    %94 = arith.mulf %83#17, %93 : vector<1x128xf32>
    %95 = vector.shape_cast %93 : vector<1x128xf32> to vector<1x128xf32>
    %96 = vector.broadcast %95 : vector<1x128xf32> to vector<8x128xf32>
    %97 = arith.mulf %83#1, %96 : vector<8x128xf32>
    %cst_30 = arith.constant 1.000000e-30 : f32
    %98 = vector.broadcast %cst_30 : f32 to vector<1x128xf32>
    %99 = arith.maximumf %83#18, %98 : vector<1x128xf32>
    %100 = math.rsqrt %99 : vector<1x128xf32>
    %101 = arith.mulf %83#18, %100 : vector<1x128xf32>
    %102 = vector.shape_cast %100 : vector<1x128xf32> to vector<1x128xf32>
    %103 = vector.broadcast %102 : vector<1x128xf32> to vector<8x128xf32>
    %104 = arith.mulf %83#2, %103 : vector<8x128xf32>
    %cst_31 = arith.constant 1.000000e-30 : f32
    %105 = vector.broadcast %cst_31 : f32 to vector<1x128xf32>
    %106 = arith.maximumf %83#19, %105 : vector<1x128xf32>
    %107 = math.rsqrt %106 : vector<1x128xf32>
    %108 = arith.mulf %83#19, %107 : vector<1x128xf32>
    %109 = vector.shape_cast %107 : vector<1x128xf32> to vector<1x128xf32>
    %110 = vector.broadcast %109 : vector<1x128xf32> to vector<8x128xf32>
    %111 = arith.mulf %83#3, %110 : vector<8x128xf32>
    %cst_32 = arith.constant 1.000000e-30 : f32
    %112 = vector.broadcast %cst_32 : f32 to vector<1x128xf32>
    %113 = arith.maximumf %83#20, %112 : vector<1x128xf32>
    %114 = math.rsqrt %113 : vector<1x128xf32>
    %115 = arith.mulf %83#20, %114 : vector<1x128xf32>
    %116 = vector.shape_cast %114 : vector<1x128xf32> to vector<1x128xf32>
    %117 = vector.broadcast %116 : vector<1x128xf32> to vector<8x128xf32>
    %118 = arith.mulf %83#4, %117 : vector<8x128xf32>
    %cst_33 = arith.constant 1.000000e-30 : f32
    %119 = vector.broadcast %cst_33 : f32 to vector<1x128xf32>
    %120 = arith.maximumf %83#21, %119 : vector<1x128xf32>
    %121 = math.rsqrt %120 : vector<1x128xf32>
    %122 = arith.mulf %83#21, %121 : vector<1x128xf32>
    %123 = vector.shape_cast %121 : vector<1x128xf32> to vector<1x128xf32>
    %124 = vector.broadcast %123 : vector<1x128xf32> to vector<8x128xf32>
    %125 = arith.mulf %83#5, %124 : vector<8x128xf32>
    %cst_34 = arith.constant 1.000000e-30 : f32
    %126 = vector.broadcast %cst_34 : f32 to vector<1x128xf32>
    %127 = arith.maximumf %83#22, %126 : vector<1x128xf32>
    %128 = math.rsqrt %127 : vector<1x128xf32>
    %129 = arith.mulf %83#22, %128 : vector<1x128xf32>
    %130 = vector.shape_cast %128 : vector<1x128xf32> to vector<1x128xf32>
    %131 = vector.broadcast %130 : vector<1x128xf32> to vector<8x128xf32>
    %132 = arith.mulf %83#6, %131 : vector<8x128xf32>
    %cst_35 = arith.constant 1.000000e-30 : f32
    %133 = vector.broadcast %cst_35 : f32 to vector<1x128xf32>
    %134 = arith.maximumf %83#23, %133 : vector<1x128xf32>
    %135 = math.rsqrt %134 : vector<1x128xf32>
    %136 = arith.mulf %83#23, %135 : vector<1x128xf32>
    %137 = vector.shape_cast %135 : vector<1x128xf32> to vector<1x128xf32>
    %138 = vector.broadcast %137 : vector<1x128xf32> to vector<8x128xf32>
    %139 = arith.mulf %83#7, %138 : vector<8x128xf32>
    %140 = arith.cmpf olt, %87, %94 : vector<1x128xf32>
    %141 = vector.shape_cast %140 : vector<1x128xi1> to vector<1x128xi1>
    %142 = vector.broadcast %141 : vector<1x128xi1> to vector<8x128xi1>
    %143 = arith.select %140, %94, %87 : vector<1x128xi1>, vector<1x128xf32>
    %144 = arith.select %140, %87, %94 : vector<1x128xi1>, vector<1x128xf32>
    %145 = arith.select %142, %97, %90 : vector<8x128xi1>, vector<8x128xf32>
    %146 = arith.select %142, %90, %97 : vector<8x128xi1>, vector<8x128xf32>
    %147 = arith.select %142, %83#9, %83#8 : vector<8x128xi1>, vector<8x128xf32>
    %148 = arith.select %142, %83#8, %83#9 : vector<8x128xi1>, vector<8x128xf32>
    %149 = arith.cmpf olt, %101, %108 : vector<1x128xf32>
    %150 = vector.shape_cast %149 : vector<1x128xi1> to vector<1x128xi1>
    %151 = vector.broadcast %150 : vector<1x128xi1> to vector<8x128xi1>
    %152 = arith.select %149, %108, %101 : vector<1x128xi1>, vector<1x128xf32>
    %153 = arith.select %149, %101, %108 : vector<1x128xi1>, vector<1x128xf32>
    %154 = arith.select %151, %111, %104 : vector<8x128xi1>, vector<8x128xf32>
    %155 = arith.select %151, %104, %111 : vector<8x128xi1>, vector<8x128xf32>
    %156 = arith.select %151, %83#11, %83#10 : vector<8x128xi1>, vector<8x128xf32>
    %157 = arith.select %151, %83#10, %83#11 : vector<8x128xi1>, vector<8x128xf32>
    %158 = arith.cmpf olt, %115, %122 : vector<1x128xf32>
    %159 = vector.shape_cast %158 : vector<1x128xi1> to vector<1x128xi1>
    %160 = vector.broadcast %159 : vector<1x128xi1> to vector<8x128xi1>
    %161 = arith.select %158, %122, %115 : vector<1x128xi1>, vector<1x128xf32>
    %162 = arith.select %158, %115, %122 : vector<1x128xi1>, vector<1x128xf32>
    %163 = arith.select %160, %125, %118 : vector<8x128xi1>, vector<8x128xf32>
    %164 = arith.select %160, %118, %125 : vector<8x128xi1>, vector<8x128xf32>
    %165 = arith.select %160, %83#13, %83#12 : vector<8x128xi1>, vector<8x128xf32>
    %166 = arith.select %160, %83#12, %83#13 : vector<8x128xi1>, vector<8x128xf32>
    %167 = arith.cmpf olt, %129, %136 : vector<1x128xf32>
    %168 = vector.shape_cast %167 : vector<1x128xi1> to vector<1x128xi1>
    %169 = vector.broadcast %168 : vector<1x128xi1> to vector<8x128xi1>
    %170 = arith.select %167, %136, %129 : vector<1x128xi1>, vector<1x128xf32>
    %171 = arith.select %167, %129, %136 : vector<1x128xi1>, vector<1x128xf32>
    %172 = arith.select %169, %139, %132 : vector<8x128xi1>, vector<8x128xf32>
    %173 = arith.select %169, %132, %139 : vector<8x128xi1>, vector<8x128xf32>
    %174 = arith.select %169, %83#15, %83#14 : vector<8x128xi1>, vector<8x128xf32>
    %175 = arith.select %169, %83#14, %83#15 : vector<8x128xi1>, vector<8x128xf32>
    %176 = arith.cmpf olt, %144, %152 : vector<1x128xf32>
    %177 = vector.shape_cast %176 : vector<1x128xi1> to vector<1x128xi1>
    %178 = vector.broadcast %177 : vector<1x128xi1> to vector<8x128xi1>
    %179 = arith.select %176, %152, %144 : vector<1x128xi1>, vector<1x128xf32>
    %180 = arith.select %176, %144, %152 : vector<1x128xi1>, vector<1x128xf32>
    %181 = arith.select %178, %154, %146 : vector<8x128xi1>, vector<8x128xf32>
    %182 = arith.select %178, %146, %154 : vector<8x128xi1>, vector<8x128xf32>
    %183 = arith.select %178, %156, %148 : vector<8x128xi1>, vector<8x128xf32>
    %184 = arith.select %178, %148, %156 : vector<8x128xi1>, vector<8x128xf32>
    %185 = arith.cmpf olt, %153, %161 : vector<1x128xf32>
    %186 = vector.shape_cast %185 : vector<1x128xi1> to vector<1x128xi1>
    %187 = vector.broadcast %186 : vector<1x128xi1> to vector<8x128xi1>
    %188 = arith.select %185, %161, %153 : vector<1x128xi1>, vector<1x128xf32>
    %189 = arith.select %185, %153, %161 : vector<1x128xi1>, vector<1x128xf32>
    %190 = arith.select %187, %163, %155 : vector<8x128xi1>, vector<8x128xf32>
    %191 = arith.select %187, %155, %163 : vector<8x128xi1>, vector<8x128xf32>
    %192 = arith.select %187, %165, %157 : vector<8x128xi1>, vector<8x128xf32>
    %193 = arith.select %187, %157, %165 : vector<8x128xi1>, vector<8x128xf32>
    %194 = arith.cmpf olt, %162, %170 : vector<1x128xf32>
    %195 = vector.shape_cast %194 : vector<1x128xi1> to vector<1x128xi1>
    %196 = vector.broadcast %195 : vector<1x128xi1> to vector<8x128xi1>
    %197 = arith.select %194, %170, %162 : vector<1x128xi1>, vector<1x128xf32>
    %198 = arith.select %194, %162, %170 : vector<1x128xi1>, vector<1x128xf32>
    %199 = arith.select %196, %172, %164 : vector<8x128xi1>, vector<8x128xf32>
    %200 = arith.select %196, %164, %172 : vector<8x128xi1>, vector<8x128xf32>
    %201 = arith.select %196, %174, %166 : vector<8x128xi1>, vector<8x128xf32>
    %202 = arith.select %196, %166, %174 : vector<8x128xi1>, vector<8x128xf32>
    %203 = arith.cmpf olt, %143, %179 : vector<1x128xf32>
    %204 = vector.shape_cast %203 : vector<1x128xi1> to vector<1x128xi1>
    %205 = vector.broadcast %204 : vector<1x128xi1> to vector<8x128xi1>
    %206 = arith.select %203, %179, %143 : vector<1x128xi1>, vector<1x128xf32>
    %207 = arith.select %203, %143, %179 : vector<1x128xi1>, vector<1x128xf32>
    %208 = arith.select %205, %181, %145 : vector<8x128xi1>, vector<8x128xf32>
    %209 = arith.select %205, %145, %181 : vector<8x128xi1>, vector<8x128xf32>
    %210 = arith.select %205, %183, %147 : vector<8x128xi1>, vector<8x128xf32>
    %211 = arith.select %205, %147, %183 : vector<8x128xi1>, vector<8x128xf32>
    %212 = arith.cmpf olt, %180, %188 : vector<1x128xf32>
    %213 = vector.shape_cast %212 : vector<1x128xi1> to vector<1x128xi1>
    %214 = vector.broadcast %213 : vector<1x128xi1> to vector<8x128xi1>
    %215 = arith.select %212, %188, %180 : vector<1x128xi1>, vector<1x128xf32>
    %216 = arith.select %212, %180, %188 : vector<1x128xi1>, vector<1x128xf32>
    %217 = arith.select %214, %190, %182 : vector<8x128xi1>, vector<8x128xf32>
    %218 = arith.select %214, %182, %190 : vector<8x128xi1>, vector<8x128xf32>
    %219 = arith.select %214, %192, %184 : vector<8x128xi1>, vector<8x128xf32>
    %220 = arith.select %214, %184, %192 : vector<8x128xi1>, vector<8x128xf32>
    %221 = arith.cmpf olt, %189, %197 : vector<1x128xf32>
    %222 = vector.shape_cast %221 : vector<1x128xi1> to vector<1x128xi1>
    %223 = vector.broadcast %222 : vector<1x128xi1> to vector<8x128xi1>
    %224 = arith.select %221, %197, %189 : vector<1x128xi1>, vector<1x128xf32>
    %225 = arith.select %221, %189, %197 : vector<1x128xi1>, vector<1x128xf32>
    %226 = arith.select %223, %199, %191 : vector<8x128xi1>, vector<8x128xf32>
    %227 = arith.select %223, %191, %199 : vector<8x128xi1>, vector<8x128xf32>
    %228 = arith.select %223, %201, %193 : vector<8x128xi1>, vector<8x128xf32>
    %229 = arith.select %223, %193, %201 : vector<8x128xi1>, vector<8x128xf32>
    %230 = arith.cmpf olt, %198, %171 : vector<1x128xf32>
    %231 = vector.shape_cast %230 : vector<1x128xi1> to vector<1x128xi1>
    %232 = vector.broadcast %231 : vector<1x128xi1> to vector<8x128xi1>
    %233 = arith.select %230, %171, %198 : vector<1x128xi1>, vector<1x128xf32>
    %234 = arith.select %230, %198, %171 : vector<1x128xi1>, vector<1x128xf32>
    %235 = arith.select %232, %173, %200 : vector<8x128xi1>, vector<8x128xf32>
    %236 = arith.select %232, %200, %173 : vector<8x128xi1>, vector<8x128xf32>
    %237 = arith.select %232, %175, %202 : vector<8x128xi1>, vector<8x128xf32>
    %238 = arith.select %232, %202, %175 : vector<8x128xi1>, vector<8x128xf32>
    %239 = arith.cmpf olt, %207, %215 : vector<1x128xf32>
    %240 = vector.shape_cast %239 : vector<1x128xi1> to vector<1x128xi1>
    %241 = vector.broadcast %240 : vector<1x128xi1> to vector<8x128xi1>
    %242 = arith.select %239, %215, %207 : vector<1x128xi1>, vector<1x128xf32>
    %243 = arith.select %239, %207, %215 : vector<1x128xi1>, vector<1x128xf32>
    %244 = arith.select %241, %217, %209 : vector<8x128xi1>, vector<8x128xf32>
    %245 = arith.select %241, %209, %217 : vector<8x128xi1>, vector<8x128xf32>
    %246 = arith.select %241, %219, %211 : vector<8x128xi1>, vector<8x128xf32>
    %247 = arith.select %241, %211, %219 : vector<8x128xi1>, vector<8x128xf32>
    %248 = arith.cmpf olt, %216, %224 : vector<1x128xf32>
    %249 = vector.shape_cast %248 : vector<1x128xi1> to vector<1x128xi1>
    %250 = vector.broadcast %249 : vector<1x128xi1> to vector<8x128xi1>
    %251 = arith.select %248, %224, %216 : vector<1x128xi1>, vector<1x128xf32>
    %252 = arith.select %248, %216, %224 : vector<1x128xi1>, vector<1x128xf32>
    %253 = arith.select %250, %226, %218 : vector<8x128xi1>, vector<8x128xf32>
    %254 = arith.select %250, %218, %226 : vector<8x128xi1>, vector<8x128xf32>
    %255 = arith.select %250, %228, %220 : vector<8x128xi1>, vector<8x128xf32>
    %256 = arith.select %250, %220, %228 : vector<8x128xi1>, vector<8x128xf32>
    %257 = arith.cmpf olt, %225, %233 : vector<1x128xf32>
    %258 = vector.shape_cast %257 : vector<1x128xi1> to vector<1x128xi1>
    %259 = vector.broadcast %258 : vector<1x128xi1> to vector<8x128xi1>
    %260 = arith.select %257, %233, %225 : vector<1x128xi1>, vector<1x128xf32>
    %261 = arith.select %257, %225, %233 : vector<1x128xi1>, vector<1x128xf32>
    %262 = arith.select %259, %235, %227 : vector<8x128xi1>, vector<8x128xf32>
    %263 = arith.select %259, %227, %235 : vector<8x128xi1>, vector<8x128xf32>
    %264 = arith.select %259, %237, %229 : vector<8x128xi1>, vector<8x128xf32>
    %265 = arith.select %259, %229, %237 : vector<8x128xi1>, vector<8x128xf32>
    %266 = arith.cmpf olt, %206, %242 : vector<1x128xf32>
    %267 = vector.shape_cast %266 : vector<1x128xi1> to vector<1x128xi1>
    %268 = vector.broadcast %267 : vector<1x128xi1> to vector<8x128xi1>
    %269 = arith.select %266, %242, %206 : vector<1x128xi1>, vector<1x128xf32>
    %270 = arith.select %266, %206, %242 : vector<1x128xi1>, vector<1x128xf32>
    %271 = arith.select %268, %244, %208 : vector<8x128xi1>, vector<8x128xf32>
    %272 = arith.select %268, %208, %244 : vector<8x128xi1>, vector<8x128xf32>
    %273 = arith.select %268, %246, %210 : vector<8x128xi1>, vector<8x128xf32>
    %274 = arith.select %268, %210, %246 : vector<8x128xi1>, vector<8x128xf32>
    %275 = arith.cmpf olt, %243, %251 : vector<1x128xf32>
    %276 = vector.shape_cast %275 : vector<1x128xi1> to vector<1x128xi1>
    %277 = vector.broadcast %276 : vector<1x128xi1> to vector<8x128xi1>
    %278 = arith.select %275, %251, %243 : vector<1x128xi1>, vector<1x128xf32>
    %279 = arith.select %275, %243, %251 : vector<1x128xi1>, vector<1x128xf32>
    %280 = arith.select %277, %253, %245 : vector<8x128xi1>, vector<8x128xf32>
    %281 = arith.select %277, %245, %253 : vector<8x128xi1>, vector<8x128xf32>
    %282 = arith.select %277, %255, %247 : vector<8x128xi1>, vector<8x128xf32>
    %283 = arith.select %277, %247, %255 : vector<8x128xi1>, vector<8x128xf32>
    %284 = arith.cmpf olt, %252, %260 : vector<1x128xf32>
    %285 = vector.shape_cast %284 : vector<1x128xi1> to vector<1x128xi1>
    %286 = vector.broadcast %285 : vector<1x128xi1> to vector<8x128xi1>
    %287 = arith.select %284, %260, %252 : vector<1x128xi1>, vector<1x128xf32>
    %288 = arith.select %284, %252, %260 : vector<1x128xi1>, vector<1x128xf32>
    %289 = arith.select %286, %262, %254 : vector<8x128xi1>, vector<8x128xf32>
    %290 = arith.select %286, %254, %262 : vector<8x128xi1>, vector<8x128xf32>
    %291 = arith.select %286, %264, %256 : vector<8x128xi1>, vector<8x128xf32>
    %292 = arith.select %286, %256, %264 : vector<8x128xi1>, vector<8x128xf32>
    %293 = arith.cmpf olt, %261, %234 : vector<1x128xf32>
    %294 = vector.shape_cast %293 : vector<1x128xi1> to vector<1x128xi1>
    %295 = vector.broadcast %294 : vector<1x128xi1> to vector<8x128xi1>
    %296 = arith.select %293, %234, %261 : vector<1x128xi1>, vector<1x128xf32>
    %297 = arith.select %293, %261, %234 : vector<1x128xi1>, vector<1x128xf32>
    %298 = arith.select %295, %236, %263 : vector<8x128xi1>, vector<8x128xf32>
    %299 = arith.select %295, %263, %236 : vector<8x128xi1>, vector<8x128xf32>
    %300 = arith.select %295, %238, %265 : vector<8x128xi1>, vector<8x128xf32>
    %301 = arith.select %295, %265, %238 : vector<8x128xi1>, vector<8x128xf32>
    %302 = arith.cmpf olt, %270, %278 : vector<1x128xf32>
    %303 = vector.shape_cast %302 : vector<1x128xi1> to vector<1x128xi1>
    %304 = vector.broadcast %303 : vector<1x128xi1> to vector<8x128xi1>
    %305 = arith.select %302, %278, %270 : vector<1x128xi1>, vector<1x128xf32>
    %306 = arith.select %302, %270, %278 : vector<1x128xi1>, vector<1x128xf32>
    %307 = arith.select %304, %280, %272 : vector<8x128xi1>, vector<8x128xf32>
    %308 = arith.select %304, %272, %280 : vector<8x128xi1>, vector<8x128xf32>
    %309 = arith.select %304, %282, %274 : vector<8x128xi1>, vector<8x128xf32>
    %310 = arith.select %304, %274, %282 : vector<8x128xi1>, vector<8x128xf32>
    %311 = arith.cmpf olt, %279, %287 : vector<1x128xf32>
    %312 = vector.shape_cast %311 : vector<1x128xi1> to vector<1x128xi1>
    %313 = vector.broadcast %312 : vector<1x128xi1> to vector<8x128xi1>
    %314 = arith.select %311, %287, %279 : vector<1x128xi1>, vector<1x128xf32>
    %315 = arith.select %311, %279, %287 : vector<1x128xi1>, vector<1x128xf32>
    %316 = arith.select %313, %289, %281 : vector<8x128xi1>, vector<8x128xf32>
    %317 = arith.select %313, %281, %289 : vector<8x128xi1>, vector<8x128xf32>
    %318 = arith.select %313, %291, %283 : vector<8x128xi1>, vector<8x128xf32>
    %319 = arith.select %313, %283, %291 : vector<8x128xi1>, vector<8x128xf32>
    %320 = arith.cmpf olt, %288, %296 : vector<1x128xf32>
    %321 = vector.shape_cast %320 : vector<1x128xi1> to vector<1x128xi1>
    %322 = vector.broadcast %321 : vector<1x128xi1> to vector<8x128xi1>
    %323 = arith.select %320, %296, %288 : vector<1x128xi1>, vector<1x128xf32>
    %324 = arith.select %320, %288, %296 : vector<1x128xi1>, vector<1x128xf32>
    %325 = arith.select %322, %298, %290 : vector<8x128xi1>, vector<8x128xf32>
    %326 = arith.select %322, %290, %298 : vector<8x128xi1>, vector<8x128xf32>
    %327 = arith.select %322, %300, %292 : vector<8x128xi1>, vector<8x128xf32>
    %328 = arith.select %322, %292, %300 : vector<8x128xi1>, vector<8x128xf32>
    %329 = arith.cmpf olt, %269, %305 : vector<1x128xf32>
    %330 = vector.shape_cast %329 : vector<1x128xi1> to vector<1x128xi1>
    %331 = vector.broadcast %330 : vector<1x128xi1> to vector<8x128xi1>
    %332 = arith.select %329, %305, %269 : vector<1x128xi1>, vector<1x128xf32>
    %333 = arith.select %329, %269, %305 : vector<1x128xi1>, vector<1x128xf32>
    %334 = arith.select %331, %307, %271 : vector<8x128xi1>, vector<8x128xf32>
    %335 = arith.select %331, %271, %307 : vector<8x128xi1>, vector<8x128xf32>
    %336 = arith.select %331, %309, %273 : vector<8x128xi1>, vector<8x128xf32>
    %337 = arith.select %331, %273, %309 : vector<8x128xi1>, vector<8x128xf32>
    %338 = arith.cmpf olt, %306, %314 : vector<1x128xf32>
    %339 = vector.shape_cast %338 : vector<1x128xi1> to vector<1x128xi1>
    %340 = vector.broadcast %339 : vector<1x128xi1> to vector<8x128xi1>
    %341 = arith.select %338, %314, %306 : vector<1x128xi1>, vector<1x128xf32>
    %342 = arith.select %338, %306, %314 : vector<1x128xi1>, vector<1x128xf32>
    %343 = arith.select %340, %316, %308 : vector<8x128xi1>, vector<8x128xf32>
    %344 = arith.select %340, %308, %316 : vector<8x128xi1>, vector<8x128xf32>
    %345 = arith.select %340, %318, %310 : vector<8x128xi1>, vector<8x128xf32>
    %346 = arith.select %340, %310, %318 : vector<8x128xi1>, vector<8x128xf32>
    %347 = arith.cmpf olt, %315, %323 : vector<1x128xf32>
    %348 = vector.shape_cast %347 : vector<1x128xi1> to vector<1x128xi1>
    %349 = vector.broadcast %348 : vector<1x128xi1> to vector<8x128xi1>
    %350 = arith.select %347, %323, %315 : vector<1x128xi1>, vector<1x128xf32>
    %351 = arith.select %347, %315, %323 : vector<1x128xi1>, vector<1x128xf32>
    %352 = arith.select %349, %325, %317 : vector<8x128xi1>, vector<8x128xf32>
    %353 = arith.select %349, %317, %325 : vector<8x128xi1>, vector<8x128xf32>
    %354 = arith.select %349, %327, %319 : vector<8x128xi1>, vector<8x128xf32>
    %355 = arith.select %349, %319, %327 : vector<8x128xi1>, vector<8x128xf32>
    %356 = arith.cmpf olt, %324, %297 : vector<1x128xf32>
    %357 = vector.shape_cast %356 : vector<1x128xi1> to vector<1x128xi1>
    %358 = vector.broadcast %357 : vector<1x128xi1> to vector<8x128xi1>
    %359 = arith.select %356, %297, %324 : vector<1x128xi1>, vector<1x128xf32>
    %360 = arith.select %356, %324, %297 : vector<1x128xi1>, vector<1x128xf32>
    %361 = arith.select %358, %299, %326 : vector<8x128xi1>, vector<8x128xf32>
    %362 = arith.select %358, %326, %299 : vector<8x128xi1>, vector<8x128xf32>
    %363 = arith.select %358, %301, %328 : vector<8x128xi1>, vector<8x128xf32>
    %364 = arith.select %358, %328, %301 : vector<8x128xi1>, vector<8x128xf32>
    %365 = arith.cmpf olt, %333, %341 : vector<1x128xf32>
    %366 = vector.shape_cast %365 : vector<1x128xi1> to vector<1x128xi1>
    %367 = vector.broadcast %366 : vector<1x128xi1> to vector<8x128xi1>
    %368 = arith.select %365, %341, %333 : vector<1x128xi1>, vector<1x128xf32>
    %369 = arith.select %365, %333, %341 : vector<1x128xi1>, vector<1x128xf32>
    %370 = arith.select %367, %343, %335 : vector<8x128xi1>, vector<8x128xf32>
    %371 = arith.select %367, %335, %343 : vector<8x128xi1>, vector<8x128xf32>
    %372 = arith.select %367, %345, %337 : vector<8x128xi1>, vector<8x128xf32>
    %373 = arith.select %367, %337, %345 : vector<8x128xi1>, vector<8x128xf32>
    %374 = arith.cmpf olt, %342, %350 : vector<1x128xf32>
    %375 = vector.shape_cast %374 : vector<1x128xi1> to vector<1x128xi1>
    %376 = vector.broadcast %375 : vector<1x128xi1> to vector<8x128xi1>
    %377 = arith.select %374, %350, %342 : vector<1x128xi1>, vector<1x128xf32>
    %378 = arith.select %374, %342, %350 : vector<1x128xi1>, vector<1x128xf32>
    %379 = arith.select %376, %352, %344 : vector<8x128xi1>, vector<8x128xf32>
    %380 = arith.select %376, %344, %352 : vector<8x128xi1>, vector<8x128xf32>
    %381 = arith.select %376, %354, %346 : vector<8x128xi1>, vector<8x128xf32>
    %382 = arith.select %376, %346, %354 : vector<8x128xi1>, vector<8x128xf32>
    %383 = arith.cmpf olt, %351, %359 : vector<1x128xf32>
    %384 = vector.shape_cast %383 : vector<1x128xi1> to vector<1x128xi1>
    %385 = vector.broadcast %384 : vector<1x128xi1> to vector<8x128xi1>
    %386 = arith.select %383, %359, %351 : vector<1x128xi1>, vector<1x128xf32>
    %387 = arith.select %383, %351, %359 : vector<1x128xi1>, vector<1x128xf32>
    %388 = arith.select %385, %361, %353 : vector<8x128xi1>, vector<8x128xf32>
    %389 = arith.select %385, %353, %361 : vector<8x128xi1>, vector<8x128xf32>
    %390 = arith.select %385, %363, %355 : vector<8x128xi1>, vector<8x128xf32>
    %391 = arith.select %385, %355, %363 : vector<8x128xi1>, vector<8x128xf32>
    %c0_36 = arith.constant 0 : index
    %c0_37 = arith.constant 0 : index
    %c0_38 = arith.constant 0 : index
    %392 = vector.load %arg2[%c0_36, %c0_37, %c0_38] : memref<8x8x128xf32, #tpu.memory_space<vmem>>, vector<1x8x128xf32>
    %393 = vector.shape_cast %392 : vector<1x8x128xf32> to vector<8x128xf32>
    %394 = vector.shape_cast %334 : vector<8x128xf32> to vector<1x8x128xf32>
    tpu.vector_store %arg2[%c0_36, %c0_37, %c0_38], %394 {strides = array<i32>} : memref<8x8x128xf32, #tpu.memory_space<vmem>>, vector<1x8x128xf32>,
    %c0_39 = arith.constant 0 : index
    %c0_40 = arith.constant 0 : index
    %c0_41 = arith.constant 0 : index
    %395 = vector.load %arg4[%c0_39, %c0_40, %c0_41] : memref<8x8x128xf32, #tpu.memory_space<vmem>>, vector<1x8x128xf32>
    %396 = vector.shape_cast %395 : vector<1x8x128xf32> to vector<8x128xf32>
    %397 = vector.shape_cast %336 : vector<8x128xf32> to vector<1x8x128xf32>
    tpu.vector_store %arg4[%c0_39, %c0_40, %c0_41], %397 {strides = array<i32>} : memref<8x8x128xf32, #tpu.memory_space<vmem>>, vector<1x8x128xf32>,
    %c1 = arith.constant 1 : index
    %c0_42 = arith.constant 0 : index
    %c0_43 = arith.constant 0 : index
    %398 = vector.load %arg2[%c1, %c0_42, %c0_43] : memref<8x8x128xf32, #tpu.memory_space<vmem>>, vector<1x8x128xf32>
    %399 = vector.shape_cast %398 : vector<1x8x128xf32> to vector<8x128xf32>
    %400 = vector.shape_cast %370 : vector<8x128xf32> to vector<1x8x128xf32>
    tpu.vector_store %arg2[%c1, %c0_42, %c0_43], %400 {strides = array<i32>} : memref<8x8x128xf32, #tpu.memory_space<vmem>>, vector<1x8x128xf32>,
    %c1_44 = arith.constant 1 : index
    %c0_45 = arith.constant 0 : index
    %c0_46 = arith.constant 0 : index
    %401 = vector.load %arg4[%c1_44, %c0_45, %c0_46] : memref<8x8x128xf32, #tpu.memory_space<vmem>>, vector<1x8x128xf32>
    %402 = vector.shape_cast %401 : vector<1x8x128xf32> to vector<8x128xf32>
    %403 = vector.shape_cast %372 : vector<8x128xf32> to vector<1x8x128xf32>
    tpu.vector_store %arg4[%c1_44, %c0_45, %c0_46], %403 {strides = array<i32>} : memref<8x8x128xf32, #tpu.memory_space<vmem>>, vector<1x8x128xf32>,
    %c2 = arith.constant 2 : index
    %c0_47 = arith.constant 0 : index
    %c0_48 = arith.constant 0 : index
    %404 = vector.load %arg2[%c2, %c0_47, %c0_48] : memref<8x8x128xf32, #tpu.memory_space<vmem>>, vector<1x8x128xf32>
    %405 = vector.shape_cast %404 : vector<1x8x128xf32> to vector<8x128xf32>
    %406 = vector.shape_cast %371 : vector<8x128xf32> to vector<1x8x128xf32>
    tpu.vector_store %arg2[%c2, %c0_47, %c0_48], %406 {strides = array<i32>} : memref<8x8x128xf32, #tpu.memory_space<vmem>>, vector<1x8x128xf32>,
    %c2_49 = arith.constant 2 : index
    %c0_50 = arith.constant 0 : index
    %c0_51 = arith.constant 0 : index
    %407 = vector.load %arg4[%c2_49, %c0_50, %c0_51] : memref<8x8x128xf32, #tpu.memory_space<vmem>>, vector<1x8x128xf32>
    %408 = vector.shape_cast %407 : vector<1x8x128xf32> to vector<8x128xf32>
    %409 = vector.shape_cast %373 : vector<8x128xf32> to vector<1x8x128xf32>
    tpu.vector_store %arg4[%c2_49, %c0_50, %c0_51], %409 {strides = array<i32>} : memref<8x8x128xf32, #tpu.memory_space<vmem>>, vector<1x8x128xf32>,
    %c3 = arith.constant 3 : index
    %c0_52 = arith.constant 0 : index
    %c0_53 = arith.constant 0 : index
    %410 = vector.load %arg2[%c3, %c0_52, %c0_53] : memref<8x8x128xf32, #tpu.memory_space<vmem>>, vector<1x8x128xf32>
    %411 = vector.shape_cast %410 : vector<1x8x128xf32> to vector<8x128xf32>
    %412 = vector.shape_cast %379 : vector<8x128xf32> to vector<1x8x128xf32>
    tpu.vector_store %arg2[%c3, %c0_52, %c0_53], %412 {strides = array<i32>} : memref<8x8x128xf32, #tpu.memory_space<vmem>>, vector<1x8x128xf32>,
    %c3_54 = arith.constant 3 : index
    %c0_55 = arith.constant 0 : index
    %c0_56 = arith.constant 0 : index
    %413 = vector.load %arg4[%c3_54, %c0_55, %c0_56] : memref<8x8x128xf32, #tpu.memory_space<vmem>>, vector<1x8x128xf32>
    %414 = vector.shape_cast %413 : vector<1x8x128xf32> to vector<8x128xf32>
    %415 = vector.shape_cast %381 : vector<8x128xf32> to vector<1x8x128xf32>
    tpu.vector_store %arg4[%c3_54, %c0_55, %c0_56], %415 {strides = array<i32>} : memref<8x8x128xf32, #tpu.memory_space<vmem>>, vector<1x8x128xf32>,
    %c4 = arith.constant 4 : index
    %c0_57 = arith.constant 0 : index
    %c0_58 = arith.constant 0 : index
    %416 = vector.load %arg2[%c4, %c0_57, %c0_58] : memref<8x8x128xf32, #tpu.memory_space<vmem>>, vector<1x8x128xf32>
    %417 = vector.shape_cast %416 : vector<1x8x128xf32> to vector<8x128xf32>
    %418 = vector.shape_cast %380 : vector<8x128xf32> to vector<1x8x128xf32>
    tpu.vector_store %arg2[%c4, %c0_57, %c0_58], %418 {strides = array<i32>} : memref<8x8x128xf32, #tpu.memory_space<vmem>>, vector<1x8x128xf32>,
    %c4_59 = arith.constant 4 : index
    %c0_60 = arith.constant 0 : index
    %c0_61 = arith.constant 0 : index
    %419 = vector.load %arg4[%c4_59, %c0_60, %c0_61] : memref<8x8x128xf32, #tpu.memory_space<vmem>>, vector<1x8x128xf32>
    %420 = vector.shape_cast %419 : vector<1x8x128xf32> to vector<8x128xf32>
    %421 = vector.shape_cast %382 : vector<8x128xf32> to vector<1x8x128xf32>
    tpu.vector_store %arg4[%c4_59, %c0_60, %c0_61], %421 {strides = array<i32>} : memref<8x8x128xf32, #tpu.memory_space<vmem>>, vector<1x8x128xf32>,
    %c5 = arith.constant 5 : index
    %c0_62 = arith.constant 0 : index
    %c0_63 = arith.constant 0 : index
    %422 = vector.load %arg2[%c5, %c0_62, %c0_63] : memref<8x8x128xf32, #tpu.memory_space<vmem>>, vector<1x8x128xf32>
    %423 = vector.shape_cast %422 : vector<1x8x128xf32> to vector<8x128xf32>
    %424 = vector.shape_cast %388 : vector<8x128xf32> to vector<1x8x128xf32>
    tpu.vector_store %arg2[%c5, %c0_62, %c0_63], %424 {strides = array<i32>} : memref<8x8x128xf32, #tpu.memory_space<vmem>>, vector<1x8x128xf32>,
    %c5_64 = arith.constant 5 : index
    %c0_65 = arith.constant 0 : index
    %c0_66 = arith.constant 0 : index
    %425 = vector.load %arg4[%c5_64, %c0_65, %c0_66] : memref<8x8x128xf32, #tpu.memory_space<vmem>>, vector<1x8x128xf32>
    %426 = vector.shape_cast %425 : vector<1x8x128xf32> to vector<8x128xf32>
    %427 = vector.shape_cast %390 : vector<8x128xf32> to vector<1x8x128xf32>
    tpu.vector_store %arg4[%c5_64, %c0_65, %c0_66], %427 {strides = array<i32>} : memref<8x8x128xf32, #tpu.memory_space<vmem>>, vector<1x8x128xf32>,
    %c6 = arith.constant 6 : index
    %c0_67 = arith.constant 0 : index
    %c0_68 = arith.constant 0 : index
    %428 = vector.load %arg2[%c6, %c0_67, %c0_68] : memref<8x8x128xf32, #tpu.memory_space<vmem>>, vector<1x8x128xf32>
    %429 = vector.shape_cast %428 : vector<1x8x128xf32> to vector<8x128xf32>
    %430 = vector.shape_cast %389 : vector<8x128xf32> to vector<1x8x128xf32>
    tpu.vector_store %arg2[%c6, %c0_67, %c0_68], %430 {strides = array<i32>} : memref<8x8x128xf32, #tpu.memory_space<vmem>>, vector<1x8x128xf32>,
    %c6_69 = arith.constant 6 : index
    %c0_70 = arith.constant 0 : index
    %c0_71 = arith.constant 0 : index
    %431 = vector.load %arg4[%c6_69, %c0_70, %c0_71] : memref<8x8x128xf32, #tpu.memory_space<vmem>>, vector<1x8x128xf32>
    %432 = vector.shape_cast %431 : vector<1x8x128xf32> to vector<8x128xf32>
    %433 = vector.shape_cast %391 : vector<8x128xf32> to vector<1x8x128xf32>
    tpu.vector_store %arg4[%c6_69, %c0_70, %c0_71], %433 {strides = array<i32>} : memref<8x8x128xf32, #tpu.memory_space<vmem>>, vector<1x8x128xf32>,
    %c7 = arith.constant 7 : index
    %c0_72 = arith.constant 0 : index
    %c0_73 = arith.constant 0 : index
    %434 = vector.load %arg2[%c7, %c0_72, %c0_73] : memref<8x8x128xf32, #tpu.memory_space<vmem>>, vector<1x8x128xf32>
    %435 = vector.shape_cast %434 : vector<1x8x128xf32> to vector<8x128xf32>
    %436 = vector.shape_cast %362 : vector<8x128xf32> to vector<1x8x128xf32>
    tpu.vector_store %arg2[%c7, %c0_72, %c0_73], %436 {strides = array<i32>} : memref<8x8x128xf32, #tpu.memory_space<vmem>>, vector<1x8x128xf32>,
    %c7_74 = arith.constant 7 : index
    %c0_75 = arith.constant 0 : index
    %c0_76 = arith.constant 0 : index
    %437 = vector.load %arg4[%c7_74, %c0_75, %c0_76] : memref<8x8x128xf32, #tpu.memory_space<vmem>>, vector<1x8x128xf32>
    %438 = vector.shape_cast %437 : vector<1x8x128xf32> to vector<8x128xf32>
    %439 = vector.shape_cast %364 : vector<8x128xf32> to vector<1x8x128xf32>
    tpu.vector_store %arg4[%c7_74, %c0_75, %c0_76], %439 {strides = array<i32>} : memref<8x8x128xf32, #tpu.memory_space<vmem>>, vector<1x8x128xf32>,
    %440 = tpu.concatenate %332, %368, %369, %377, %378, %386, %387, %360 in 0 : vector<1x128xf32>, vector<1x128xf32>, vector<1x128xf32>, vector<1x128xf32>, vector<1x128xf32>, vector<1x128xf32>, vector<1x128xf32>, vector<1x128xf32> -> vector<8x128xf32>
    %c0_77 = arith.constant 0 : index
    %c0_78 = arith.constant 0 : index
    %441 = vector.load %arg3[%c0_77, %c0_78] : memref<8x128xf32, #tpu.memory_space<vmem>>, vector<8x128xf32>
    tpu.vector_store %arg3[%c0_77, %c0_78], %440 {strides = array<i32>} : memref<8x128xf32, #tpu.memory_space<vmem>>, vector<8x128xf32>,
    return
  }
  func.func @transform_0(%arg0: i32) -> (i32, i32, i32) {
    %c0_i32 = arith.constant 0 : i32
    %c0_i32_0 = arith.constant 0 : i32
    %c0_i32_1 = arith.constant 0 : i32
    return %c0_i32, %c0_i32_0, %arg0 : i32, i32, i32
  }
  func.func @transform_1(%arg0: i32) -> (i32, i32, i32) {
    %c0_i32 = arith.constant 0 : i32
    %c0_i32_0 = arith.constant 0 : i32
    %c0_i32_1 = arith.constant 0 : i32
    return %c0_i32, %c0_i32_0, %arg0 : i32, i32, i32
  }
  func.func @transform_2(%arg0: i32) -> (i32, i32) {
    %c0_i32 = arith.constant 0 : i32
    %c0_i32_0 = arith.constant 0 : i32
    return %c0_i32, %arg0 : i32, i32
  }
  func.func @transform_3(%arg0: i32) -> (i32, i32, i32) {
    %c0_i32 = arith.constant 0 : i32
    %c0_i32_0 = arith.constant 0 : i32
    %c0_i32_1 = arith.constant 0 : i32
    return %c0_i32, %c0_i32_0, %arg0 : i32, i32, i32
  }
}

</mosaic_0001>

<bundles_post_ra>
// kernel: tpu_custom_call.1
= control target key start
LH: loop header
LB: loop body
LE: loop exit
PB: predicated region body
PF: predicated region fallthrough
CT: control target
= control target key end

     0   :  { %9 = vsyncpa [#allocation3], 0  ;;  %s5538_s0 = inlined_call_operand.hbm [shape: f32[8,8,128], index: 0, kind: input, shape index: {}]   ;;  %s5539_s1 = inlined_call_operand.hbm [shape: f32[8,8,128], index: 1, kind: output, shape index: {0}]   ;;  %s5540_s2 = inlined_call_operand.hbm [shape: f32[8,128], index: 2, kind: output, shape index: {1}]   ;;  %s5541_s3 = inlined_call_operand.hbm [shape: f32[8,8,128], index: 3, kind: output, shape index: {2}]  }
   0x1   :  { %10 = vsyncpa [#allocation4], 0 }
   0x2   :  { %11 = vsyncpa [#allocation7], 0  ;;  %s2985_s12 = smov [#allocation2]   ;;  %s2691_s16 = scalar_lea.hbm %s5538_s0, 1024 }
   0x3   :  { %s17_s13 = sshll.u32 %s2985_s12, 4  ;;  %p2692_p0 = scmp.ne.s32.totalorder %s5538_s0, %s2691_s16  ;;  %s18_s13 = int_to_ptr.vmem [resolvable:$true] %s17_s13 }
   0x4   :  { %p2695_p1 = scmp.lt.u32.totalorder %s2691_s16, %s5538_s0 }
   0x6   :  { %p2697_p2 = pnand %p2695_p1, %p2692_p0 }
   0x8   :  { %2700 = shalt.err (!%p2697_p2)
}
   0x9   :  { %s2701_s21 = scalar_lea.vmem %s18_s13, 1024  ;;  %p2706_p4 = scmp.lt.s32.totalorder %s18_s13, %s18_s13 }
   0xa   :  { %p2702_p3 = scmp.ne.s32.totalorder %s18_s13, %s2701_s21  ;;  %p2707_p5 = scmp.lt.s32.totalorder %s2701_s21, %s2701_s21 }
   0xc   :  { %p2708_p6 = por %p2707_p5, %p2706_p4 }
   0xe   :  { %p2709_p7 = pnand %p2708_p6, %p2702_p3 }
  0x10   :  { %2712 = shalt.err (!%p2709_p7)
}
  0x11   :  { %s2986_s22 = smov 128   ;;  %s2987_s23 = smov 8  }
  0x12   :  { %23 = dma.hbm_to_vmem [thread:$0]  %s5538_s0, 1024, %s18_s13, [#allocation3], %s2986_s22, %s2986_s22, %s2987_s23  }
  0x13   :  { %2879 = dma.done.wait [#allocation3], 1024  }
  0x14   :  { %2880 = vsyncadd [#allocation3], 4294966272  ;;  %v35_v0 = vlaneseq  ;;  %v2988_v2 = vmov 0.0   ;;  %v3036_v7 = vld [vmem:[#allocation2] sm:$0xff]   ;;  %v3038_v8 = vld [vmem:[#allocation2 + $0x8] sm:$0xff]   ;;  %s3140_s0 = smov 0  }
  0x15   :  { %v3040_v9 = vld [vmem:[#allocation2 + $0x10] sm:$0xff]   ;;  %v3048_v13 = vld [vmem:[#allocation2 + $0x18] sm:$0xff]   ;;  %v3050_v14 = vld [vmem:[#allocation2 + $0x20] sm:$0xff]   ;;  %v53_v17 = vmul.f32 %v3036_v7, %v3036_v7  ;;  %v60_v18 = vmul.f32 %v3038_v8, %v3038_v8 }
  0x16   :  { %v36_v1 = vshrl.u32 %v35_v0, 7  ;;  %v3052_v15 = vld [vmem:[#allocation2 + $0x28] sm:$0xff]   ;;  %v67_v19 = vmul.f32 %v3040_v9, %v3040_v9  ;;  %v3062_v20 = vld [vmem:[#allocation2 + $0x30] sm:$0xff]   ;;  %v3064_v21 = vld [vmem:[#allocation2 + $0x38] sm:$0xff]   ;;  %v74_v22 = vmul.f32 %v3048_v13, %v3048_v13  ;;  %v81_v23 = vmul.f32 %v3050_v14, %v3050_v14 }
  0x17   :  { %v88_v24 = vmul.f32 %v3052_v15, %v3052_v15  ;;  %v54_v25 = vrot.slane %v53_v17, 4  ;;  %v61_v26 = vrot.slane %v60_v18, 4  ;;  %v95_v28 = vmul.f32 %v3062_v20, %v3062_v20 }
  0x18   :  { %vm37_vm0 = vcmp.eq.s32.totalorder %v36_v1, 0  ;;  %vm39_vm1 = vcmp.eq.s32.totalorder %v36_v1, 1  ;;  %vm41_vm2 = vcmp.eq.s32.totalorder %v36_v1, 2  ;;  %vm43_vm3 = vcmp.eq.s32.totalorder %v36_v1, 3 }
  0x19   :  { %v3028_v3 = vsel %vm37_vm0, 1.0, %v2988_v2   ;;  %v3030_v4 = vsel %vm39_vm1, 1.0, %v2988_v2   ;;  %v3032_v5 = vsel %vm41_vm2, 1.0, %v2988_v2   ;;  %v3034_v6 = vsel %vm43_vm3, 1.0, %v2988_v2  }
  0x1a   :  { %vm45_vm4 = vcmp.eq.s32.totalorder %v36_v1, 4  ;;  %vm47_vm5 = vcmp.eq.s32.totalorder %v36_v1, 5  ;;  %vm49_vm6 = vcmp.eq.s32.totalorder %v36_v1, 6  ;;  %vm51_vm7 = vcmp.eq.s32.totalorder %v36_v1, 7 }
  0x1b   :  { %v3042_v10 = vsel %vm45_vm4, 1.0, %v2988_v2   ;;  %v3044_v11 = vsel %vm47_vm5, 1.0, %v2988_v2   ;;  %v3046_v12 = vsel %vm49_vm6, 1.0, %v2988_v2   ;;  %v3054_v16 = vsel %vm51_vm7, 1.0, %v2988_v2  }
  0x1c   :  { %v68_v27 = vrot.slane %v67_v19, 4  ;;  %v75_v29 = vrot.slane %v74_v22, 4  ;;  %v82_v30 = vrot.slane %v81_v23, 4  ;;  %v89_v31 = vrot.slane %v88_v24, 4 }
  0x1d   :  { %v102_v32 = vmul.f32 %v3064_v21, %v3064_v21  ;;  %v55_v33 = vadd.f32 %v54_v25, %v53_v17  ;;  %v62_v34 = vadd.f32 %v61_v26, %v60_v18  ;;  %v96_v36 = vrot.slane %v95_v28, 4 }
  0x1e   :  { %v69_v35 = vadd.f32 %v68_v27, %v67_v19  ;;  %v76_v37 = vadd.f32 %v75_v29, %v74_v22  ;;  %v83_v38 = vadd.f32 %v82_v30, %v81_v23  ;;  %v90_v39 = vadd.f32 %v89_v31, %v88_v24 }
  0x1f   :  { %v103_v40 = vrot.slane %v102_v32, 4  ;;  %v56_v41 = vrot.slane %v55_v33, 2  ;;  %v63_v42 = vrot.slane %v62_v34, 2  ;;  %v97_v44 = vadd.f32 %v96_v36, %v95_v28 }
  0x20   :  { %v70_v43 = vrot.slane %v69_v35, 2  ;;  %v77_v45 = vrot.slane %v76_v37, 2  ;;  %v84_v46 = vrot.slane %v83_v38, 2  ;;  %v91_v47 = vrot.slane %v90_v39, 2 }
  0x21   :  { %v104_v48 = vadd.f32 %v103_v40, %v102_v32  ;;  %v57_v49 = vadd.f32 %v56_v41, %v55_v33  ;;  %v64_v50 = vadd.f32 %v63_v42, %v62_v34  ;;  %v98_v52 = vrot.slane %v97_v44, 2 }
  0x22   :  { %v71_v51 = vadd.f32 %v70_v43, %v69_v35  ;;  %v78_v53 = vadd.f32 %v77_v45, %v76_v37  ;;  %v85_v54 = vadd.f32 %v84_v46, %v83_v38  ;;  %v92_v55 = vadd.f32 %v91_v47, %v90_v39 }
  0x23   :  { %v105_v56 = vrot.slane %v104_v48, 2  ;;  %v58_v57 = vrot.slane %v57_v49, 1  ;;  %v65_v58 = vrot.slane %v64_v50, 1  ;;  %v99_v60 = vadd.f32 %v98_v52, %v97_v44 }
  0x24   :  { %v72_v59 = vrot.slane %v71_v51, 1  ;;  %v79_v61 = vrot.slane %v78_v53, 1  ;;  %v86_v62 = vrot.slane %v85_v54, 1  ;;  %v93_v63 = vrot.slane %v92_v55, 1 }
  0x25   :  { %v106_v0 = vadd.f32 %v105_v56, %v104_v48  ;;  %v59_v1 = vadd.f32 %v58_v57, %v57_v49   ;;  %v66_v2 = vadd.f32 %v65_v58, %v64_v50   ;;  %v100_v18 = vrot.slane %v99_v60, 1 }
  0x26   :  { %v73_v17 = vadd.f32 %v72_v59, %v71_v51   ;;  %v80_v19 = vadd.f32 %v79_v61, %v78_v53   ;;  %v87_v22 = vadd.f32 %v86_v62, %v85_v54   ;;  %v94_v23 = vadd.f32 %v93_v63, %v92_v55  }
  0x27   :  { %v107_v24 = vrot.slane %v106_v0, 1  ;;  %v101_v25 = vadd.f32 %v100_v18, %v99_v60  }
  0x29   :  { %v108_v26 = vadd.f32 %v107_v24, %v106_v0  }
  0x2a LB: > { %v139_v27 = vmul.f32 %v2951_v21, %v2979_v7  ;;  %v200_v28 = vmul.f32 %v2955_v20, %v2975_v8  ;;  %v261_v29 = vmul.f32 %v2959_v15, %v2971_v9  ;;  %v322_v38 = vmul.f32 %v2963_v14, %v2967_v13  ;;  %s114_s0 = sadd.s32 1, %s2983_s0   ;;  %s2983_s0 = sphi %s3140_s0, %s114_s0   ;;  %v2979_v7 = vphi %v3036_v7, %v5621_v7   ;;  %v2975_v8 = vphi %v3038_v8, %v5620_v8   ;;  %v2971_v9 = vphi %v3040_v9, %v5619_v9   ;;  %v2967_v13 = vphi %v3048_v13, %v5618_v13   ;;  %v2963_v14 = vphi %v3050_v14, %v5617_v14   ;;  %v2959_v15 = vphi %v3052_v15, %v5616_v15   ;;  %v2955_v20 = vphi %v3062_v20, %v5615_v20   ;;  %v2951_v21 = vphi %v3064_v21, %v5614_v21   ;;  %v2947_v3 = vphi %v3028_v3, %v5613_v3   ;;  %v2943_v4 = vphi %v3030_v4, %v5612_v4   ;;  %v2939_v5 = vphi %v3032_v5, %v5611_v5   ;;  %v2935_v6 = vphi %v3034_v6, %v5610_v6   ;;  %v2931_v10 = vphi %v3042_v10, %v5609_v10   ;;  %v2927_v11 = vphi %v3044_v11, %v5608_v11   ;;  %v2923_v12 = vphi %v3046_v12, %v5607_v12   ;;  %v2919_v16 = vphi %v3054_v16, %v5606_v16   ;;  %v2915_v1 = vphi %v59_v1, %v5605_v1   ;;  %v2911_v2 = vphi %v66_v2, %v5604_v2   ;;  %v2907_v17 = vphi %v73_v17, %v5603_v17   ;;  %v2903_v19 = vphi %v80_v19, %v5602_v19   ;;  %v2899_v22 = vphi %v87_v22, %v5601_v22   ;;  %v2895_v23 = vphi %v94_v23, %v5600_v23   ;;  %v2891_v25 = vphi %v101_v25, %v5599_v25   ;;  %v2887_v26 = vphi %v108_v26, %v5598_v26  }
  0x2b   : > { %v3227_v43 = vsub.f32 %v2887_v26, %v2915_v1  ;;  %v3231_v46 = vsub.f32 %v2891_v25, %v2911_v2  ;;  %v3245_v54 = vsub.f32 %v2895_v23, %v2907_v17  ;;  %p4853_p8 = scmp.ge.s32.totalorder %s114_s0, 7  }
  0x2c   : > { %v140_v30 = vrot.slane %v139_v27, 4  ;;  %v201_v31 = vrot.slane %v200_v28, 4  ;;  %v262_v34 = vrot.slane %v261_v29, 4  ;;  %v323_v44 = vrot.slane %v322_v38, 4  ;;  %s2990_s27 = smov (%p4853_p8), [#allocation6]  }
  0x2d   : > { %v154_v53 = vmul.f32 %v3227_v43, %v3227_v43  ;;  %v215_v57 = vmul.f32 %v3231_v46, %v3231_v46  ;;  %v276_v0 = vmul.f32 %v3245_v54, %v3245_v54  ;;  %vm151_vm8 = vcmp.ge.f32.partialorder %v3227_v43, 0.0  ;;  %s2194_s28 = sshll.u32 (%p4853_p8), %s2990_s27, 4  ;;  %s2195_s28 = int_to_ptr.vmem [resolvable:$true] %s2194_s28 }
  0x2e   : > { %v141_v32 = vadd.f32 %v140_v30, %v139_v27  ;;  %v202_v33 = vadd.f32 %v201_v31, %v200_v28  ;;  %v263_v37 = vadd.f32 %v262_v34, %v261_v29  ;;  %v324_v49 = vadd.f32 %v323_v44, %v322_v38  ;;  %s2713_s29 = scalar_lea.vmem (%p4853_p8), %s2195_s28, 128  ;;  %p2718_p10 = scmp.lt.s32.totalorder (%p4853_p8), %s2195_s28, %s2195_s28 }
  0x2f   : > { %v3266_v28 = vsub.f32 %v2899_v22, %v2903_v19  ;;  %v148_v31 = vmul.f32 %v2887_v26, %v2915_v1  ;;  %v153_v38 = vand.u32 2147483647, %v3227_v43  ;;  %vm212_vm11 = vcmp.ge.f32.partialorder %v3231_v46, 0.0  ;;  %p2714_p9 = scmp.ne.s32.totalorder (%p4853_p8), %s2195_s28, %s2713_s29  ;;  %p2719_p11 = scmp.lt.s32.totalorder (%p4853_p8), %s2713_s29, %s2713_s29 }
  0x30   : > { %v142_v35 = vrot.slane %v141_v32, 2  ;;  %v203_v36 = vrot.slane %v202_v33, 2  ;;  %v264_v41 = vrot.slane %v263_v37, 2  ;;  %v325_v55 = vrot.slane %v324_v49, 2 }
  0x31   : > { %v337_v34 = vmul.f32 %v3266_v28, %v3266_v28  ;;  %vm273_vm3 = vcmp.ge.f32.partialorder %v3245_v54, 0.0  ;;  %vm334_vm7 = vcmp.ge.f32.partialorder %v3266_v28, 0.0  ;;  %p2720_p12 = por (%p4853_p8), %p2719_p11, %p2718_p10 }
  0x32   : > { %v143_v39 = vadd.f32 %v142_v35, %v141_v32  ;;  %v204_v40 = vadd.f32 %v203_v36, %v202_v33  ;;  %v265_v47 = vadd.f32 %v264_v41, %v263_v37  ;;  %v326_v60 = vadd.f32 %v325_v55, %v324_v49 }
  0x33   : > { %v209_v32 = vmul.f32 %v2891_v25, %v2911_v2  ;;  %v3281_v36 = vmul.f32 1e-14, %v148_v31  ;;  %v270_v37 = vmul.f32 %v2895_v23, %v2907_v17  ;;  %v214_v49 = vand.u32 2147483647, %v3231_v46  ;;  %p2721_p13 = pnand (%p4853_p8), %p2720_p12, %p2714_p9 }
  0x34   : > { %v144_v42 = vrot.slane %v143_v39, 1  ;;  %v205_v45 = vrot.slane %v204_v40, 1  ;;  %v266_v51 = vrot.slane %v265_v47, 1  ;;  %v327_v18 = vrot.slane %v326_v60, 1 }
  0x36   : > { %v3233_v48 = vadd.f32 %v144_v42, %v143_v39  ;;  %v3235_v50 = vadd.f32 %v205_v45, %v204_v40  ;;  %v3253_v58 = vadd.f32 %v266_v51, %v265_v47  ;;  %v3268_v30 = vadd.f32 %v327_v18, %v326_v60 }
  0x37   : > { %v3287_v39 = vmul.f32 1e-14, %v209_v32 }
  0x38   : > { %v3239_v52 = vmul.f32 %v3233_v48, %v3233_v48  ;;  %v3249_v56 = vmul.f32 %v3235_v50, %v3235_v50  ;;  %v3259_v62 = vmul.f32 %v3253_v58, %v3253_v58  ;;  %v3276_v33 = vmul.f32 %v3268_v30, %v3268_v30 }
  0x3a   : > { %v155_v59 = vmul.f32 4.0, %v3239_v52  ;;  %v216_v61 = vmul.f32 4.0, %v3249_v56  ;;  %v277_v27 = vmul.f32 4.0, %v3259_v62  ;;  %v338_v35 = vmul.f32 4.0, %v3276_v33 }
  0x3b   : > { %vm150_vm14 = vcmp.le.f32.partialorder %v3239_v52, %v3281_v36  ;;  %vm211_vm15 = vcmp.le.f32.partialorder %v3249_v56, %v3287_v39 }
  0x3c   : > { %v156_v63 = vadd.f32 %v155_v59, %v154_v53  ;;  %v217_v24 = vadd.f32 %v216_v61, %v215_v57  ;;  %v278_v29 = vadd.f32 %v277_v27, %v276_v0  ;;  %v339_v40 = vadd.f32 %v338_v35, %v337_v34 }
  0x3d   : > { %v3291_v53 = vmul.f32 1e-14, %v270_v37  ;;  %v275_v57 = vand.u32 2147483647, %v3245_v54  ;;  %v2989_v34 = vmov -1.0  }
  0x3e   : > { %2507 = vrsqrt.f32 %v156_v63  ;;  %vm159_vm9 = vcmp.eq.f32.partialorder %v156_v63, inf  ;;  %vm161_vm10 = vcmp.eq.f32.partialorder %v156_v63, 0.0  ;;  %v162_v42 = vand.u32 2147483648, %v156_v63 }
  0x3f   : > { %2509 = vrsqrt.f32 %v217_v24  ;;  %vm220_vm12 = vcmp.eq.f32.partialorder %v217_v24, inf  ;;  %v223_v47 = vand.u32 2147483648, %v217_v24  ;;  %vm222_vm13 = vcmp.eq.f32.partialorder %v217_v24, 0.0 }
  0x40   : > { %2511 = vrsqrt.f32 %v278_v29  ;;  %vm281_vm0 = vcmp.eq.f32.partialorder %v278_v29, inf  ;;  %v284_v0 = vand.u32 2147483648, %v278_v29  ;;  %vm283_vm1 = vcmp.eq.f32.partialorder %v278_v29, 0.0 }
  0x41   : > { %2513 = vrsqrt.f32 %v339_v40  ;;  %v152_v35 = vsel %vm151_vm8, 1.0, %v2989_v34  ;;  %vm272_vm2 = vcmp.le.f32.partialorder %v3259_v62, %v3291_v53  ;;  %vm342_vm4 = vcmp.eq.f32.partialorder %v339_v40, inf }
  0x42   : > { %vm344_vm5 = vcmp.eq.f32.partialorder %v339_v40, 0.0  ;;  %v336_v54 = vand.u32 2147483647, %v3266_v28  ;;  %v335_v36 = vsel %vm334_vm7, 1.0, %v2989_v34 }
  0x43   : > { %v349_v39 = vmul.f32 2.0, %v335_v36 }
  0x48   : > { %v2508_v41 = vpop.eup %2507 }
  0x49   : > { %v2510_v44 = vpop.eup %2509  ;;  %v158_v45 = vmul.f32 %v2508_v41, %v156_v63 }
  0x4a   : > { %v219_v51 = vmul.f32 %v2510_v44, %v217_v24  ;;  %v2512_v59 = vpop.eup %2511 }
  0x4b   : > { %v160_v55 = vsel %vm159_vm9, %v156_v63, %v158_v45  ;;  %v280_v31 = vmul.f32 %v2512_v59, %v278_v29  ;;  %v213_v63 = vsel %vm212_vm11, 1.0, %v2989_v34  ;;  %v2514_v45 = vpop.eup %2513 }
  0x4c   : > { %v163_v60 = vsel %vm161_vm10, %v162_v42, %v160_v55  ;;  %v221_v61 = vsel %vm220_vm12, %v217_v24, %v219_v51  ;;  %v166_v42 = vmul.f32 2.0, %v152_v35  ;;  %v227_v44 = vmul.f32 2.0, %v213_v63 }
  0x4d   : > { %v164_v18 = vadd.f32 %v163_v60, %v153_v38  ;;  %v224_v27 = vsel %vm222_vm13, %v223_v47, %v221_v61  ;;  %v282_v24 = vsel %vm281_vm0, %v278_v29, %v280_v31  ;;  %v331_v29 = vmul.f32 %v2899_v22, %v2903_v19 }
  0x4e   : > { %v225_v32 = vadd.f32 %v224_v27, %v214_v49  ;;  %v285_v41 = vsel %vm283_vm1, %v284_v0, %v282_v24  ;;  %v345_v47 = vand.u32 2147483648, %v339_v40  ;;  %v274_v49 = vsel %vm273_vm3, 1.0, %v2989_v34 }
  0x4f   : > { %v165_v37 = vsel %vm150_vm14, 1.0, %v164_v18  ;;  %v286_v43 = vadd.f32 %v285_v41, %v275_v57  ;;  %v341_v51 = vmul.f32 %v2514_v45, %v339_v40  ;;  %v167_v57 = vmul.f32 %v166_v42, %v3233_v48 }
  0x50   : > { %2515 = vrcp.f32 %v165_v37  ;;  %v226_v38 = vsel %vm211_vm15, 1.0, %v225_v32  ;;  %v288_v59 = vmul.f32 2.0, %v274_v49  ;;  %v332_v60 = vmul.f32 1e-14, %v331_v29 }
  0x51   : > { %2517 = vrcp.f32 %v226_v38  ;;  %v287_v46 = vsel %vm272_vm2, 1.0, %v286_v43  ;;  %v343_v55 = vsel %vm342_vm4, %v339_v40, %v341_v51  ;;  %v228_v0 = vmul.f32 %v227_v44, %v3235_v50 }
  0x52   : > { %2519 = vrcp.f32 %v287_v46  ;;  %v346_v61 = vsel %vm344_vm5, %v345_v47, %v343_v55  ;;  %v289_v35 = vmul.f32 %v288_v59, %v3253_v58  ;;  %vm333_vm6 = vcmp.le.f32.partialorder %v3276_v33, %v332_v60 }
  0x53   : > { %v347_v27 = vadd.f32 %v346_v61, %v336_v54  ;;  %v350_v29 = vmul.f32 %v349_v39, %v3268_v30 }
  0x55   : > { %v348_v41 = vsel %vm333_vm6, 1.0, %v347_v27 }
  0x56   : > { %2521 = vrcp.f32 %v348_v41 }
  0x5a   : > { %v2516_v18 = vpop.eup %2515 }
  0x5b   : > { %v2518_v31 = vpop.eup %2517  ;;  %v169_v32 = vmul.f32 %v2516_v18, %v167_v57 }
  0x5c   : > { %v230_v37 = vmul.f32 %v2518_v31, %v228_v0  ;;  %v2520_v63 = vpop.eup %2519 }
  0x5d   : > { %v170_v40 = vsel %vm150_vm14, 0.0, %v169_v32  ;;  %v291_v42 = vmul.f32 %v2520_v63, %v289_v35 }
  0x5e   : > { %v171_v24 = vmul.f32 %v170_v40, %v170_v40  ;;  %v231_v38 = vsel %vm211_vm15, 0.0, %v230_v37 }
  0x5f   : > { %v232_v43 = vmul.f32 %v231_v38, %v231_v38  ;;  %v292_v52 = vsel %vm272_vm2, 0.0, %v291_v42 }
  0x60   : > { %v172_v44 = vadd.f32 1.0, %v171_v24  ;;  %v293_v56 = vmul.f32 %v292_v52, %v292_v52  ;;  %v2522_v47 = vpop.eup %2521 }
  0x61   : > { %v233_v45 = vadd.f32 1.0, %v232_v43  ;;  %v352_v53 = vmul.f32 %v2522_v47, %v350_v29 }
  0x62   : > { %2523 = vrsqrt.f32 %v172_v44  ;;  %v294_v46 = vadd.f32 1.0, %v293_v56 }
  0x63   : > { %2525 = vrsqrt.f32 %v233_v45  ;;  %v3352_v27 = vsel %vm333_vm6, 0.0, %v352_v53 }
  0x64   : > { %2527 = vrsqrt.f32 %v294_v46 }
  0x6c   : > { %v2524_v49 = vpop.eup %2523 }
  0x6d   : > { %v3339_v51 = vpop.eup %2525  ;;  %v174_v28 = vmul.f32 %v2524_v49, %v170_v40  ;;  %v194_v54 = vmul.f32 %v2947_v3, %v2524_v49  ;;  %v198_v62 = vmul.f32 %v2919_v16, %v2524_v49  ;;  %v175_v32 = vmul.f32 %v2524_v49, %v2524_v49 }
  0x6e   : > { %v235_v59 = vmul.f32 %v3339_v51, %v231_v38  ;;  %v188_v35 = vmul.f32 %v2979_v7, %v2524_v49  ;;  %v2528_v37 = vpop.eup %2527  ;;  %v255_v24 = vmul.f32 %v2943_v4, %v3339_v51  ;;  %v253_v41 = vmul.f32 %v2955_v20, %v3339_v51 }
  0x6f   : > { %v195_v55 = vmul.f32 %v2919_v16, %v174_v28  ;;  %v197_v57 = vmul.f32 %v2947_v3, %v174_v28  ;;  %v177_v61 = vmul.f32 %v2524_v49, %v174_v28  ;;  %v189_v16 = vmul.f32 %v2951_v21, %v174_v28 }
  0x70   : > { %v238_v31 = vmul.f32 %v3339_v51, %v235_v59  ;;  %v354_v3 = vmul.f32 %v3352_v27, %v3352_v27  ;;  %v3359_v63 = vmul.f32 %v235_v59, %v235_v59  ;;  %v256_v33 = vmul.f32 %v2923_v12, %v235_v59 }
  0x71   : > { %v3346_v0 = vsub.f32 %v194_v54, %v195_v55  ;;  %v3348_v18 = vadd.f32 %v198_v62, %v197_v57  ;;  %v178_v40 = vmul.f32 2.0, %v177_v61  ;;  %v252_v38 = vmul.f32 %v2975_v8, %v235_v59 }
  0x72   : > { %v239_v60 = vmul.f32 2.0, %v238_v31  ;;  %v258_v43 = vmul.f32 %v2943_v4, %v235_v59  ;;  %v191_v42 = vmul.f32 %v2979_v7, %v174_v28  ;;  %v192_v44 = vmul.f32 %v2951_v21, %v2524_v49 }
  0x73   : > { %v3370_v45 = vsub.f32 %v255_v24, %v256_v33  ;;  %v259_v36 = vmul.f32 %v2923_v12, %v3339_v51  ;;  %v236_v56 = vmul.f32 %v3339_v51, %v3339_v51  ;;  %v296_v39 = vmul.f32 %v2528_v37, %v292_v52 }
  0x74   : > { %v355_v46 = vadd.f32 1.0, %v354_v3  ;;  %v176_v29 = vmul.f32 %v174_v28, %v174_v28  ;;  %v179_v47 = vmul.f32 %v2915_v1, %v175_v32  ;;  %v180_v54 = vmul.f32 %v178_v40, %v3233_v48 }
  0x75   : > { %v3378_v4 = vadd.f32 %v259_v36, %v258_v43  ;;  %v3380_v7 = vsub.f32 %v188_v35, %v189_v16  ;;  %v3383_v21 = vmul.f32 %v239_v60, %v3235_v50  ;;  %v245_v12 = vmul.f32 %v2911_v2, %v3359_v63 }
  0x76   : > { %v3387_v49 = vadd.f32 %v253_v41, %v252_v38  ;;  %v182_v52 = vmul.f32 %v2887_v26, %v176_v29  ;;  %v3390_v62 = vadd.f32 %v192_v44, %v191_v42  ;;  %v247_v28 = vmul.f32 %v2891_v25, %v236_v56 }
  0x77   : > { %v299_v53 = vmul.f32 %v2528_v37, %v296_v39  ;;  %v313_v48 = vmul.f32 %v2971_v9, %v296_v39  ;;  %v314_v55 = vmul.f32 %v2959_v15, %v2528_v37  ;;  %v316_v57 = vmul.f32 %v2939_v5, %v2528_v37 }
  0x78   : > { %v317_v50 = vmul.f32 %v2927_v11, %v296_v39  ;;  %v181_v61 = vsub.f32 %v179_v47, %v180_v54  ;;  %v319_v31 = vmul.f32 %v2939_v5, %v296_v39  ;;  %v320_v35 = vmul.f32 %v2927_v11, %v2528_v37 }
  0x79   : > { %2529 = vrsqrt.f32 %v355_v46  ;;  %v246_v16 = vadd.f32 %v245_v12, %v3383_v21  ;;  %v3400_v3 = vadd.f32 %v314_v55, %v313_v48  ;;  %v383_v24 = vmul.f32 %v3387_v49, %v3380_v7 }
  0x7a   : > { %v3402_v40 = vsub.f32 %v316_v57, %v317_v50  ;;  %v184_v33 = vmul.f32 %v2915_v1, %v176_v29  ;;  %v3407_v60 = vadd.f32 %v320_v35, %v319_v31  ;;  %v3409_v38 = vmul.f32 %v296_v39, %v296_v39 }
  0x7b   : > { %v300_v41 = vmul.f32 2.0, %v299_v53  ;;  %v384_v5 = vrot.slane %v383_v24, 4  ;;  %v186_v11 = vmul.f32 %v2887_v26, %v175_v32  ;;  %v249_v43 = vmul.f32 %v2975_v8, %v3339_v51 }
  0x7c   : > { %v3414_v42 = vadd.f32 %v182_v52, %v181_v61  ;;  %v3416_v44 = vadd.f32 %v247_v28, %v246_v16  ;;  %v444_v46 = vmul.f32 %v3400_v3, %v3390_v62  ;;  %v185_v1 = vadd.f32 %v184_v33, %v180_v54 }
  0x7d   : > { %v385_v36 = vadd.f32 %v384_v5, %v383_v24  ;;  %v250_v29 = vmul.f32 %v2955_v20, %v235_v59  ;;  %v310_v47 = vmul.f32 %v2971_v9, %v2528_v37  ;;  %v311_v12 = vmul.f32 %v2959_v15, %v296_v39 }
  0x7e   : > { %v3424_v26 = vmul.f32 %v300_v41, %v3253_v58  ;;  %v306_v8 = vmul.f32 %v2907_v17, %v3409_v38  ;;  %v445_v32 = vrot.slane %v444_v46, 4  ;;  %v297_v52 = vmul.f32 %v2528_v37, %v2528_v37 }
  0x7f   : > { %v386_v51 = vrot.slane %v385_v36, 2  ;;  %v3430_v53 = vsub.f32 %v3416_v44, %v3414_v42  ;;  %v3432_v59 = vadd.f32 %v186_v11, %v185_v1  ;;  %v240_v9 = vmul.f32 %v2911_v2, %v236_v56 }
  0x80   : > { %v446_v54 = vadd.f32 %v445_v32, %v444_v46  ;;  %v3435_v15 = vsub.f32 %v249_v43, %v250_v29  ;;  %v308_v58 = vmul.f32 %v2895_v23, %v297_v52  ;;  %v307_v39 = vadd.f32 %v306_v8, %v3424_v26 }
  0x81   : > { %v387_v28 = vadd.f32 %v386_v51, %v385_v36  ;;  %v3439_v48 = vsub.f32 %v310_v47, %v311_v12  ;;  %v398_v35 = vmul.f32 %v3430_v53, %v3430_v53  ;;  %v243_v51 = vmul.f32 %v2891_v25, %v3359_v63 }
  0x82   : > { %v447_v16 = vrot.slane %v446_v54, 2  ;;  %v3452_v5 = vadd.f32 %v308_v58, %v307_v39  ;;  %v301_v32 = vmul.f32 %v2907_v17, %v297_v52  ;;  %vm395_vm10 = vcmp.ge.f32.partialorder %v3430_v53, 0.0 }
  0x83   : > { %v2530_v20 = vpop.eup %2529  ;;  %v388_v31 = vrot.slane %v387_v28, 1 }
  0x84   : > { %v357_v37 = vmul.f32 %v2530_v20, %v3352_v27  ;;  %v371_v55 = vmul.f32 %v2967_v13, %v2530_v20  ;;  %v375_v57 = vmul.f32 %v2963_v14, %v2530_v20  ;;  %v377_v50 = vmul.f32 %v2935_v6, %v2530_v20 }
  0x85   : > { %v381_v61 = vmul.f32 %v2931_v10, %v2530_v20  ;;  %v358_v11 = vmul.f32 %v2530_v20, %v2530_v20  ;;  %v3454_v36 = vadd.f32 %v388_v31, %v387_v28  ;;  %v3480_v28 = vsub.f32 %v3432_v59, %v3452_v5 }
  0x86   : > { %v359_v2 = vmul.f32 %v357_v37, %v357_v37  ;;  %v360_v56 = vmul.f32 %v2530_v20, %v357_v37  ;;  %v372_v24 = vmul.f32 %v2963_v14, %v357_v37  ;;  %v374_v33 = vmul.f32 %v2967_v13, %v357_v37 }
  0x87   : > { %v378_v27 = vmul.f32 %v2931_v10, %v357_v37  ;;  %v380_v41 = vmul.f32 %v2935_v6, %v357_v37  ;;  %v3468_v6 = vmul.f32 %v3454_v36, %v3454_v36  ;;  %v448_v14 = vadd.f32 %v447_v16, %v446_v54 }
  0x88   : > { %v361_v43 = vmul.f32 2.0, %v360_v56  ;;  %v3456_v46 = vsub.f32 %v371_v55, %v372_v24  ;;  %v3458_v1 = vadd.f32 %v375_v57, %v374_v33  ;;  %v367_v10 = vmul.f32 %v2903_v19, %v359_v2 }
  0x89   : > { %v3460_v29 = vsub.f32 %v377_v50, %v378_v27  ;;  %v3462_v47 = vadd.f32 %v381_v61, %v380_v41  ;;  %v362_v20 = vmul.f32 %v2903_v19, %v358_v11  ;;  %v449_v54 = vrot.slane %v448_v14, 1 }
  0x8a   : > { %v363_v13 = vmul.f32 %v361_v43, %v3268_v30  ;;  %v505_v12 = vmul.f32 %v3458_v1, %v3435_v15  ;;  %v566_v8 = vmul.f32 %v3456_v46, %v3439_v48  ;;  %v399_v30 = vmul.f32 4.0, %v3468_v6 }
  0x8b   : > { %v242_v37 = vsub.f32 %v240_v9, %v3383_v21  ;;  %v369_v57 = vmul.f32 %v2899_v22, %v358_v11  ;;  %v3485_v25 = vadd.f32 %v449_v54, %v448_v14  ;;  %v303_v52 = vsub.f32 %v301_v32, %v3424_v26 }
  0x8c   : > { %v506_v58 = vrot.slane %v505_v12, 4  ;;  %v567_v39 = vrot.slane %v566_v8, 4  ;;  %v368_v55 = vadd.f32 %v367_v10, %v363_v13  ;;  %v400_v50 = vadd.f32 %v399_v30, %v398_v35 }
  0x8d   : > { %v304_v61 = vmul.f32 %v2895_v23, %v3409_v38  ;;  %v459_v19 = vmul.f32 %v3480_v28, %v3480_v28  ;;  %v364_v31 = vsub.f32 %v362_v20, %v363_v13  ;;  %v365_v21 = vmul.f32 %v2899_v22, %v359_v2 }
  0x8e   : > { %v507_v17 = vadd.f32 %v506_v58, %v505_v12  ;;  %v568_v63 = vadd.f32 %v567_v39, %v566_v8  ;;  %2531 = vrsqrt.f32 %v400_v50  ;;  %v3495_v9 = vmul.f32 %v3485_v25, %v3485_v25 }
  0x8f   : > { %v3497_v35 = vadd.f32 %v243_v51, %v242_v37  ;;  %v3499_v16 = vadd.f32 %v369_v57, %v368_v55  ;;  %v3502_v38 = vadd.f32 %v304_v61, %v303_v52  ;;  %v392_v33 = vmul.f32 %v3416_v44, %v3414_v42 }
  0x90   : > { %v508_v56 = vrot.slane %v507_v17, 2  ;;  %v569_v26 = vrot.slane %v568_v63, 2  ;;  %v460_v24 = vmul.f32 4.0, %v3495_v9  ;;  %v3506_v27 = vadd.f32 %v365_v21, %v364_v31 }
  0x91   : > { %v3510_v11 = vsub.f32 %v3499_v16, %v3497_v35  ;;  %v3514_v10 = vmul.f32 1e-14, %v392_v33  ;;  %vm403_vm8 = vcmp.eq.f32.partialorder %v400_v50, inf  ;;  %v406_v8 = vand.u32 2147483648, %v400_v50 }
  0x92   : > { %v509_v23 = vadd.f32 %v508_v56, %v507_v17  ;;  %v461_v22 = vadd.f32 %v460_v24, %v459_v19  ;;  %v570_v41 = vadd.f32 %v569_v26, %v568_v63  ;;  %v3518_v14 = vsub.f32 %v3506_v27, %v3502_v38 }
  0x93   : > { %v520_v32 = vmul.f32 %v3510_v11, %v3510_v11  ;;  %v397_v20 = vand.u32 2147483647, %v3430_v53  ;;  %vm405_vm9 = vcmp.eq.f32.partialorder %v400_v50, 0.0  ;;  %v453_v58 = vmul.f32 %v3452_v5, %v3432_v59 }
  0x94   : > { %v510_v2 = vrot.slane %v509_v23, 1  ;;  %2533 = vrsqrt.f32 %v461_v22  ;;  %v571_v13 = vrot.slane %v570_v41, 1  ;;  %v581_v57 = vmul.f32 %v3518_v14, %v3518_v14 }
  0x95   : > { %vm394_vm11 = vcmp.le.f32.partialorder %v3468_v6, %v3514_v10  ;;  %v396_v19 = vsel %vm395_vm10, 1.0, %v2989_v34  ;;  %v3543_v31 = vmul.f32 1e-14, %v453_v58  ;;  %vm464_vm12 = vcmp.eq.f32.partialorder %v461_v22, inf }
  0x96   : > { %v3512_v43 = vadd.f32 %v510_v2, %v509_v23  ;;  %v3526_v30 = vadd.f32 %v571_v13, %v570_v41  ;;  %v458_v26 = vand.u32 2147483647, %v3480_v28  ;;  %vm466_vm13 = vcmp.eq.f32.partialorder %v461_v22, 0.0 }
  0x97   : > { %v410_v33 = vmul.f32 2.0, %v396_v19  ;;  %vm455_vm14 = vcmp.le.f32.partialorder %v3495_v9, %v3543_v31  ;;  %vm456_vm15 = vcmp.ge.f32.partialorder %v3480_v28, 0.0  ;;  %v514_v13 = vmul.f32 %v3499_v16, %v3497_v35 }
  0x98   : > { %v2532_v12 = vpop.eup %2531  ;;  %v3522_v51 = vmul.f32 %v3512_v43, %v3512_v43  ;;  %v3534_v37 = vmul.f32 %v3526_v30, %v3526_v30  ;;  %v519_v58 = vand.u32 2147483647, %v3510_v11  ;;  %vm517_vm2 = vcmp.ge.f32.partialorder %v3510_v11, 0.0 }
  0x99   : > { %v402_v54 = vmul.f32 %v2532_v12, %v400_v50  ;;  %vm578_vm7 = vcmp.ge.f32.partialorder %v3518_v14, 0.0 }
  0x9a   : > { %v521_v39 = vmul.f32 4.0, %v3522_v51  ;;  %v582_v52 = vmul.f32 4.0, %v3534_v37 }
  0x9b   : > { %v404_v55 = vsel %vm403_vm8, %v400_v50, %v402_v54  ;;  %v467_v50 = vand.u32 2147483648, %v461_v22  ;;  %v515_v54 = vmul.f32 1e-14, %v514_v13 }
  0x9c   : > { %v407_v17 = vsel %vm405_vm9, %v406_v8, %v404_v55  ;;  %v522_v63 = vadd.f32 %v521_v39, %v520_v32  ;;  %v583_v56 = vadd.f32 %v582_v52, %v581_v57  ;;  %v575_v8 = vmul.f32 %v3506_v27, %v3502_v38 }
  0x9d   : > { %v408_v61 = vadd.f32 %v407_v17, %v397_v20  ;;  %v457_v32 = vsel %vm456_vm15, 1.0, %v2989_v34  ;;  %v580_v52 = vand.u32 2147483647, %v3518_v14  ;;  %vm516_vm4 = vcmp.le.f32.partialorder %v3522_v51, %v515_v54 }
  0x9e   : > { %2535 = vrsqrt.f32 %v522_v63  ;;  %v2534_v21 = vpop.eup %2533  ;;  %vm525_vm0 = vcmp.eq.f32.partialorder %v522_v63, inf  ;;  %v528_v28 = vand.u32 2147483648, %v522_v63  ;;  %vm527_vm1 = vcmp.eq.f32.partialorder %v522_v63, 0.0 }
  0x9f   : > { %v409_v53 = vsel %vm394_vm11, 1.0, %v408_v61  ;;  %v463_v24 = vmul.f32 %v2534_v21, %v461_v22  ;;  %v471_v57 = vmul.f32 2.0, %v457_v32  ;;  %v3563_v17 = vmul.f32 1e-14, %v575_v8 }
  0xa0   : > { %2537 = vrcp.f32 %v409_v53  ;;  %vm586_vm3 = vcmp.eq.f32.partialorder %v583_v56, inf  ;;  %v589_v53 = vand.u32 2147483648, %v583_v56  ;;  %vm588_vm5 = vcmp.eq.f32.partialorder %v583_v56, 0.0 }
  0xa1   : > { %2539 = vrsqrt.f32 %v583_v56  ;;  %v465_v23 = vsel %vm464_vm12, %v461_v22, %v463_v24  ;;  %v411_v22 = vmul.f32 %v410_v33, %v3454_v36  ;;  %vm577_vm6 = vcmp.le.f32.partialorder %v3534_v37, %v3563_v17 }
  0xa2   : > { %v468_v2 = vsel %vm466_vm13, %v467_v50, %v465_v23 }
  0xa3   : > { %v469_v41 = vadd.f32 %v468_v2, %v458_v26  ;;  %v472_v2 = vmul.f32 %v471_v57, %v3485_v25 }
  0xa5   : > { %v470_v12 = vsel %vm455_vm14, 1.0, %v469_v41 }
  0xa6   : > { %2541 = vrcp.f32 %v470_v12 }
  0xa8   : > { %v2536_v20 = vpop.eup %2535 }
  0xa9   : > { %v524_v39 = vmul.f32 %v2536_v20, %v522_v63 }
  0xaa   : > { %v2538_v55 = vpop.eup %2537 }
  0xab   : > { %v2540_v61 = vpop.eup %2539  ;;  %v413_v19 = vmul.f32 %v2538_v55, %v411_v22  ;;  %v526_v21 = vsel %vm525_vm0, %v522_v63, %v524_v39  ;;  %v518_v63 = vsel %vm517_vm2, 1.0, %v2989_v34  ;;  %v579_v39 = vsel %vm578_vm7, 1.0, %v2989_v34 }
  0xac   : > { %v529_v50 = vsel %vm527_vm1, %v528_v28, %v526_v21  ;;  %v585_v26 = vmul.f32 %v2540_v61, %v583_v56  ;;  %v532_v32 = vmul.f32 2.0, %v518_v63 }
  0xad   : > { %v414_v24 = vsel %vm394_vm11, 0.0, %v413_v19  ;;  %v530_v23 = vadd.f32 %v529_v50, %v519_v58 }
  0xae   : > { %v415_v33 = vmul.f32 %v414_v24, %v414_v24  ;;  %v587_v41 = vsel %vm586_vm3, %v583_v56, %v585_v26  ;;  %v533_v58 = vmul.f32 %v532_v32, %v3512_v43 }
  0xaf   : > { %v531_v13 = vsel %vm516_vm4, 1.0, %v530_v23  ;;  %v590_v12 = vsel %vm588_vm5, %v589_v53, %v587_v41 }
  0xb0   : > { %v416_v8 = vadd.f32 1.0, %v415_v33  ;;  %2543 = vrcp.f32 %v531_v13  ;;  %v591_v6 = vadd.f32 %v590_v12, %v580_v52  ;;  %v2542_v10 = vpop.eup %2541  ;;  %v593_v52 = vmul.f32 2.0, %v579_v39 }
  0xb1   : > { %v474_v22 = vmul.f32 %v2542_v10, %v472_v2 }
  0xb2   : > { %2545 = vrsqrt.f32 %v416_v8  ;;  %v592_v56 = vsel %vm577_vm6, 1.0, %v591_v6  ;;  %v594_v14 = vmul.f32 %v593_v52, %v3526_v30 }
  0xb3   : > { %v475_v11 = vsel %vm455_vm14, 0.0, %v474_v22  ;;  %2547 = vrcp.f32 %v592_v56 }
  0xb4   : > { %v476_v20 = vmul.f32 %v475_v11, %v475_v11 }
  0xb6   : > { %v477_v28 = vadd.f32 1.0, %v476_v20 }
  0xb8   : > { %2549 = vrsqrt.f32 %v477_v28 }
  0xba   : > { %v2544_v55 = vpop.eup %2543 }
  0xbb   : > { %v535_v57 = vmul.f32 %v2544_v55, %v533_v58 }
  0xbc   : > { %v2546_v61 = vpop.eup %2545 }
  0xbd   : > { %v418_v19 = vmul.f32 %v2546_v61, %v414_v24  ;;  %v438_v21 = vmul.f32 %v2546_v61, %v3346_v0  ;;  %v442_v9 = vmul.f32 %v2546_v61, %v3378_v4  ;;  %v536_v31 = vsel %vm516_vm4, 0.0, %v535_v57  ;;  %v2548_v53 = vpop.eup %2547 }
  0xbe   : > { %v537_v23 = vmul.f32 %v536_v31, %v536_v31  ;;  %v432_v41 = vmul.f32 %v2546_v61, %v3380_v7  ;;  %v596_v51 = vmul.f32 %v2548_v53, %v594_v14  ;;  %v419_v10 = vmul.f32 %v2546_v61, %v2546_v61 }
  0xbf   : > { %v439_v50 = vmul.f32 %v418_v19, %v3378_v4  ;;  %v441_v26 = vmul.f32 %v418_v19, %v3346_v0  ;;  %v433_v63 = vmul.f32 %v418_v19, %v3387_v49  ;;  %v421_v54 = vmul.f32 %v2546_v61, %v418_v19 }
  0xc0   : > { %v538_v8 = vadd.f32 1.0, %v537_v23  ;;  %v597_v56 = vsel %vm577_vm6, 0.0, %v596_v51  ;;  %v423_v37 = vmul.f32 %v419_v10, %v3414_v42 }
  0xc1   : > { %v3594_v33 = vsub.f32 %v438_v21, %v439_v50  ;;  %v3596_v2 = vadd.f32 %v442_v9, %v441_v26  ;;  %v3613_v22 = vsub.f32 %v432_v41, %v433_v63  ;;  %v598_v52 = vmul.f32 %v597_v56, %v597_v56 }
  0xc2   : > { %v3598_v24 = vpop.eup %2549  ;;  %2551 = vrsqrt.f32 %v538_v8  ;;  %v420_v50 = vmul.f32 %v418_v19, %v418_v19 }
  0xc3   : > { %v3603_v13 = vmul.f32 %v3598_v24, %v475_v11  ;;  %v493_v4 = vmul.f32 %v3598_v24, %v3400_v3  ;;  %v499_v0 = vmul.f32 %v3598_v24, %v3407_v60  ;;  %v503_v12 = vmul.f32 %v3598_v24, %v3348_v18 }
  0xc4   : > { %v422_v11 = vmul.f32 2.0, %v421_v54  ;;  %v3622_v20 = vmul.f32 %v3598_v24, %v3598_v24  ;;  %v426_v63 = vmul.f32 %v420_v50, %v3416_v44 }
  0xc5   : > { %v482_v6 = vmul.f32 %v3598_v24, %v3603_v13  ;;  %v494_v32 = vmul.f32 %v3603_v13, %v3390_v62  ;;  %v500_v58 = vmul.f32 %v3603_v13, %v3348_v18  ;;  %v502_v55 = vmul.f32 %v3603_v13, %v3407_v60 }
  0xc6   : > { %v424_v9 = vmul.f32 %v422_v11, %v3454_v36  ;;  %v484_v18 = vmul.f32 %v3622_v20, %v3452_v5  ;;  %v599_v60 = vadd.f32 1.0, %v598_v52  ;;  %v481_v26 = vmul.f32 %v3603_v13, %v3603_v13 }
  0xc7   : > { %v483_v28 = vmul.f32 2.0, %v482_v6  ;;  %v3626_v39 = vsub.f32 %v493_v4, %v494_v32  ;;  %v3630_v57 = vsub.f32 %v499_v0, %v500_v58  ;;  %v3633_v17 = vadd.f32 %v503_v12, %v502_v55 }
  0xc8   : > { %2553 = vrsqrt.f32 %v599_v60  ;;  %v425_v41 = vsub.f32 %v423_v37, %v424_v9  ;;  %v487_v36 = vmul.f32 %v481_v26, %v3432_v59  ;;  %v436_v58 = vmul.f32 %v2546_v61, %v3387_v49 }
  0xc9   : > { %v627_v21 = vmul.f32 %v3626_v39, %v3613_v22  ;;  %v3641_v14 = vmul.f32 %v483_v28, %v3485_v25  ;;  %v435_v28 = vmul.f32 %v418_v19, %v3380_v7  ;;  %v428_v55 = vmul.f32 %v420_v50, %v3414_v42 }
  0xca   : > { %v3648_v25 = vadd.f32 %v426_v63, %v425_v41  ;;  %v430_v60 = vmul.f32 %v419_v10, %v3416_v44  ;;  %v489_v63 = vmul.f32 %v481_v26, %v3452_v5 }
  0xcb   : > { %v628_v53 = vrot.slane %v627_v21, 4  ;;  %v486_v51 = vsub.f32 %v484_v18, %v3641_v14  ;;  %v429_v10 = vadd.f32 %v428_v55, %v424_v9 }
  0xcc   : > { %v2552_v4 = vpop.eup %2551 }
  0xcd   : > { %v629_v23 = vadd.f32 %v628_v53, %v627_v21  ;;  %v3650_v12 = vadd.f32 %v487_v36, %v486_v51  ;;  %v540_v8 = vmul.f32 %v2552_v4, %v536_v31  ;;  %v560_v6 = vmul.f32 %v2552_v4, %v3370_v45 }
  0xce   : > { %v564_v32 = vmul.f32 %v2552_v4, %v3462_v47  ;;  %v558_v49 = vmul.f32 %v2552_v4, %v3458_v1  ;;  %v496_v51 = vmul.f32 %v3603_v13, %v3400_v3 }
  0xcf   : > { %v630_v54 = vrot.slane %v629_v23, 2  ;;  %v543_v52 = vmul.f32 %v2552_v4, %v540_v8  ;;  %v561_v37 = vmul.f32 %v540_v8, %v3462_v47  ;;  %v563_v21 = vmul.f32 %v540_v8, %v3370_v45 }
  0xd0   : > { %v3664_v53 = vsub.f32 %v3650_v12, %v3648_v25  ;;  %v557_v7 = vmul.f32 %v540_v8, %v3435_v15  ;;  %v3672_v47 = vadd.f32 %v436_v58, %v435_v28  ;;  %v497_v45 = vmul.f32 %v3598_v24, %v3390_v62 }
  0xd1   : > { %v631_v0 = vadd.f32 %v630_v54, %v629_v23  ;;  %v3668_v61 = vsub.f32 %v560_v6, %v561_v37  ;;  %v3670_v42 = vadd.f32 %v564_v32, %v563_v21  ;;  %v542_v44 = vmul.f32 %v540_v8, %v540_v8 }
  0xd2   : > { %v2554_v18 = vpop.eup %2553  ;;  %v544_v50 = vmul.f32 2.0, %v543_v52  ;;  %v554_v62 = vmul.f32 %v2552_v4, %v3435_v15  ;;  %v3686_v24 = vadd.f32 %v558_v49, %v557_v7  ;;  %v555_v5 = vmul.f32 %v540_v8, %v3458_v1 }
  0xd3   : > { %v632_v11 = vrot.slane %v631_v0, 1  ;;  %v601_v19 = vmul.f32 %v2554_v18, %v597_v56  ;;  %v621_v23 = vmul.f32 %v2554_v18, %v3402_v40  ;;  %v625_v41 = vmul.f32 %v2554_v18, %v3460_v29 }
  0xd4   : > { %v642_v56 = vmul.f32 %v3664_v53, %v3664_v53  ;;  %v550_v9 = vmul.f32 %v542_v44, %v3497_v35  ;;  %v619_v3 = vmul.f32 %v2554_v18, %v3456_v46  ;;  %v546_v13 = vmul.f32 %v544_v50, %v3512_v43 }
  0xd5   : > { %v3660_v31 = vadd.f32 %v632_v11, %v631_v0  ;;  %v604_v36 = vmul.f32 %v2554_v18, %v601_v19  ;;  %v541_v0 = vmul.f32 %v2552_v4, %v2552_v4  ;;  %v618_v26 = vmul.f32 %v601_v19, %v3439_v48 }
  0xd6   : > { %v615_v6 = vmul.f32 %v2554_v18, %v3439_v48  ;;  %v616_v32 = vmul.f32 %v601_v19, %v3456_v46  ;;  %v622_v15 = vmul.f32 %v601_v19, %v3460_v29  ;;  %v603_v4 = vmul.f32 %v601_v19, %v601_v19 }
  0xd7   : > { %v3683_v54 = vmul.f32 %v3660_v31, %v3660_v31  ;;  %v605_v11 = vmul.f32 2.0, %v604_v36  ;;  %v624_v28 = vmul.f32 %v601_v19, %v3402_v40  ;;  %v3700_v55 = vadd.f32 %v497_v45, %v496_v51 }
  0xd8   : > { %v602_v1 = vmul.f32 %v2554_v18, %v2554_v18  ;;  %v3702_v8 = vsub.f32 %v621_v23, %v622_v15  ;;  %v688_v43 = vmul.f32 %v3686_v24, %v3672_v47  ;;  %v552_v48 = vmul.f32 %v541_v0, %v3499_v16 }
  0xd9   : > { %v643_v58 = vmul.f32 4.0, %v3683_v54  ;;  %v3707_v52 = vadd.f32 %v619_v3, %v618_v26  ;;  %v3709_v46 = vadd.f32 %v625_v41, %v624_v28  ;;  %v551_v37 = vadd.f32 %v550_v9, %v546_v13 }
  0xda   : > { %v3711_v21 = vsub.f32 %v554_v62, %v555_v5  ;;  %v3713_v40 = vsub.f32 %v615_v6, %v616_v32  ;;  %v689_v7 = vrot.slane %v688_v43, 4  ;;  %v545_v18 = vmul.f32 %v541_v0, %v3497_v35 }
  0xdb   : > { %v644_v29 = vadd.f32 %v643_v58, %v642_v56  ;;  %v607_v49 = vmul.f32 %v605_v11, %v3526_v30  ;;  %v611_v45 = vmul.f32 %v603_v4, %v3502_v38  ;;  %v491_v19 = vmul.f32 %v3622_v20, %v3432_v59 }
  0xdc   : > { %v606_v50 = vmul.f32 %v602_v1, %v3502_v38  ;;  %v690_v23 = vadd.f32 %v689_v7, %v688_v43  ;;  %v3721_v41 = vadd.f32 %v430_v60, %v429_v10  ;;  %v490_v51 = vadd.f32 %v489_v63, %v3641_v14 }
  0xdd   : > { %2555 = vrsqrt.f32 %v644_v29  ;;  %v636_v36 = vmul.f32 %v3650_v12, %v3648_v25  ;;  %v749_v35 = vmul.f32 %v3707_v52, %v3700_v55  ;;  %v548_v30 = vmul.f32 %v542_v44, %v3499_v16 }
  0xde   : > { %v3729_v0 = vadd.f32 %v552_v48, %v551_v37  ;;  %v691_v62 = vrot.slane %v690_v23, 2  ;;  %v810_v59 = vmul.f32 %v3713_v40, %v3711_v21  ;;  %v547_v38 = vsub.f32 %v545_v18, %v546_v13 }
  0xdf   : > { %v612_v20 = vadd.f32 %v611_v45, %v607_v49  ;;  %v613_v60 = vmul.f32 %v602_v1, %v3506_v27  ;;  %v750_v10 = vrot.slane %v749_v35, 4  ;;  %v608_v14 = vsub.f32 %v606_v50, %v607_v49 }
  0xe0   : > { %v609_v63 = vmul.f32 %v603_v4, %v3506_v27  ;;  %v692_v56 = vadd.f32 %v691_v62, %v690_v23  ;;  %v811_v9 = vrot.slane %v810_v59, 4  ;;  %v3735_v26 = vadd.f32 %v491_v19, %v490_v51 }
  0xe1   : > { %v751_v5 = vadd.f32 %v750_v10, %v749_v35  ;;  %v3739_v44 = vsub.f32 %v3721_v41, %v3729_v0  ;;  %v3741_v6 = vadd.f32 %v613_v60, %v612_v20  ;;  %v637_v13 = vmul.f32 1e-14, %v636_v36 }
  0xe2   : > { %v693_v16 = vrot.slane %v692_v56, 1  ;;  %v812_v3 = vadd.f32 %v811_v9, %v810_v59  ;;  %v641_v32 = vand.u32 2147483647, %v3664_v53  ;;  %v3744_v11 = vadd.f32 %v548_v30, %v547_v38 }
  0xe3   : > { %v752_v15 = vrot.slane %v751_v5, 2  ;;  %v3746_v27 = vadd.f32 %v609_v63, %v608_v14  ;;  %vm647_vm8 = vcmp.eq.f32.partialorder %v644_v29, inf  ;;  %vm649_vm9 = vcmp.eq.f32.partialorder %v644_v29, 0.0 }
  0xe4   : > { %v3748_v4 = vadd.f32 %v693_v16, %v692_v56  ;;  %v813_v28 = vrot.slane %v812_v3, 2  ;;  %v650_v1 = vand.u32 2147483648, %v644_v29  ;;  %v703_v7 = vmul.f32 %v3739_v44, %v3739_v44 }
  0xe5   : > { %v753_v43 = vadd.f32 %v752_v15, %v751_v5  ;;  %v3758_v45 = vsub.f32 %v3735_v26, %v3741_v6  ;;  %vm638_vm10 = vcmp.le.f32.partialorder %v3683_v54, %v637_v13  ;;  %vm639_vm11 = vcmp.ge.f32.partialorder %v3664_v53, 0.0 }
  0xe6   : > { %v3752_v37 = vmul.f32 %v3748_v4, %v3748_v4  ;;  %v814_v18 = vadd.f32 %v813_v28, %v812_v3  ;;  %v3769_v59 = vsub.f32 %v3746_v27, %v3744_v11  ;;  %v640_v20 = vsel %vm639_vm11, 1.0, %v2989_v34 }
  0xe7   : > { %v2556_v58 = vpop.eup %2555  ;;  %v754_v49 = vrot.slane %v753_v43, 1  ;;  %v764_v38 = vmul.f32 %v3758_v45, %v3758_v45  ;;  %v654_v56 = vmul.f32 2.0, %v640_v20  ;;  %v697_v5 = vmul.f32 %v3729_v0, %v3721_v41 }
  0xe8   : > { %v646_v48 = vmul.f32 %v2556_v58, %v644_v29  ;;  %v704_v50 = vmul.f32 4.0, %v3752_v37  ;;  %v815_v23 = vrot.slane %v814_v18, 1  ;;  %v825_v14 = vmul.f32 %v3769_v59, %v3769_v59 }
  0xe9   : > { %v3763_v36 = vadd.f32 %v754_v49, %v753_v43  ;;  %v655_v3 = vmul.f32 %v654_v56, %v3660_v31  ;;  %v698_v28 = vmul.f32 1e-14, %v697_v5  ;;  %vm700_vm13 = vcmp.ge.f32.partialorder %v3739_v44, 0.0 }
  0xea   : > { %v648_v19 = vsel %vm647_vm8, %v644_v29, %v646_v48  ;;  %v705_v30 = vadd.f32 %v704_v50, %v703_v7  ;;  %v3765_v62 = vadd.f32 %v815_v23, %v814_v18  ;;  %v702_v43 = vand.u32 2147483647, %v3739_v44 }
  0xeb   : > { %v651_v51 = vsel %vm649_vm9, %v650_v1, %v648_v19  ;;  %v3773_v29 = vmul.f32 %v3763_v36, %v3763_v36  ;;  %v819_v18 = vmul.f32 %v3746_v27, %v3744_v11  ;;  %vm699_vm15 = vcmp.le.f32.partialorder %v3752_v37, %v698_v28 }
  0xec   : > { %v652_v35 = vadd.f32 %v651_v51, %v641_v32  ;;  %2557 = vrsqrt.f32 %v705_v30  ;;  %v3783_v10 = vmul.f32 %v3765_v62, %v3765_v62  ;;  %v758_v32 = vmul.f32 %v3741_v6, %v3735_v26 }
  0xed   : > { %v765_v60 = vmul.f32 4.0, %v3773_v29  ;;  %vm708_vm12 = vcmp.eq.f32.partialorder %v705_v30, inf  ;;  %v711_v58 = vand.u32 2147483648, %v705_v30  ;;  %vm710_vm14 = vcmp.eq.f32.partialorder %v705_v30, 0.0 }
  0xee   : > { %v653_v53 = vsel %vm638_vm10, 1.0, %v652_v35  ;;  %v826_v9 = vmul.f32 4.0, %v3783_v10  ;;  %v3797_v19 = vmul.f32 1e-14, %v758_v32  ;;  %v701_v23 = vsel %vm700_vm13, 1.0, %v2989_v34 }
  0xef   : > { %2559 = vrcp.f32 %v653_v53  ;;  %v766_v63 = vadd.f32 %v765_v60, %v764_v38  ;;  %v763_v20 = vand.u32 2147483647, %v3758_v45  ;;  %v824_v13 = vand.u32 2147483647, %v3769_v59 }
  0xf0   : > { %v827_v16 = vadd.f32 %v826_v9, %v825_v14  ;;  %vm760_vm2 = vcmp.le.f32.partialorder %v3773_v29, %v3797_v19  ;;  %vm761_vm5 = vcmp.ge.f32.partialorder %v3758_v45, 0.0  ;;  %vm822_vm7 = vcmp.ge.f32.partialorder %v3769_v59, 0.0 }
  0xf1   : > { %2561 = vrsqrt.f32 %v766_v63  ;;  %vm769_vm0 = vcmp.eq.f32.partialorder %v766_v63, inf  ;;  %v772_v53 = vand.u32 2147483648, %v766_v63  ;;  %vm771_vm1 = vcmp.eq.f32.partialorder %v766_v63, 0.0 }
  0xf2   : > { %2563 = vrsqrt.f32 %v827_v16  ;;  %vm830_vm3 = vcmp.eq.f32.partialorder %v827_v16, inf  ;;  %v833_v5 = vand.u32 2147483648, %v827_v16  ;;  %vm832_vm4 = vcmp.eq.f32.partialorder %v827_v16, 0.0 }
  0xf3   : > { %v823_v45 = vsel %vm822_vm7, 1.0, %v2989_v34 }
  0xf6   : > { %v2558_v15 = vpop.eup %2557 }
  0xf7   : > { %v707_v48 = vmul.f32 %v2558_v15, %v705_v30 }
  0xf9   : > { %v2560_v1 = vpop.eup %2559  ;;  %v709_v49 = vsel %vm708_vm12, %v705_v30, %v707_v48  ;;  %v820_v30 = vmul.f32 1e-14, %v819_v18  ;;  %v762_v18 = vsel %vm761_vm5, 1.0, %v2989_v34 }
  0xfa   : > { %v657_v7 = vmul.f32 %v2560_v1, %v655_v3  ;;  %v712_v51 = vsel %vm710_vm14, %v711_v58, %v709_v49  ;;  %v715_v58 = vmul.f32 2.0, %v701_v23  ;;  %v776_v23 = vmul.f32 2.0, %v762_v18 }
  0xfb   : > { %v2562_v35 = vpop.eup %2561  ;;  %v713_v44 = vadd.f32 %v712_v51, %v702_v43  ;;  %vm821_vm6 = vcmp.le.f32.partialorder %v3783_v10, %v820_v30 }
  0xfc   : > { %v658_v50 = vsel %vm638_vm10, 0.0, %v657_v7  ;;  %v768_v60 = vmul.f32 %v2562_v35, %v766_v63  ;;  %v2564_v56 = vpop.eup %2563  ;;  %v716_v7 = vmul.f32 %v715_v58, %v3748_v4 }
  0xfd   : > { %v659_v38 = vmul.f32 %v658_v50, %v658_v50  ;;  %v714_v54 = vsel %vm699_vm15, 1.0, %v713_v44  ;;  %v829_v32 = vmul.f32 %v2564_v56, %v827_v16 }
  0xfe   : > { %2565 = vrcp.f32 %v714_v54  ;;  %v770_v9 = vsel %vm769_vm0, %v766_v63, %v768_v60  ;;  %v777_v60 = vmul.f32 %v776_v23, %v3763_v36 }
  0xff   : > { %v660_v14 = vadd.f32 1.0, %v659_v38  ;;  %v773_v3 = vsel %vm771_vm1, %v772_v53, %v770_v9  ;;  %v831_v1 = vsel %vm830_vm3, %v827_v16, %v829_v32  ;;  %v837_v38 = vmul.f32 2.0, %v823_v45 }
 0x100   : > { %v774_v15 = vadd.f32 %v773_v3, %v763_v20  ;;  %v834_v48 = vsel %vm832_vm4, %v833_v5, %v831_v1 }
 0x101   : > { %2567 = vrsqrt.f32 %v660_v14  ;;  %v835_v63 = vadd.f32 %v834_v48, %v824_v13  ;;  %v838_v56 = vmul.f32 %v837_v38, %v3765_v62 }
 0x102   : > { %v775_v43 = vsel %vm760_vm2, 1.0, %v774_v15 }
 0x103   : > { %2569 = vrcp.f32 %v775_v43  ;;  %v836_v16 = vsel %vm821_vm6, 1.0, %v835_v63 }
 0x104   : > { %2571 = vrcp.f32 %v836_v16 }
 0x108   : > { %v2566_v49 = vpop.eup %2565 }
 0x109   : > { %v718_v35 = vmul.f32 %v2566_v49, %v716_v7 }
 0x10b   : > { %v2568_v51 = vpop.eup %2567  ;;  %v719_v20 = vsel %vm699_vm15, 0.0, %v718_v35 }
 0x10c   : > { %v662_v44 = vmul.f32 %v2568_v51, %v658_v50  ;;  %v682_v53 = vmul.f32 %v2568_v51, %v3594_v33  ;;  %v686_v59 = vmul.f32 %v2568_v51, %v3630_v57  ;;  %v720_v9 = vmul.f32 %v719_v20, %v719_v20 }
 0x10d   : > { %v2570_v14 = vpop.eup %2569  ;;  %v663_v45 = vmul.f32 %v2568_v51, %v2568_v51  ;;  %v676_v30 = vmul.f32 %v2568_v51, %v3613_v22 }
 0x10e   : > { %v683_v54 = vmul.f32 %v662_v44, %v3630_v57  ;;  %v685_v13 = vmul.f32 %v662_v44, %v3594_v33  ;;  %v2572_v3 = vpop.eup %2571  ;;  %v721_v32 = vadd.f32 1.0, %v720_v9  ;;  %v779_v15 = vmul.f32 %v2570_v14, %v777_v60 }
 0x10f   : > { %v840_v58 = vmul.f32 %v2572_v3, %v838_v56  ;;  %v665_v63 = vmul.f32 %v2568_v51, %v662_v44  ;;  %v664_v49 = vmul.f32 %v662_v44, %v662_v44  ;;  %v677_v23 = vmul.f32 %v662_v44, %v3626_v39 }
 0x110   : > { %v3828_v5 = vsub.f32 %v682_v53, %v683_v54  ;;  %v3830_v50 = vadd.f32 %v686_v59, %v685_v13  ;;  %2573 = vrsqrt.f32 %v721_v32  ;;  %v780_v37 = vsel %vm760_vm2, 0.0, %v779_v15 }
 0x111   : > { %v781_v28 = vmul.f32 %v780_v37, %v780_v37  ;;  %v841_v33 = vsel %vm821_vm6, 0.0, %v840_v58  ;;  %v666_v29 = vmul.f32 2.0, %v665_v63  ;;  %v3848_v59 = vmul.f32 %v663_v45, %v3648_v25 }
 0x112   : > { %v842_v57 = vmul.f32 %v841_v33, %v841_v33  ;;  %v680_v60 = vmul.f32 %v2568_v51, %v3626_v39  ;;  %v3857_v56 = vmul.f32 %v663_v45, %v3650_v12  ;;  %v670_v3 = vmul.f32 %v664_v49, %v3650_v12 }
 0x113   : > { %v782_v1 = vadd.f32 1.0, %v781_v28  ;;  %v3860_v32 = vsub.f32 %v676_v30, %v677_v23 }
 0x114   : > { %v843_v43 = vadd.f32 1.0, %v842_v57 }
 0x115   : > { %2575 = vrsqrt.f32 %v782_v1 }
 0x116   : > { %2577 = vrsqrt.f32 %v843_v43 }
 0x11a   : > { %v2574_v48 = vpop.eup %2573 }
 0x11b   : > { %v723_v7 = vmul.f32 %v2574_v48, %v719_v20  ;;  %v743_v18 = vmul.f32 %v2574_v48, %v3670_v42  ;;  %v747_v16 = vmul.f32 %v2574_v48, %v3596_v2  ;;  %v679_v20 = vmul.f32 %v662_v44, %v3613_v22 }
 0x11c   : > { %v724_v22 = vmul.f32 %v2574_v48, %v2574_v48  ;;  %v741_v12 = vmul.f32 %v2574_v48, %v3672_v47 }
 0x11d   : > { %v744_v19 = vmul.f32 %v723_v7, %v3596_v2  ;;  %v746_v10 = vmul.f32 %v723_v7, %v3670_v42  ;;  %v726_v14 = vmul.f32 %v2574_v48, %v723_v7  ;;  %v668_v2 = vmul.f32 %v666_v29, %v3660_v31 }
 0x11e   : > { %v672_v42 = vmul.f32 %v664_v49, %v3648_v25  ;;  %v3862_v39 = vadd.f32 %v680_v60, %v679_v20  ;;  %v737_v31 = vmul.f32 %v2574_v48, %v3686_v24  ;;  %v738_v25 = vmul.f32 %v723_v7, %v3672_v47 }
 0x11f   : > { %v3843_v35 = vsub.f32 %v743_v18, %v744_v19  ;;  %v3845_v38 = vadd.f32 %v747_v16, %v746_v10  ;;  %v2576_v53 = vpop.eup %2575  ;;  %v727_v51 = vmul.f32 2.0, %v726_v14  ;;  %v669_v15 = vsub.f32 %v3848_v59, %v668_v2 }
 0x120   : > { %v804_v54 = vmul.f32 %v2576_v53, %v3709_v46  ;;  %v808_v13 = vmul.f32 %v2576_v53, %v3633_v17  ;;  %v2578_v9 = vpop.eup %2577  ;;  %v784_v44 = vmul.f32 %v2576_v53, %v780_v37  ;;  %v3867_v58 = vadd.f32 %v672_v42, %v668_v2 }
 0x121   : > { %v725_v28 = vmul.f32 %v723_v7, %v723_v7  ;;  %v845_v37 = vmul.f32 %v2578_v9, %v841_v33  ;;  %v728_v63 = vmul.f32 %v724_v22, %v3729_v0  ;;  %v740_v16 = vmul.f32 %v723_v7, %v3686_v24 }
 0x122   : > { %v805_v57 = vmul.f32 %v784_v44, %v3633_v17  ;;  %v787_v1 = vmul.f32 %v2576_v53, %v784_v44  ;;  %v807_v43 = vmul.f32 %v784_v44, %v3709_v46  ;;  %v729_v49 = vmul.f32 %v727_v51, %v3748_v4 }
 0x123   : > { %v731_v18 = vmul.f32 %v725_v28, %v3721_v41  ;;  %v3878_v29 = vsub.f32 %v737_v31, %v738_v25  ;;  %v785_v19 = vmul.f32 %v2576_v53, %v2576_v53  ;;  %v798_v47 = vmul.f32 %v2576_v53, %v3707_v52 }
 0x124   : > { %v3875_v45 = vsub.f32 %v804_v54, %v805_v57  ;;  %v3880_v17 = vadd.f32 %v808_v13, %v807_v43  ;;  %v799_v46 = vmul.f32 %v784_v44, %v3700_v55  ;;  %v801_v33 = vmul.f32 %v784_v44, %v3707_v52 }
 0x125   : > { %v802_v48 = vmul.f32 %v2576_v53, %v3700_v55  ;;  %v788_v10 = vmul.f32 2.0, %v787_v1  ;;  %v848_v30 = vmul.f32 %v2578_v9, %v845_v37  ;;  %v859_v24 = vmul.f32 %v2578_v9, %v3711_v21 }
 0x126   : > { %v862_v7 = vmul.f32 %v845_v37, %v3711_v21  ;;  %v860_v4 = vmul.f32 %v845_v37, %v3713_v40  ;;  %v863_v23 = vmul.f32 %v2578_v9, %v3713_v40  ;;  %v865_v59 = vmul.f32 %v2578_v9, %v3668_v61 }
 0x127   : > { %v866_v20 = vmul.f32 %v845_v37, %v3702_v8  ;;  %v3892_v60 = vadd.f32 %v741_v12, %v740_v16  ;;  %v868_v52 = vmul.f32 %v845_v37, %v3668_v61  ;;  %v869_v55 = vmul.f32 %v2578_v9, %v3702_v8 }
 0x128   : > { %v871_v53 = vmul.f32 %v3878_v29, %v3860_v32  ;;  %v730_v14 = vsub.f32 %v728_v63, %v729_v49  ;;  %v3898_v2 = vsub.f32 %v798_v47, %v799_v46  ;;  %v3900_v21 = vadd.f32 %v863_v23, %v862_v7 }
 0x129   : > { %v3902_v42 = vsub.f32 %v865_v59, %v866_v20  ;;  %v847_v40 = vmul.f32 %v845_v37, %v845_v37  ;;  %v849_v54 = vmul.f32 2.0, %v848_v30  ;;  %v3904_v13 = vadd.f32 %v869_v55, %v868_v52 }
 0x12a   : > { %v872_v51 = vrot.slane %v871_v53, 4  ;;  %v789_v31 = vmul.f32 %v785_v19, %v3741_v6  ;;  %v790_v61 = vmul.f32 %v788_v10, %v3763_v36  ;;  %v3908_v8 = vadd.f32 %v802_v48, %v801_v33 }
 0x12b   : > { %v3910_v25 = vsub.f32 %v859_v24, %v860_v4  ;;  %v3912_v57 = vadd.f32 %v670_v3, %v669_v15  ;;  %v733_v12 = vmul.f32 %v725_v28, %v3729_v0  ;;  %v786_v1 = vmul.f32 %v784_v44, %v784_v44 }
 0x12c   : > { %v873_v43 = vadd.f32 %v872_v51, %v871_v53  ;;  %v735_v37 = vmul.f32 %v724_v22, %v3721_v41  ;;  %v846_v63 = vmul.f32 %v2578_v9, %v2578_v9  ;;  %v932_v16 = vmul.f32 %v3898_v2, %v3862_v39 }
 0x12d   : > { %v993_v47 = vmul.f32 %v3900_v21, %v3892_v60  ;;  %v3920_v36 = vadd.f32 %v731_v18, %v730_v14  ;;  %v851_v46 = vmul.f32 %v849_v54, %v3765_v62  ;;  %v855_v3 = vmul.f32 %v847_v40, %v3744_v11 }
 0x12e   : > { %v874_v15 = vrot.slane %v873_v43, 2  ;;  %v791_v33 = vsub.f32 %v789_v31, %v790_v61  ;;  %v792_v0 = vmul.f32 %v786_v1, %v3735_v26  ;;  %v933_v44 = vrot.slane %v932_v16, 4 }
 0x12f   : > { %v1054_v41 = vmul.f32 %v3910_v25, %v3908_v8  ;;  %v734_v9 = vadd.f32 %v733_v12, %v729_v49  ;;  %v794_v22 = vmul.f32 %v786_v1, %v3741_v6  ;;  %v994_v48 = vrot.slane %v993_v47, 4 }
 0x130   : > { %v875_v28 = vadd.f32 %v874_v15, %v873_v43  ;;  %v3930_v18 = vadd.f32 %v3857_v56, %v3867_v58  ;;  %v850_v62 = vmul.f32 %v846_v63, %v3744_v11  ;;  %v857_v10 = vmul.f32 %v846_v63, %v3746_v27 }
 0x131   : > { %v934_v30 = vadd.f32 %v933_v44, %v932_v16  ;;  %v856_v24 = vadd.f32 %v855_v3, %v851_v46  ;;  %v3936_v4 = vsub.f32 %v3920_v36, %v3912_v57  ;;  %v995_v49 = vadd.f32 %v994_v48, %v993_v47 }
 0x132   : > { %v876_v7 = vrot.slane %v875_v28, 1  ;;  %v3938_v23 = vadd.f32 %v792_v0, %v791_v33  ;;  %v796_v6 = vmul.f32 %v785_v19, %v3735_v26  ;;  %v1055_v20 = vrot.slane %v1054_v41, 4 }
 0x133   : > { %v935_v59 = vrot.slane %v934_v30, 2  ;;  %v3941_v56 = vadd.f32 %v735_v37, %v734_v9  ;;  %v795_v58 = vadd.f32 %v794_v22, %v790_v61  ;;  %v996_v52 = vrot.slane %v995_v49, 2 }
 0x134   : > { %v3943_v11 = vadd.f32 %v876_v7, %v875_v28  ;;  %v852_v55 = vsub.f32 %v850_v62, %v851_v46  ;;  %v853_v53 = vmul.f32 %v847_v40, %v3746_v27  ;;  %v1056_v54 = vadd.f32 %v1055_v20, %v1054_v41 }
 0x135   : > { %v936_v14 = vadd.f32 %v935_v59, %v934_v30  ;;  %v3946_v51 = vadd.f32 %v857_v10, %v856_v24  ;;  %v886_v26 = vmul.f32 %v3936_v4, %v3936_v4  ;;  %v997_v19 = vadd.f32 %v996_v52, %v995_v49 }
 0x136   : > { %v3950_v31 = vmul.f32 %v3943_v11, %v3943_v11  ;;  %v3956_v61 = vsub.f32 %v3930_v18, %v3938_v23  ;;  %v1057_v1 = vrot.slane %v1056_v54, 2  ;;  %v3959_v43 = vadd.f32 %v796_v6, %v795_v58 }
 0x137   : > { %v937_v12 = vrot.slane %v936_v14, 1  ;;  %v998_v40 = vrot.slane %v997_v19, 1  ;;  %v3961_v37 = vadd.f32 %v853_v53, %v852_v55  ;;  %v3969_v3 = vsub.f32 %v3941_v56, %v3946_v51 }
 0x138   : > { %v887_v27 = vmul.f32 4.0, %v3950_v31  ;;  %v1058_v16 = vadd.f32 %v1057_v1, %v1056_v54  ;;  %v947_v33 = vmul.f32 %v3956_v61, %v3956_v61  ;;  %v880_v24 = vmul.f32 %v3920_v36, %v3912_v57 }
 0x139   : > { %v3963_v63 = vadd.f32 %v937_v12, %v936_v14  ;;  %v3965_v46 = vadd.f32 %v998_v40, %v997_v19  ;;  %v3984_v9 = vsub.f32 %v3959_v43, %v3961_v37  ;;  %v1008_v22 = vmul.f32 %v3969_v3, %v3969_v3 }
 0x13a   : > { %v888_v47 = vadd.f32 %v887_v27, %v886_v26  ;;  %v1059_v0 = vrot.slane %v1058_v16, 1  ;;  %vm883_vm8 = vcmp.ge.f32.partialorder %v3936_v4, 0.0  ;;  %v4002_v58 = vmul.f32 1e-14, %v880_v24 }
 0x13b   : > { %v3973_v15 = vmul.f32 %v3963_v63, %v3963_v63  ;;  %v3980_v41 = vmul.f32 %v3965_v46, %v3965_v46  ;;  %v1069_v30 = vmul.f32 %v3984_v9, %v3984_v9  ;;  %v884_v6 = vsel %vm883_vm8, 1.0, %v2989_v34 }
 0x13c   : > { %2579 = vrsqrt.f32 %v888_v47  ;;  %v3988_v28 = vadd.f32 %v1059_v0, %v1058_v16  ;;  %v885_v52 = vand.u32 2147483647, %v3936_v4  ;;  %vm891_vm9 = vcmp.eq.f32.partialorder %v888_v47, inf }
 0x13d   : > { %v948_v44 = vmul.f32 4.0, %v3973_v15  ;;  %v1009_v62 = vmul.f32 4.0, %v3980_v41  ;;  %v894_v55 = vand.u32 2147483648, %v888_v47  ;;  %vm893_vm10 = vcmp.eq.f32.partialorder %v888_v47, 0.0 }
 0x13e   : > { %v3993_v10 = vmul.f32 %v3988_v28, %v3988_v28  ;;  %v941_v14 = vmul.f32 %v3938_v23, %v3930_v18  ;;  %v1002_v26 = vmul.f32 %v3946_v51, %v3941_v56  ;;  %vm882_vm11 = vcmp.le.f32.partialorder %v3950_v31, %v4002_v58 }
 0x13f   : > { %v949_v48 = vadd.f32 %v948_v44, %v947_v33  ;;  %v1010_v7 = vadd.f32 %v1009_v62, %v1008_v22  ;;  %v898_v12 = vmul.f32 2.0, %v884_v6  ;;  %v946_v16 = vand.u32 2147483647, %v3956_v61 }
 0x140   : > { %v1070_v49 = vmul.f32 4.0, %v3993_v10  ;;  %v4011_v4 = vmul.f32 1e-14, %v941_v14  ;;  %vm944_vm14 = vcmp.ge.f32.partialorder %v3956_v61, 0.0  ;;  %v1003_v44 = vmul.f32 1e-14, %v1002_v26 }
 0x141   : > { %2581 = vrsqrt.f32 %v949_v48  ;;  %vm952_vm12 = vcmp.eq.f32.partialorder %v949_v48, inf  ;;  %v955_v40 = vand.u32 2147483648, %v949_v48  ;;  %vm954_vm13 = vcmp.eq.f32.partialorder %v949_v48, 0.0 }
 0x142   : > { %2583 = vrsqrt.f32 %v1010_v7  ;;  %v1071_v59 = vadd.f32 %v1070_v49, %v1069_v30  ;;  %v1007_v22 = vand.u32 2147483647, %v3969_v3  ;;  %vm1013_vm15 = vcmp.eq.f32.partialorder %v1010_v7, inf }
 0x143   : > { %v1016_v24 = vand.u32 2147483648, %v1010_v7  ;;  %vm943_vm0 = vcmp.le.f32.partialorder %v3973_v15, %v4011_v4  ;;  %vm1015_vm1 = vcmp.eq.f32.partialorder %v1010_v7, 0.0  ;;  %v1068_v61 = vand.u32 2147483647, %v3984_v9 }
 0x144   : > { %2585 = vrsqrt.f32 %v1071_v59  ;;  %vm1004_vm2 = vcmp.le.f32.partialorder %v3980_v41, %v1003_v44  ;;  %vm1074_vm3 = vcmp.eq.f32.partialorder %v1071_v59, inf  ;;  %vm1076_vm4 = vcmp.eq.f32.partialorder %v1071_v59, 0.0 }
 0x145   : > { %vm1005_vm5 = vcmp.ge.f32.partialorder %v3969_v3, 0.0  ;;  %vm1066_vm7 = vcmp.ge.f32.partialorder %v3984_v9, 0.0 }
 0x146   : > { %v2580_v20 = vpop.eup %2579 }
 0x147   : > { %v890_v53 = vmul.f32 %v2580_v20, %v888_v47  ;;  %v945_v20 = vsel %vm944_vm14, 1.0, %v2989_v34 }
 0x149   : > { %v892_v54 = vsel %vm891_vm9, %v888_v47, %v890_v53  ;;  %v1063_v47 = vmul.f32 %v3961_v37, %v3959_v43 }
 0x14a   : > { %v895_v19 = vsel %vm893_vm10, %v894_v55, %v892_v54 }
 0x14b   : > { %v2582_v1 = vpop.eup %2581  ;;  %v896_v27 = vadd.f32 %v895_v19, %v885_v52  ;;  %v1064_v55 = vmul.f32 1e-14, %v1063_v47  ;;  %v1006_v47 = vsel %vm1005_vm5, 1.0, %v2989_v34 }
 0x14c   : > { %v951_v33 = vmul.f32 %v2582_v1, %v949_v48  ;;  %v2584_v62 = vpop.eup %2583 }
 0x14d   : > { %v897_v0 = vsel %vm882_vm11, 1.0, %v896_v27  ;;  %v1012_v6 = vmul.f32 %v2584_v62, %v1010_v7  ;;  %v959_v27 = vmul.f32 2.0, %v945_v20  ;;  %vm1065_vm6 = vcmp.le.f32.partialorder %v3993_v10, %v1064_v55 }
 0x14e   : > { %2587 = vrcp.f32 %v897_v0  ;;  %v953_v30 = vsel %vm952_vm12, %v949_v48, %v951_v33  ;;  %v2586_v53 = vpop.eup %2585  ;;  %v1077_v48 = vand.u32 2147483648, %v1071_v59 }
 0x14f   : > { %v956_v49 = vsel %vm954_vm13, %v955_v40, %v953_v30  ;;  %v1014_v14 = vsel %vm1013_vm15, %v1010_v7, %v1012_v6  ;;  %v1073_v19 = vmul.f32 %v2586_v53, %v1071_v59  ;;  %v960_v30 = vmul.f32 %v959_v27, %v3963_v63 }
 0x150   : > { %v957_v52 = vadd.f32 %v956_v49, %v946_v16  ;;  %v1017_v26 = vsel %vm1015_vm1, %v1016_v24, %v1014_v14  ;;  %v899_v16 = vmul.f32 %v898_v12, %v3943_v11  ;;  %v1067_v12 = vsel %vm1066_vm7, 1.0, %v2989_v34 }
 0x151   : > { %v1018_v1 = vadd.f32 %v1017_v26, %v1007_v22  ;;  %v1075_v40 = vsel %vm1074_vm3, %v1071_v59, %v1073_v19  ;;  %v1020_v59 = vmul.f32 2.0, %v1006_v47  ;;  %v1081_v6 = vmul.f32 2.0, %v1067_v12 }
 0x152   : > { %v958_v54 = vsel %vm943_vm0, 1.0, %v957_v52  ;;  %v1078_v33 = vsel %vm1076_vm4, %v1077_v48, %v1075_v40 }
 0x153   : > { %2589 = vrcp.f32 %v958_v54  ;;  %v1019_v7 = vsel %vm1004_vm2, 1.0, %v1018_v1  ;;  %v1079_v0 = vadd.f32 %v1078_v33, %v1068_v61  ;;  %v1021_v9 = vmul.f32 %v1020_v59, %v3965_v46 }
 0x154   : > { %2591 = vrcp.f32 %v1019_v7  ;;  %v1082_v48 = vmul.f32 %v1081_v6, %v3988_v28 }
 0x155   : > { %v1080_v3 = vsel %vm1065_vm6, 1.0, %v1079_v0 }
 0x156   : > { %2593 = vrcp.f32 %v1080_v3 }
 0x158   : > { %v2588_v62 = vpop.eup %2587 }
 0x159   : > { %v901_v22 = vmul.f32 %v2588_v62, %v899_v16 }
 0x15b   : > { %v902_v24 = vsel %vm882_vm11, 0.0, %v901_v22 }
 0x15c   : > { %v903_v49 = vmul.f32 %v902_v24, %v902_v24 }
 0x15d   : > { %v2590_v20 = vpop.eup %2589 }
 0x15e   : > { %v904_v52 = vadd.f32 1.0, %v903_v49  ;;  %v962_v61 = vmul.f32 %v2590_v20, %v960_v30  ;;  %v2592_v53 = vpop.eup %2591 }
 0x15f   : > { %v1023_v26 = vmul.f32 %v2592_v53, %v1021_v9 }
 0x160   : > { %2595 = vrsqrt.f32 %v904_v52  ;;  %v963_v14 = vsel %vm943_vm0, 0.0, %v962_v61  ;;  %v2594_v19 = vpop.eup %2593 }
 0x161   : > { %v964_v54 = vmul.f32 %v963_v14, %v963_v14  ;;  %v1024_v58 = vsel %vm1004_vm2, 0.0, %v1023_v26  ;;  %v1084_v1 = vmul.f32 %v2594_v19, %v1082_v48 }
 0x162   : > { %v1025_v27 = vmul.f32 %v1024_v58, %v1024_v58 }
 0x163   : > { %v965_v31 = vadd.f32 1.0, %v964_v54  ;;  %v1085_v40 = vsel %vm1065_vm6, 0.0, %v1084_v1 }
 0x164   : > { %v1086_v16 = vmul.f32 %v1085_v40, %v1085_v40  ;;  %v1026_v7 = vadd.f32 1.0, %v1025_v27 }
 0x165   : > { %2597 = vrsqrt.f32 %v965_v31 }
 0x166   : > { %v1087_v0 = vadd.f32 1.0, %v1086_v16  ;;  %2599 = vrsqrt.f32 %v1026_v7 }
 0x168   : > { %2601 = vrsqrt.f32 %v1087_v0 }
 0x16a   : > { %v2596_v33 = vpop.eup %2595 }
 0x16b   : > { %v906_v15 = vmul.f32 %v2596_v33, %v902_v24  ;;  %v926_v4 = vmul.f32 %v2596_v33, %v3828_v5  ;;  %v930_v47 = vmul.f32 %v2596_v33, %v3843_v35  ;;  %v907_v30 = vmul.f32 %v2596_v33, %v2596_v33 }
 0x16c   : > { %v920_v6 = vmul.f32 %v2596_v33, %v3860_v32  ;;  %v924_v52 = vmul.f32 %v2596_v33, %v3878_v29 }
 0x16d   : > { %v927_v62 = vmul.f32 %v906_v15, %v3843_v35  ;;  %v929_v41 = vmul.f32 %v906_v15, %v3828_v5  ;;  %v909_v55 = vmul.f32 %v2596_v33, %v906_v15  ;;  %v908_v24 = vmul.f32 %v906_v15, %v906_v15 }
 0x16e   : > { %v921_v20 = vmul.f32 %v906_v15, %v3878_v29  ;;  %v923_v9 = vmul.f32 %v906_v15, %v3860_v32  ;;  %v4072_v54 = vmul.f32 %v907_v30, %v3912_v57  ;;  %v4075_v26 = vmul.f32 %v907_v30, %v3920_v36 }
 0x16f   : > { %v4056_v44 = vsub.f32 %v926_v4, %v927_v62  ;;  %v4058_v3 = vadd.f32 %v930_v47, %v929_v41  ;;  %v2598_v10 = vpop.eup %2597  ;;  %v910_v49 = vmul.f32 2.0, %v909_v55  ;;  %v4083_v29 = vmul.f32 %v908_v24, %v3920_v36 }
 0x170   : > { %v987_v22 = vmul.f32 %v2598_v10, %v3875_v45  ;;  %v991_v59 = vmul.f32 %v2598_v10, %v3830_v50  ;;  %v967_v12 = vmul.f32 %v2598_v10, %v963_v14  ;;  %v2600_v5 = vpop.eup %2599  ;;  %v4086_v1 = vsub.f32 %v920_v6, %v921_v20 }
 0x171   : > { %v1048_v14 = vmul.f32 %v2600_v5, %v3904_v13  ;;  %v4080_v32 = vmul.f32 %v910_v49, %v3943_v11  ;;  %v1028_v31 = vmul.f32 %v2600_v5, %v1024_v58  ;;  %v4088_v27 = vadd.f32 %v924_v52, %v923_v9 }
 0x172   : > { %v988_v35 = vmul.f32 %v967_v12, %v3830_v50  ;;  %v990_v61 = vmul.f32 %v967_v12, %v3875_v45  ;;  %v970_v53 = vmul.f32 %v2598_v10, %v967_v12  ;;  %v2602_v19 = vpop.eup %2601  ;;  %v916_v45 = vmul.f32 %v908_v24, %v3912_v57 }
 0x173   : > { %v968_v16 = vmul.f32 %v2598_v10, %v2598_v10  ;;  %v981_v7 = vmul.f32 %v2598_v10, %v3898_v2  ;;  %v982_v15 = vmul.f32 %v967_v12, %v3862_v39  ;;  %v985_v4 = vmul.f32 %v2598_v10, %v3862_v39 }
 0x174   : > { %v4068_v48 = vsub.f32 %v987_v22, %v988_v35  ;;  %v4077_v50 = vadd.f32 %v991_v59, %v990_v61  ;;  %v971_v33 = vmul.f32 2.0, %v970_v53  ;;  %v1049_v11 = vmul.f32 %v1028_v31, %v3845_v38 }
 0x175   : > { %v969_v47 = vmul.f32 %v967_v12, %v967_v12  ;;  %v1051_v36 = vmul.f32 %v1028_v31, %v3904_v13  ;;  %v1052_v57 = vmul.f32 %v2600_v5, %v3845_v38  ;;  %v1089_v58 = vmul.f32 %v2602_v19, %v1085_v40 }
 0x176   : > { %v913_v0 = vsub.f32 %v4072_v54, %v4080_v32  ;;  %v917_v62 = vadd.f32 %v916_v45, %v4080_v32  ;;  %v1031_v41 = vmul.f32 %v2600_v5, %v1028_v31  ;;  %v4099_v55 = vsub.f32 %v1048_v14, %v1049_v11 }
 0x177   : > { %v972_v22 = vmul.f32 %v968_v16, %v3938_v23  ;;  %v975_v39 = vmul.f32 %v969_v47, %v3930_v18  ;;  %v984_v10 = vmul.f32 %v967_v12, %v3898_v2  ;;  %v4104_v59 = vadd.f32 %v1052_v57, %v1051_v36 }
 0x178   : > { %v973_v13 = vmul.f32 %v971_v33, %v3963_v63  ;;  %v4107_v38 = vsub.f32 %v981_v7, %v982_v15  ;;  %v1042_v40 = vmul.f32 %v2600_v5, %v3900_v21  ;;  %v1043_v30 = vmul.f32 %v1028_v31, %v3892_v60 }
 0x179   : > { %v1029_v24 = vmul.f32 %v2600_v5, %v2600_v5  ;;  %v1092_v49 = vmul.f32 %v2602_v19, %v1089_v58  ;;  %v1103_v6 = vmul.f32 %v2602_v19, %v3910_v25  ;;  %v1104_v35 = vmul.f32 %v1089_v58, %v3908_v8 }
 0x17a   : > { %v1032_v20 = vmul.f32 2.0, %v1031_v41  ;;  %v1045_v9 = vmul.f32 %v1028_v31, %v3900_v21  ;;  %v1046_v2 = vmul.f32 %v2600_v5, %v3892_v60  ;;  %v1106_v12 = vmul.f32 %v1089_v58, %v3910_v25 }
 0x17b   : > { %v1107_v63 = vmul.f32 %v2602_v19, %v3908_v8  ;;  %v1109_v52 = vmul.f32 %v2602_v19, %v3902_v42  ;;  %v1110_v61 = vmul.f32 %v1089_v58, %v3880_v17  ;;  %v1112_v53 = vmul.f32 %v1089_v58, %v3902_v42 }
 0x17c   : > { %v4120_v14 = vadd.f32 %v985_v4, %v984_v10  ;;  %v4122_v54 = vsub.f32 %v1042_v40, %v1043_v30  ;;  %v1113_v32 = vmul.f32 %v2602_v19, %v3880_v17  ;;  %v1115_v21 = vmul.f32 %v4107_v38, %v4086_v1 }
 0x17d   : > { %v1090_v60 = vmul.f32 %v2602_v19, %v2602_v19  ;;  %v1093_v5 = vmul.f32 2.0, %v1092_v49  ;;  %v4127_v25 = vsub.f32 %v1103_v6, %v1104_v35  ;;  %v4129_v8 = vsub.f32 %v1109_v52, %v1110_v61 }
 0x17e   : > { %v974_v45 = vsub.f32 %v972_v22, %v973_v13  ;;  %v977_v7 = vmul.f32 %v969_v47, %v3938_v23  ;;  %v4132_v33 = vadd.f32 %v1113_v32, %v1112_v53  ;;  %v1116_v42 = vrot.slane %v1115_v21, 4 }
 0x17f   : > { %v1033_v15 = vmul.f32 %v1029_v24, %v3946_v51  ;;  %v1034_v4 = vmul.f32 %v1032_v20, %v3965_v46  ;;  %v4136_v17 = vadd.f32 %v1046_v2, %v1045_v9  ;;  %v4138_v11 = vadd.f32 %v1107_v63, %v1106_v12 }
 0x180   : > { %v979_v19 = vmul.f32 %v968_v16, %v3930_v18  ;;  %v1030_v36 = vmul.f32 %v1028_v31, %v1028_v31  ;;  %v1117_v57 = vadd.f32 %v1116_v42, %v1115_v21  ;;  %v1176_v41 = vmul.f32 %v4122_v54, %v4088_v27 }
 0x181   : > { %v1091_v22 = vmul.f32 %v1089_v58, %v1089_v58  ;;  %v1094_v23 = vmul.f32 %v1090_v60, %v3961_v37  ;;  %v1095_v47 = vmul.f32 %v1093_v5, %v3988_v28  ;;  %v1237_v10 = vmul.f32 %v4127_v25, %v4120_v14 }
 0x182   : > { %v4148_v46 = vadd.f32 %v4083_v29, %v913_v0  ;;  %v4150_v40 = vadd.f32 %v975_v39, %v974_v45  ;;  %v1118_v30 = vrot.slane %v1117_v57, 2  ;;  %v1177_v18 = vrot.slane %v1176_v41, 4 }
 0x183   : > { %v978_v31 = vadd.f32 %v977_v7, %v973_v13  ;;  %v1035_v16 = vsub.f32 %v1033_v15, %v1034_v4  ;;  %v1036_v49 = vmul.f32 %v1030_v36, %v3941_v56  ;;  %v1298_v58 = vmul.f32 %v4138_v11, %v4136_v17 }
 0x184   : > { %v1038_v6 = vmul.f32 %v1030_v36, %v3946_v51  ;;  %v1119_v28 = vadd.f32 %v1118_v30, %v1117_v57  ;;  %v1178_v35 = vadd.f32 %v1177_v18, %v1176_v41  ;;  %v1238_v20 = vrot.slane %v1237_v10, 4 }
 0x185   : > { %v4157_v9 = vadd.f32 %v4075_v26, %v917_v62  ;;  %v1096_v29 = vsub.f32 %v1094_v23, %v1095_v47  ;;  %v1097_v0 = vmul.f32 %v1091_v22, %v3959_v43  ;;  %v1099_v39 = vmul.f32 %v1091_v22, %v3961_v37 }
 0x186   : > { %v1120_v13 = vrot.slane %v1119_v28, 1  ;;  %v4163_v2 = vsub.f32 %v4150_v40, %v4148_v46  ;;  %v1179_v12 = vrot.slane %v1178_v35, 2  ;;  %v1239_v63 = vadd.f32 %v1238_v20, %v1237_v10 }
 0x187   : > { %v4165_v52 = vadd.f32 %v979_v19, %v978_v31  ;;  %v4167_v51 = vadd.f32 %v1036_v49, %v1035_v16  ;;  %v1040_v61 = vmul.f32 %v1029_v24, %v3941_v56  ;;  %v1299_v26 = vrot.slane %v1298_v58, 4 }
 0x188   : > { %v1039_v62 = vadd.f32 %v1038_v6, %v1034_v4  ;;  %v4170_v53 = vadd.f32 %v1120_v13, %v1119_v28  ;;  %v1180_v32 = vadd.f32 %v1179_v12, %v1178_v35  ;;  %v1240_v21 = vrot.slane %v1239_v63, 2 }
 0x189   : > { %v4172_v37 = vadd.f32 %v1097_v0, %v1096_v29  ;;  %v1100_v5 = vadd.f32 %v1099_v39, %v1095_v47  ;;  %v1101_v45 = vmul.f32 %v1090_v60, %v3959_v43  ;;  %v1300_v7 = vadd.f32 %v1299_v26, %v1298_v58 }
 0x18a   : > { %v4177_v42 = vmul.f32 %v4170_v53, %v4170_v53  ;;  %v1130_v15 = vmul.f32 %v4163_v2, %v4163_v2  ;;  %v1181_v56 = vrot.slane %v1180_v32, 1  ;;  %v1241_v24 = vadd.f32 %v1240_v21, %v1239_v63 }
 0x18b   : > { %v4183_v4 = vsub.f32 %v4157_v9, %v4167_v51  ;;  %v1301_v19 = vrot.slane %v1300_v7, 2  ;;  %v4188_v60 = vadd.f32 %v1040_v61, %v1039_v62  ;;  %v4190_v41 = vadd.f32 %v1101_v45, %v1100_v5 }
 0x18c   : > { %v1131_v36 = vmul.f32 4.0, %v4177_v42  ;;  %v4186_v57 = vadd.f32 %v1181_v56, %v1180_v32  ;;  %v1242_v43 = vrot.slane %v1241_v24, 1  ;;  %v4200_v30 = vsub.f32 %v4165_v52, %v4172_v37 }
 0x18d   : > { %v1302_v22 = vadd.f32 %v1301_v19, %v1300_v7  ;;  %v1191_v18 = vmul.f32 %v4183_v4, %v4183_v4  ;;  %v4211_v58 = vsub.f32 %v4190_v41, %v4188_v60  ;;  %v1124_v39 = vmul.f32 %v4150_v40, %v4148_v46 }
 0x18e   : > { %v1132_v23 = vadd.f32 %v1131_v36, %v1130_v15  ;;  %v4194_v47 = vmul.f32 %v4186_v57, %v4186_v57  ;;  %v4196_v10 = vadd.f32 %v1242_v43, %v1241_v24  ;;  %v1252_v6 = vmul.f32 %v4200_v30, %v4200_v30 }
 0x18f   : > { %v1303_v31 = vrot.slane %v1302_v22, 1  ;;  %v1313_v0 = vmul.f32 %v4211_v58, %v4211_v58  ;;  %vm1127_vm8 = vcmp.ge.f32.partialorder %v4163_v2, 0.0  ;;  %v1129_v63 = vand.u32 2147483647, %v4163_v2 }
 0x190   : > { %2603 = vrsqrt.f32 %v1132_v23  ;;  %v1192_v16 = vmul.f32 4.0, %v4194_v47  ;;  %v4207_v49 = vmul.f32 %v4196_v10, %v4196_v10  ;;  %v4229_v62 = vmul.f32 1e-14, %v1124_v39 }
 0x191   : > { %v4215_v28 = vadd.f32 %v1303_v31, %v1302_v22  ;;  %v1128_v32 = vsel %vm1127_vm8, 1.0, %v2989_v34  ;;  %vm1135_vm9 = vcmp.eq.f32.partialorder %v1132_v23, inf  ;;  %v1138_v21 = vand.u32 2147483648, %v1132_v23 }
 0x192   : > { %v1193_v35 = vadd.f32 %v1192_v16, %v1191_v18  ;;  %v1253_v20 = vmul.f32 4.0, %v4207_v49  ;;  %vm1137_vm10 = vcmp.eq.f32.partialorder %v1132_v23, 0.0  ;;  %v1185_v45 = vmul.f32 %v4167_v51, %v4157_v9 }
 0x193   : > { %v4220_v29 = vmul.f32 %v4215_v28, %v4215_v28  ;;  %v1246_v15 = vmul.f32 %v4172_v37, %v4165_v52  ;;  %vm1126_vm11 = vcmp.le.f32.partialorder %v4177_v42, %v4229_v62  ;;  %v1142_v56 = vmul.f32 2.0, %v1128_v32 }
 0x194   : > { %2605 = vrsqrt.f32 %v1193_v35  ;;  %v1254_v13 = vadd.f32 %v1253_v20, %v1252_v6  ;;  %v4238_v36 = vmul.f32 1e-14, %v1185_v45  ;;  %vm1196_vm12 = vcmp.eq.f32.partialorder %v1193_v35, inf }
 0x195   : > { %v1314_v12 = vmul.f32 4.0, %v4220_v29  ;;  %v1199_v43 = vand.u32 2147483648, %v1193_v35  ;;  %v1190_v22 = vand.u32 2147483647, %v4183_v4  ;;  %vm1198_vm13 = vcmp.eq.f32.partialorder %v1193_v35, 0.0 }
 0x196   : > { %2607 = vrsqrt.f32 %v1254_v13  ;;  %vm1188_vm14 = vcmp.ge.f32.partialorder %v4183_v4, 0.0  ;;  %v1247_v16 = vmul.f32 1e-14, %v1246_v15  ;;  %v1251_v6 = vand.u32 2147483647, %v4200_v30 }
 0x197   : > { %v1315_v61 = vadd.f32 %v1314_v12, %v1313_v0  ;;  %vm1257_vm15 = vcmp.eq.f32.partialorder %v1254_v13, inf  ;;  %v1260_v39 = vand.u32 2147483648, %v1254_v13  ;;  %vm1187_vm0 = vcmp.le.f32.partialorder %v4194_v47, %v4238_v36 }
 0x198   : > { %vm1259_vm1 = vcmp.eq.f32.partialorder %v1254_v13, 0.0  ;;  %v1312_v4 = vand.u32 2147483647, %v4211_v58  ;;  %vm1248_vm2 = vcmp.le.f32.partialorder %v4207_v49, %v1247_v16  ;;  %vm1249_vm5 = vcmp.ge.f32.partialorder %v4200_v30, 0.0 }
 0x199   : > { %2609 = vrsqrt.f32 %v1315_v61  ;;  %vm1318_vm3 = vcmp.eq.f32.partialorder %v1315_v61, inf  ;;  %vm1320_vm4 = vcmp.eq.f32.partialorder %v1315_v61, 0.0  ;;  %vm1310_vm7 = vcmp.ge.f32.partialorder %v4211_v58, 0.0 }
 0x19a   : > { %v2604_v26 = vpop.eup %2603 }
 0x19b   : > { %v1134_v5 = vmul.f32 %v2604_v26, %v1132_v23  ;;  %v1189_v26 = vsel %vm1188_vm14, 1.0, %v2989_v34 }
 0x19d   : > { %v1136_v7 = vsel %vm1135_vm9, %v1132_v23, %v1134_v5  ;;  %v1307_v23 = vmul.f32 %v4190_v41, %v4188_v60 }
 0x19e   : > { %v1139_v2 = vsel %vm1137_vm10, %v1138_v21, %v1136_v7  ;;  %v2606_v24 = vpop.eup %2605 }
 0x19f   : > { %v1140_v19 = vadd.f32 %v1139_v2, %v1129_v63  ;;  %v1195_v18 = vmul.f32 %v2606_v24, %v1193_v35  ;;  %v1308_v21 = vmul.f32 1e-14, %v1307_v23  ;;  %v1250_v23 = vsel %vm1249_vm5, 1.0, %v2989_v34 }
 0x1a0   : > { %v2608_v20 = vpop.eup %2607 }
 0x1a1   : > { %v1141_v31 = vsel %vm1126_vm11, 1.0, %v1140_v19  ;;  %v1197_v0 = vsel %vm1196_vm12, %v1193_v35, %v1195_v18  ;;  %v1256_v63 = vmul.f32 %v2608_v20, %v1254_v13  ;;  %v1321_v35 = vand.u32 2147483648, %v1315_v61 }
 0x1a2   : > { %2611 = vrcp.f32 %v1141_v31  ;;  %v1200_v12 = vsel %vm1198_vm13, %v1199_v43, %v1197_v0  ;;  %v1203_v19 = vmul.f32 2.0, %v1189_v26  ;;  %vm1309_vm6 = vcmp.le.f32.partialorder %v4220_v29, %v1308_v21 }
 0x1a3   : > { %v1201_v32 = vadd.f32 %v1200_v12, %v1190_v22  ;;  %v2610_v5 = vpop.eup %2609  ;;  %v1258_v45 = vsel %vm1257_vm15, %v1254_v13, %v1256_v63  ;;  %v1143_v22 = vmul.f32 %v1142_v56, %v4170_v53  ;;  %v1311_v56 = vsel %vm1310_vm7, 1.0, %v2989_v34 }
 0x1a4   : > { %v1261_v15 = vsel %vm1259_vm1, %v1260_v39, %v1258_v45  ;;  %v1317_v2 = vmul.f32 %v2610_v5, %v1315_v61  ;;  %v1204_v0 = vmul.f32 %v1203_v19, %v4186_v57  ;;  %v1325_v63 = vmul.f32 2.0, %v1311_v56 }
 0x1a5   : > { %v1202_v7 = vsel %vm1187_vm0, 1.0, %v1201_v32  ;;  %v1262_v24 = vadd.f32 %v1261_v15, %v1251_v6 }
 0x1a6   : > { %2613 = vrcp.f32 %v1202_v7  ;;  %v1319_v43 = vsel %vm1318_vm3, %v1315_v61, %v1317_v2  ;;  %v1264_v61 = vmul.f32 2.0, %v1250_v23 }
 0x1a7   : > { %v1263_v13 = vsel %vm1248_vm2, 1.0, %v1262_v24  ;;  %v1322_v18 = vsel %vm1320_vm4, %v1321_v35, %v1319_v43  ;;  %v1326_v35 = vmul.f32 %v1325_v63, %v4215_v28 }
 0x1a8   : > { %2615 = vrcp.f32 %v1263_v13  ;;  %v1323_v31 = vadd.f32 %v1322_v18, %v1312_v4  ;;  %v1265_v58 = vmul.f32 %v1264_v61, %v4196_v10 }
 0x1aa   : > { %v1324_v30 = vsel %vm1309_vm6, 1.0, %v1323_v31 }
 0x1ab   : > { %2617 = vrcp.f32 %v1324_v30 }
 0x1ac   : > { %v2612_v20 = vpop.eup %2611 }
 0x1ad   : > { %v1145_v6 = vmul.f32 %v2612_v20, %v1143_v22 }
 0x1af   : > { %v1146_v39 = vsel %vm1126_vm11, 0.0, %v1145_v6 }
 0x1b0   : > { %v1147_v12 = vmul.f32 %v1146_v39, %v1146_v39  ;;  %v2614_v26 = vpop.eup %2613 }
 0x1b1   : > { %v1206_v4 = vmul.f32 %v2614_v26, %v1204_v0 }
 0x1b2   : > { %v1148_v32 = vadd.f32 1.0, %v1147_v12  ;;  %v2616_v5 = vpop.eup %2615 }
 0x1b3   : > { %v1207_v45 = vsel %vm1187_vm0, 0.0, %v1206_v4  ;;  %v1267_v15 = vmul.f32 %v2616_v5, %v1265_v58 }
 0x1b4   : > { %2619 = vrsqrt.f32 %v1148_v32  ;;  %v1208_v7 = vmul.f32 %v1207_v45, %v1207_v45 }
 0x1b5   : > { %v2618_v2 = vpop.eup %2617  ;;  %v1268_v62 = vsel %vm1248_vm2, 0.0, %v1267_v15 }
 0x1b6   : > { %v1209_v42 = vadd.f32 1.0, %v1208_v7  ;;  %v1328_v24 = vmul.f32 %v2618_v2, %v1326_v35  ;;  %v1269_v19 = vmul.f32 %v1268_v62, %v1268_v62 }
 0x1b8   : > { %v1329_v43 = vsel %vm1309_vm6, 0.0, %v1328_v24  ;;  %2621 = vrsqrt.f32 %v1209_v42  ;;  %v1270_v13 = vadd.f32 1.0, %v1269_v19 }
 0x1b9   : > { %v1330_v22 = vmul.f32 %v1329_v43, %v1329_v43 }
 0x1ba   : > { %2623 = vrsqrt.f32 %v1270_v13 }
 0x1bb   : > { %v1331_v31 = vadd.f32 1.0, %v1330_v22 }
 0x1bd   : > { %2625 = vrsqrt.f32 %v1331_v31 }
 0x1be   : > { %v2620_v18 = vpop.eup %2619 }
 0x1bf   : > { %v1150_v47 = vmul.f32 %v2620_v18, %v1146_v39  ;;  %v1170_v36 = vmul.f32 %v2620_v18, %v4056_v44  ;;  %v1174_v23 = vmul.f32 %v2620_v18, %v4068_v48  ;;  %v1151_v0 = vmul.f32 %v2620_v18, %v2620_v18 }
 0x1c0   : > { %v1164_v63 = vmul.f32 %v2620_v18, %v4086_v1  ;;  %v1168_v32 = vmul.f32 %v2620_v18, %v4107_v38 }
 0x1c1   : > { %v1171_v20 = vmul.f32 %v1150_v47, %v4068_v48  ;;  %v1173_v49 = vmul.f32 %v1150_v47, %v4056_v44  ;;  %v1153_v21 = vmul.f32 %v2620_v18, %v1150_v47  ;;  %v1152_v39 = vmul.f32 %v1150_v47, %v1150_v47 }
 0x1c2   : > { %v2622_v29 = vpop.eup %2621  ;;  %v1165_v26 = vmul.f32 %v1150_v47, %v4107_v38  ;;  %v1167_v58 = vmul.f32 %v1150_v47, %v4086_v1  ;;  %v4299_v7 = vmul.f32 %v1151_v0, %v4148_v46  ;;  %v4302_v15 = vmul.f32 %v1151_v0, %v4150_v40 }
 0x1c3   : > { %v4283_v16 = vsub.f32 %v1170_v36, %v1171_v20  ;;  %v4285_v30 = vadd.f32 %v1174_v23, %v1173_v49  ;;  %v1231_v6 = vmul.f32 %v2622_v29, %v4099_v55  ;;  %v1235_v61 = vmul.f32 %v2622_v29, %v4058_v3 }
 0x1c4   : > { %v1211_v56 = vmul.f32 %v2622_v29, %v1207_v45  ;;  %v1154_v12 = vmul.f32 2.0, %v1153_v21  ;;  %v2624_v44 = vpop.eup %2623  ;;  %v4310_v38 = vmul.f32 %v1152_v39, %v4150_v40  ;;  %v4313_v24 = vsub.f32 %v1164_v63, %v1165_v26 }
 0x1c5   : > { %v1292_v45 = vmul.f32 %v2624_v44, %v4129_v8  ;;  %v1272_v42 = vmul.f32 %v2624_v44, %v1268_v62  ;;  %v4315_v19 = vadd.f32 %v1168_v32, %v1167_v58  ;;  %v1212_v22 = vmul.f32 %v2622_v29, %v2622_v29 }
 0x1c6   : > { %v1232_v48 = vmul.f32 %v1211_v56, %v4058_v3  ;;  %v1234_v4 = vmul.f32 %v1211_v56, %v4099_v55  ;;  %v1214_v5 = vmul.f32 %v2622_v29, %v1211_v56  ;;  %v4307_v1 = vmul.f32 %v1154_v12, %v4170_v53 }
 0x1c7   : > { %v2626_v2 = vpop.eup %2625  ;;  %v1160_v55 = vmul.f32 %v1152_v39, %v4148_v46  ;;  %v1225_v13 = vmul.f32 %v2622_v29, %v4122_v54  ;;  %v1226_v47 = vmul.f32 %v1211_v56, %v4088_v27  ;;  %v1229_v36 = vmul.f32 %v2622_v29, %v4088_v27 }
 0x1c8   : > { %v4295_v35 = vsub.f32 %v1231_v6, %v1232_v48  ;;  %v4304_v3 = vadd.f32 %v1235_v61, %v1234_v4  ;;  %v1215_v18 = vmul.f32 2.0, %v1214_v5  ;;  %v1293_v53 = vmul.f32 %v1272_v42, %v4077_v50 }
 0x1c9   : > { %v1213_v23 = vmul.f32 %v1211_v56, %v1211_v56  ;;  %v1295_v40 = vmul.f32 %v1272_v42, %v4129_v8  ;;  %v1296_v46 = vmul.f32 %v2624_v44, %v4077_v50  ;;  %v1333_v62 = vmul.f32 %v2626_v2, %v1329_v43 }
 0x1ca   : > { %v1157_v31 = vsub.f32 %v4299_v7, %v4307_v1  ;;  %v1161_v20 = vadd.f32 %v1160_v55, %v4307_v1  ;;  %v1275_v49 = vmul.f32 %v2624_v44, %v1272_v42  ;;  %v4326_v21 = vsub.f32 %v1292_v45, %v1293_v53 }
 0x1cb   : > { %v1216_v6 = vmul.f32 %v1212_v22, %v4167_v51  ;;  %v1219_v27 = vmul.f32 %v1213_v23, %v4157_v9  ;;  %v1228_v29 = vmul.f32 %v1211_v56, %v4122_v54  ;;  %v4331_v61 = vadd.f32 %v1296_v46, %v1295_v40 }
 0x1cc   : > { %v1217_v8 = vmul.f32 %v1215_v18, %v4186_v57  ;;  %v4334_v50 = vsub.f32 %v1225_v13, %v1226_v47  ;;  %v1286_v43 = vmul.f32 %v2624_v44, %v4127_v25  ;;  %v1287_v0 = vmul.f32 %v1272_v42, %v4120_v14 }
 0x1cd   : > { %v1273_v39 = vmul.f32 %v2624_v44, %v2624_v44  ;;  %v1290_v12 = vmul.f32 %v2624_v44, %v4120_v14  ;;  %v1336_v63 = vmul.f32 %v2626_v2, %v1333_v62  ;;  %v1350_v48 = vmul.f32 %v1333_v62, %v4136_v17 }
 0x1ce   : > { %v1276_v26 = vmul.f32 2.0, %v1275_v49  ;;  %v1289_v58 = vmul.f32 %v1272_v42, %v4127_v25  ;;  %v1347_v54 = vmul.f32 %v2626_v2, %v4136_v17  ;;  %v1351_v56 = vmul.f32 %v2626_v2, %v4138_v11 }
 0x1cf   : > { %v1348_v57 = vmul.f32 %v1333_v62, %v4138_v11  ;;  %v1353_v32 = vmul.f32 %v2626_v2, %v4104_v59  ;;  %v1354_v4 = vmul.f32 %v1333_v62, %v4132_v33  ;;  %v1356_v5 = vmul.f32 %v1333_v62, %v4104_v59 }
 0x1d0   : > { %v4347_v45 = vadd.f32 %v1229_v36, %v1228_v29  ;;  %v4349_v14 = vsub.f32 %v1286_v43, %v1287_v0  ;;  %v1357_v44 = vmul.f32 %v2626_v2, %v4132_v33  ;;  %v1359_v25 = vmul.f32 %v4334_v50, %v4313_v24 }
 0x1d1   : > { %v1335_v17 = vmul.f32 %v1333_v62, %v1333_v62  ;;  %v1337_v7 = vmul.f32 2.0, %v1336_v63  ;;  %v4354_v1 = vadd.f32 %v1351_v56, %v1350_v48  ;;  %v4356_v11 = vsub.f32 %v1353_v32, %v1354_v4 }
 0x1d2   : > { %v1218_v55 = vsub.f32 %v1216_v6, %v1217_v8  ;;  %v1221_v13 = vmul.f32 %v1213_v23, %v4167_v51  ;;  %v4359_v18 = vadd.f32 %v1357_v44, %v1356_v5  ;;  %v1360_v59 = vrot.slane %v1359_v25, 4 }
 0x1d3   : > { %v1277_v47 = vmul.f32 %v1273_v39, %v4172_v37  ;;  %v1278_v36 = vmul.f32 %v1276_v26, %v4196_v10  ;;  %v4363_v33 = vadd.f32 %v1290_v12, %v1289_v58  ;;  %v4365_v53 = vsub.f32 %v1347_v54, %v1348_v57 }
 0x1d4   : > { %v1223_v40 = vmul.f32 %v1212_v22, %v4157_v9  ;;  %v1274_v46 = vmul.f32 %v1272_v42, %v1272_v42  ;;  %v1361_v62 = vadd.f32 %v1360_v59, %v1359_v25  ;;  %v1420_v49 = vmul.f32 %v4349_v14, %v4315_v19 }
 0x1d5   : > { %v1334_v6 = vmul.f32 %v2626_v2, %v2626_v2  ;;  %v1339_v51 = vmul.f32 %v1337_v7, %v4215_v28  ;;  %v1343_v23 = vmul.f32 %v1335_v17, %v4188_v60  ;;  %v1481_v29 = vmul.f32 %v4354_v1, %v4347_v45 }
 0x1d6   : > { %v4375_v10 = vadd.f32 %v4310_v38, %v1157_v31  ;;  %v4377_v43 = vadd.f32 %v1219_v27, %v1218_v55  ;;  %v1362_v0 = vrot.slane %v1361_v62, 2  ;;  %v1421_v9 = vrot.slane %v1420_v49, 4 }
 0x1d7   : > { %v1222_v42 = vadd.f32 %v1221_v13, %v1217_v8  ;;  %v1279_v22 = vsub.f32 %v1277_v47, %v1278_v36  ;;  %v1280_v12 = vmul.f32 %v1274_v46, %v4165_v52  ;;  %v1542_v2 = vmul.f32 %v4365_v53, %v4363_v33 }
 0x1d8   : > { %v1282_v28 = vmul.f32 %v1274_v46, %v4172_v37  ;;  %v1363_v63 = vadd.f32 %v1362_v0, %v1361_v62  ;;  %v1422_v48 = vadd.f32 %v1421_v9, %v1420_v49  ;;  %v1482_v26 = vrot.slane %v1481_v29, 4 }
 0x1d9   : > { %v4384_v58 = vadd.f32 %v4302_v15, %v1161_v20  ;;  %v1338_v38 = vmul.f32 %v1334_v6, %v4188_v60  ;;  %v1344_v31 = vadd.f32 %v1343_v23, %v1339_v51  ;;  %v1345_v27 = vmul.f32 %v1334_v6, %v4190_v41 }
 0x1da   : > { %v1364_v8 = vrot.slane %v1363_v63, 1  ;;  %v4390_v54 = vsub.f32 %v4377_v43, %v4375_v10  ;;  %v1423_v56 = vrot.slane %v1422_v48, 2  ;;  %v1483_v57 = vadd.f32 %v1482_v26, %v1481_v29 }
 0x1db   : > { %v4392_v32 = vadd.f32 %v1223_v40, %v1222_v42  ;;  %v4394_v37 = vadd.f32 %v1280_v12, %v1279_v22  ;;  %v1284_v4 = vmul.f32 %v1273_v39, %v4165_v52  ;;  %v1543_v15 = vrot.slane %v1542_v2, 4 }
 0x1dc   : > { %v1283_v20 = vadd.f32 %v1282_v28, %v1278_v36  ;;  %v4397_v5 = vadd.f32 %v1364_v8, %v1363_v63  ;;  %v1424_v60 = vadd.f32 %v1423_v56, %v1422_v48  ;;  %v1484_v44 = vrot.slane %v1483_v57, 2 }
 0x1dd   : > { %v1340_v25 = vsub.f32 %v1338_v38, %v1339_v51  ;;  %v1341_v7 = vmul.f32 %v1335_v17, %v4190_v41  ;;  %v4400_v55 = vadd.f32 %v1345_v27, %v1344_v31  ;;  %v1544_v13 = vadd.f32 %v1543_v15, %v1542_v2 }
 0x1de   : > { %v4404_v59 = vmul.f32 %v4397_v5, %v4397_v5  ;;  %v1374_v47 = vmul.f32 %v4390_v54, %v4390_v54  ;;  %v1425_v52 = vrot.slane %v1424_v60, 1  ;;  %v1485_v39 = vadd.f32 %v1484_v44, %v1483_v57 }
 0x1df   : > { %v4410_v36 = vsub.f32 %v4384_v58, %v4394_v37  ;;  %v1545_v40 = vrot.slane %v1544_v13, 2  ;;  %v4415_v62 = vadd.f32 %v1284_v4, %v1283_v20  ;;  %v4417_v49 = vadd.f32 %v1341_v7, %v1340_v25 }
 0x1e0   : > { %v1375_v46 = vmul.f32 4.0, %v4404_v59  ;;  %v4413_v41 = vadd.f32 %v1425_v52, %v1424_v60  ;;  %v1486_v17 = vrot.slane %v1485_v39, 1  ;;  %v4427_v0 = vsub.f32 %v4400_v55, %v4392_v32 }
 0x1e1   : > { %v1546_v6 = vadd.f32 %v1545_v40, %v1544_v13  ;;  %v1435_v9 = vmul.f32 %v4410_v36, %v4410_v36  ;;  %v4438_v2 = vsub.f32 %v4417_v49, %v4415_v62  ;;  %v1368_v27 = vmul.f32 %v4377_v43, %v4375_v10 }
 0x1e2   : > { %v1376_v51 = vadd.f32 %v1375_v46, %v1374_v47  ;;  %v4421_v23 = vmul.f32 %v4413_v41, %v4413_v41  ;;  %v4423_v29 = vadd.f32 %v1486_v17, %v1485_v39  ;;  %v1496_v28 = vmul.f32 %v4427_v0, %v4427_v0 }
 0x1e3   : > { %v1547_v42 = vrot.slane %v1546_v6, 1  ;;  %v1557_v31 = vmul.f32 %v4438_v2, %v4438_v2  ;;  %vm1371_vm8 = vcmp.ge.f32.partialorder %v4390_v54, 0.0  ;;  %v1373_v57 = vand.u32 2147483647, %v4390_v54 }
 0x1e4   : > { %2627 = vrsqrt.f32 %v1376_v51  ;;  %v1436_v22 = vmul.f32 4.0, %v4421_v23  ;;  %v4434_v12 = vmul.f32 %v4423_v29, %v4423_v29  ;;  %v4456_v20 = vmul.f32 1e-14, %v1368_v27 }
 0x1e5   : > { %v4442_v63 = vadd.f32 %v1547_v42, %v1546_v6  ;;  %v1372_v60 = vsel %vm1371_vm8, 1.0, %v2989_v34  ;;  %vm1379_vm9 = vcmp.eq.f32.partialorder %v1376_v51, inf  ;;  %v1382_v44 = vand.u32 2147483648, %v1376_v51 }
 0x1e6   : > { %v1437_v48 = vadd.f32 %v1436_v22, %v1435_v9  ;;  %v1497_v26 = vmul.f32 4.0, %v4434_v12  ;;  %vm1381_vm10 = vcmp.eq.f32.partialorder %v1376_v51, 0.0  ;;  %v1429_v7 = vmul.f32 %v4394_v37, %v4384_v58 }
 0x1e7   : > { %v4447_v38 = vmul.f32 %v4442_v63, %v4442_v63  ;;  %v1490_v47 = vmul.f32 %v4400_v55, %v4392_v32  ;;  %vm1370_vm11 = vcmp.le.f32.partialorder %v4404_v59, %v4456_v20  ;;  %v1386_v52 = vmul.f32 2.0, %v1372_v60 }
 0x1e8   : > { %2629 = vrsqrt.f32 %v1437_v48  ;;  %v1498_v8 = vadd.f32 %v1497_v26, %v1496_v28  ;;  %v4465_v46 = vmul.f32 1e-14, %v1429_v7  ;;  %vm1440_vm12 = vcmp.eq.f32.partialorder %v1437_v48, inf }
 0x1e9   : > { %v1558_v56 = vmul.f32 4.0, %v4447_v38  ;;  %v1443_v17 = vand.u32 2147483648, %v1437_v48  ;;  %v1434_v6 = vand.u32 2147483647, %v4410_v36  ;;  %vm1442_vm13 = vcmp.eq.f32.partialorder %v1437_v48, 0.0 }
 0x1ea   : > { %2631 = vrsqrt.f32 %v1498_v8  ;;  %vm1432_vm14 = vcmp.ge.f32.partialorder %v4410_v36, 0.0  ;;  %v1491_v22 = vmul.f32 1e-14, %v1490_v47  ;;  %v1495_v28 = vand.u32 2147483647, %v4427_v0 }
 0x1eb   : > { %v1559_v4 = vadd.f32 %v1558_v56, %v1557_v31  ;;  %vm1501_vm15 = vcmp.eq.f32.partialorder %v1498_v8, inf  ;;  %v1504_v27 = vand.u32 2147483648, %v1498_v8  ;;  %vm1431_vm0 = vcmp.le.f32.partialorder %v4421_v23, %v4465_v46 }
 0x1ec   : > { %vm1503_vm1 = vcmp.eq.f32.partialorder %v1498_v8, 0.0  ;;  %v1556_v36 = vand.u32 2147483647, %v4438_v2  ;;  %vm1492_vm2 = vcmp.le.f32.partialorder %v4434_v12, %v1491_v22  ;;  %vm1493_vm5 = vcmp.ge.f32.partialorder %v4427_v0, 0.0 }
 0x1ed   : > { %2633 = vrsqrt.f32 %v1559_v4  ;;  %vm1562_vm3 = vcmp.eq.f32.partialorder %v1559_v4, inf  ;;  %vm1564_vm4 = vcmp.eq.f32.partialorder %v1559_v4, 0.0  ;;  %vm1554_vm7 = vcmp.ge.f32.partialorder %v4438_v2, 0.0 }
 0x1ee   : > { %v2628_v15 = vpop.eup %2627 }
 0x1ef   : > { %v1378_v25 = vmul.f32 %v2628_v15, %v1376_v51  ;;  %v1433_v15 = vsel %vm1432_vm14, 1.0, %v2989_v34 }
 0x1f1   : > { %v1380_v13 = vsel %vm1379_vm9, %v1376_v51, %v1378_v25  ;;  %v1551_v51 = vmul.f32 %v4417_v49, %v4415_v62 }
 0x1f2   : > { %v1383_v54 = vsel %vm1381_vm10, %v1382_v44, %v1380_v13  ;;  %v2630_v39 = vpop.eup %2629 }
 0x1f3   : > { %v1384_v40 = vadd.f32 %v1383_v54, %v1373_v57  ;;  %v1439_v9 = vmul.f32 %v2630_v39, %v1437_v48  ;;  %v1552_v44 = vmul.f32 1e-14, %v1551_v51  ;;  %v1494_v51 = vsel %vm1493_vm5, 1.0, %v2989_v34 }
 0x1f4   : > { %v2632_v26 = vpop.eup %2631 }
 0x1f5   : > { %v1385_v42 = vsel %vm1370_vm11, 1.0, %v1384_v40  ;;  %v1441_v31 = vsel %vm1440_vm12, %v1437_v48, %v1439_v9  ;;  %v1500_v57 = vmul.f32 %v2632_v26, %v1498_v8  ;;  %v1565_v48 = vand.u32 2147483648, %v1559_v4 }
 0x1f6   : > { %2635 = vrcp.f32 %v1385_v42  ;;  %v1444_v56 = vsel %vm1442_vm13, %v1443_v17, %v1441_v31  ;;  %v1447_v40 = vmul.f32 2.0, %v1433_v15  ;;  %vm1553_vm6 = vcmp.le.f32.partialorder %v4447_v38, %v1552_v44 }
 0x1f7   : > { %v1445_v60 = vadd.f32 %v1444_v56, %v1434_v6  ;;  %v2634_v25 = vpop.eup %2633  ;;  %v1502_v7 = vsel %vm1501_vm15, %v1498_v8, %v1500_v57  ;;  %v1387_v6 = vmul.f32 %v1386_v52, %v4397_v5  ;;  %v1555_v52 = vsel %vm1554_vm7, 1.0, %v2989_v34 }
 0x1f8   : > { %v1505_v47 = vsel %vm1503_vm1, %v1504_v27, %v1502_v7  ;;  %v1561_v54 = vmul.f32 %v2634_v25, %v1559_v4  ;;  %v1448_v31 = vmul.f32 %v1447_v40, %v4413_v41  ;;  %v1569_v57 = vmul.f32 2.0, %v1555_v52 }
 0x1f9   : > { %v1446_v13 = vsel %vm1431_vm0, 1.0, %v1445_v60  ;;  %v1506_v39 = vadd.f32 %v1505_v47, %v1495_v28 }
 0x1fa   : > { %2637 = vrcp.f32 %v1446_v13  ;;  %v1563_v17 = vsel %vm1562_vm3, %v1559_v4, %v1561_v54  ;;  %v1508_v4 = vmul.f32 2.0, %v1494_v51 }
 0x1fb   : > { %v1507_v8 = vsel %vm1492_vm2, 1.0, %v1506_v39  ;;  %v1566_v9 = vsel %vm1564_vm4, %v1565_v48, %v1563_v17  ;;  %v1570_v48 = vmul.f32 %v1569_v57, %v4442_v63 }
 0x1fc   : > { %2639 = vrcp.f32 %v1507_v8  ;;  %v1567_v42 = vadd.f32 %v1566_v9, %v1556_v36  ;;  %v1509_v2 = vmul.f32 %v1508_v4, %v4423_v29 }
 0x1fe   : > { %v1568_v0 = vsel %vm1553_vm6, 1.0, %v1567_v42 }
 0x1ff   : > { %2641 = vrcp.f32 %v1568_v0 }
 0x200   : > { %v2636_v26 = vpop.eup %2635 }
 0x201   : > { %v1389_v28 = vmul.f32 %v2636_v26, %v1387_v6 }
 0x203   : > { %v1390_v27 = vsel %vm1370_vm11, 0.0, %v1389_v28 }
 0x204   : > { %v1391_v56 = vmul.f32 %v1390_v27, %v1390_v27  ;;  %v2638_v15 = vpop.eup %2637 }
 0x205   : > { %v1450_v36 = vmul.f32 %v2638_v15, %v1448_v31 }
 0x206   : > { %v1392_v60 = vadd.f32 1.0, %v1391_v56  ;;  %v2640_v25 = vpop.eup %2639 }
 0x207   : > { %v1451_v7 = vsel %vm1431_vm0, 0.0, %v1450_v36  ;;  %v1511_v47 = vmul.f32 %v2640_v25, %v1509_v2 }
 0x208   : > { %2643 = vrsqrt.f32 %v1392_v60  ;;  %v1452_v13 = vmul.f32 %v1451_v7, %v1451_v7 }
 0x209   : > { %v2642_v54 = vpop.eup %2641  ;;  %v1512_v20 = vsel %vm1492_vm2, 0.0, %v1511_v47 }
 0x20a   : > { %v1453_v59 = vadd.f32 1.0, %v1452_v13  ;;  %v1572_v39 = vmul.f32 %v2642_v54, %v1570_v48  ;;  %v1513_v40 = vmul.f32 %v1512_v20, %v1512_v20 }
 0x20c   : > { %2645 = vrsqrt.f32 %v1453_v59  ;;  %v1573_v17 = vsel %vm1553_vm6, 0.0, %v1572_v39  ;;  %v1514_v8 = vadd.f32 1.0, %v1513_v40 }
 0x20d   : > { %v1574_v6 = vmul.f32 %v1573_v17, %v1573_v17 }
 0x20e   : > { %2647 = vrsqrt.f32 %v1514_v8 }
 0x20f   : > { %v1575_v42 = vadd.f32 1.0, %v1574_v6 }
 0x211   : > { %2649 = vrsqrt.f32 %v1575_v42 }
 0x212   : > { %v2644_v9 = vpop.eup %2643 }
 0x213   : > { %v1394_v23 = vmul.f32 %v2644_v9, %v1390_v27  ;;  %v1414_v46 = vmul.f32 %v2644_v9, %v4283_v16  ;;  %v1418_v51 = vmul.f32 %v2644_v9, %v4295_v35  ;;  %v4516_v31 = vmul.f32 %v2644_v9, %v2644_v9 }
 0x214   : > { %v1408_v47 = vmul.f32 %v2644_v9, %v4313_v24 }
 0x215   : > { %v1415_v26 = vmul.f32 %v1394_v23, %v4295_v35  ;;  %v1417_v12 = vmul.f32 %v1394_v23, %v4283_v16  ;;  %v1397_v0 = vmul.f32 %v2644_v9, %v1394_v23  ;;  %v1396_v2 = vmul.f32 %v1394_v23, %v1394_v23 }
 0x216   : > { %v2646_v22 = vpop.eup %2645  ;;  %v1399_v60 = vmul.f32 %v4516_v31, %v4375_v10  ;;  %v1409_v54 = vmul.f32 %v1394_v23, %v4334_v50  ;;  %v1411_v40 = vmul.f32 %v1394_v23, %v4313_v24 }
 0x217   : > { %v4510_v28 = vsub.f32 %v1414_v46, %v1415_v26  ;;  %v4512_v38 = vadd.f32 %v1418_v51, %v1417_v12  ;;  %v1455_v44 = vmul.f32 %v2646_v22, %v1451_v7  ;;  %v1475_v4 = vmul.f32 %v2646_v22, %v4326_v21 }
 0x218   : > { %v1479_v52 = vmul.f32 %v2646_v22, %v4285_v30  ;;  %v1398_v27 = vmul.f32 2.0, %v1397_v0  ;;  %v4518_v57 = vmul.f32 %v2646_v22, %v2646_v22  ;;  %v4521_v15 = vpop.eup %2647  ;;  %v1402_v39 = vmul.f32 %v1396_v2, %v4377_v43 }
 0x219   : > { %v1458_v56 = vmul.f32 %v2646_v22, %v1455_v44  ;;  %v1476_v16 = vmul.f32 %v1455_v44, %v4285_v30  ;;  %v1478_v25 = vmul.f32 %v1455_v44, %v4326_v21  ;;  %v1536_v30 = vmul.f32 %v4521_v15, %v4304_v3 }
 0x21a   : > { %v4526_v36 = vmul.f32 %v1398_v27, %v4397_v5  ;;  %v1460_v7 = vmul.f32 %v4518_v57, %v4394_v37  ;;  %v1412_v5 = vmul.f32 %v2644_v9, %v4334_v50  ;;  %v1516_v6 = vmul.f32 %v4521_v15, %v1512_v20 }
 0x21b   : > { %v1459_v35 = vmul.f32 2.0, %v1458_v56  ;;  %v4534_v13 = vsub.f32 %v1475_v4, %v1476_v16  ;;  %v4541_v59 = vadd.f32 %v1479_v52, %v1478_v25  ;;  %v2650_v21 = vpop.eup %2649  ;;  %v1469_v46 = vmul.f32 %v2646_v22, %v4349_v14 }
 0x21c   : > { %v1401_v8 = vsub.f32 %v1399_v60, %v4526_v36  ;;  %v1470_v51 = vmul.f32 %v1455_v44, %v4315_v19  ;;  %v1473_v42 = vmul.f32 %v2646_v22, %v4315_v19  ;;  %v1472_v26 = vmul.f32 %v1455_v44, %v4349_v14 }
 0x21d   : > { %v4532_v48 = vmul.f32 %v1459_v35, %v4413_v41  ;;  %v1457_v41 = vmul.f32 %v1455_v44, %v1455_v44  ;;  %v1537_v12 = vmul.f32 %v1516_v6, %v4359_v18  ;;  %v1539_v24 = vmul.f32 %v1516_v6, %v4304_v3 }
 0x21e   : > { %v1540_v20 = vmul.f32 %v4521_v15, %v4359_v18  ;;  %v1577_v23 = vmul.f32 %v2650_v21, %v1573_v17  ;;  %v1519_v0 = vmul.f32 %v4521_v15, %v1516_v6  ;;  %v1533_v4 = vmul.f32 %v1516_v6, %v4347_v45 }
 0x21f   : > { %v1462_v50 = vsub.f32 %v1460_v7, %v4532_v48  ;;  %v1463_v9 = vmul.f32 %v1457_v41, %v4384_v58  ;;  %v1534_v19 = vmul.f32 %v4521_v15, %v4354_v1  ;;  %v4561_v22 = vsub.f32 %v1536_v30, %v1537_v12 }
 0x220   : > { %v4563_v52 = vadd.f32 %v1402_v39, %v1401_v8  ;;  %v4565_v14 = vsub.f32 %v1408_v47, %v1409_v54  ;;  %v4567_v44 = vadd.f32 %v1412_v5, %v1411_v40  ;;  %v4569_v3 = vadd.f32 %v1540_v20, %v1539_v24 }
 0x221   : > { %v4571_v27 = vadd.f32 %v1463_v9, %v1462_v50  ;;  %v4573_v18 = vsub.f32 %v1469_v46, %v1470_v51  ;;  %v4575_v17 = vadd.f32 %v1473_v42, %v1472_v26  ;;  %v1530_v56 = vmul.f32 %v4521_v15, %v4347_v45 }
 0x222   : > { %v1518_v35 = vmul.f32 %v1516_v6, %v1516_v6  ;;  %v1531_v16 = vmul.f32 %v1516_v6, %v4354_v1  ;;  %v1580_v60 = vmul.f32 %v2650_v21, %v1577_v23  ;;  %v1594_v25 = vmul.f32 %v1577_v23, %v4363_v33 }
 0x223   : > { %v1520_v7 = vmul.f32 2.0, %v1519_v0  ;;  %v4581_v30 = vadd.f32 %v1534_v19, %v1533_v4  ;;  %v1591_v47 = vmul.f32 %v2650_v21, %v4363_v33  ;;  %v1595_v54 = vmul.f32 %v2650_v21, %v4365_v53 }
 0x224   : > { %v1592_v5 = vmul.f32 %v1577_v23, %v4365_v53  ;;  %v1597_v39 = vmul.f32 %v2650_v21, %v4331_v61  ;;  %v1598_v40 = vmul.f32 %v1577_v23, %v4356_v11  ;;  %v1600_v45 = vmul.f32 %v1577_v23, %v4331_v61 }
 0x225   : > { %v1579_v8 = vmul.f32 %v1577_v23, %v1577_v23  ;;  %v1601_v1 = vmul.f32 %v2650_v21, %v4356_v11  ;;  %v1603_v6 = vmul.f32 %v4573_v18, %v4565_v14  ;;  %v4594_v46 = vsub.f32 %v4571_v27, %v4563_v52 }
 0x226   : > { %v1581_v33 = vmul.f32 2.0, %v1580_v60  ;;  %v4596_v51 = vadd.f32 %v1595_v54, %v1594_v25  ;;  %v4598_v53 = vsub.f32 %v1597_v39, %v1598_v40  ;;  %v4602_v42 = vmul.f32 %v4571_v27, %v4563_v52 }
 0x227   : > { %v1404_v61 = vmul.f32 %v1396_v2, %v4375_v10  ;;  %v1465_v11 = vmul.f32 %v1457_v41, %v4394_v37  ;;  %v4606_v50 = vadd.f32 %v1601_v1, %v1600_v45  ;;  %v1604_v9 = vrot.slane %v1603_v6, 4 }
 0x228   : > { %v1522_v26 = vmul.f32 %v1520_v7, %v4423_v29  ;;  %v1526_v12 = vmul.f32 %v1518_v35, %v4392_v32  ;;  %v4610_v24 = vsub.f32 %v1530_v56, %v1531_v16  ;;  %v4612_v20 = vsub.f32 %v1591_v47, %v1592_v5 }
 0x229   : > { %v1406_v23 = vmul.f32 %v4516_v31, %v4377_v43  ;;  %v1517_v0 = vmul.f32 %v4521_v15, %v4521_v15  ;;  %v1605_v10 = vadd.f32 %v1604_v9, %v1603_v6  ;;  %v1664_v37 = vmul.f32 %v4581_v30, %v4567_v44 }
 0x22a   : > { %v1578_v2 = vmul.f32 %v2650_v21, %v2650_v21  ;;  %v1583_v41 = vmul.f32 %v1581_v33, %v4442_v63  ;;  %v1587_v29 = vmul.f32 %v1579_v8, %v4415_v62  ;;  %v1725_v4 = vmul.f32 %v4596_v51, %v4575_v17 }
 0x22b   : > { %v1405_v19 = vadd.f32 %v1404_v61, %v4526_v36  ;;  %v1467_v43 = vmul.f32 %v4518_v57, %v4384_v58  ;;  %v1606_v31 = vrot.slane %v1605_v10, 2  ;;  %v1665_v56 = vrot.slane %v1664_v37, 4 }
 0x22c   : > { %v1466_v15 = vadd.f32 %v1465_v11, %v4532_v48  ;;  %v1527_v16 = vadd.f32 %v1526_v12, %v1522_v26  ;;  %v1528_v60 = vmul.f32 %v1517_v0, %v4400_v55  ;;  %v1786_v63 = vmul.f32 %v4612_v20, %v4610_v24 }
 0x22d   : > { %v1521_v21 = vmul.f32 %v1517_v0, %v4392_v32  ;;  %v1607_v25 = vadd.f32 %v1606_v31, %v1605_v10  ;;  %v1666_v7 = vadd.f32 %v1665_v56, %v1664_v37  ;;  %v1726_v47 = vrot.slane %v1725_v4, 4 }
 0x22e   : > { %v1582_v36 = vmul.f32 %v1578_v2, %v4415_v62  ;;  %v1588_v54 = vadd.f32 %v1587_v29, %v1583_v41  ;;  %v1589_v58 = vmul.f32 %v1578_v2, %v4417_v49  ;;  %v4634_v57 = vadd.f32 %v1406_v23, %v1405_v19 }
 0x22f   : > { %v1608_v5 = vrot.slane %v1607_v25, 1  ;;  %v1667_v48 = vrot.slane %v1666_v7, 2  ;;  %v1727_v39 = vadd.f32 %v1726_v47, %v1725_v4  ;;  %v4636_v40 = vadd.f32 %v1467_v43, %v1466_v15 }
 0x230   : > { %v1524_v45 = vmul.f32 %v1518_v35, %v4400_v55  ;;  %v4639_v1 = vadd.f32 %v1528_v60, %v1527_v16  ;;  %v1787_v32 = vrot.slane %v1786_v63, 4  ;;  %v1523_v6 = vsub.f32 %v1521_v21, %v1522_v26 }
 0x231   : > { %v4641_v33 = vadd.f32 %v1608_v5, %v1607_v25  ;;  %v1668_v61 = vadd.f32 %v1667_v48, %v1666_v7  ;;  %v1728_v62 = vrot.slane %v1727_v39, 2  ;;  %v1584_v11 = vsub.f32 %v1582_v36, %v1583_v41 }
 0x232   : > { %v1585_v9 = vmul.f32 %v1579_v8, %v4417_v49  ;;  %v4644_v12 = vadd.f32 %v1589_v58, %v1588_v54  ;;  %v1788_v23 = vadd.f32 %v1787_v32, %v1786_v63  ;;  %v1618_v55 = vmul.f32 %v4594_v46, %v4594_v46 }
 0x233   : > { %v4648_v0 = vmul.f32 %v4641_v33, %v4641_v33  ;;  %v1669_v35 = vrot.slane %v1668_v61, 1  ;;  %v1729_v10 = vadd.f32 %v1728_v62, %v1727_v39  ;;  %v4654_v26 = vsub.f32 %v4639_v1, %v4634_v57 }
 0x234   : > { %v1789_v37 = vrot.slane %v1788_v23, 2  ;;  %v4659_v41 = vadd.f32 %v1524_v45, %v1523_v6  ;;  %v4661_v29 = vadd.f32 %v1585_v9, %v1584_v11  ;;  %v4671_v56 = vsub.f32 %v4644_v12, %v4636_v40 }
 0x235   : > { %v1619_v2 = vmul.f32 4.0, %v4648_v0  ;;  %v4657_v49 = vadd.f32 %v1669_v35, %v1668_v61  ;;  %v1730_v8 = vrot.slane %v1729_v10, 1  ;;  %v1679_v15 = vmul.f32 %v4654_v26, %v4654_v26 }
 0x236   : > { %v1790_v4 = vadd.f32 %v1789_v37, %v1788_v23  ;;  %v4682_v21 = vsub.f32 %v4661_v29, %v4659_v41  ;;  %v1740_v25 = vmul.f32 %v4671_v56, %v4671_v56  ;;  %vm1615_vm8 = vcmp.ge.f32.partialorder %v4594_v46, 0.0 }
 0x237   : > { %v1620_v19 = vadd.f32 %v1619_v2, %v1618_v55  ;;  %v4665_v43 = vmul.f32 %v4657_v49, %v4657_v49  ;;  %v4667_v31 = vadd.f32 %v1730_v8, %v1729_v10  ;;  %v1617_v39 = vand.u32 2147483647, %v4594_v46 }
 0x238   : > { %v1791_v16 = vrot.slane %v1790_v4, 1  ;;  %v1801_v58 = vmul.f32 %v4682_v21, %v4682_v21  ;;  %v4699_v6 = vmul.f32 1e-14, %v4602_v42  ;;  %v1616_v61 = vsel %vm1615_vm8, 1.0, %v2989_v34 }
 0x239   : > { %2651 = vrsqrt.f32 %v1620_v19  ;;  %v1680_v60 = vmul.f32 4.0, %v4665_v43  ;;  %v4678_v63 = vmul.f32 %v4667_v31, %v4667_v31  ;;  %vm1623_vm9 = vcmp.eq.f32.partialorder %v1620_v19, inf }
 0x23a   : > { %v4686_v7 = vadd.f32 %v1791_v16, %v1790_v4  ;;  %v1626_v62 = vand.u32 2147483648, %v1620_v19  ;;  %vm1625_vm10 = vcmp.eq.f32.partialorder %v1620_v19, 0.0  ;;  %v1673_v9 = vmul.f32 %v4639_v1, %v4634_v57 }
 0x23b   : > { %v1681_v47 = vadd.f32 %v1680_v60, %v1679_v15  ;;  %v1741_v36 = vmul.f32 4.0, %v4678_v63  ;;  %v1734_v55 = vmul.f32 %v4644_v12, %v4636_v40  ;;  %vm1614_vm11 = vcmp.le.f32.partialorder %v4648_v0, %v4699_v6 }
 0x23c   : > { %v4691_v54 = vmul.f32 %v4686_v7, %v4686_v7  ;;  %v1630_v42 = vmul.f32 2.0, %v1616_v61  ;;  %v4708_v37 = vmul.f32 1e-14, %v1673_v9  ;;  %v1678_v8 = vand.u32 2147483647, %v4654_v26 }
 0x23d   : > { %2653 = vrsqrt.f32 %v1681_v47  ;;  %v1742_v5 = vadd.f32 %v1741_v36, %v1740_v25  ;;  %vm1684_vm12 = vcmp.eq.f32.partialorder %v1681_v47, inf  ;;  %v1687_v2 = vand.u32 2147483648, %v1681_v47 }
 0x23e   : > { %v1802_v48 = vmul.f32 4.0, %v4691_v54  ;;  %vm1686_vm13 = vcmp.eq.f32.partialorder %v1681_v47, 0.0  ;;  %vm1676_vm14 = vcmp.ge.f32.partialorder %v4654_v26, 0.0  ;;  %v1735_v16 = vmul.f32 1e-14, %v1734_v55 }
 0x23f   : > { %2655 = vrsqrt.f32 %v1742_v5  ;;  %v1739_v60 = vand.u32 2147483647, %v4671_v56  ;;  %vm1745_vm15 = vcmp.eq.f32.partialorder %v1742_v5, inf  ;;  %vm1675_vm0 = vcmp.le.f32.partialorder %v4665_v43, %v4708_v37 }
 0x240   : > { %v1803_v45 = vadd.f32 %v1802_v48, %v1801_v58  ;;  %v1748_v58 = vand.u32 2147483648, %v1742_v5  ;;  %vm1747_vm1 = vcmp.eq.f32.partialorder %v1742_v5, 0.0  ;;  %v1800_v26 = vand.u32 2147483647, %v4682_v21 }
 0x241   : > { %vm1736_vm2 = vcmp.le.f32.partialorder %v4678_v63, %v1735_v16  ;;  %vm1737_vm5 = vcmp.ge.f32.partialorder %v4671_v56, 0.0  ;;  %vm1798_vm7 = vcmp.ge.f32.partialorder %v4682_v21, 0.0 }
 0x242   : > { %2657 = vrsqrt.f32 %v1803_v45  ;;  %vm1806_vm3 = vcmp.eq.f32.partialorder %v1803_v45, inf  ;;  %vm1808_vm4 = vcmp.eq.f32.partialorder %v1803_v45, 0.0 }
 0x243   : > { %v2652_v32 = vpop.eup %2651 }
 0x244   : > { %v1622_v11 = vmul.f32 %v2652_v32, %v1620_v19  ;;  %v1677_v32 = vsel %vm1676_vm14, 1.0, %v2989_v34 }
 0x246   : > { %v1624_v23 = vsel %vm1623_vm9, %v1620_v19, %v1622_v11  ;;  %v1795_v19 = vmul.f32 %v4661_v29, %v4659_v41 }
 0x247   : > { %v1627_v46 = vsel %vm1625_vm10, %v1626_v62, %v1624_v23  ;;  %v2654_v35 = vpop.eup %2653 }
 0x248   : > { %v1628_v10 = vadd.f32 %v1627_v46, %v1617_v39  ;;  %v1683_v4 = vmul.f32 %v2654_v35, %v1681_v47  ;;  %v1796_v62 = vmul.f32 1e-14, %v1795_v19  ;;  %v1738_v19 = vsel %vm1737_vm5, 1.0, %v2989_v34 }
 0x249   : > { %v2656_v25 = vpop.eup %2655 }
 0x24a   : > { %v1629_v15 = vsel %vm1614_vm11, 1.0, %v1628_v10  ;;  %v1685_v36 = vsel %vm1684_vm12, %v1681_v47, %v1683_v4  ;;  %v1744_v39 = vmul.f32 %v2656_v25, %v1742_v5  ;;  %v1809_v47 = vand.u32 2147483648, %v1803_v45 }
 0x24b   : > { %2659 = vrcp.f32 %v1629_v15  ;;  %v1688_v48 = vsel %vm1686_vm13, %v1687_v2, %v1685_v36  ;;  %v1691_v10 = vmul.f32 2.0, %v1677_v32  ;;  %vm1797_vm6 = vcmp.le.f32.partialorder %v4691_v54, %v1796_v62 }
 0x24c   : > { %v1689_v61 = vadd.f32 %v1688_v48, %v1678_v8  ;;  %v2658_v11 = vpop.eup %2657  ;;  %v1746_v9 = vsel %vm1745_vm15, %v1742_v5, %v1744_v39  ;;  %v1631_v8 = vmul.f32 %v1630_v42, %v4641_v33  ;;  %v1799_v42 = vsel %vm1798_vm7, 1.0, %v2989_v34 }
 0x24d   : > { %v1749_v55 = vsel %vm1747_vm1, %v1748_v58, %v1746_v9  ;;  %v1805_v46 = vmul.f32 %v2658_v11, %v1803_v45  ;;  %v1692_v36 = vmul.f32 %v1691_v10, %v4657_v49  ;;  %v1813_v39 = vmul.f32 2.0, %v1799_v42 }
 0x24e   : > { %v1690_v23 = vsel %vm1675_vm0, 1.0, %v1689_v61  ;;  %v1750_v35 = vadd.f32 %v1749_v55, %v1739_v60 }
 0x24f   : > { %2661 = vrcp.f32 %v1690_v23  ;;  %v1807_v2 = vsel %vm1806_vm3, %v1803_v45, %v1805_v46  ;;  %v1752_v45 = vmul.f32 2.0, %v1738_v19  ;;  %v1814_v9 = vmul.f32 %v1813_v39, %v4686_v7 }
 0x250   : > { %v1751_v5 = vsel %vm1736_vm2, 1.0, %v1750_v35  ;;  %v1810_v4 = vsel %vm1808_vm4, %v1809_v47, %v1807_v2 }
 0x251   : > { %2663 = vrcp.f32 %v1751_v5  ;;  %v1811_v15 = vadd.f32 %v1810_v4, %v1800_v26  ;;  %v1753_v21 = vmul.f32 %v1752_v45, %v4667_v31 }
 0x253   : > { %v1812_v56 = vsel %vm1797_vm6, 1.0, %v1811_v15 }
 0x254   : > { %2665 = vrcp.f32 %v1812_v56 }
 0x255   : > { %v2660_v25 = vpop.eup %2659 }
 0x256   : > { %v1633_v60 = vmul.f32 %v2660_v25, %v1631_v8 }
 0x258   : > { %v1634_v58 = vsel %vm1614_vm11, 0.0, %v1633_v60 }
 0x259   : > { %v1635_v48 = vmul.f32 %v1634_v58, %v1634_v58  ;;  %v2662_v32 = vpop.eup %2661 }
 0x25a   : > { %v1694_v26 = vmul.f32 %v2662_v32, %v1692_v36 }
 0x25b   : > { %v1636_v61 = vadd.f32 1.0, %v1635_v48  ;;  %v2664_v11 = vpop.eup %2663 }
 0x25c   : > { %v1695_v34 = vsel %vm1675_vm0, 0.0, %v1694_v26  ;;  %v1755_v23 = vmul.f32 %v2664_v11, %v1753_v21 }
 0x25d   : > { %2667 = vrsqrt.f32 %v1636_v61  ;;  %v1696_v47 = vmul.f32 %v1695_v34, %v1695_v34 }
 0x25e   : > { %v2666_v55 = vpop.eup %2665  ;;  %v1756_v6 = vsel %vm1736_vm2, 0.0, %v1755_v23 }
 0x25f   : > { %v1697_v0 = vadd.f32 1.0, %v1696_v47  ;;  %v1757_v46 = vmul.f32 %v1756_v6, %v1756_v6  ;;  %v1816_v35 = vmul.f32 %v2666_v55, %v1814_v9 }
 0x261   : > { %2669 = vrsqrt.f32 %v1697_v0  ;;  %v1758_v10 = vadd.f32 1.0, %v1757_v46  ;;  %v4749_v2 = vsel %vm1797_vm6, 0.0, %v1816_v35 }
 0x262   : > { %v1818_v43 = vmul.f32 %v4749_v2, %v4749_v2 }
 0x263   : > { %2671 = vrsqrt.f32 %v1758_v10 }
 0x264   : > { %v1819_v4 = vadd.f32 1.0, %v1818_v43 }
 0x266   : > { %2673 = vrsqrt.f32 %v1819_v4 }
 0x267   : > { %v2668_v37 = vpop.eup %2667 }
 0x268   : > { %v1638_v8 = vmul.f32 %v2668_v37, %v1634_v58  ;;  %v1639_v5 = vmul.f32 %v2668_v37, %v2668_v37  ;;  %v1652_v19 = vmul.f32 %v2668_v37, %v4565_v14  ;;  %v1656_v63 = vmul.f32 %v2668_v37, %v4573_v18 }
 0x269   : > { %v1658_v16 = vmul.f32 %v2668_v37, %v4510_v28  ;;  %v1662_v15 = vmul.f32 %v2668_v37, %v4534_v13 }
 0x26a   : > { %v1640_v25 = vmul.f32 %v1638_v8, %v1638_v8  ;;  %v1641_v54 = vmul.f32 %v2668_v37, %v1638_v8  ;;  %v1643_v62 = vmul.f32 %v1639_v5, %v4563_v52  ;;  %v1650_v56 = vmul.f32 %v1639_v5, %v4571_v27 }
 0x26b   : > { %v1653_v60 = vmul.f32 %v1638_v8, %v4573_v18  ;;  %v1655_v45 = vmul.f32 %v1638_v8, %v4565_v14  ;;  %v1659_v42 = vmul.f32 %v1638_v8, %v4534_v13  ;;  %v1661_v36 = vmul.f32 %v1638_v8, %v4510_v28  ;;  %v2670_v58 = vpop.eup %2669 }
 0x26c   : > { %v1642_v48 = vmul.f32 2.0, %v1641_v54  ;;  %v1646_v39 = vmul.f32 %v1640_v25, %v4571_v27  ;;  %v1648_v32 = vmul.f32 %v1640_v25, %v4563_v52  ;;  %v1699_v13 = vmul.f32 %v2670_v58, %v1695_v34 }
 0x26d   : > { %v4765_v21 = vsub.f32 %v1652_v19, %v1653_v60   ;;  %v4767_v8 = vadd.f32 %v1656_v63, %v1655_v45   ;;  %v4769_v26 = vsub.f32 %v1658_v16, %v1659_v42   ;;  %v4771_v4 = vadd.f32 %v1662_v15, %v1661_v36   ;;  %v2672_v10 = vpop.eup %2671 }
 0x26e   : > { %v1644_v14 = vmul.f32 %v1642_v48, %v4641_v33  ;;  %v1700_v11 = vmul.f32 %v2670_v58, %v2670_v58  ;;  %v1713_v28 = vmul.f32 %v2670_v58, %v4567_v44  ;;  %v1717_v9 = vmul.f32 %v2670_v58, %v4581_v30 }
 0x26f   : > { %v5576_v61 = vmov %v4765_v21  ;;  %v5577_v47 = vmov %v4767_v8  ;;  %v5578_v55 = vmov %v4769_v26  ;;  %v5579_v18 = vmov %v4771_v4 }
 0x270   : > { %v1719_v27 = vmul.f32 %v2670_v58, %v4512_v38  ;;  %v1723_v52 = vmul.f32 %v2670_v58, %v4569_v3  ;;  %v1645_v23 = vsub.f32 %v1643_v62, %v1644_v14  ;;  %v1649_v0 = vadd.f32 %v1648_v32, %v1644_v14 }
 0x271   : > { %v1701_v46 = vmul.f32 %v1699_v13, %v1699_v13  ;;  %v1702_v35 = vmul.f32 %v2670_v58, %v1699_v13  ;;  %v1704_v43 = vmul.f32 %v1700_v11, %v4634_v57  ;;  %v1711_v37 = vmul.f32 %v1700_v11, %v4639_v1  ;;  %v2674_v58 = vpop.eup %2673 }
 0x272   : > { %v1714_v33 = vmul.f32 %v1699_v13, %v4581_v30  ;;  %v1716_v34 = vmul.f32 %v1699_v13, %v4567_v44  ;;  %v4782_v8 = vadd.f32 %v1646_v39, %v1645_v23   ;;  %v4784_v5 = vadd.f32 %v1650_v56, %v1649_v0  }
 0x273   : > { %v1703_v4 = vmul.f32 2.0, %v1702_v35  ;;  %v1707_v19 = vmul.f32 %v1701_v46, %v4639_v1  ;;  %v1709_v16 = vmul.f32 %v1701_v46, %v4634_v57  ;;  %v1720_v25 = vmul.f32 %v1699_v13, %v4569_v3 }
 0x274   : > { %v5580_v63 = vmov %v4782_v8  ;;  %v5581_v54 = vmov %v4784_v5  ;;  %v4788_v15 = vsub.f32 %v1713_v28, %v1714_v33   ;;  %v4790_v21 = vadd.f32 %v1717_v9, %v1716_v34  }
 0x275   : > { %v1705_v45 = vmul.f32 %v1703_v4, %v4657_v49  ;;  %v1722_v30 = vmul.f32 %v1699_v13, %v4512_v38  ;;  %v1760_v44 = vmul.f32 %v2672_v10, %v1756_v6  ;;  %v1761_v42 = vmul.f32 %v2672_v10, %v2672_v10 }
 0x276   : > { %v5582_v62 = vmov %v4788_v15  ;;  %v5583_v60 = vmov %v4790_v21  ;;  %v4795_v5 = vsub.f32 %v1719_v27, %v1720_v25   ;;  %v1774_v36 = vmul.f32 %v2672_v10, %v4575_v17 }
 0x277   : > { %v1778_v1 = vmul.f32 %v2672_v10, %v4596_v51  ;;  %v1780_v57 = vmul.f32 %v2672_v10, %v4541_v59  ;;  %v1706_v48 = vsub.f32 %v1704_v43, %v1705_v45  ;;  %v1710_v39 = vadd.f32 %v1709_v16, %v1705_v45 }
 0x278   : > { %v5584_v56 = vmov %v4795_v5  ;;  %v4800_v16 = vadd.f32 %v1723_v52, %v1722_v30   ;;  %v1762_v3 = vmul.f32 %v1760_v44, %v1760_v44  ;;  %v1763_v21 = vmul.f32 %v2672_v10, %v1760_v44 }
 0x279   : > { %v1765_v49 = vmul.f32 %v1761_v42, %v4636_v40  ;;  %v1772_v38 = vmul.f32 %v1761_v42, %v4644_v12  ;;  %v1775_v6 = vmul.f32 %v1760_v44, %v4596_v51  ;;  %v4805_v26 = vadd.f32 %v1707_v19, %v1706_v48  }
 0x27a   : > { %v5585_v32 = vmov %v4800_v16  ;;  %v1768_v14 = vmul.f32 %v1762_v3, %v4644_v12  ;;  %v1770_v13 = vmul.f32 %v1762_v3, %v4636_v40  ;;  %v1764_v11 = vmul.f32 2.0, %v1763_v21 }
 0x27b   : > { %v5586_v28 = vmov %v4805_v26  ;;  %v4807_v26 = vadd.f32 %v1711_v37, %v1710_v39   ;;  %v4811_v9 = vsub.f32 %v1774_v36, %v1775_v6   ;;  %v1777_v23 = vmul.f32 %v1760_v44, %v4575_v17 }
 0x27c   : > { %v1781_v0 = vmul.f32 %v1760_v44, %v4606_v50  ;;  %v1783_v46 = vmul.f32 %v1760_v44, %v4541_v59  ;;  %v1784_v35 = vmul.f32 %v2672_v10, %v4606_v50  ;;  %v1821_v51 = vmul.f32 %v2674_v58, %v4749_v2 }
 0x27d   : > { %v5587_v27 = vmov %v4807_v26  ;;  %v5588_v52 = vmov %v4811_v9  ;;  %v1822_v43 = vmul.f32 %v2674_v58, %v2674_v58  ;;  %v1766_v37 = vmul.f32 %v1764_v11, %v4667_v31 }
 0x27e   : > { %v4819_v33 = vadd.f32 %v1778_v1, %v1777_v23   ;;  %v4821_v6 = vsub.f32 %v1780_v57, %v1781_v0   ;;  %v1835_v12 = vmul.f32 %v2674_v58, %v4610_v24  ;;  %v4824_v34 = vadd.f32 %v1784_v35, %v1783_v46  }
 0x27f   : > { %v1823_v17 = vmul.f32 %v1821_v51, %v1821_v51  ;;  %v1824_v8 = vmul.f32 %v2674_v58, %v1821_v51  ;;  %v1826_v5 = vmul.f32 %v1822_v43, %v4659_v41  ;;  %v1767_v59 = vsub.f32 %v1765_v49, %v1766_v37 }
 0x280   : > { %v5589_v40 = vmov %v4821_v6  ;;  %v1771_v4 = vadd.f32 %v1770_v13, %v1766_v37  ;;  %v1833_v50 = vmul.f32 %v1822_v43, %v4661_v29  ;;  %v1836_v2 = vmul.f32 %v1821_v51, %v4612_v20 }
 0x281   : > { %v1825_v10 = vmul.f32 2.0, %v1824_v8  ;;  %v1829_v31 = vmul.f32 %v1823_v17, %v4661_v29  ;;  %v1831_v19 = vmul.f32 %v1823_v17, %v4659_v41  ;;  %v1838_v16 = vmul.f32 %v1821_v51, %v4610_v24 }
 0x282   : > { %v4832_v15 = vadd.f32 %v1768_v14, %v1767_v59   ;;  %v4834_v25 = vadd.f32 %v1772_v38, %v1771_v4   ;;  %v4836_v14 = vsub.f32 %v1835_v12, %v1836_v2   ;;  %v1839_v42 = vmul.f32 %v2674_v58, %v4612_v20 }
 0x283   : > { %v1827_v36 = vmul.f32 %v1825_v10, %v4686_v7  ;;  %v1841_v1 = vmul.f32 %v2674_v58, %v4561_v22  ;;  %v1842_v57 = vmul.f32 %v1821_v51, %v4598_v53  ;;  %v1844_v29 = vmul.f32 %v1821_v51, %v4561_v22 }
 0x284   : > { %v5590_v45 = vmov %v4832_v15  ;;  %v5591_v30 = vmov %v4834_v25  ;;  %v5592_v44 = vmov %v4836_v14  ;;  %v4843_v15 = vadd.f32 %v1839_v42, %v1838_v16  }
 0x285   : > { %v1845_v24 = vmul.f32 %v2674_v58, %v4598_v53  ;;  %v1828_v48 = vsub.f32 %v1826_v5, %v1827_v36  ;;  %v1832_v39 = vadd.f32 %v1831_v19, %v1827_v36  ;;  %v4846_v10 = vsub.f32 %v1841_v1, %v1842_v57  }
 0x286   : > { %v5593_v41 = vmov %v4843_v15  ;;  %v5598_v26 = vmov %v5587_v27  ;;  %v5599_v25 = vmov %v5591_v30  ;;  %v5602_v19 = vmov %v5590_v45 }
 0x287   : > { %v5594_v49 = vmov %v4846_v10  ;;  %v4848_v11 = vadd.f32 %v1845_v24, %v1844_v29   ;;  %v1830_v0 = vadd.f32 %v1829_v31, %v1828_v48   ;;  %v4850_v23 = vadd.f32 %v1833_v50, %v1832_v39   ;;  %113 = sbr.rel (!%p4853_p8) target bundleno = 42 (0x2a), region = 65 }
 0x288   : > { %v5603_v17 = vmov %v5586_v28  ;;  %v5604_v2 = vmov %v5581_v54  ;;  %v5605_v1 = vmov %v5580_v63  ;;  %v5606_v16 = vmov %v5585_v32 }
 0x289   : > { %v5595_v38 = vmov %v4848_v11  ;;  %v5596_v46 = vmov %v4850_v23  ;;  %v5601_v22 = vmov %v1830_v0  ;;  %v5607_v12 = vmov %v4824_v34 }
 0x28a   : > { %v5600_v23 = vmov %v5596_v46  ;;  %v5608_v11 = vmov %v5595_v38  ;;  %v5609_v10 = vmov %v5594_v49  ;;  %v5610_v6 = vmov %v5589_v40 }
 0x28b   : > { %v5611_v5 = vmov %v5584_v56  ;;  %v5612_v4 = vmov %v5579_v18  ;;  %v5613_v3 = vmov %v5578_v55  ;;  %v5614_v21 = vmov %v5583_v60 }
 0x28c   : > { %v5615_v20 = vmov %v4819_v33  ;;  %v5616_v15 = vmov %v5593_v41  ;;  %v5617_v14 = vmov %v5592_v44  ;;  %v5618_v13 = vmov %v5588_v52 }
 0x28d   : > { %v5619_v9 = vmov %v5582_v62  ;;  %v5620_v8 = vmov %v5577_v47  ;;  %v5621_v7 = vmov %v5576_v61  ;;  %v1847_v53 = vmax.f32 (%p4853_p8), %v5580_v63, 1e-30 }
 0x28e   :  { %v1851_v7 = vmax.f32 %v5581_v54, 1e-30  ;;  %v1855_v58 = vmax.f32 %v5586_v28, 1e-30  ;;  %v1859_v35 = vmax.f32 %v5590_v45, 1e-30 }
 0x28f   :  { %2675 = vrsqrt.f32 %v1847_v53  ;;  %v1863_v51 = vmax.f32 %v1830_v0, 1e-30  ;;  %v1867_v43 = vmax.f32 %v5596_v46, 1e-30  ;;  %v1871_v37 = vmax.f32 %v5591_v30, 1e-30 }
 0x290   :  { %2677 = vrsqrt.f32 %v1851_v7  ;;  %v1875_v59 = vmax.f32 %v5587_v27, 1e-30  ;;  %v5622_v23 = vmov 0 }
 0x291   :  { %2679 = vrsqrt.f32 %v1855_v58 }
 0x292   :  { %2681 = vrsqrt.f32 %v1859_v35 }
 0x293   :  { %2683 = vrsqrt.f32 %v1863_v51 }
 0x294   :  { %2685 = vrsqrt.f32 %v1867_v43 }
 0x295   :  { %2687 = vrsqrt.f32 %v1871_v37  ;;  %v5642_v37 = vmov 0 }
 0x296   :  { %2689 = vrsqrt.f32 %v1875_v59 }
 0x299   :  { %v2676_v22 = vpop.eup %2675 }
 0x29a   :  { %v2678_v20 = vpop.eup %2677  ;;  %v1849_v25 = vmul.f32 %v2676_v22, %v5580_v63  ;;  %v1850_v6 = vmul.f32 %v2676_v22, %v5576_v61 }
 0x29b   :  { %v2680_v3 = vpop.eup %2679  ;;  %v1853_v21 = vmul.f32 %v2678_v20, %v5581_v54  ;;  %v1854_v26 = vmul.f32 %v2678_v20, %v5577_v47 }
 0x29c   :  { %v2682_v14 = vpop.eup %2681  ;;  %v1857_v13 = vmul.f32 %v2680_v3, %v5586_v28  ;;  %v4950_v12 = vmul.f32 %v2680_v3, %v5582_v62  ;;  %v5624_v62 = vmov 0 }
 0x29d   :  { %v2684_v11 = vpop.eup %2683  ;;  %v1861_v9 = vmul.f32 %v2682_v14, %v5590_v45  ;;  %vm4945_vm8 = vcmp.lt.f32.partialorder %v1849_v25, %v1853_v21  ;;  %v4953_v63 = vmul.f32 %v2682_v14, %v5588_v52  ;;  %v5646_v14 = vmov 0 }
 0x29e   :  { %v5623_v23 = vsel %vm4945_vm8, 4294967295, %v5622_v23  ;;  %v2686_v54 = vpop.eup %2685  ;;  %v1865_v61 = vmul.f32 %v2684_v11, %v1830_v0  ;;  %v1882_v47 = vsel %vm4945_vm8, %v1853_v21, %v1849_v25  ;;  %v1883_v28 = vsel %vm4945_vm8, %v1849_v25, %v1853_v21 }
 0x29f   :  { %v4960_v17 = vmul.f32 %v2684_v11, %v5592_v44  ;;  %v2688_v8 = vpop.eup %2687  ;;  %v1869_v5 = vmul.f32 %v2686_v54, %v5596_v46  ;;  %vm4963_vm9 = vcmp.lt.f32.partialorder %v1857_v13, %v1861_v9  ;;  %v4968_v52 = vmul.f32 %v2686_v54, %v5593_v41 }
 0x2a0   :  { %v5625_v62 = vsel %vm4963_vm9, 4294967295, %v5624_v62  ;;  %v4972_v4 = vsel %vm4945_vm8, %v1854_v26, %v1850_v6  ;;  %v2690_v50 = vpop.eup %2689  ;;  %v1873_v2 = vmul.f32 %v2688_v8, %v5591_v30  ;;  %v1891_v10 = vsel %vm4963_vm9, %v1861_v9, %v1857_v13 }
 0x2a1   :  { %v1892_v31 = vsel %vm4963_vm9, %v1857_v13, %v1861_v9  ;;  %v4980_v19 = vmul.f32 %v2688_v8, %v4819_v33  ;;  %v1877_v16 = vmul.f32 %v2690_v50, %v5587_v27  ;;  %vm4983_vm10 = vcmp.lt.f32.partialorder %v1865_v61, %v1869_v5 }
 0x2a2   :  { %vm4987_vm11 = vcmp.lt.f32.partialorder %v1883_v28, %v1891_v10  ;;  %v4992_v30 = vmul.f32 %v2690_v50, %v5583_v60  ;;  %v1900_v44 = vsel %vm4983_vm10, %v1869_v5, %v1865_v61  ;;  %v1901_v33 = vsel %vm4983_vm10, %v1865_v61, %v1869_v5 }
 0x2a3   :  { %v1918_v27 = vsel %vm4987_vm11, %v1891_v10, %v1883_v28  ;;  %v1919_v42 = vsel %vm4987_vm11, %v1883_v28, %v1891_v10  ;;  %vm5002_vm12 = vcmp.lt.f32.partialorder %v1873_v2, %v1877_v16  ;;  %vm5006_vm13 = vcmp.lt.f32.partialorder %v1892_v31, %v1900_v44 }
 0x2a4   :  { %vm5010_vm14 = vcmp.lt.f32.partialorder %v1882_v47, %v1918_v27  ;;  %v5016_v57 = vsel %vm4945_vm8, %v1850_v6, %v1854_v26  ;;  %v1909_v29 = vsel %vm5002_vm12, %v1877_v16, %v1873_v2  ;;  %v1910_v41 = vsel %vm5002_vm12, %v1873_v2, %v1877_v16 }
 0x2a5   :  { %v1927_v24 = vsel %vm5006_vm13, %v1900_v44, %v1892_v31  ;;  %v1928_v48 = vsel %vm5006_vm13, %v1892_v31, %v1900_v44  ;;  %vm5026_vm15 = vcmp.lt.f32.partialorder %v1901_v33, %v1909_v29  ;;  %v1945_v0 = vsel %vm5010_vm14, %v1918_v27, %v1882_v47 }
 0x2a6   :  { %v1946_v46 = vsel %vm5010_vm14, %v1882_v47, %v1918_v27  ;;  %vm5034_vm0 = vcmp.lt.f32.partialorder %v1919_v42, %v1927_v24  ;;  %v1936_v7 = vsel %vm5026_vm15, %v1909_v29, %v1901_v33  ;;  %v1937_v58 = vsel %vm5026_vm15, %v1901_v33, %v1909_v29 }
 0x2a7   :  { %v1954_v35 = vsel %vm5034_vm0, %v1927_v24, %v1919_v42  ;;  %v1955_v51 = vsel %vm5034_vm0, %v1919_v42, %v1927_v24  ;;  %vm5046_vm1 = vcmp.lt.f32.partialorder %v1928_v48, %v1936_v7  ;;  %vm5050_vm2 = vcmp.lt.f32.partialorder %v1937_v58, %v1910_v41 }
 0x2a8   :  { %v5643_v37 = vsel %vm5050_vm2, 4294967295, %v5642_v37  ;;  %vm5054_vm3 = vcmp.lt.f32.partialorder %v1946_v46, %v1954_v35  ;;  %v5062_v22 = vsel %vm4963_vm9, %v4953_v63, %v4950_v12  ;;  %v1963_v20 = vsel %vm5046_vm1, %v1936_v7, %v1928_v48 }
 0x2a9   :  { %v1964_v25 = vsel %vm5046_vm1, %v1928_v48, %v1936_v7  ;;  %v1972_v3 = vsel %vm5050_vm2, %v1910_v41, %v1937_v58  ;;  %v1973_v21 = vsel %vm5050_vm2, %v1937_v58, %v1910_v41  ;;  %v1981_v6 = vsel %vm5054_vm3, %v1954_v35, %v1946_v46 }
 0x2aa   :  { %v1982_v26 = vsel %vm5054_vm3, %v1946_v46, %v1954_v35  ;;  %vm5076_vm4 = vcmp.lt.f32.partialorder %v1955_v51, %v1963_v20  ;;  %vm5080_vm5 = vcmp.lt.f32.partialorder %v1964_v25, %v1972_v3  ;;  %v5648_v13 = vmov 0 }
 0x2ab   :  { %v5647_v14 = vsel %vm5076_vm4, 4294967295, %v5646_v14  ;;  %v5649_v13 = vsel %vm5080_vm5, 4294967295, %v5648_v13  ;;  %v1990_v11 = vsel %vm5076_vm4, %v1963_v20, %v1955_v51  ;;  %v1991_v9 = vsel %vm5076_vm4, %v1955_v51, %v1963_v20 }
 0x2ac   :  { %v1999_v54 = vsel %vm5080_vm5, %v1972_v3, %v1964_v25  ;;  %v2000_v61 = vsel %vm5080_vm5, %v1964_v25, %v1972_v3  ;;  %vm5092_vm6 = vcmp.lt.f32.partialorder %v1945_v0, %v1981_v6  ;;  %v5650_v47 = vmov 0 }
 0x2ad   :  { %v5651_v47 = vsel %vm5092_vm6, 4294967295, %v5650_v47  ;;  %vm5096_vm7 = vcmp.lt.f32.partialorder %v1982_v26, %v1990_v11  ;;  %v5652_v28 = vmov 0  ;;  %vm5100_vm2 = vcmp.lt.f32.partialorder %v1991_v9, %v1999_v54 }
 0x2ae   :  { %v5653_v28 = vsel %vm5096_vm7, 4294967295, %v5652_v28  ;;  %v5654_v8 = vmov 0  ;;  %vm5104_vm8 = vcmp.lt.f32.partialorder %v2000_v61, %v1973_v21  ;;  %v5656_v5 = vmov 0 }
 0x2af   :  { %v5655_v8 = vsel %vm5100_vm2, 4294967295, %v5654_v8  ;;  %v5657_v5 = vsel %vm5104_vm8, 4294967295, %v5656_v5  ;;  %v2008_v50 = vsel %vm5092_vm6, %v1981_v6, %v1945_v0  ;;  %v2009_v2 = vsel %vm5092_vm6, %v1945_v0, %v1981_v6 }
 0x2b0   :  { %v2017_v10 = vsel %vm5096_vm7, %v1990_v11, %v1982_v26  ;;  %v2018_v31 = vsel %vm5096_vm7, %v1982_v26, %v1990_v11  ;;  %v2026_v16 = vsel %vm5100_vm2, %v1999_v54, %v1991_v9  ;;  %v2027_v44 = vsel %vm5100_vm2, %v1991_v9, %v1999_v54 }
 0x2b1   :  { %v2035_v33 = vsel %vm5104_vm8, %v1973_v21, %v2000_v61  ;;  %v5124_v27 = vsel %vm5104_vm8, %v2000_v61, %v1973_v21  ;;  %vm5126_vm6 = vcmp.lt.f32.partialorder %v2009_v2, %v2017_v10  ;;  %vm5130_vm7 = vcmp.lt.f32.partialorder %v2018_v31, %v2026_v16 }
 0x2b2   :  { %v5660_v29 = vmov 0  ;;  %vm5134_vm5 = vcmp.lt.f32.partialorder %v2027_v44, %v2035_v33  ;;  %v5662_v41 = vmov 0  ;;  %v1894_v24 = vsel %vm4963_vm9, %v4950_v12, %v4953_v63 }
 0x2b3   :  { %v5661_v29 = vsel %vm5130_vm7, 4294967295, %v5660_v29  ;;  %v5663_v41 = vsel %vm5134_vm5, 4294967295, %v5662_v41  ;;  %v2044_v48 = vsel %vm5126_vm6, %v2017_v10, %v2009_v2  ;;  %v2045_v0 = vsel %vm5126_vm6, %v2009_v2, %v2017_v10 }
 0x2b4   :  { %v2053_v46 = vsel %vm5130_vm7, %v2026_v16, %v2018_v31  ;;  %v2054_v7 = vsel %vm5130_vm7, %v2018_v31, %v2026_v16  ;;  %v2062_v58 = vsel %vm5134_vm5, %v2035_v33, %v2027_v44  ;;  %v2063_v35 = vsel %vm5134_vm5, %v2027_v44, %v2035_v33 }
 0x2b5   :  { %vm5154_vm2 = vcmp.lt.f32.partialorder %v2008_v50, %v2044_v48  ;;  %vm5158_vm8 = vcmp.lt.f32.partialorder %v2045_v0, %v2053_v46  ;;  %v5666_v63 = vmov 0  ;;  %vm5170_vm5 = vcmp.lt.f32.partialorder %v2054_v7, %v2062_v58 }
 0x2b6   :  { %v5667_v63 = vsel %vm5158_vm8, 4294967295, %v5666_v63  ;;  %v2071_v51 = vsel %vm5154_vm2, %v2044_v48, %v2008_v50  ;;  %v2072_v20 = vsel %vm5154_vm2, %v2008_v50, %v2044_v48  ;;  %v2080_v25 = vsel %vm5158_vm8, %v2053_v46, %v2045_v0 }
 0x2b7   :  { %v2081_v3 = vsel %vm5158_vm8, %v2045_v0, %v2053_v46  ;;  %v5668_v21 = vmov 0  ;;  %vm5175_vm7 = vcmp.lt.f32.partialorder %v2063_v35, %v5124_v27  ;;  %v5670_v6 = vmov 0 }
 0x2b8   :  { %v5669_v21 = vsel %vm5170_vm5, 4294967295, %v5668_v21  ;;  %v5671_v6 = vsel %vm5175_vm7, 4294967295, %v5670_v6  ;;  %vm5179_vm9 = vcmp.lt.f32.partialorder %v2072_v20, %v2080_v25  ;;  %v5672_v26 = vmov 0 }
 0x2b9   :  { %v5673_v26 = vsel %vm5179_vm9, 4294967295, %v5672_v26  ;;  %v1902_v11 = vsel %vm4983_vm10, %v4968_v52, %v4960_v17  ;;  %v2089_v9 = vsel %vm5170_vm5, %v2062_v58, %v2054_v7  ;;  %v2090_v54 = vsel %vm5170_vm5, %v2054_v7, %v2062_v58 }
 0x2ba   :  { %v2098_v61 = vsel %vm5175_vm7, %v5124_v27, %v2063_v35  ;;  %v2099_v50 = vsel %vm5175_vm7, %v2063_v35, %v5124_v27  ;;  %v2107_v2 = vsel %vm5179_vm9, %v2080_v25, %v2072_v20  ;;  %v2108_v10 = vsel %vm5179_vm9, %v2072_v20, %v2080_v25 }
 0x2bb   :  { %vm5201_vm4 = vcmp.lt.f32.partialorder %v2081_v3, %v2089_v9  ;;  %v5674_v31 = vmov 0  ;;  %vm5205_vm8 = vcmp.lt.f32.partialorder %v2090_v54, %v2098_v61  ;;  %v5676_v16 = vmov 0 }
 0x2bc   :  { %v5675_v31 = vsel %vm5201_vm4, 4294967295, %v5674_v31  ;;  %v5677_v16 = vsel %vm5205_vm8, 4294967295, %v5676_v16  ;;  %v2116_v44 = vsel %vm5201_vm4, %v2089_v9, %v2081_v3  ;;  %v2117_v33 = vsel %vm5201_vm4, %v2081_v3, %v2089_v9 }
 0x2bd   :  { %v2125_v27 = vsel %vm5205_vm8, %v2098_v61, %v2090_v54  ;;  %v2126_v48 = vsel %vm5205_vm8, %v2090_v54, %v2098_v61  ;;  %vm5678_vm7 = vcmask 1040384   ;;  %v5222_v46 = vsel %vm4983_vm10, %v4960_v17, %v4968_v52 }
 0x2be   :  { %v2162_v0 = vsel %vm5678_vm7, %v2071_v51, %v2107_v2  ;;  %v5228_v7 = vsel %vm5002_vm12, %v4992_v30, %v4980_v19  ;;  %v1920_v58 = vsel %vm4987_vm11, %v5062_v22, %v5016_v57  ;;  %vm5679_vm8 = vcmask 1041408  }
 0x2bf   :  { %v2164_v35 = vsel %vm5679_vm8, %v2162_v0, %v2108_v10  ;;  %v1921_v51 = vsel %vm4987_vm11, %v5016_v57, %v5062_v22  ;;  %v1929_v17 = vsel %vm5006_vm13, %v1902_v11, %v1894_v24  ;;  %v5243_v52 = vsel %vm5006_vm13, %v1894_v24, %v1902_v11 }
 0x2c0   :  { %vm5680_vm7 = vcmask 1042432   ;;  %v5250_v25 = vsel %vm5026_vm15, %v5228_v7, %v5222_v46  ;;  %v1947_v3 = vsel %vm5010_vm14, %v1920_v58, %v4972_v4  ;;  %v1948_v57 = vsel %vm5010_vm14, %v4972_v4, %v1920_v58 }
 0x2c1   :  { %v2166_v20 = vsel %vm5680_vm7, %v2164_v35, %v2116_v44  ;;  %vm5681_vm8 = vcmask 1043456   ;;  %v1956_v24 = vsel %vm5034_vm0, %v1929_v17, %v1921_v51  ;;  %v1957_v11 = vsel %vm5034_vm0, %v1921_v51, %v1929_v17 }
 0x2c2   :  { %v2168_v22 = vsel %vm5681_vm8, %v2166_v20, %v2117_v33  ;;  %v1965_v9 = vsel %vm5046_vm1, %v5250_v25, %v5243_v52  ;;  %vm5682_vm7 = vcmask 1044480   ;;  %v1983_v4 = vsel %vm5054_vm3, %v1956_v24, %v1948_v57 }
 0x2c3   :  { %v2170_v54 = vsel %vm5682_vm7, %v2168_v22, %v2125_v27  ;;  %v1984_v61 = vsel %vm5054_vm3, %v1948_v57, %v1956_v24  ;;  %vm5683_vm8 = vnez %v5647_v14  ;;  %vm5684_vm4 = vcmask 1045504  }
 0x2c4   :  { %v1992_v2 = vsel %vm5683_vm8, %v1965_v9, %v1957_v11  ;;  %v2172_v10 = vsel %vm5684_vm4, %v2170_v54, %v2126_v48  ;;  %vm5685_vm5 = vnez %v5651_v47  ;;  %vm5686_vm9 = vnez %v5653_v28 }
 0x2c5   :  { %v2010_v44 = vsel %vm5685_vm5, %v1983_v4, %v1947_v3  ;;  %v2011_v33 = vsel %vm5685_vm5, %v1947_v3, %v1983_v4  ;;  %v2019_v27 = vsel %vm5686_vm9, %v1992_v2, %v1984_v61  ;;  %vm5687_vm7 = vcmask 1046528  }
 0x2c6   :  { %v2174_v0 = vsel %vm5687_vm7, %v2172_v10, %v2099_v50  ;;  %v2046_v58 = vsel %vm5126_vm6, %v2019_v27, %v2011_v33  ;;  %vm5688_vm8 = vnez %v5623_v23  ;;  %vm5689_vm4 = vnez %v5625_v62 }
 0x2c7   :  { %v1886_v48 = vsel %vm5688_vm8, %v5579_v18, %v5578_v55  ;;  %v1887_v35 = vsel %vm5688_vm8, %v5578_v55, %v5579_v18  ;;  %2175 = vst [vmem:[#allocation6] sm:$0xff] %v2174_v0  ;;  %v2073_v51 = vsel %vm5154_vm2, %v2046_v58, %v2010_v44  ;;  %v1895_v50 = vsel %vm5689_vm4, %v5589_v40, %v5584_v56 }
 0x2c8   :  { %v1896_v17 = vsel %vm5689_vm4, %v5584_v56, %v5589_v40  ;;  %v1904_v23 = vsel %vm4983_vm10, %v5595_v38, %v5594_v49  ;;  %2131 = vst [vmem:[#allocation5] sm:$0xff] %v2073_v51  ;;  %v1905_v55 = vsel %vm4983_vm10, %v5594_v49, %v5595_v38  ;;  %v1913_v18 = vsel %vm5002_vm12, %v5585_v32, %v4824_v34 }
 0x2c9   :  { %v1922_v62 = vsel %vm4987_vm11, %v1895_v50, %v1887_v35  ;;  %v1923_v56 = vsel %vm4987_vm11, %v1887_v35, %v1895_v50 }
 0x2ca   :  { %2724 = shalt.err (!%p2721_p13)
}
 0x2cb   :  { %s2725_s5 = scalar_lea.hbm %s5540_s2, 128 }
 0x2cc   :  { %p2726_p0 = scmp.ne.s32.totalorder %s5540_s2, %s2725_s5  ;;  %p2729_p1 = scmp.lt.u32.totalorder %s2725_s5, %s5540_s2 }
 0x2ce   :  { %p2731_p2 = pnand %p2729_p1, %p2726_p0 }
 0x2d0   :  { %2734 = shalt.err (!%p2731_p2)
}
 0x2d1   :  { %2197 = dma.vmem_to_hbm [thread:$0]  %s2195_s28, 128, %s5540_s2, [#allocation7]   ;;  %v1931_v40 = vsel %vm5006_vm13, %v1904_v23, %v1896_v17  ;;  %v1932_v49 = vsel %vm5006_vm13, %v1896_v17, %v1904_v23  ;;  %v1940_v38 = vsel %vm5026_vm15, %v1913_v18, %v1905_v55  ;;  %v1949_v15 = vsel %vm5010_vm14, %v1922_v62, %v1886_v48 }
 0x2d2   :  { %v1950_v45 = vsel %vm5010_vm14, %v1886_v48, %v1922_v62  ;;  %v1958_v20 = vsel %vm5034_vm0, %v1931_v40, %v1923_v56  ;;  %v1959_v3 = vsel %vm5034_vm0, %v1923_v56, %v1931_v40  ;;  %v1967_v57 = vsel %vm5046_vm1, %v1940_v38, %v1932_v49  ;;  %s2991_s2 = smov [#allocation5]   ;;  %s2992_s13 = smov [#allocation8]  }
 0x2d3   :  { %v1985_v1 = vsel %vm5054_vm3, %v1958_v20, %v1950_v45  ;;  %v1986_v22 = vsel %vm5054_vm3, %v1950_v45, %v1958_v20  ;;  %vm5690_vm10 = vnez %v5647_v14  ;;  %v1912_v60 = vsel %vm5002_vm12, %v4980_v19, %v4992_v30  ;;  %s2181_s12 = sshll.u32 %s2991_s2, 4  ;;  %s2203_s14 = sshll.u32 %s2992_s13, 4  ;;  %s5482_s12 = int_to_ptr.vmem [resolvable:$true] %s2181_s12  ;;  %s5492_s14 = int_to_ptr.vmem [resolvable:$true] %s2203_s14 }
 0x2d4   :  { %v1994_v24 = vsel %vm5690_vm10, %v1967_v57, %v1959_v3  ;;  %v2012_v53 = vsel %vm5685_vm5, %v1985_v1, %v1949_v15  ;;  %v2013_v54 = vsel %vm5685_vm5, %v1949_v15, %v1985_v1  ;;  %v1939_v59 = vsel %vm5026_vm15, %v5222_v46, %v5228_v7  ;;  %s2735_s15 = scalar_lea.vmem %s5482_s12, 1024  ;;  %p2740_p4 = scmp.lt.s32.totalorder %s5482_s12, %s5482_s12 }
 0x2d5   :  { %v2021_v4 = vsel %vm5686_vm9, %v1994_v24, %v1986_v22  ;;  %v1966_v19 = vsel %vm5046_vm1, %v5243_v52, %v5250_v25  ;;  %vm5691_vm11 = vnez %v5643_v37  ;;  %v1993_v47 = vsel %vm5690_vm10, %v1957_v11, %v1965_v9  ;;  %p2736_p3 = scmp.ne.s32.totalorder %s5482_s12, %s2735_s15  ;;  %p2741_p5 = scmp.lt.s32.totalorder %s2735_s15, %s2735_s15 }
 0x2d6   :  { %v2048_v10 = vsel %vm5126_vm6, %v2021_v4, %v2013_v54  ;;  %v1974_v30 = vsel %vm5691_vm11, %v1912_v60, %v1939_v59  ;;  %vm5692_vm13 = vnez %v5649_v13  ;;  %v2020_v7 = vsel %vm5686_vm9, %v1984_v61, %v1992_v2 }
 0x2d7   :  { %v2075_v0 = vsel %vm5154_vm2, %v2048_v10, %v2012_v53  ;;  %v2001_v46 = vsel %vm5692_vm13, %v1974_v30, %v1966_v19  ;;  %v2047_v48 = vsel %vm5126_vm6, %v2011_v33, %v2019_v27  ;;  %vm5693_vm14 = vnez %v5655_v8  ;;  %p2742_p6 = por %p2741_p5, %p2740_p4 }
 0x2d8   :  { %2132 = vst [vmem:[#allocation8] sm:$0xff] %v2075_v0  ;;  %v2028_v52 = vsel %vm5693_vm14, %v2001_v46, %v1993_v47  ;;  %v2074_v25 = vsel %vm5154_vm2, %v2010_v44, %v2046_v58  ;;  %v1914_v11 = vsel %vm5002_vm12, %v4824_v34, %v5585_v32  ;;  %v1941_v9 = vsel %vm5026_vm15, %v1905_v55, %v1913_v18 }
 0x2d9   :  { %vm5694_vm0 = vnez %v5661_v29  ;;  %v1968_v2 = vsel %vm5046_vm1, %v1932_v49, %v1940_v38  ;;  %v1976_v33 = vsel %vm5691_vm11, %v1914_v11, %v1941_v9  ;;  %v1995_v44 = vsel %vm5690_vm10, %v1959_v3, %v1967_v57  ;;  %p2743_p7 = pnand %p2742_p6, %p2736_p3 }
 0x2da   :  { %v2055_v61 = vsel %vm5694_vm0, %v2028_v52, %v2020_v7  ;;  %vm5695_vm3 = vnez %v5667_v63  ;;  %v2003_v32 = vsel %vm5692_vm13, %v1976_v33, %v1968_v2  ;;  %v2022_v34 = vsel %vm5686_vm9, %v1986_v22, %v1994_v24 }
 0x2db   :  { %v2082_v27 = vsel %vm5695_vm3, %v2055_v61, %v2047_v48  ;;  %v2049_v36 = vsel %vm5126_vm6, %v2013_v54, %v2021_v4  ;;  %vm5696_vm12 = vnez %v5673_v26  ;;  %v2030_v43 = vsel %vm5693_vm14, %v2003_v32, %v1995_v44 }
 0x2dc   :  { %v2109_v39 = vsel %vm5696_vm12, %v2082_v27, %v2074_v25  ;;  %v2076_v14 = vsel %vm5154_vm2, %v2012_v53, %v2048_v10  ;;  %v2110_v58 = vsel %vm5696_vm12, %v2074_v25, %v2082_v27  ;;  %v2057_v28 = vsel %vm5694_vm0, %v2030_v43, %v2022_v34 }
 0x2dd   :  { %2134 = vst [vmem:[#allocation5 + $0x8] sm:$0xff] %v2109_v39  ;;  %2138 = vst [vmem:[#allocation5 + $0x10] sm:$0xff] %v2110_v58  ;;  %v1975_v42 = vsel %vm5691_vm11, %v1939_v59, %v1912_v60  ;;  %v2002_v35 = vsel %vm5692_vm13, %v1966_v19, %v1974_v30  ;;  %v2029_v51 = vsel %vm5693_vm14, %v1993_v47, %v2001_v46  ;;  %vm5697_vm9 = vnez %v5657_v5 }
 0x2de   :  { %v2084_v12 = vsel %vm5695_vm3, %v2057_v28, %v2049_v36  ;;  %v2037_v50 = vsel %vm5697_vm9, %v1975_v42, %v2002_v35  ;;  %v2056_v17 = vsel %vm5694_vm0, %v2020_v7, %v2028_v52  ;;  %v2083_v23 = vsel %vm5695_vm3, %v2047_v48, %v2055_v61 }
 0x2df   :  { %v2111_v55 = vsel %vm5696_vm12, %v2084_v12, %v2076_v14  ;;  %v2112_v18 = vsel %vm5696_vm12, %v2076_v14, %v2084_v12  ;;  %vm5698_vm15 = vnez %v5663_v41  ;;  %v1977_v56 = vsel %vm5691_vm11, %v1941_v9, %v1914_v11 }
 0x2e0   :  { %v2064_v62 = vsel %vm5698_vm15, %v2037_v50, %v2029_v51  ;;  %2136 = vst [vmem:[#allocation8 + $0x8] sm:$0xff] %v2111_v55  ;;  %2140 = vst [vmem:[#allocation8 + $0x10] sm:$0xff] %v2112_v18  ;;  %vm5699_vm1 = vnez %v5669_v21  ;;  %v2004_v49 = vsel %vm5692_vm13, %v1968_v2, %v1976_v33  ;;  %v2031_v38 = vsel %vm5693_vm14, %v1995_v44, %v2003_v32 }
 0x2e1   :  { %v2091_v40 = vsel %vm5699_vm1, %v2064_v62, %v2056_v17  ;;  %v2058_v26 = vsel %vm5694_vm0, %v2022_v34, %v2030_v43  ;;  %vm5700_vm2 = vnez %v5675_v31  ;;  %v2039_v37 = vsel %vm5697_vm9, %v1977_v56, %v2004_v49 }
 0x2e2   :  { %v2118_v15 = vsel %vm5700_vm2, %v2091_v40, %v2083_v23  ;;  %v2085_v45 = vsel %vm5695_vm3, %v2049_v36, %v2057_v28  ;;  %v2119_v20 = vsel %vm5700_vm2, %v2083_v23, %v2091_v40  ;;  %v2066_v13 = vsel %vm5698_vm15, %v2039_v37, %v2031_v38 }
 0x2e3   :  { %2142 = vst [vmem:[#allocation5 + $0x18] sm:$0xff] %v2118_v15  ;;  %2146 = vst [vmem:[#allocation5 + $0x20] sm:$0xff] %v2119_v20  ;;  %v2038_v8 = vsel %vm5697_vm9, %v2002_v35, %v1975_v42  ;;  %v2065_v29 = vsel %vm5698_vm15, %v2029_v51, %v2037_v50  ;;  %v2092_v63 = vsel %vm5699_vm1, %v2056_v17, %v2064_v62  ;;  %vm5701_vm5 = vnez %v5671_v6 }
 0x2e4   :  { %v2093_v3 = vsel %vm5699_vm1, %v2066_v13, %v2058_v26  ;;  %v2100_v57 = vsel %vm5701_vm5, %v2038_v8, %v2065_v29  ;;  %v2040_v1 = vsel %vm5697_vm9, %v2004_v49, %v1977_v56  ;;  %v2067_v22 = vsel %vm5698_vm15, %v2031_v38, %v2039_v37 }
 0x2e5   :  { %v2120_v24 = vsel %vm5700_vm2, %v2093_v3, %v2085_v45  ;;  %v2121_v60 = vsel %vm5700_vm2, %v2085_v45, %v2093_v3  ;;  %vm5702_vm6 = vnez %v5677_v16  ;;  %v2094_v54 = vsel %vm5699_vm1, %v2058_v26, %v2066_v13 }
 0x2e6   :  { %v2127_v53 = vsel %vm5702_vm6, %v2100_v57, %v2092_v63  ;;  %2144 = vst [vmem:[#allocation8 + $0x18] sm:$0xff] %v2120_v24  ;;  %2148 = vst [vmem:[#allocation8 + $0x20] sm:$0xff] %v2121_v60  ;;  %v2102_v5 = vsel %vm5701_vm5, %v2040_v1, %v2067_v22  ;;  %v2128_v41 = vsel %vm5702_vm6, %v2092_v63, %v2100_v57 }
 0x2e7   :  { %2150 = vst [vmem:[#allocation5 + $0x28] sm:$0xff] %v2127_v53  ;;  %v2101_v31 = vsel %vm5701_vm5, %v2065_v29, %v2038_v8  ;;  %v2103_v21 = vsel %vm5701_vm5, %v2067_v22, %v2040_v1  ;;  %v2129_v4 = vsel %vm5702_vm6, %v2102_v5, %v2094_v54  ;;  %2154 = vst [vmem:[#allocation5 + $0x30] sm:$0xff] %v2128_v41 }
 0x2e8   :  { %v2130_v59 = vsel %vm5702_vm6, %v2094_v54, %v2102_v5  ;;  %2158 = vst [vmem:[#allocation5 + $0x38] sm:$0xff] %v2101_v31  ;;  %2160 = vst [vmem:[#allocation8 + $0x38] sm:$0xff] %v2103_v21 }
 0x2e9   :  { %2152 = vst [vmem:[#allocation8 + $0x28] sm:$0xff] %v2129_v4  ;;  %2156 = vst [vmem:[#allocation8 + $0x30] sm:$0xff] %v2130_v59 }
 0x2ea   :  { %2746 = shalt.err (!%p2743_p7)
}
 0x2eb   :  { %s2747_s18 = scalar_lea.hbm %s5539_s1, 1024 }
 0x2ec   :  { %p2748_p8 = scmp.ne.s32.totalorder %s5539_s1, %s2747_s18  ;;  %p2751_p9 = scmp.lt.u32.totalorder %s2747_s18, %s5539_s1 }
 0x2ee   :  { %p2753_p10 = pnand %p2751_p9, %p2748_p8 }
 0x2f0   :  { %2756 = shalt.err (!%p2753_p10)
}
 0x2f1   :  { %2187 = dma.vmem_to_hbm [thread:$0]  %s5482_s12, 1024, %s5539_s1, [#allocation4], %s2986_s22, %s2986_s22, %s2987_s23  }
 0x2f2   :  { %s2757_s26 = scalar_lea.vmem %s5492_s14, 1024  ;;  %p2762_p12 = scmp.lt.s32.totalorder %s5492_s14, %s5492_s14 }
 0x2f3   :  { %p2758_p11 = scmp.ne.s32.totalorder %s5492_s14, %s2757_s26  ;;  %p2763_p13 = scmp.lt.s32.totalorder %s2757_s26, %s2757_s26 }
 0x2f5   :  { %p2764_p0 = por %p2763_p13, %p2762_p12 }
 0x2f7   :  { %p2765_p1 = pnand %p2764_p0, %p2758_p11 }
 0x2f9   :  { %2768 = shalt.err (!%p2765_p1)
}
 0x2fa   :  { %s2769_s29 = scalar_lea.hbm %s5541_s3, 1024 }
 0x2fb   :  { %p2770_p2 = scmp.ne.s32.totalorder %s5541_s3, %s2769_s29  ;;  %p2773_p3 = scmp.lt.u32.totalorder %s2769_s29, %s5541_s3 }
 0x2fd   :  { %p2775_p4 = pnand %p2773_p3, %p2770_p2 }
 0x2ff   :  { %2778 = shalt.err (!%p2775_p4)
}
 0x300   :  { %2209 = dma.vmem_to_hbm [thread:$0]  %s5492_s14, 1024, %s5541_s3, [#allocation7], %s2986_s22, %s2986_s22, %s2987_s23  }
 0x301   :  { %2881 = dma.done.wait [#allocation4], 1024  }
 0x302   :  { %2882 = vsyncadd [#allocation4], 4294966272 }
 0x303   :  { %2883 = dma.done.wait [#allocation7], 1152  }
 0x304   :  { %2884 = vsyncadd [#allocation7], 4294966144 }
 0x305   :  { %2219 = vsyncpa [#allocation3], 1 }
 0x306   :  { %2220 = vsyncpa [#allocation4], 1 }
 0x307   :  { %2221 = vsyncpa [#allocation7], 1 }

</bundles_post_ra>
